<compile_context>
chip_gen: v6e
topology: v6e:2x2x1
jax: 0.10.0
libtpu: 0.0.40
codegen_flags: <defaults>
</compile_context>

<pallas_src>
import functools

import jax
import jax.numpy as jnp
from jax import lax
from jax.experimental import pallas as pl
from jax.experimental.pallas import tpu as pltpu


# Safe on v7x (64 MiB physical / 32 MiB scoped default) and plenty for our tiny
# blocks; v5e/v6e (128 MiB) need no more at these sizes.
_VMEM_LIMIT = 32 * 1024 * 1024


# ----------------------------------------------------------------------------
# tiling helpers
# ----------------------------------------------------------------------------
def _hw_tile(hw, batch, cap=8192):
    """Lane-axis tile over flattened H*W: always a multiple of 128 or == hw.

    Tries to give the pallas_call >= 2 grid steps (v7x megacore) while keeping
    blocks far inside VMEM on every generation.
    """
    cap = max(128, (cap // 128) * 128)
    if hw <= 128:
        return hw
    if batch >= 2:
        return hw if hw <= cap else cap          # grid >= batch >= 2 steps
    # batch == 1: split HW so this call still has >= 2 grid steps
    t = max(128, (pl.cdiv(hw, 2) // 128) * 128)
    return min(cap, t)


def _win_batch(n, p, vmem_cap_bytes=2 << 20):
    """Windows per grid step: as many as a ~2 MiB atn block allows, capped at 128,
    preferring exact divisors of n (no masked tail) and keeping >= 2 grid steps."""
    cap = max(1, min(128, vmem_cap_bytes // max(1, p * p * 2)))
    if n <= 1:
        return 1
    best = 1
    for d in range(1, min(n, cap) + 1):
        if n % d == 0 and n // d >= 2:
            best = d
    return best


# ----------------------------------------------------------------------------
# Pallas kernels
# ----------------------------------------------------------------------------
def _proj_in_kernel(x_ref, w_ref, b_ref, z_ref):
    """project_inp (1x1 conv + folded BN), transposed: z = W^T @ x, lane-dense on HW."""
    x = x_ref[0].astype(jnp.bfloat16)                     # (C, t); module input is f32
    z = jnp.dot(w_ref[...], x, preferred_element_type=jnp.float32)   # (2C, t)
    z_ref[0] = (z + b_ref[...]).astype(z_ref.dtype)


def _proj_out_kernel(y_ref, w_ref, b_ref, o_ref):
    """project_out (1x1 conv), transposed single K=C matmul, lane-dense on HW."""
    o = jnp.dot(w_ref[...], y_ref[0], preferred_element_type=jnp.float32)  # (C, t)
    o_ref[0] = (o + b_ref[...]).astype(o_ref.dtype)


def _win_attn_kernel(q_ref, v_ref, y_ref, atn_ref):
    """Batched per-window self-attention.

    q_ref: (nb, P, c3) bf16 position-major, v_ref: (nb, c3, P) bf16 channel-major.
    atn = softmax(q q^T) (f32 math, bf16 store); y channel-major = (atn @ v)^T.
    """
    q = q_ref[...]
    v = v_ref[...]
    s = jnp.einsum("npc,nqc->npq", q, q,
                   preferred_element_type=jnp.float32)     # (nb, P, P) f32
    s = s - jnp.max(s, axis=-1, keepdims=True)
    e = jnp.exp(s)
    inv = pl.reciprocal(jnp.sum(e, axis=-1, keepdims=True), approx=True)
    p = e * inv
    atn_ref[...] = p.astype(atn_ref.dtype)
    y = jnp.einsum("ncq,npq->ncp", v, p.astype(jnp.bfloat16),
                   preferred_element_type=jnp.float32)     # (nb, c3, P)
    y_ref[...] = y.astype(y_ref.dtype)


# ----------------------------------------------------------------------------
# pallas_call wrappers
# ----------------------------------------------------------------------------
def proj_in(x3d, w_t, b_col):
    """x3d: (B, C, HW) f32; w_t: (2C, C) bf16; b_col: (2C, 1) f32 -> (B, 2C, HW) bf16."""
    B, C, HW = x3d.shape
    C2 = w_t.shape[0]
    t = _hw_tile(HW, B)
    return pl.pallas_call(
        _proj_in_kernel,
        grid=(B, pl.cdiv(HW, t)),
        in_specs=[
            pl.BlockSpec((1, C, t), lambda b, i: (b, 0, i)),
            pl.BlockSpec((C2, C), lambda b, i: (0, 0)),    # VMEM-resident weights
            pl.BlockSpec((C2, 1), lambda b, i: (0, 0)),
        ],
        out_specs=pl.BlockSpec((1, C2, t), lambda b, i: (b, 0, i)),
        out_shape=jax.ShapeDtypeStruct((B, C2, HW), jnp.bfloat16),
        compiler_params=pltpu.CompilerParams(
            dimension_semantics=("parallel", "parallel"),
            vmem_limit_bytes=_VMEM_LIMIT),
    )(x3d, w_t, b_col)


def proj_out(ycat, w_t, b_col):
    """ycat: (B, C, HW) bf16; w_t: (C, C) bf16; b_col: (C, 1) f32 -> (B, C, HW) f32."""
    B, C, HW = ycat.shape
    t = _hw_tile(HW, B)
    return pl.pallas_call(
        _proj_out_kernel,
        grid=(B, pl.cdiv(HW, t)),
        in_specs=[
            pl.BlockSpec((1, C, t), lambda b, i: (b, 0, i)),
            pl.BlockSpec((C, C), lambda b, i: (0, 0)),
            pl.BlockSpec((C, 1), lambda b, i: (0, 0)),
        ],
        out_specs=pl.BlockSpec((1, C, t), lambda b, i: (b, 0, i)),
        out_shape=jax.ShapeDtypeStruct((B, C, HW), jnp.float32),
        compiler_params=pltpu.CompilerParams(
            dimension_semantics=("parallel", "parallel"),
            vmem_limit_bytes=_VMEM_LIMIT),
    )(ycat, w_t, b_col)


def window_attention(q, v):
    """q: (N, P, c3) bf16, v: (N, c3, P) bf16 -> (y (N, c3, P) bf16, atn (N, P, P) bf16)."""
    N, P, c3 = q.shape
    nb = _win_batch(N, P)
    y, atn = pl.pallas_call(
        _win_attn_kernel,
        grid=(N // nb,),
        in_specs=[
            pl.BlockSpec((nb, P, c3), lambda n: (n, 0, 0)),
            pl.BlockSpec((nb, c3, P), lambda n: (n, 0, 0)),
        ],
        out_specs=[
            pl.BlockSpec((nb, c3, P), lambda n: (n, 0, 0)),
            pl.BlockSpec((nb, P, P), lambda n: (n, 0, 0)),
        ],
        out_shape=[
            jax.ShapeDtypeStruct((N, c3, P), jnp.bfloat16),
            jax.ShapeDtypeStruct((N, P, P), jnp.bfloat16),
        ],
        compiler_params=pltpu.CompilerParams(
            dimension_semantics=("parallel",),
            vmem_limit_bytes=_VMEM_LIMIT),
    )(q, v)
    return y, atn


# ----------------------------------------------------------------------------
# window partition / unpartition glue (XLA, bf16, fused under the jit)
# ----------------------------------------------------------------------------
def _partition_qv(z, idx, c3, ws, shifts):
    """z: (B, 2C, H, W) bf16 -> q (N, P, c3) position-major, v (N, c3, P) channel-major."""
    B, _, H, W = z.shape
    chunk = z[:, idx * 2 * c3:(idx + 1) * 2 * c3]              # (B, 2*c3, H, W)
    if shifts > 0:
        chunk = jnp.roll(chunk, (-ws // 2, -ws // 2), axis=(2, 3))
    hw, ww = H // ws, W // ws
    qc, vc = chunk[:, :c3], chunk[:, c3:]
    q = qc.reshape(B, c3, hw, ws, ww, ws)
    q = jnp.transpose(q, (0, 2, 4, 3, 5, 1)).reshape(B * hw * ww, ws * ws, c3)
    v = vc.reshape(B, c3, hw, ws, ww, ws)
    v = jnp.transpose(v, (0, 2, 4, 1, 3, 5)).reshape(B * hw * ww, c3, ws * ws)
    return q, v


def _unpartition_y(y_cm, B, H, W, ws, c3, shifts):
    """y_cm: (N, c3, P) -> (B, c3, H, W)."""
    hw, ww = H // ws, W // ws
    y = y_cm.reshape(B, hw, ww, c3, ws, ws)
    y = jnp.transpose(y, (0, 3, 1, 4, 2, 5)).reshape(B, c3, H, W)
    if shifts > 0:
        y = jnp.roll(y, (ws // 2, ws // 2), axis=(2, 3))
    return y


# ----------------------------------------------------------------------------
# GMSA forward (everything NCHW; glue in plain JAX, hot paths in Pallas)
# ----------------------------------------------------------------------------
@functools.partial(jax.jit, static_argnames=("window_sizes", "shifts"))
def gmsa_forward(x, params, window_sizes=(4, 8, 12), shifts=0):
    B, C, H, W = x.shape
    assert C % 3 == 0 and len(window_sizes) == 3, "planes must be divisible by 3"
    for ws in window_sizes:
        assert H % ws == 0 and W % ws == 0, "H and W must be divisible by every window size"
    c3 = C // 3

    # fold eval-mode BatchNorm into the project_inp weights (host/XLA side, tiny)
    scale = params["bn_gamma"] / jnp.sqrt(params["bn_var"] + 1e-5)
    w_in_t = (params["w_in"] * scale[None, :]).T.astype(jnp.bfloat16)        # (2C, C)
    b_in = params["b_in"] * scale + (params["bn_beta"] - params["bn_mean"] * scale)

    z = proj_in(x.reshape(B, C, H * W), w_in_t, b_in.reshape(2 * C, 1))
    z = z.reshape(B, 2 * C, H, W)                                            # bf16

    ys, atns = [], []
    for idx, ws in enumerate(window_sizes):
        q, v = _partition_qv(z, idx, c3, ws, shifts)
        y_cm, atn = window_attention(q, v)
        ys.append(_unpartition_y(y_cm, B, H, W, ws, c3, shifts))
        atns.append(atn)

    ycat = jnp.concatenate(ys, axis=1).reshape(B, C, H * W)                  # (B,C,HW) bf16
    w_out_t = params["w_out"].T.astype(jnp.bfloat16)                         # (C, C)
    out = proj_out(ycat, w_out_t, params["b_out"].reshape(C, 1))
    return out.reshape(B, C, H, W), atns


# ----------------------------------------------------------------------------
# Pure-JAX f32 reference (same semantics, no Pallas) for verification
# ----------------------------------------------------------------------------
def gmsa_reference(x, params, window_sizes=(4, 8, 12), shifts=0):
    B, C, H, W = x.shape
    hp = lax.Precision.HIGHEST
    xh = jnp.transpose(x, (0, 2, 3, 1))
    scale = params["bn_gamma"] / jnp.sqrt(params["bn_var"] + 1e-5)
    shift = params["bn_beta"] - params["bn_mean"] * scale
    z = jnp.dot(xh.reshape(-1, C), params["w_in"], precision=hp) + params["b_in"]
    z = z * scale + shift
    z = z.reshape(B, H, W, 2 * C)
    c3 = C // 3
    ys, atns = [], []
    for idx, ws in enumerate(window_sizes):
        chunk = z[..., idx * 2 * c3:(idx + 1) * 2 * c3]
        if shifts > 0:
            chunk = jnp.roll(chunk, (-ws // 2, -ws // 2), axis=(1, 2))
        hw, ww = H // ws, W // ws
        t = chunk.reshape(B, hw, ws, ww, ws, 2 * c3)
        t = jnp.transpose(t, (0, 1, 3, 2, 4, 5)).reshape(B * hw * ww, ws * ws, 2 * c3)
        q, v = t[..., :c3], t[..., c3:]
        s = jnp.einsum("npc,nqc->npq", q, q, precision=hp)
        s = s - jnp.max(s, axis=-1, keepdims=True)
        e = jnp.exp(s)
        atn = e / jnp.sum(e, axis=-1, keepdims=True)
        y_ = jnp.einsum("npq,nqc->npc", atn, v, precision=hp)
        y_ = y_.reshape(B, hw, ww, ws, ws, c3)
        y_ = jnp.transpose(y_, (0, 1, 3, 2, 4, 5)).reshape(B, H, W, c3)
        if shifts > 0:
            y_ = jnp.roll(y_, (ws // 2, ws // 2), axis=(1, 2))
        ys.append(y_)
        atns.append(atn)
    y = jnp.dot(jnp.concatenate(ys, axis=-1).reshape(-1, C), params["w_out"],
                precision=hp) + params["b_out"]
    y = y.reshape(B, H, W, C).transpose(0, 3, 1, 2)
    return y, atns


# ----------------------------------------------------------------------------
# Deterministic parameter init (shapes follow GMSA.__init__ with pass_attn=0)
# ----------------------------------------------------------------------------
def init_params(key, planes):
    c2 = planes * 2
    ks = jax.random.split(key, 8)
    return dict(
        w_in=0.1 * jax.random.normal(ks[0], (planes, c2), jnp.float32),     # Conv2d1x1(planes, 2*planes)
        b_in=0.1 * jax.random.normal(ks[1], (c2,), jnp.float32),
        bn_gamma=1.0 + 0.1 * jax.random.normal(ks[2], (c2,), jnp.float32),  # BatchNorm2d(2*planes), eval mode
        bn_beta=0.1 * jax.random.normal(ks[3], (c2,), jnp.float32),
        bn_mean=0.1 * jax.random.normal(ks[4], (c2,), jnp.float32),
        bn_var=1.0 + 0.1 * jnp.abs(jax.random.normal(ks[5], (c2,), jnp.float32)),
        w_out=0.1 * jax.random.normal(ks[6], (planes, planes), jnp.float32),  # Conv2d1x1(planes, planes)
        b_out=0.1 * jax.random.normal(ks[7], (planes,), jnp.float32),
    )


if __name__ == "__main__":
    planes = 12                       # divisible by 3
    B, H, W = 2, 24, 24               # divisible by all window sizes (4, 8, 12)
    window_sizes = (4, 8, 12)

    key = jax.random.PRNGKey(0)
    kx, kp = jax.random.split(key)
    x = jax.random.normal(kx, (B, planes, H, W), jnp.float32)
    params = init_params(kp, planes)

    out, atns = gmsa_forward(x, params, window_sizes=window_sizes, shifts=0)
    out = jax.block_until_ready(out)
    for a in atns:
        jax.block_until_ready(a)

    ref_out, ref_atns = gmsa_reference(x, params, window_sizes=window_sizes, shifts=0)
    assert out.shape == (B, planes, H, W) and out.dtype == jnp.float32
    # Kernels use bf16 MXU operands / bf16 intermediates with f32 accumulation
    # (per perf review), so tolerance vs. the f32-HIGHEST reference is bf16-level.
    assert jnp.allclose(out, ref_out, atol=2e-2, rtol=2e-2)
    for a, ra in zip(atns, ref_atns):
        assert a.shape == ra.shape
        assert jnp.allclose(a.astype(jnp.float32), ra, atol=2e-2, rtol=2e-2)

    print("KERNEL_OK")
</pallas_src>

<mosaic_0001>
module attributes {stable_mosaic.version = 11 : i64} {
  func.func @_proj_in_kernel(%arg0: i32, %arg1: i32, %arg2: memref<1x12x576xf32, #tpu.memory_space<vmem>>, %arg3: memref<24x12xbf16, #tpu.memory_space<vmem>>, %arg4: memref<24x1xf32, #tpu.memory_space<vmem>>, %arg5: memref<1x24x576xbf16, #tpu.memory_space<vmem>>) attributes {dimension_semantics = [#tpu.dimension_semantics<parallel>, #tpu.dimension_semantics<parallel>], iteration_bounds = array<i64: 2, 1>, scalar_prefetch = 0 : i64, scratch_operands = 0 : i64, tpu.core_type = #tpu.core_type<tc>, window_params = [{transform_indices = @transform_0, window_bounds = array<i64: 1, 12, 576>}, {pipeline_mode = #tpu.pipeline_mode<synchronous>, transform_indices = @transform_1, window_bounds = array<i64: 24, 12>}, {pipeline_mode = #tpu.pipeline_mode<synchronous>, transform_indices = @transform_2, window_bounds = array<i64: 24, 1>}, {transform_indices = @transform_3, window_bounds = array<i64: 1, 24, 576>}]} {
    %c0 = arith.constant 0 : index
    %c0_0 = arith.constant 0 : index
    %c0_1 = arith.constant 0 : index
    %0 = vector.load %arg2[%c0, %c0_0, %c0_1] : memref<1x12x576xf32, #tpu.memory_space<vmem>>, vector<1x12x576xf32>
    %1 = vector.shape_cast %0 : vector<1x12x576xf32> to vector<12x576xf32>
    %2 = arith.truncf %1 : vector<12x576xf32> to vector<12x576xbf16>
    %c0_2 = arith.constant 0 : index
    %c0_3 = arith.constant 0 : index
    %3 = vector.load %arg3[%c0_2, %c0_3] : memref<24x12xbf16, #tpu.memory_space<vmem>>, vector<24x12xbf16>
    %cst = arith.constant dense<0.000000e+00> : vector<24x576xf32>
    %4 = tpu.matmul %3, %2, %cst {dimension_numbers = #tpu.dot_dimension_numbers<[1], [0], [0], [1], [0, 0, 1, 1], [], []>} : vector<24x12xbf16>, vector<12x576xbf16>, vector<24x576xf32> -> vector<24x576xf32>
    %c0_4 = arith.constant 0 : index
    %c0_5 = arith.constant 0 : index
    %5 = vector.load %arg4[%c0_4, %c0_5] : memref<24x1xf32, #tpu.memory_space<vmem>>, vector<24x1xf32>
    %6 = vector.broadcast %5 : vector<24x1xf32> to vector<24x576xf32>
    %7 = arith.addf %4, %6 : vector<24x576xf32>
    %8 = arith.truncf %7 : vector<24x576xf32> to vector<24x576xbf16>
    %c0_6 = arith.constant 0 : index
    %c0_7 = arith.constant 0 : index
    %c0_8 = arith.constant 0 : index
    %9 = vector.load %arg5[%c0_6, %c0_7, %c0_8] : memref<1x24x576xbf16, #tpu.memory_space<vmem>>, vector<1x24x576xbf16>
    %10 = vector.shape_cast %9 : vector<1x24x576xbf16> to vector<24x576xbf16>
    %11 = vector.shape_cast %8 : vector<24x576xbf16> to vector<1x24x576xbf16>
    tpu.vector_store %arg5[%c0_6, %c0_7, %c0_8], %11 {strides = array<i32>} : memref<1x24x576xbf16, #tpu.memory_space<vmem>>, vector<1x24x576xbf16>,
    return
  }
  func.func @transform_0(%arg0: i32, %arg1: i32) -> (i32, i32, i32) {
    %c0_i32 = arith.constant 0 : i32
    %c0_i32_0 = arith.constant 0 : i32
    return %arg0, %c0_i32, %arg1 : i32, i32, i32
  }
  func.func @transform_1(%arg0: i32, %arg1: i32) -> (i32, i32) {
    %c0_i32 = arith.constant 0 : i32
    %c0_i32_0 = arith.constant 0 : i32
    %c0_i32_1 = arith.constant 0 : i32
    return %c0_i32, %c0_i32_0 : i32, i32
  }
  func.func @transform_2(%arg0: i32, %arg1: i32) -> (i32, i32) {
    %c0_i32 = arith.constant 0 : i32
    %c0_i32_0 = arith.constant 0 : i32
    %c0_i32_1 = arith.constant 0 : i32
    return %c0_i32, %c0_i32_0 : i32, i32
  }
  func.func @transform_3(%arg0: i32, %arg1: i32) -> (i32, i32, i32) {
    %c0_i32 = arith.constant 0 : i32
    %c0_i32_0 = arith.constant 0 : i32
    return %arg0, %c0_i32, %arg1 : i32, i32, i32
  }
}

module attributes {stable_mosaic.version = 11 : i64} {
  func.func @_win_attn_kernel(%arg0: i32, %arg1: memref<36x16x4xbf16, #tpu.memory_space<vmem>>, %arg2: memref<36x4x16xbf16, #tpu.memory_space<vmem>>, %arg3: memref<36x4x16xbf16, #tpu.memory_space<vmem>>, %arg4: memref<36x16x16xbf16, #tpu.memory_space<vmem>>) attributes {dimension_semantics = [#tpu.dimension_semantics<parallel>], iteration_bounds = array<i64: 2>, scalar_prefetch = 0 : i64, scratch_operands = 0 : i64, tpu.core_type = #tpu.core_type<tc>, window_params = [{transform_indices = @transform_0, window_bounds = array<i64: 36, 16, 4>}, {transform_indices = @transform_1, window_bounds = array<i64: 36, 4, 16>}, {transform_indices = @transform_2, window_bounds = array<i64: 36, 4, 16>}, {transform_indices = @transform_3, window_bounds = array<i64: 36, 16, 16>}]} {
    %c0 = arith.constant 0 : index
    %c0_0 = arith.constant 0 : index
    %c0_1 = arith.constant 0 : index
    %0 = vector.load %arg1[%c0, %c0_0, %c0_1] : memref<36x16x4xbf16, #tpu.memory_space<vmem>>, vector<36x16x4xbf16>
    %c0_2 = arith.constant 0 : index
    %c0_3 = arith.constant 0 : index
    %c0_4 = arith.constant 0 : index
    %1 = vector.load %arg2[%c0_2, %c0_3, %c0_4] : memref<36x4x16xbf16, #tpu.memory_space<vmem>>, vector<36x4x16xbf16>
    "tpu.trace_start"() <{level = 10 : i32, message = "npc,nqc->npq"}> : () -> ()
    %cst = arith.constant dense<0.000000e+00> : vector<36x16x16xf32>
    %2 = tpu.matmul %0, %0, %cst {dimension_numbers = #tpu.dot_dimension_numbers<[2], [2], [1], [1], [0, 0, 0, 1, 1, 1], [0], [0]>} : vector<36x16x4xbf16>, vector<36x16x4xbf16>, vector<36x16x16xf32> -> vector<36x16x16xf32>
    "tpu.trace_stop"() : () -> ()
    %cst_5 = arith.constant dense<0xFF800000> : vector<36x16xf32>
    %3 = vector.multi_reduction <maximumf>, %2, %cst_5 [2] : vector<36x16x16xf32> to vector<36x16xf32>
    %4 = vector.shape_cast %3 : vector<36x16xf32> to vector<36x16x1xf32>
    %5 = vector.broadcast %4 : vector<36x16x1xf32> to vector<36x16x16xf32>
    %6 = arith.subf %2, %5 : vector<36x16x16xf32>
    %7 = math.exp %6 : vector<36x16x16xf32>
    %cst_6 = arith.constant dense<0.000000e+00> : vector<36x16xf32>
    %8 = vector.multi_reduction <add>, %7, %cst_6 [2] : vector<36x16x16xf32> to vector<36x16xf32>
    %9 = vector.shape_cast %8 : vector<36x16xf32> to vector<36x16x1xf32>
    %10 = tpu.reciprocal %9 {approx = true} : vector<36x16x1xf32> -> vector<36x16x1xf32>
    %11 = vector.broadcast %10 : vector<36x16x1xf32> to vector<36x16x16xf32>
    %12 = arith.mulf %7, %11 : vector<36x16x16xf32>
    %13 = arith.truncf %12 : vector<36x16x16xf32> to vector<36x16x16xbf16>
    %c0_7 = arith.constant 0 : index
    %c0_8 = arith.constant 0 : index
    %c0_9 = arith.constant 0 : index
    %14 = vector.load %arg4[%c0_7, %c0_8, %c0_9] : memref<36x16x16xbf16, #tpu.memory_space<vmem>>, vector<36x16x16xbf16>
    tpu.vector_store %arg4[%c0_7, %c0_8, %c0_9], %13 {strides = array<i32>} : memref<36x16x16xbf16, #tpu.memory_space<vmem>>, vector<36x16x16xbf16>,
    %15 = arith.truncf %12 : vector<36x16x16xf32> to vector<36x16x16xbf16>
    "tpu.trace_start"() <{level = 10 : i32, message = "ncq,npq->ncp"}> : () -> ()
    %cst_10 = arith.constant dense<0.000000e+00> : vector<36x4x16xf32>
    %16 = tpu.matmul %1, %15, %cst_10 {dimension_numbers = #tpu.dot_dimension_numbers<[2], [2], [1], [1], [0, 0, 0, 1, 1, 1], [0], [0]>} : vector<36x4x16xbf16>, vector<36x16x16xbf16>, vector<36x4x16xf32> -> vector<36x4x16xf32>
    "tpu.trace_stop"() : () -> ()
    %17 = arith.truncf %16 : vector<36x4x16xf32> to vector<36x4x16xbf16>
    %c0_11 = arith.constant 0 : index
    %c0_12 = arith.constant 0 : index
    %c0_13 = arith.constant 0 : index
    %18 = vector.load %arg3[%c0_11, %c0_12, %c0_13] : memref<36x4x16xbf16, #tpu.memory_space<vmem>>, vector<36x4x16xbf16>
    tpu.vector_store %arg3[%c0_11, %c0_12, %c0_13], %17 {strides = array<i32>} : memref<36x4x16xbf16, #tpu.memory_space<vmem>>, vector<36x4x16xbf16>,
    return
  }
  func.func @transform_0(%arg0: i32) -> (i32, i32, i32) {
    %c0_i32 = arith.constant 0 : i32
    %c0_i32_0 = arith.constant 0 : i32
    %c0_i32_1 = arith.constant 0 : i32
    return %arg0, %c0_i32, %c0_i32_0 : i32, i32, i32
  }
  func.func @transform_1(%arg0: i32) -> (i32, i32, i32) {
    %c0_i32 = arith.constant 0 : i32
    %c0_i32_0 = arith.constant 0 : i32
    %c0_i32_1 = arith.constant 0 : i32
    return %arg0, %c0_i32, %c0_i32_0 : i32, i32, i32
  }
  func.func @transform_2(%arg0: i32) -> (i32, i32, i32) {
    %c0_i32 = arith.constant 0 : i32
    %c0_i32_0 = arith.constant 0 : i32
    %c0_i32_1 = arith.constant 0 : i32
    return %arg0, %c0_i32, %c0_i32_0 : i32, i32, i32
  }
  func.func @transform_3(%arg0: i32) -> (i32, i32, i32) {
    %c0_i32 = arith.constant 0 : i32
    %c0_i32_0 = arith.constant 0 : i32
    %c0_i32_1 = arith.constant 0 : i32
    return %arg0, %c0_i32, %c0_i32_0 : i32, i32, i32
  }
}

module attributes {stable_mosaic.version = 11 : i64} {
  func.func @_win_attn_kernel(%arg0: i32, %arg1: memref<9x64x4xbf16, #tpu.memory_space<vmem>>, %arg2: memref<9x4x64xbf16, #tpu.memory_space<vmem>>, %arg3: memref<9x4x64xbf16, #tpu.memory_space<vmem>>, %arg4: memref<9x64x64xbf16, #tpu.memory_space<vmem>>) attributes {dimension_semantics = [#tpu.dimension_semantics<parallel>], iteration_bounds = array<i64: 2>, scalar_prefetch = 0 : i64, scratch_operands = 0 : i64, tpu.core_type = #tpu.core_type<tc>, window_params = [{transform_indices = @transform_0, window_bounds = array<i64: 9, 64, 4>}, {transform_indices = @transform_1, window_bounds = array<i64: 9, 4, 64>}, {transform_indices = @transform_2, window_bounds = array<i64: 9, 4, 64>}, {transform_indices = @transform_3, window_bounds = array<i64: 9, 64, 64>}]} {
    %c0 = arith.constant 0 : index
    %c0_0 = arith.constant 0 : index
    %c0_1 = arith.constant 0 : index
    %0 = vector.load %arg1[%c0, %c0_0, %c0_1] : memref<9x64x4xbf16, #tpu.memory_space<vmem>>, vector<9x64x4xbf16>
    %c0_2 = arith.constant 0 : index
    %c0_3 = arith.constant 0 : index
    %c0_4 = arith.constant 0 : index
    %1 = vector.load %arg2[%c0_2, %c0_3, %c0_4] : memref<9x4x64xbf16, #tpu.memory_space<vmem>>, vector<9x4x64xbf16>
    "tpu.trace_start"() <{level = 10 : i32, message = "npc,nqc->npq"}> : () -> ()
    %cst = arith.constant dense<0.000000e+00> : vector<9x64x64xf32>
    %2 = tpu.matmul %0, %0, %cst {dimension_numbers = #tpu.dot_dimension_numbers<[2], [2], [1], [1], [0, 0, 0, 1, 1, 1], [0], [0]>} : vector<9x64x4xbf16>, vector<9x64x4xbf16>, vector<9x64x64xf32> -> vector<9x64x64xf32>
    "tpu.trace_stop"() : () -> ()
    %cst_5 = arith.constant dense<0xFF800000> : vector<9x64xf32>
    %3 = vector.multi_reduction <maximumf>, %2, %cst_5 [2] : vector<9x64x64xf32> to vector<9x64xf32>
    %4 = vector.shape_cast %3 : vector<9x64xf32> to vector<9x64x1xf32>
    %5 = vector.broadcast %4 : vector<9x64x1xf32> to vector<9x64x64xf32>
    %6 = arith.subf %2, %5 : vector<9x64x64xf32>
    %7 = math.exp %6 : vector<9x64x64xf32>
    %cst_6 = arith.constant dense<0.000000e+00> : vector<9x64xf32>
    %8 = vector.multi_reduction <add>, %7, %cst_6 [2] : vector<9x64x64xf32> to vector<9x64xf32>
    %9 = vector.shape_cast %8 : vector<9x64xf32> to vector<9x64x1xf32>
    %10 = tpu.reciprocal %9 {approx = true} : vector<9x64x1xf32> -> vector<9x64x1xf32>
    %11 = vector.broadcast %10 : vector<9x64x1xf32> to vector<9x64x64xf32>
    %12 = arith.mulf %7, %11 : vector<9x64x64xf32>
    %13 = arith.truncf %12 : vector<9x64x64xf32> to vector<9x64x64xbf16>
    %c0_7 = arith.constant 0 : index
    %c0_8 = arith.constant 0 : index
    %c0_9 = arith.constant 0 : index
    %14 = vector.load %arg4[%c0_7, %c0_8, %c0_9] : memref<9x64x64xbf16, #tpu.memory_space<vmem>>, vector<9x64x64xbf16>
    tpu.vector_store %arg4[%c0_7, %c0_8, %c0_9], %13 {strides = array<i32>} : memref<9x64x64xbf16, #tpu.memory_space<vmem>>, vector<9x64x64xbf16>,
    %15 = arith.truncf %12 : vector<9x64x64xf32> to vector<9x64x64xbf16>
    "tpu.trace_start"() <{level = 10 : i32, message = "ncq,npq->ncp"}> : () -> ()
    %cst_10 = arith.constant dense<0.000000e+00> : vector<9x4x64xf32>
    %16 = tpu.matmul %1, %15, %cst_10 {dimension_numbers = #tpu.dot_dimension_numbers<[2], [2], [1], [1], [0, 0, 0, 1, 1, 1], [0], [0]>} : vector<9x4x64xbf16>, vector<9x64x64xbf16>, vector<9x4x64xf32> -> vector<9x4x64xf32>
    "tpu.trace_stop"() : () -> ()
    %17 = arith.truncf %16 : vector<9x4x64xf32> to vector<9x4x64xbf16>
    %c0_11 = arith.constant 0 : index
    %c0_12 = arith.constant 0 : index
    %c0_13 = arith.constant 0 : index
    %18 = vector.load %arg3[%c0_11, %c0_12, %c0_13] : memref<9x4x64xbf16, #tpu.memory_space<vmem>>, vector<9x4x64xbf16>
    tpu.vector_store %arg3[%c0_11, %c0_12, %c0_13], %17 {strides = array<i32>} : memref<9x4x64xbf16, #tpu.memory_space<vmem>>, vector<9x4x64xbf16>,
    return
  }
  func.func @transform_0(%arg0: i32) -> (i32, i32, i32) {
    %c0_i32 = arith.constant 0 : i32
    %c0_i32_0 = arith.constant 0 : i32
    %c0_i32_1 = arith.constant 0 : i32
    return %arg0, %c0_i32, %c0_i32_0 : i32, i32, i32
  }
  func.func @transform_1(%arg0: i32) -> (i32, i32, i32) {
    %c0_i32 = arith.constant 0 : i32
    %c0_i32_0 = arith.constant 0 : i32
    %c0_i32_1 = arith.constant 0 : i32
    return %arg0, %c0_i32, %c0_i32_0 : i32, i32, i32
  }
  func.func @transform_2(%arg0: i32) -> (i32, i32, i32) {
    %c0_i32 = arith.constant 0 : i32
    %c0_i32_0 = arith.constant 0 : i32
    %c0_i32_1 = arith.constant 0 : i32
    return %arg0, %c0_i32, %c0_i32_0 : i32, i32, i32
  }
  func.func @transform_3(%arg0: i32) -> (i32, i32, i32) {
    %c0_i32 = arith.constant 0 : i32
    %c0_i32_0 = arith.constant 0 : i32
    %c0_i32_1 = arith.constant 0 : i32
    return %arg0, %c0_i32, %c0_i32_0 : i32, i32, i32
  }
}

module attributes {stable_mosaic.version = 11 : i64} {
  func.func @_win_attn_kernel(%arg0: i32, %arg1: memref<4x144x4xbf16, #tpu.memory_space<vmem>>, %arg2: memref<4x4x144xbf16, #tpu.memory_space<vmem>>, %arg3: memref<4x4x144xbf16, #tpu.memory_space<vmem>>, %arg4: memref<4x144x144xbf16, #tpu.memory_space<vmem>>) attributes {dimension_semantics = [#tpu.dimension_semantics<parallel>], iteration_bounds = array<i64: 2>, scalar_prefetch = 0 : i64, scratch_operands = 0 : i64, tpu.core_type = #tpu.core_type<tc>, window_params = [{transform_indices = @transform_0, window_bounds = array<i64: 4, 144, 4>}, {transform_indices = @transform_1, window_bounds = array<i64: 4, 4, 144>}, {transform_indices = @transform_2, window_bounds = array<i64: 4, 4, 144>}, {transform_indices = @transform_3, window_bounds = array<i64: 4, 144, 144>}]} {
    %c0 = arith.constant 0 : index
    %c0_0 = arith.constant 0 : index
    %c0_1 = arith.constant 0 : index
    %0 = vector.load %arg1[%c0, %c0_0, %c0_1] : memref<4x144x4xbf16, #tpu.memory_space<vmem>>, vector<4x144x4xbf16>
    %c0_2 = arith.constant 0 : index
    %c0_3 = arith.constant 0 : index
    %c0_4 = arith.constant 0 : index
    %1 = vector.load %arg2[%c0_2, %c0_3, %c0_4] : memref<4x4x144xbf16, #tpu.memory_space<vmem>>, vector<4x4x144xbf16>
    "tpu.trace_start"() <{level = 10 : i32, message = "npc,nqc->npq"}> : () -> ()
    %cst = arith.constant dense<0.000000e+00> : vector<4x144x144xf32>
    %2 = tpu.matmul %0, %0, %cst {dimension_numbers = #tpu.dot_dimension_numbers<[2], [2], [1], [1], [0, 0, 0, 1, 1, 1], [0], [0]>} : vector<4x144x4xbf16>, vector<4x144x4xbf16>, vector<4x144x144xf32> -> vector<4x144x144xf32>
    "tpu.trace_stop"() : () -> ()
    %cst_5 = arith.constant dense<0xFF800000> : vector<4x144xf32>
    %3 = vector.multi_reduction <maximumf>, %2, %cst_5 [2] : vector<4x144x144xf32> to vector<4x144xf32>
    %4 = vector.shape_cast %3 : vector<4x144xf32> to vector<4x144x1xf32>
    %5 = vector.broadcast %4 : vector<4x144x1xf32> to vector<4x144x144xf32>
    %6 = arith.subf %2, %5 : vector<4x144x144xf32>
    %7 = math.exp %6 : vector<4x144x144xf32>
    %cst_6 = arith.constant dense<0.000000e+00> : vector<4x144xf32>
    %8 = vector.multi_reduction <add>, %7, %cst_6 [2] : vector<4x144x144xf32> to vector<4x144xf32>
    %9 = vector.shape_cast %8 : vector<4x144xf32> to vector<4x144x1xf32>
    %10 = tpu.reciprocal %9 {approx = true} : vector<4x144x1xf32> -> vector<4x144x1xf32>
    %11 = vector.broadcast %10 : vector<4x144x1xf32> to vector<4x144x144xf32>
    %12 = arith.mulf %7, %11 : vector<4x144x144xf32>
    %13 = arith.truncf %12 : vector<4x144x144xf32> to vector<4x144x144xbf16>
    %c0_7 = arith.constant 0 : index
    %c0_8 = arith.constant 0 : index
    %c0_9 = arith.constant 0 : index
    %14 = vector.load %arg4[%c0_7, %c0_8, %c0_9] : memref<4x144x144xbf16, #tpu.memory_space<vmem>>, vector<4x144x144xbf16>
    tpu.vector_store %arg4[%c0_7, %c0_8, %c0_9], %13 {strides = array<i32>} : memref<4x144x144xbf16, #tpu.memory_space<vmem>>, vector<4x144x144xbf16>,
    %15 = arith.truncf %12 : vector<4x144x144xf32> to vector<4x144x144xbf16>
    "tpu.trace_start"() <{level = 10 : i32, message = "ncq,npq->ncp"}> : () -> ()
    %cst_10 = arith.constant dense<0.000000e+00> : vector<4x4x144xf32>
    %16 = tpu.matmul %1, %15, %cst_10 {dimension_numbers = #tpu.dot_dimension_numbers<[2], [2], [1], [1], [0, 0, 0, 1, 1, 1], [0], [0]>} : vector<4x4x144xbf16>, vector<4x144x144xbf16>, vector<4x4x144xf32> -> vector<4x4x144xf32>
    "tpu.trace_stop"() : () -> ()
    %17 = arith.truncf %16 : vector<4x4x144xf32> to vector<4x4x144xbf16>
    %c0_11 = arith.constant 0 : index
    %c0_12 = arith.constant 0 : index
    %c0_13 = arith.constant 0 : index
    %18 = vector.load %arg3[%c0_11, %c0_12, %c0_13] : memref<4x4x144xbf16, #tpu.memory_space<vmem>>, vector<4x4x144xbf16>
    tpu.vector_store %arg3[%c0_11, %c0_12, %c0_13], %17 {strides = array<i32>} : memref<4x4x144xbf16, #tpu.memory_space<vmem>>, vector<4x4x144xbf16>,
    return
  }
  func.func @transform_0(%arg0: i32) -> (i32, i32, i32) {
    %c0_i32 = arith.constant 0 : i32
    %c0_i32_0 = arith.constant 0 : i32
    %c0_i32_1 = arith.constant 0 : i32
    return %arg0, %c0_i32, %c0_i32_0 : i32, i32, i32
  }
  func.func @transform_1(%arg0: i32) -> (i32, i32, i32) {
    %c0_i32 = arith.constant 0 : i32
    %c0_i32_0 = arith.constant 0 : i32
    %c0_i32_1 = arith.constant 0 : i32
    return %arg0, %c0_i32, %c0_i32_0 : i32, i32, i32
  }
  func.func @transform_2(%arg0: i32) -> (i32, i32, i32) {
    %c0_i32 = arith.constant 0 : i32
    %c0_i32_0 = arith.constant 0 : i32
    %c0_i32_1 = arith.constant 0 : i32
    return %arg0, %c0_i32, %c0_i32_0 : i32, i32, i32
  }
  func.func @transform_3(%arg0: i32) -> (i32, i32, i32) {
    %c0_i32 = arith.constant 0 : i32
    %c0_i32_0 = arith.constant 0 : i32
    %c0_i32_1 = arith.constant 0 : i32
    return %arg0, %c0_i32, %c0_i32_0 : i32, i32, i32
  }
}

module attributes {stable_mosaic.version = 11 : i64} {
  func.func @_proj_out_kernel(%arg0: i32, %arg1: i32, %arg2: memref<1x12x576xbf16, #tpu.memory_space<vmem>>, %arg3: memref<12x12xbf16, #tpu.memory_space<vmem>>, %arg4: memref<12x1xf32, #tpu.memory_space<vmem>>, %arg5: memref<1x12x576xf32, #tpu.memory_space<vmem>>) attributes {dimension_semantics = [#tpu.dimension_semantics<parallel>, #tpu.dimension_semantics<parallel>], iteration_bounds = array<i64: 2, 1>, scalar_prefetch = 0 : i64, scratch_operands = 0 : i64, tpu.core_type = #tpu.core_type<tc>, window_params = [{transform_indices = @transform_0, window_bounds = array<i64: 1, 12, 576>}, {pipeline_mode = #tpu.pipeline_mode<synchronous>, transform_indices = @transform_1, window_bounds = array<i64: 12, 12>}, {pipeline_mode = #tpu.pipeline_mode<synchronous>, transform_indices = @transform_2, window_bounds = array<i64: 12, 1>}, {transform_indices = @transform_3, window_bounds = array<i64: 1, 12, 576>}]} {
    %c0 = arith.constant 0 : index
    %c0_0 = arith.constant 0 : index
    %0 = vector.load %arg3[%c0, %c0_0] : memref<12x12xbf16, #tpu.memory_space<vmem>>, vector<12x12xbf16>
    %c0_1 = arith.constant 0 : index
    %c0_2 = arith.constant 0 : index
    %c0_3 = arith.constant 0 : index
    %1 = vector.load %arg2[%c0_1, %c0_2, %c0_3] : memref<1x12x576xbf16, #tpu.memory_space<vmem>>, vector<1x12x576xbf16>
    %2 = vector.shape_cast %1 : vector<1x12x576xbf16> to vector<12x576xbf16>
    %cst = arith.constant dense<0.000000e+00> : vector<12x576xf32>
    %3 = tpu.matmul %0, %2, %cst {dimension_numbers = #tpu.dot_dimension_numbers<[1], [0], [0], [1], [0, 0, 1, 1], [], []>} : vector<12x12xbf16>, vector<12x576xbf16>, vector<12x576xf32> -> vector<12x576xf32>
    %c0_4 = arith.constant 0 : index
    %c0_5 = arith.constant 0 : index
    %4 = vector.load %arg4[%c0_4, %c0_5] : memref<12x1xf32, #tpu.memory_space<vmem>>, vector<12x1xf32>
    %5 = vector.broadcast %4 : vector<12x1xf32> to vector<12x576xf32>
    %6 = arith.addf %3, %5 : vector<12x576xf32>
    %c0_6 = arith.constant 0 : index
    %c0_7 = arith.constant 0 : index
    %c0_8 = arith.constant 0 : index
    %7 = vector.load %arg5[%c0_6, %c0_7, %c0_8] : memref<1x12x576xf32, #tpu.memory_space<vmem>>, vector<1x12x576xf32>
    %8 = vector.shape_cast %7 : vector<1x12x576xf32> to vector<12x576xf32>
    %9 = vector.shape_cast %6 : vector<12x576xf32> to vector<1x12x576xf32>
    tpu.vector_store %arg5[%c0_6, %c0_7, %c0_8], %9 {strides = array<i32>} : memref<1x12x576xf32, #tpu.memory_space<vmem>>, vector<1x12x576xf32>,
    return
  }
  func.func @transform_0(%arg0: i32, %arg1: i32) -> (i32, i32, i32) {
    %c0_i32 = arith.constant 0 : i32
    %c0_i32_0 = arith.constant 0 : i32
    return %arg0, %c0_i32, %arg1 : i32, i32, i32
  }
  func.func @transform_1(%arg0: i32, %arg1: i32) -> (i32, i32) {
    %c0_i32 = arith.constant 0 : i32
    %c0_i32_0 = arith.constant 0 : i32
    %c0_i32_1 = arith.constant 0 : i32
    return %c0_i32, %c0_i32_0 : i32, i32
  }
  func.func @transform_2(%arg0: i32, %arg1: i32) -> (i32, i32) {
    %c0_i32 = arith.constant 0 : i32
    %c0_i32_0 = arith.constant 0 : i32
    %c0_i32_1 = arith.constant 0 : i32
    return %c0_i32, %c0_i32_0 : i32, i32
  }
  func.func @transform_3(%arg0: i32, %arg1: i32) -> (i32, i32, i32) {
    %c0_i32 = arith.constant 0 : i32
    %c0_i32_0 = arith.constant 0 : i32
    return %arg0, %c0_i32, %arg1 : i32, i32, i32
  }
}

</mosaic_0001>

<bundles_post_ra>
// kernel: gmsa_forward.5
= control target key start
LH: loop header
LB: loop body
LE: loop exit
PB: predicated region body
PF: predicated region fallthrough
CT: control target
= control target key end

     0   :  { %s701_s12 = smov 0   ;;  %s703_s13 = smov 0   ;;  %s770_s0 = inlined_call_operand.vmem [shape: f32[2,12,576], index: 0, kind: input, shape index: {}]   ;;  %s771_s1 = inlined_call_operand.vmem [shape: bf16[24,12], index: 1, kind: input, shape index: {}]   ;;  %s772_s2 = inlined_call_operand.vmem [shape: f32[24,1], index: 2, kind: input, shape index: {}]   ;;  %s773_s3 = inlined_call_operand.vmem [shape: bf16[2,24,576], index: 3, kind: output, shape index: {}]  }
   0x1   :  { %s705_s14 = smov 0  }
   0x2 LB: > { %s25_s15 = sadd.s32 1, %s674_s13  ;;  %p582_p0 = scmp.ge.s32.totalorder %s678_s14, 1  ;;  %s678_s14 = sphi %s705_s14, %s13_s14   ;;  %s674_s13 = sphi %s703_s13, %s775_s13   ;;  %s670_s12 = sphi %s701_s12, %s774_s12  }
   0x3   : > { %p27_p1 = scmp.ge.s32.totalorder %s25_s15, 2  ;;  %p158_p2 = scmp.lt.s32.totalorder %s678_s14, 3 }
   0x5   : > { %s777_s15 = smov (%p27_p1, %s25_s15), 0  ;;  %p159_p3 = pnand %p582_p0, %p158_p2 }
   0x6   : > { %p191_p4 = scmp.lt.s32.totalorder (!%p159_p3), %s670_s12, 1 }
   0x7   : > { %162 = sbr.rel (%p159_p3) target bundleno = 244 (0xf4), region = 32 }
   0xc   : > { %v680_v0 = vmov 0   ;;  %v229_v1 = vld [vmem:[%s772_s2] sm:$0xff]  ;;  %s779_s12 = smov (!%p191_p4, %s670_s12), 1  ;;  %v231_v2 = vld [vmem:[%s772_s2 + $0x10] sm:$0xff]  ;;  %v230_v3 = vld [vmem:[%s772_s2 + $0x8] sm:$0xff]  ;;  %vm262_vm0 = vcmask 1045504  }
   0xd   : > { %310 = vmatprep.mubr.bf16.mxu0 %v680_v0  ;;  %361 = vmatprep.mubr.bf16.mxu1 %v680_v0  ;;  %s625_s20 = smul.u32 80, %s779_s12  ;;  %v654_v19 = vld [vmem:[%s771_s1] sm:$0xff]   ;;  %vm255_vm1 = vcmask 97280   ;;  %v655_v23 = vld [vmem:[%s771_s1 + $0x8] ss:$0 sps:$4 sm:$0xff]   ;;  %vm483_vm2 = vcmask 519168  }
   0xe   : > { %652 = vset.pattern.permute.xlu0 %v680_v0  ;;  %653 = vset.pattern.permute.xlu1 %v680_v0  ;;  %s626_s30 = smul.u32 60, %s779_s12 }
   0xf   : > { %234 = vperm.xlu0 %652, %v229_v1   ;;  %244 = vperm.xlu1 %653, %v231_v2   ;;  %s198_s25 = scalar_lea.vmem %s770_s0, %s625_s20 }
  0x10   : > { %v212_v4 = vld [vmem:[%s198_s25 + $0x8] sm:$0xff]  ;;  %v217_v5 = vld [vmem:[%s198_s25 + $0x30] sm:$0xf]  ;;  %v211_v6 = vld [vmem:[%s198_s25] sm:$0xff]  ;;  %s750_s6 = scalar_lea.vmem %s773_s3, %s626_s30 }
  0x11   : > { %v222_v7 = vpack.c.bf16 %v217_v5, %v212_v4  ;;  %v216_v8 = vld [vmem:[%s198_s25 + $0x28] sm:$0xf]  ;;  %v215_v9 = vld [vmem:[%s198_s25 + $0x20] sm:$0xff]  ;;  %v214_v13 = vld [vmem:[%s198_s25 + $0x18] sm:$0xff] }
  0x12   : > { %v220_v10 = vld [vmem:[%s198_s25 + $0x48] sm:$0xf]  ;;  %v221_v11 = vpack.c.bf16 %v216_v8, %v211_v6  ;;  %v219_v14 = vld [vmem:[%s198_s25 + $0x40] sm:$0xf]  ;;  %v213_v15 = vld [vmem:[%s198_s25 + $0x10] sm:$0xff] }
  0x13   : > { %239 = vperm.xlu0 %652, %v230_v3   ;;  %v225_v12 = vpack.c.bf16 %v220_v10, %v215_v9  ;;  %587 = vmatprep.subr.msk.bf16.mxu0 %vm262_vm0, %v222_v7  ;;  %v224_v16 = vpack.c.bf16 %v219_v14, %v214_v13  ;;  %v218_v17 = vld [vmem:[%s198_s25 + $0x38] sm:$0xf] }
  0x14   : > { %v264_v18 = vsel %vm262_vm0, %v221_v11, 0  ;;  %v223_v20 = vpack.c.bf16 %v218_v17, %v213_v15 }
  0x15   : > { %293 = vmatpush1.bf16.msra.mxu0 %v264_v18  ;;  %590 = vmatprep.subr.msk.bf16.mxu1 %vm262_vm0, %v224_v16  ;;  %v276_v21 = vsel %vm262_vm0, %v225_v12, 0 }
  0x16   : > { %624 = vmatprep.subr.msk.bf16.mxu0 %vm262_vm0, %v225_v12  ;;  %v270_v22 = vsel %vm262_vm0, %v223_v20, 0 }
  0x17   : > { %344 = vmatpush1.bf16.msra.mxu1 %v270_v22 }
  0x18   : > { %588 = vmatmul.mubr.msk.bf16.vlgmr.msra.gmra.mxu0 %vm255_vm1, %v654_v19 }
  0x19   : > { %619 = vmatpush3.bf16.msra.mxu0 %v276_v21  ;;  %320 = vmatprep.mubr.bf16.mxu0 %v680_v0 }
  0x1a   : > { %591 = vmatmul.mubr.msk.bf16.vlgmr.msra.gmra.mxu1 %vm255_vm1, %v654_v19 }
  0x1b   : > { %371 = vmatprep.mubr.bf16.mxu1 %v680_v0 }
  0x20   : > { %589 = vmatmul.mubr.msk.bf16.gmra.mxu0 %vm255_vm1, %v655_v23 }
  0x21   : > { %620 = vmatprep.mubr.msk.bf16.mxu0 %vm255_vm1, %v654_v19 }
  0x22   : > { %592 = vmatmul.mubr.msk.bf16.gmra.mxu1 %vm255_vm1, %v655_v23 }
  0x28   : > { %621 = vmatmul.mubr.msk.bf16.vlgmr.msra.gmra.mxu0 %vm255_vm1, %v655_v23 }
  0x8a   : > { %v235_v24 = vpop.permute.xlu0 %234  ;;  %v245_v40 = vpop.permute.xlu1 %244 }
  0x8e   : > { %v240_v30 = vpop.permute.xlu0 %239 }
  0xd8   : > { %v312_v25 = vpop.f32.mrf.mxu0 }
  0xd9   : > { %v313_v28 = vadd.f32 %v312_v25, %v235_v24 }
  0xda   : > { %v314_v26 = vpop.f32.mrf.mxu0  ;;  %v363_v27 = vpop.f32.mrf.mxu1 }
  0xdb   : > { %v315_v29 = vadd.f32 %v314_v26, %v235_v24  ;;  %v364_v31 = vadd.f32 %v363_v27, %v235_v24 }
  0xdc   : > { %v316_v32 = vpop.f32.mrf.mxu0  ;;  %v365_v33 = vpop.f32.mrf.mxu1 }
  0xdd   : > { %v606_v34 = vpack.c.bf16 %v315_v29, %v313_v28  ;;  %v366_v35 = vadd.f32 %v365_v33, %v235_v24  ;;  %v317_v38 = vadd.f32 %v316_v32, %v240_v30 }
  0xde   : > { %v318_v36 = vpop.f32.mrf.mxu0  ;;  %v367_v37 = vpop.f32.mrf.mxu1 }
  0xdf   : > { %481 = vst [vmem:[%s750_s6] sm:$0xff] %v606_v34  ;;  %v319_v39 = vadd.f32 %v318_v36, %v240_v30  ;;  %v607_v41 = vpack.c.bf16 %v366_v35, %v364_v31  ;;  %v368_v42 = vadd.f32 %v367_v37, %v240_v30 }
  0xe0   : > { %v322_v43 = vpop.f32.mrf.mxu0  ;;  %v369_v44 = vpop.f32.mrf.mxu1 }
  0xe1   : > { %v609_v45 = vpack.c.bf16 %v319_v39, %v317_v38  ;;  %482 = vst [vmem:[%s750_s6 + $0x8] sm:$0xff] %v607_v41  ;;  %v370_v46 = vadd.f32 %v369_v44, %v240_v30  ;;  %v323_v49 = vadd.f32 %v322_v43, %v245_v40 }
  0xe2   : > { %v324_v47 = vpop.f32.mrf.mxu0  ;;  %v373_v48 = vpop.f32.mrf.mxu1 }
  0xe3   : > { %485 = vst [vmem:[%s750_s6 + $0x14] sm:$0xff] %v609_v45  ;;  %v325_v50 = vadd.f32 %v324_v47, %v245_v40  ;;  %v610_v51 = vpack.c.bf16 %v370_v46, %v368_v42  ;;  %v374_v52 = vadd.f32 %v373_v48, %v245_v40 }
  0xe4   : > { %v326_v53 = vpop.f32.mrf.mxu0  ;;  %v375_v54 = vpop.f32.mrf.mxu1 }
  0xe5   : > { %v612_v55 = vpack.c.bf16 %v325_v50, %v323_v49  ;;  %486 = vst [vmem:[%s750_s6 + $0x1c] sm:$0xff] %v610_v51  ;;  %v376_v56 = vadd.f32 %v375_v54, %v245_v40 }
  0xe6   : > { %v327_v57 = vpop.f32.mrf.mxu0  ;;  %v377_v58 = vpop.f32.mrf.mxu1 }
  0xe7   : > { %488 = vst [vmem:[%s750_s6 + $0x28] sm:$0xff] %v612_v55  ;;  %v613_v59 = vpack.c.bf16 %v376_v56, %v374_v52 }
  0xe8   : > { %v622_v60 = vpop.f32.mrf.mxu0  ;;  %v378_v61 = vpop.f32.mrf.mxu1 }
  0xe9   : > { %v423_v62 = vadd.f32 %v622_v60, %v245_v40  ;;  %489 = vst [vmem:[%s750_s6 + $0x30] sm:$0xff] %v613_v59 }
  0xea   : > { %v414_v63 = vpop.f32.mrf.mxu0 }
  0xeb   : > { %v614_v0 = vpack.c.bf16 %v423_v62, %v423_v62  ;;  %v415_v1 = vadd.f32 %v414_v63, %v235_v24 }
  0xec   : > { %v623_v2 = vpop.f32.mrf.mxu0 }
  0xed   : > { %490 = vst.msk [vmem:[%s750_s6 + $0x38] sm:$0xf] %vm483_vm2, %v614_v0  ;;  %v608_v3 = vpack.c.bf16 %v415_v1, %v415_v1 }
  0xee   : > { %v417_v4 = vpop.f32.mrf.mxu0 }
  0xef   : > { %484 = vst.msk [vmem:[%s750_s6 + $0x10] sm:$0xf] %vm483_vm2, %v608_v3  ;;  %v418_v5 = vadd.f32 %v417_v4, %v240_v30 }
  0xf1   : > { %v611_v6 = vpack.c.bf16 %v418_v5, %v418_v5 }
  0xf3   : > { %487 = vst.msk [vmem:[%s750_s6 + $0x24] sm:$0xf] %vm483_vm2, %v611_v6 }
  0xf4 PF: > { %s13_s14 = sadd.s32 1, %s678_s14   ;;  %s774_s12 = smov %s674_s13 }
  0xf5   : > { %p10_p5 = scmp.ge.s32.totalorder %s13_s14, 4   ;;  %s775_s13 = smov %s777_s15 }
  0xf7   :  { %12 = sbr.rel (!%p10_p5) target bundleno = 2 (0x2), region = 62 }

// kernel: gmsa_forward.6
= control target key start
LH: loop header
LB: loop body
LE: loop exit
PB: predicated region body
PF: predicated region fallthrough
CT: control target
= control target key end

     0   :  { %s6283_s12 = smov 0   ;;  %s7694_s0 = inlined_call_operand.vmem [shape: bf16[72,16,4], index: 0, kind: input, shape index: {}]   ;;  %s7695_s1 = inlined_call_operand.vmem [shape: bf16[72,4,16], index: 1, kind: input, shape index: {}]   ;;  %s7696_s2 = inlined_call_operand.vmem [shape: bf16[72,4,16], index: 2, kind: output, shape index: {0}]   ;;  %s7697_s3 = inlined_call_operand.vmem [shape: bf16[72,16,16], index: 3, kind: output, shape index: {1}]  }
   0x1 LB: > { %s5076_s13 = sadd.s32 4294967295, %s6259_s12   ;;  %p5080_p0 = scmp.ge.s32.totalorder %s6259_s12, 1  ;;  %s6259_s12 = sphi %s6283_s12, %s14_s12  }
   0x2   : > { %p153_p1 = scmp.lt.s32.totalorder %s6259_s12, 3 }
   0x4   : > { %p154_p2 = pnand %p5080_p0, %p153_p1 }
   0x6   : > { %157 = sbr.rel (%p154_p2) target bundleno = 887 (0x377), region = 28 }
   0xb   : > { %s189_s14 = smul.u32 36, %s5076_s13  ;;  %v7698_v0 = vmov 0.0   ;;  %vm6262_vm0 = vmmov 0   ;;  %vm329_vm1 = vcmask 31744   ;;  %vm2089_vm2 = vcmask 130048  }
   0xc   : > { %5487 = vmatprep.subr.bf16.mxu0 %v7698_v0  ;;  %5493 = vmatprep.subr.bf16.mxu1 %v7698_v0  ;;  %vm3170_vm3 = vcmask 125952   ;;  %vm4935_vm4 = vcmask 123904  }
   0xd   : > { %p190_p3 = scmp.lt.s32.totalorder %s189_s14, 71  ;;  %5489 = vmatprep.mubr.msk.bf16.mxu0 %vm6262_vm0, %v7698_v0  ;;  %5495 = vmatprep.mubr.msk.bf16.mxu1 %vm6262_vm0, %v7698_v0 }
   0xf   : > { %s7831_s14 = smov (!%p190_p3, %s189_s14), 71 }
  0x10   : > { %s5269_s15 = sshll.u32 %s7831_s14, 3  ;;  %s5083_s22 = sshll.u32 %s7831_s14, 1 }
  0x11   : > { %s6305_s18 = scalar_lea.vmem %s7694_s0, %s5269_s15  ;;  %s7177_s21 = scalar_lea.vmem %s7697_s3, %s5269_s15 }
  0x12   : > { %v5929_v1 = vld [vmem:[%s6305_s18] sm:$0xff]   ;;  %v5930_v2 = vld [vmem:[%s6305_s18 + $0x8] sm:$0xff]   ;;  %v5931_v5 = vld [vmem:[%s6305_s18 + $0x10] sm:$0xff]   ;;  %s7196_s25 = scalar_lea.vmem %s7695_s1, %s5083_s22  ;;  %s7617_s28 = scalar_lea.vmem %s7696_s2, %s5083_s22 }
  0x13   : > { %v331_v3 = vsel %vm329_vm1, %v5929_v1, 0  ;;  %v380_v4 = vsel %vm329_vm1, %v5930_v2, 0  ;;  %v5932_v6 = vld [vmem:[%s6305_s18 + $0x18] sm:$0xff]   ;;  %v429_v7 = vsel %vm329_vm1, %v5931_v5, 0  ;;  %v5933_v9 = vld [vmem:[%s6305_s18 + $0x20] sm:$0xff]   ;;  %v5934_v10 = vld [vmem:[%s6305_s18 + $0x28] sm:$0xff]  }
  0x14   : > { %5488 = vmatpush3.bf16.xpose.msra.mxu0 %v331_v3  ;;  %5494 = vmatpush3.bf16.xpose.msra.mxu1 %v380_v4  ;;  %v478_v8 = vsel %vm329_vm1, %v5932_v6, 0  ;;  %v527_v11 = vsel %vm329_vm1, %v5933_v9, 0  ;;  %v576_v12 = vsel %vm329_vm1, %v5934_v10, 0  ;;  %v5935_v13 = vld [vmem:[%s6305_s18 + $0x30] sm:$0xff]   ;;  %v5936_v14 = vld [vmem:[%s6305_s18 + $0x38] sm:$0xff]   ;;  %v5937_v17 = vld [vmem:[%s6305_s18 + $0x40] sm:$0xff]  }
  0x15   : > { %5499 = vmatprep.subr.bf16.mxu0 %v7698_v0  ;;  %5505 = vmatprep.subr.bf16.mxu1 %v7698_v0  ;;  %v625_v15 = vsel %vm329_vm1, %v5935_v13, 0  ;;  %v674_v16 = vsel %vm329_vm1, %v5936_v14, 0  ;;  %v5938_v18 = vld [vmem:[%s6305_s18 + $0x48] sm:$0xff]   ;;  %v723_v19 = vsel %vm329_vm1, %v5937_v17, 0  ;;  %v5939_v21 = vld [vmem:[%s6305_s18 + $0x50] sm:$0xff]   ;;  %v5940_v22 = vld [vmem:[%s6305_s18 + $0x58] sm:$0xff]  }
  0x16   : > { %v772_v20 = vsel %vm329_vm1, %v5938_v18, 0  ;;  %v821_v23 = vsel %vm329_vm1, %v5939_v21, 0  ;;  %v870_v24 = vsel %vm329_vm1, %v5940_v22, 0  ;;  %v5941_v25 = vld [vmem:[%s6305_s18 + $0x60] sm:$0xff]   ;;  %v5942_v26 = vld [vmem:[%s6305_s18 + $0x68] sm:$0xff]   ;;  %v5943_v29 = vld [vmem:[%s6305_s18 + $0x70] sm:$0xff]  }
  0x17   : > { %v919_v27 = vsel %vm329_vm1, %v5941_v25, 0  ;;  %v968_v28 = vsel %vm329_vm1, %v5942_v26, 0  ;;  %v5944_v30 = vld [vmem:[%s6305_s18 + $0x78] sm:$0xff]   ;;  %v1017_v31 = vsel %vm329_vm1, %v5943_v29, 0  ;;  %v5945_v33 = vld [vmem:[%s6305_s18 + $0x80] sm:$0xff]   ;;  %v5946_v34 = vld [vmem:[%s6305_s18 + $0x88] sm:$0xff]  }
  0x18   : > { %v1066_v32 = vsel %vm329_vm1, %v5944_v30, 0  ;;  %v1115_v35 = vsel %vm329_vm1, %v5945_v33, 0  ;;  %v1164_v36 = vsel %vm329_vm1, %v5946_v34, 0  ;;  %v5947_v37 = vld [vmem:[%s6305_s18 + $0x90] sm:$0xff]   ;;  %v5948_v38 = vld [vmem:[%s6305_s18 + $0x98] sm:$0xff]   ;;  %v5949_v41 = vld [vmem:[%s6305_s18 + $0xa0] sm:$0xff]  }
  0x19   : > { %v1213_v39 = vsel %vm329_vm1, %v5947_v37, 0  ;;  %v1262_v40 = vsel %vm329_vm1, %v5948_v38, 0  ;;  %v5950_v42 = vld [vmem:[%s6305_s18 + $0xa8] sm:$0xff]   ;;  %v1311_v43 = vsel %vm329_vm1, %v5949_v41, 0  ;;  %v5951_v45 = vld [vmem:[%s6305_s18 + $0xb0] sm:$0xff]   ;;  %v5952_v46 = vld [vmem:[%s6305_s18 + $0xb8] sm:$0xff]  }
  0x1a   : > { %v1360_v44 = vsel %vm329_vm1, %v5950_v42, 0  ;;  %v1409_v47 = vsel %vm329_vm1, %v5951_v45, 0  ;;  %v1458_v48 = vsel %vm329_vm1, %v5952_v46, 0  ;;  %v5953_v49 = vld [vmem:[%s6305_s18 + $0xc0] sm:$0xff]   ;;  %v5954_v50 = vld [vmem:[%s6305_s18 + $0xc8] sm:$0xff]   ;;  %v5955_v53 = vld [vmem:[%s6305_s18 + $0xd0] sm:$0xff]  }
  0x1b   : > { %5490 = vmatmul.mubr.msk.bf16.vlgmr.msra.gmra.mxu0 %vm329_vm1, %v5929_v1  ;;  %5496 = vmatmul.mubr.msk.bf16.vlgmr.msra.gmra.mxu1 %vm329_vm1, %v5930_v2  ;;  %v1507_v51 = vsel %vm329_vm1, %v5953_v49, 0  ;;  %v1556_v52 = vsel %vm329_vm1, %v5954_v50, 0  ;;  %v5956_v54 = vld [vmem:[%s6305_s18 + $0xd8] sm:$0xff]   ;;  %v1605_v55 = vsel %vm329_vm1, %v5955_v53, 0  ;;  %v5957_v57 = vld [vmem:[%s6305_s18 + $0xe0] sm:$0xff]   ;;  %v5958_v58 = vld [vmem:[%s6305_s18 + $0xe8] sm:$0xff]  }
  0x1c   : > { %5500 = vmatpush3.bf16.xpose.msra.mxu0 %v429_v7  ;;  %5506 = vmatpush3.bf16.xpose.msra.mxu1 %v478_v8  ;;  %v1654_v56 = vsel %vm329_vm1, %v5956_v54, 0  ;;  %v1703_v59 = vsel %vm329_vm1, %v5957_v57, 0  ;;  %v1752_v60 = vsel %vm329_vm1, %v5958_v58, 0  ;;  %v5959_v61 = vld [vmem:[%s6305_s18 + $0xf0] sm:$0xff]   ;;  %v5960_v62 = vld [vmem:[%s6305_s18 + $0xf8] sm:$0xff]   ;;  %v5961_v2 = vld [vmem:[%s6305_s18 + $0x100] sm:$0xff]  }
  0x1d   : > { %5501 = vmatprep.mubr.msk.bf16.mxu0 %vm6262_vm0, %v7698_v0  ;;  %5507 = vmatprep.mubr.msk.bf16.mxu1 %vm6262_vm0, %v7698_v0  ;;  %v1801_v63 = vsel %vm329_vm1, %v5959_v61, 0  ;;  %v1850_v1 = vsel %vm329_vm1, %v5960_v62, 0  ;;  %v5962_v3 = vld [vmem:[%s6305_s18 + $0x108] sm:$0xff]   ;;  %v1899_v4 = vsel %vm329_vm1, %v5961_v2, 0  ;;  %v5964_v7 = vld [vmem:[%s6305_s18 + $0x118] sm:$0xff]  }
  0x1e   : > { %5511 = vmatprep.subr.bf16.mxu0 %v7698_v0  ;;  %5517 = vmatprep.subr.bf16.mxu1 %v7698_v0 }
  0x23   : > { %5502 = vmatmul.mubr.msk.bf16.vlgmr.msra.gmra.mxu0 %vm329_vm1, %v5931_v5  ;;  %5508 = vmatmul.mubr.msk.bf16.vlgmr.msra.gmra.mxu1 %vm329_vm1, %v5932_v6  ;;  %v1948_v5 = vsel %vm329_vm1, %v5962_v3, 0  ;;  %v5963_v6 = vld [vmem:[%s6305_s18 + $0x110] sm:$0xff]  }
  0x24   : > { %5512 = vmatpush3.bf16.xpose.msra.mxu0 %v527_v11  ;;  %5518 = vmatpush3.bf16.xpose.msra.mxu1 %v576_v12  ;;  %v1997_v8 = vsel %vm329_vm1, %v5963_v6, 0 }
  0x25   : > { %5513 = vmatprep.mubr.msk.bf16.mxu0 %vm6262_vm0, %v7698_v0  ;;  %5519 = vmatprep.mubr.msk.bf16.mxu1 %vm6262_vm0, %v7698_v0 }
  0x26   : > { %5523 = vmatprep.subr.bf16.mxu0 %v7698_v0  ;;  %5529 = vmatprep.subr.bf16.mxu1 %v7698_v0 }
  0x2b   : > { %5514 = vmatmul.mubr.msk.bf16.vlgmr.msra.gmra.mxu0 %vm329_vm1, %v5933_v9  ;;  %5520 = vmatmul.mubr.msk.bf16.vlgmr.msra.gmra.mxu1 %vm329_vm1, %v5934_v10  ;;  %v2046_v9 = vsel %vm329_vm1, %v5964_v7, 0 }
  0x2c   : > { %5524 = vmatpush3.bf16.xpose.msra.mxu0 %v625_v15  ;;  %5530 = vmatpush3.bf16.xpose.msra.mxu1 %v674_v16 }
  0x2d   : > { %5525 = vmatprep.mubr.msk.bf16.mxu0 %vm6262_vm0, %v7698_v0  ;;  %5531 = vmatprep.mubr.msk.bf16.mxu1 %vm6262_vm0, %v7698_v0 }
  0x2e   : > { %5535 = vmatprep.subr.bf16.mxu0 %v7698_v0  ;;  %5541 = vmatprep.subr.bf16.mxu1 %v7698_v0 }
  0x33   : > { %5526 = vmatmul.mubr.msk.bf16.vlgmr.msra.gmra.mxu0 %vm329_vm1, %v5935_v13  ;;  %5532 = vmatmul.mubr.msk.bf16.vlgmr.msra.gmra.mxu1 %vm329_vm1, %v5936_v14 }
  0x34   : > { %5536 = vmatpush3.bf16.xpose.msra.mxu0 %v723_v19  ;;  %5542 = vmatpush3.bf16.xpose.msra.mxu1 %v772_v20 }
  0x35   : > { %5537 = vmatprep.mubr.msk.bf16.mxu0 %vm6262_vm0, %v7698_v0  ;;  %5543 = vmatprep.mubr.msk.bf16.mxu1 %vm6262_vm0, %v7698_v0 }
  0x36   : > { %5547 = vmatprep.subr.bf16.mxu0 %v7698_v0  ;;  %5553 = vmatprep.subr.bf16.mxu1 %v7698_v0 }
  0x3b   : > { %5538 = vmatmul.mubr.msk.bf16.vlgmr.msra.gmra.mxu0 %vm329_vm1, %v5937_v17  ;;  %5544 = vmatmul.mubr.msk.bf16.vlgmr.msra.gmra.mxu1 %vm329_vm1, %v5938_v18 }
  0x3c   : > { %5548 = vmatpush3.bf16.xpose.msra.mxu0 %v821_v23  ;;  %5554 = vmatpush3.bf16.xpose.msra.mxu1 %v870_v24 }
  0x3d   : > { %5549 = vmatprep.mubr.msk.bf16.mxu0 %vm6262_vm0, %v7698_v0  ;;  %5555 = vmatprep.mubr.msk.bf16.mxu1 %vm6262_vm0, %v7698_v0 }
  0x3e   : > { %5559 = vmatprep.subr.bf16.mxu0 %v7698_v0  ;;  %5565 = vmatprep.subr.bf16.mxu1 %v7698_v0 }
  0x43   : > { %5550 = vmatmul.mubr.msk.bf16.vlgmr.msra.gmra.mxu0 %vm329_vm1, %v5939_v21  ;;  %5556 = vmatmul.mubr.msk.bf16.vlgmr.msra.gmra.mxu1 %vm329_vm1, %v5940_v22 }
  0x44   : > { %5560 = vmatpush3.bf16.xpose.msra.mxu0 %v919_v27  ;;  %5566 = vmatpush3.bf16.xpose.msra.mxu1 %v968_v28 }
  0x45   : > { %5561 = vmatprep.mubr.msk.bf16.mxu0 %vm6262_vm0, %v7698_v0  ;;  %5567 = vmatprep.mubr.msk.bf16.mxu1 %vm6262_vm0, %v7698_v0 }
  0x46   : > { %5571 = vmatprep.subr.bf16.mxu0 %v7698_v0  ;;  %5577 = vmatprep.subr.bf16.mxu1 %v7698_v0 }
  0x4b   : > { %5562 = vmatmul.mubr.msk.bf16.vlgmr.msra.gmra.mxu0 %vm329_vm1, %v5941_v25  ;;  %5568 = vmatmul.mubr.msk.bf16.vlgmr.msra.gmra.mxu1 %vm329_vm1, %v5942_v26 }
  0x4c   : > { %5572 = vmatpush3.bf16.xpose.msra.mxu0 %v1017_v31  ;;  %5578 = vmatpush3.bf16.xpose.msra.mxu1 %v1066_v32 }
  0x4d   : > { %5573 = vmatprep.mubr.msk.bf16.mxu0 %vm6262_vm0, %v7698_v0  ;;  %5579 = vmatprep.mubr.msk.bf16.mxu1 %vm6262_vm0, %v7698_v0 }
  0x4e   : > { %5583 = vmatprep.subr.bf16.mxu0 %v7698_v0  ;;  %5589 = vmatprep.subr.bf16.mxu1 %v7698_v0 }
  0x53   : > { %5574 = vmatmul.mubr.msk.bf16.vlgmr.msra.gmra.mxu0 %vm329_vm1, %v5943_v29  ;;  %5580 = vmatmul.mubr.msk.bf16.vlgmr.msra.gmra.mxu1 %vm329_vm1, %v5944_v30 }
  0x54   : > { %5584 = vmatpush3.bf16.xpose.msra.mxu0 %v1115_v35  ;;  %5590 = vmatpush3.bf16.xpose.msra.mxu1 %v1164_v36 }
  0x55   : > { %5585 = vmatprep.mubr.msk.bf16.mxu0 %vm6262_vm0, %v7698_v0  ;;  %5591 = vmatprep.mubr.msk.bf16.mxu1 %vm6262_vm0, %v7698_v0 }
  0x56   : > { %5595 = vmatprep.subr.bf16.mxu0 %v7698_v0  ;;  %5601 = vmatprep.subr.bf16.mxu1 %v7698_v0 }
  0x5b   : > { %5586 = vmatmul.mubr.msk.bf16.vlgmr.msra.gmra.mxu0 %vm329_vm1, %v5945_v33  ;;  %5592 = vmatmul.mubr.msk.bf16.vlgmr.msra.gmra.mxu1 %vm329_vm1, %v5946_v34 }
  0x5c   : > { %5596 = vmatpush3.bf16.xpose.msra.mxu0 %v1213_v39  ;;  %5602 = vmatpush3.bf16.xpose.msra.mxu1 %v1262_v40 }
  0x5d   : > { %5597 = vmatprep.mubr.msk.bf16.mxu0 %vm6262_vm0, %v7698_v0  ;;  %5603 = vmatprep.mubr.msk.bf16.mxu1 %vm6262_vm0, %v7698_v0 }
  0x5e   : > { %5607 = vmatprep.subr.bf16.mxu0 %v7698_v0  ;;  %5613 = vmatprep.subr.bf16.mxu1 %v7698_v0 }
  0x63   : > { %5598 = vmatmul.mubr.msk.bf16.vlgmr.msra.gmra.mxu0 %vm329_vm1, %v5947_v37  ;;  %5604 = vmatmul.mubr.msk.bf16.vlgmr.msra.gmra.mxu1 %vm329_vm1, %v5948_v38 }
  0x64   : > { %5608 = vmatpush3.bf16.xpose.msra.mxu0 %v1311_v43  ;;  %5614 = vmatpush3.bf16.xpose.msra.mxu1 %v1360_v44 }
  0x65   : > { %5609 = vmatprep.mubr.msk.bf16.mxu0 %vm6262_vm0, %v7698_v0  ;;  %5615 = vmatprep.mubr.msk.bf16.mxu1 %vm6262_vm0, %v7698_v0 }
  0x66   : > { %5619 = vmatprep.subr.bf16.mxu0 %v7698_v0  ;;  %5625 = vmatprep.subr.bf16.mxu1 %v7698_v0 }
  0x6b   : > { %5610 = vmatmul.mubr.msk.bf16.vlgmr.msra.gmra.mxu0 %vm329_vm1, %v5949_v41  ;;  %5616 = vmatmul.mubr.msk.bf16.vlgmr.msra.gmra.mxu1 %vm329_vm1, %v5950_v42 }
  0x6c   : > { %5620 = vmatpush3.bf16.xpose.msra.mxu0 %v1409_v47  ;;  %5626 = vmatpush3.bf16.xpose.msra.mxu1 %v1458_v48 }
  0x6d   : > { %5621 = vmatprep.mubr.msk.bf16.mxu0 %vm6262_vm0, %v7698_v0  ;;  %5627 = vmatprep.mubr.msk.bf16.mxu1 %vm6262_vm0, %v7698_v0 }
  0x6e   : > { %5631 = vmatprep.subr.bf16.mxu0 %v7698_v0  ;;  %5637 = vmatprep.subr.bf16.mxu1 %v7698_v0 }
  0x73   : > { %5622 = vmatmul.mubr.msk.bf16.vlgmr.msra.gmra.mxu0 %vm329_vm1, %v5951_v45  ;;  %5628 = vmatmul.mubr.msk.bf16.vlgmr.msra.gmra.mxu1 %vm329_vm1, %v5952_v46 }
  0x74   : > { %5632 = vmatpush3.bf16.xpose.msra.mxu0 %v1507_v51  ;;  %5638 = vmatpush3.bf16.xpose.msra.mxu1 %v1556_v52 }
  0x75   : > { %5633 = vmatprep.mubr.msk.bf16.mxu0 %vm6262_vm0, %v7698_v0  ;;  %5639 = vmatprep.mubr.msk.bf16.mxu1 %vm6262_vm0, %v7698_v0 }
  0x76   : > { %5643 = vmatprep.subr.bf16.mxu0 %v7698_v0  ;;  %5649 = vmatprep.subr.bf16.mxu1 %v7698_v0 }
  0x7b   : > { %5634 = vmatmul.mubr.msk.bf16.vlgmr.msra.gmra.mxu0 %vm329_vm1, %v5953_v49  ;;  %5640 = vmatmul.mubr.msk.bf16.vlgmr.msra.gmra.mxu1 %vm329_vm1, %v5954_v50 }
  0x7c   : > { %5644 = vmatpush3.bf16.xpose.msra.mxu0 %v1605_v55  ;;  %5650 = vmatpush3.bf16.xpose.msra.mxu1 %v1654_v56 }
  0x7d   : > { %5645 = vmatprep.mubr.msk.bf16.mxu0 %vm6262_vm0, %v7698_v0  ;;  %5651 = vmatprep.mubr.msk.bf16.mxu1 %vm6262_vm0, %v7698_v0 }
  0x7e   : > { %5655 = vmatprep.subr.bf16.mxu0 %v7698_v0  ;;  %5661 = vmatprep.subr.bf16.mxu1 %v7698_v0 }
  0x83   : > { %5646 = vmatmul.mubr.msk.bf16.vlgmr.msra.gmra.mxu0 %vm329_vm1, %v5955_v53  ;;  %5652 = vmatmul.mubr.msk.bf16.vlgmr.msra.gmra.mxu1 %vm329_vm1, %v5956_v54 }
  0x84   : > { %5656 = vmatpush3.bf16.xpose.msra.mxu0 %v1703_v59  ;;  %5662 = vmatpush3.bf16.xpose.msra.mxu1 %v1752_v60 }
  0x85   : > { %5657 = vmatprep.mubr.msk.bf16.mxu0 %vm6262_vm0, %v7698_v0  ;;  %5663 = vmatprep.mubr.msk.bf16.mxu1 %vm6262_vm0, %v7698_v0 }
  0x86   : > { %5667 = vmatprep.subr.bf16.mxu0 %v7698_v0  ;;  %5673 = vmatprep.subr.bf16.mxu1 %v7698_v0 }
  0x8b   : > { %5658 = vmatmul.mubr.msk.bf16.vlgmr.msra.gmra.mxu0 %vm329_vm1, %v5957_v57  ;;  %5664 = vmatmul.mubr.msk.bf16.vlgmr.msra.gmra.mxu1 %vm329_vm1, %v5958_v58 }
  0x8c   : > { %5668 = vmatpush3.bf16.xpose.msra.mxu0 %v1801_v63  ;;  %5674 = vmatpush3.bf16.xpose.msra.mxu1 %v1850_v1 }
  0x8d   : > { %5669 = vmatprep.mubr.msk.bf16.mxu0 %vm6262_vm0, %v7698_v0  ;;  %5675 = vmatprep.mubr.msk.bf16.mxu1 %vm6262_vm0, %v7698_v0 }
  0x8e   : > { %5679 = vmatprep.subr.bf16.mxu0 %v7698_v0  ;;  %5685 = vmatprep.subr.bf16.mxu1 %v7698_v0 }
  0x93   : > { %5670 = vmatmul.mubr.msk.bf16.vlgmr.msra.gmra.mxu0 %vm329_vm1, %v5959_v61  ;;  %5676 = vmatmul.mubr.msk.bf16.vlgmr.msra.gmra.mxu1 %vm329_vm1, %v5960_v62 }
  0x94   : > { %5680 = vmatpush3.bf16.xpose.msra.mxu0 %v1899_v4  ;;  %5686 = vmatpush3.bf16.xpose.msra.mxu1 %v1948_v5 }
  0x95   : > { %5681 = vmatprep.mubr.msk.bf16.mxu0 %vm6262_vm0, %v7698_v0  ;;  %5687 = vmatprep.mubr.msk.bf16.mxu1 %vm6262_vm0, %v7698_v0 }
  0x96   : > { %5691 = vmatprep.subr.bf16.mxu0 %v7698_v0  ;;  %5697 = vmatprep.subr.bf16.mxu1 %v7698_v0 }
  0x9b   : > { %5682 = vmatmul.mubr.msk.bf16.vlgmr.msra.gmra.mxu0 %vm329_vm1, %v5961_v2  ;;  %5688 = vmatmul.mubr.msk.bf16.vlgmr.msra.gmra.mxu1 %vm329_vm1, %v5962_v3 }
  0x9c   : > { %5692 = vmatpush3.bf16.xpose.msra.mxu0 %v1997_v8  ;;  %5698 = vmatpush3.bf16.xpose.msra.mxu1 %v2046_v9 }
  0x9d   : > { %5693 = vmatprep.mubr.msk.bf16.mxu0 %vm6262_vm0, %v7698_v0  ;;  %5699 = vmatprep.mubr.msk.bf16.mxu1 %vm6262_vm0, %v7698_v0 }
  0x9e   : > { %5703 = vmatprep.subr.bf16.mxu0 %v7698_v0  ;;  %5709 = vmatprep.subr.bf16.mxu1 %v7698_v0 }
  0xa3   : > { %5694 = vmatmul.mubr.msk.bf16.vlgmr.msra.gmra.mxu0 %vm329_vm1, %v5963_v6  ;;  %5700 = vmatmul.mubr.msk.bf16.vlgmr.msra.gmra.mxu1 %vm329_vm1, %v5964_v7 }
  0xa4   : > { %5705 = vmatprep.mubr.msk.bf16.mxu0 %vm6262_vm0, %v7698_v0  ;;  %5711 = vmatprep.mubr.msk.bf16.mxu1 %vm6262_vm0, %v7698_v0 }
  0xdb   : > { %v6523_v10 = vpop.f32.mrf.mxu0  ;;  %v6525_v11 = vpop.f32.mrf.mxu1 }
  0xdc   : > { %v2090_v12 = vsel %vm2089_vm2, %v6523_v10, -inf  ;;  %v2096_v13 = vsel %vm2089_vm2, %v6525_v11, -inf }
  0xdd   : > { %2091 = vmax.xlane.f32.xlu0 %v2090_v12  ;;  %v5491_v14 = vpop.f32.mrf.mxu0  ;;  %2097 = vmax.xlane.f32.xlu1 %v2096_v13  ;;  %v5497_v15 = vpop.f32.mrf.mxu1 }
  0xdf   : > { %v6531_v16 = vpop.f32.mrf.mxu0  ;;  %v6533_v17 = vpop.f32.mrf.mxu1 }
  0xe0   : > { %v2093_v18 = vsel %vm2089_vm2, %v6531_v16, -inf  ;;  %v2099_v19 = vsel %vm2089_vm2, %v6533_v17, -inf }
  0xe1   : > { %2094 = vmax.xlane.f32.xlu0 %v2093_v18  ;;  %v5492_v20 = vpop.f32.mrf.mxu0  ;;  %2100 = vmax.xlane.f32.xlu1 %v2099_v19  ;;  %v5498_v21 = vpop.f32.mrf.mxu1 }
  0xe3   : > { %v6539_v22 = vpop.f32.mrf.mxu0  ;;  %v6541_v23 = vpop.f32.mrf.mxu1 }
  0xe4   : > { %v2102_v24 = vsel %vm2089_vm2, %v6539_v22, -inf  ;;  %v2108_v27 = vsel %vm2089_vm2, %v6541_v23, -inf }
  0xe5   : > { %2103 = vmax.xlane.f32.xlu0 %v2102_v24  ;;  %v5503_v25 = vpop.f32.mrf.mxu0  ;;  %v5509_v26 = vpop.f32.mrf.mxu1 }
  0xe7   : > { %v6547_v28 = vpop.f32.mrf.mxu0  ;;  %v6549_v29 = vpop.f32.mrf.mxu1 }
  0xe8   : > { %v2105_v30 = vsel %vm2089_vm2, %v6547_v28, -inf  ;;  %v2111_v35 = vsel %vm2089_vm2, %v6549_v29, -inf }
  0xe9   : > { %2109 = vmax.xlane.f32.xlu0 %v2108_v27  ;;  %2106 = vmax.xlane.f32.xlu1 %v2105_v30  ;;  %v5504_v31 = vpop.f32.mrf.mxu0  ;;  %v5510_v32 = vpop.f32.mrf.mxu1 }
  0xeb   : > { %v6553_v33 = vpop.f32.mrf.mxu0  ;;  %v6555_v34 = vpop.f32.mrf.mxu1 }
  0xec   : > { %v2114_v36 = vsel %vm2089_vm2, %v6553_v33, -inf  ;;  %v2120_v39 = vsel %vm2089_vm2, %v6555_v34, -inf }
  0xed   : > { %2112 = vmax.xlane.f32.xlu1 %v2111_v35  ;;  %2115 = vmax.xlane.f32.xlu0 %v2114_v36  ;;  %v5515_v37 = vpop.f32.mrf.mxu0  ;;  %v5521_v38 = vpop.f32.mrf.mxu1 }
  0xef   : > { %v6563_v40 = vpop.f32.mrf.mxu0  ;;  %v6565_v41 = vpop.f32.mrf.mxu1 }
  0xf0   : > { %v2117_v42 = vsel %vm2089_vm2, %v6563_v40, -inf  ;;  %v2123_v47 = vsel %vm2089_vm2, %v6565_v41, -inf }
  0xf1   : > { %2121 = vmax.xlane.f32.xlu0 %v2120_v39  ;;  %2118 = vmax.xlane.f32.xlu1 %v2117_v42  ;;  %v5516_v43 = vpop.f32.mrf.mxu0  ;;  %v5522_v44 = vpop.f32.mrf.mxu1 }
  0xf3   : > { %v6569_v45 = vpop.f32.mrf.mxu0  ;;  %v6571_v46 = vpop.f32.mrf.mxu1 }
  0xf4   : > { %v2126_v48 = vsel %vm2089_vm2, %v6569_v45, -inf  ;;  %v2132_v51 = vsel %vm2089_vm2, %v6571_v46, -inf }
  0xf5   : > { %2124 = vmax.xlane.f32.xlu1 %v2123_v47  ;;  %2127 = vmax.xlane.f32.xlu0 %v2126_v48  ;;  %v5527_v49 = vpop.f32.mrf.mxu0  ;;  %v5533_v50 = vpop.f32.mrf.mxu1 }
  0xf7   : > { %v6579_v52 = vpop.f32.mrf.mxu0  ;;  %v6581_v53 = vpop.f32.mrf.mxu1 }
  0xf8   : > { %v2129_v54 = vsel %vm2089_vm2, %v6579_v52, -inf  ;;  %v2135_v59 = vsel %vm2089_vm2, %v6581_v53, -inf }
  0xf9   : > { %2133 = vmax.xlane.f32.xlu0 %v2132_v51  ;;  %2130 = vmax.xlane.f32.xlu1 %v2129_v54  ;;  %v5528_v55 = vpop.f32.mrf.mxu0  ;;  %v5534_v56 = vpop.f32.mrf.mxu1 }
  0xfb   : > { %v6585_v57 = vpop.f32.mrf.mxu0  ;;  %v6587_v58 = vpop.f32.mrf.mxu1 }
  0xfc   : > { %v2138_v60 = vsel %vm2089_vm2, %v6585_v57, -inf  ;;  %v2144_v63 = vsel %vm2089_vm2, %v6587_v58, -inf }
  0xfd   : > { %2136 = vmax.xlane.f32.xlu1 %v2135_v59  ;;  %2139 = vmax.xlane.f32.xlu0 %v2138_v60  ;;  %v5539_v61 = vpop.f32.mrf.mxu0  ;;  %v5545_v62 = vpop.f32.mrf.mxu1 }
  0xff   : > { %v6595_v1 = vpop.f32.mrf.mxu0  ;;  %v6597_v2 = vpop.f32.mrf.mxu1 }
 0x100   : > { %v2141_v3 = vsel %vm2089_vm2, %v6595_v1, -inf  ;;  %v2147_v8 = vsel %vm2089_vm2, %v6597_v2, -inf }
 0x101   : > { %2145 = vmax.xlane.f32.xlu0 %v2144_v63  ;;  %2142 = vmax.xlane.f32.xlu1 %v2141_v3  ;;  %v5540_v4 = vpop.f32.mrf.mxu0  ;;  %v5546_v5 = vpop.f32.mrf.mxu1 }
 0x103   : > { %v6601_v6 = vpop.f32.mrf.mxu0  ;;  %v6603_v7 = vpop.f32.mrf.mxu1 }
 0x104   : > { %v2150_v9 = vsel %vm2089_vm2, %v6601_v6, -inf  ;;  %v2156_v14 = vsel %vm2089_vm2, %v6603_v7, -inf }
 0x105   : > { %2148 = vmax.xlane.f32.xlu1 %v2147_v8  ;;  %2151 = vmax.xlane.f32.xlu0 %v2150_v9  ;;  %v5551_v12 = vpop.f32.mrf.mxu0  ;;  %v5557_v13 = vpop.f32.mrf.mxu1 }
 0x107   : > { %v6611_v15 = vpop.f32.mrf.mxu0  ;;  %v6613_v18 = vpop.f32.mrf.mxu1 }
 0x108   : > { %v2153_v19 = vsel %vm2089_vm2, %v6611_v15, -inf  ;;  %v2159_v26 = vsel %vm2089_vm2, %v6613_v18, -inf }
 0x109   : > { %2157 = vmax.xlane.f32.xlu0 %v2156_v14  ;;  %2154 = vmax.xlane.f32.xlu1 %v2153_v19  ;;  %v5552_v20 = vpop.f32.mrf.mxu0  ;;  %v5558_v21 = vpop.f32.mrf.mxu1 }
 0x10b   : > { %v6617_v24 = vpop.f32.mrf.mxu0  ;;  %v6619_v25 = vpop.f32.mrf.mxu1 }
 0x10c   : > { %v2162_v27 = vsel %vm2089_vm2, %v6617_v24, -inf  ;;  %v2168_v32 = vsel %vm2089_vm2, %v6619_v25, -inf }
 0x10d   : > { %2160 = vmax.xlane.f32.xlu1 %v2159_v26  ;;  %2163 = vmax.xlane.f32.xlu0 %v2162_v27  ;;  %v5563_v30 = vpop.f32.mrf.mxu0  ;;  %v5569_v31 = vpop.f32.mrf.mxu1 }
 0x10f   : > { %v6627_v35 = vpop.f32.mrf.mxu0  ;;  %v6629_v36 = vpop.f32.mrf.mxu1 }
 0x110   : > { %v2165_v37 = vsel %vm2089_vm2, %v6627_v35, -inf  ;;  %v2171_v44 = vsel %vm2089_vm2, %v6629_v36, -inf }
 0x111   : > { %2169 = vmax.xlane.f32.xlu0 %v2168_v32  ;;  %2166 = vmax.xlane.f32.xlu1 %v2165_v37  ;;  %v5564_v38 = vpop.f32.mrf.mxu0  ;;  %v5570_v39 = vpop.f32.mrf.mxu1 }
 0x113   : > { %v6633_v42 = vpop.f32.mrf.mxu0  ;;  %v6635_v43 = vpop.f32.mrf.mxu1 }
 0x114   : > { %v2174_v47 = vsel %vm2089_vm2, %v6633_v42, -inf  ;;  %v2180_v50 = vsel %vm2089_vm2, %v6635_v43, -inf }
 0x115   : > { %2172 = vmax.xlane.f32.xlu1 %v2171_v44  ;;  %2175 = vmax.xlane.f32.xlu0 %v2174_v47  ;;  %v5575_v48 = vpop.f32.mrf.mxu0  ;;  %v5581_v49 = vpop.f32.mrf.mxu1 }
 0x117   : > { %v6643_v51 = vpop.f32.mrf.mxu0  ;;  %v6645_v54 = vpop.f32.mrf.mxu1 }
 0x118   : > { %v2177_v55 = vsel %vm2089_vm2, %v6643_v51, -inf  ;;  %v2183_v62 = vsel %vm2089_vm2, %v6645_v54, -inf }
 0x119   : > { %2181 = vmax.xlane.f32.xlu0 %v2180_v50  ;;  %2178 = vmax.xlane.f32.xlu1 %v2177_v55  ;;  %v5576_v56 = vpop.f32.mrf.mxu0  ;;  %v5582_v59 = vpop.f32.mrf.mxu1 }
 0x11b   : > { %v6649_v60 = vpop.f32.mrf.mxu0  ;;  %v6651_v61 = vpop.f32.mrf.mxu1 }
 0x11c   : > { %v2186_v63 = vsel %vm2089_vm2, %v6649_v60, -inf  ;;  %v2192_v5 = vsel %vm2089_vm2, %v6651_v61, -inf }
 0x11d   : > { %2184 = vmax.xlane.f32.xlu1 %v2183_v62  ;;  %2187 = vmax.xlane.f32.xlu0 %v2186_v63  ;;  %v5587_v3 = vpop.f32.mrf.mxu0  ;;  %v5593_v4 = vpop.f32.mrf.mxu1 }
 0x11f   : > { %v6659_v8 = vpop.f32.mrf.mxu0  ;;  %v6661_v9 = vpop.f32.mrf.mxu1 }
 0x120   : > { %v2189_v12 = vsel %vm2089_vm2, %v6659_v8, -inf  ;;  %v2195_v21 = vsel %vm2089_vm2, %v6661_v9, -inf }
 0x121   : > { %2193 = vmax.xlane.f32.xlu0 %v2192_v5  ;;  %2190 = vmax.xlane.f32.xlu1 %v2189_v12  ;;  %v5588_v13 = vpop.f32.mrf.mxu0  ;;  %v5594_v14 = vpop.f32.mrf.mxu1 }
 0x123   : > { %v6665_v19 = vpop.f32.mrf.mxu0  ;;  %v6667_v20 = vpop.f32.mrf.mxu1 }
 0x124   : > { %v2198_v26 = vsel %vm2089_vm2, %v6665_v19, -inf  ;;  %v2204_v31 = vsel %vm2089_vm2, %v6667_v20, -inf }
 0x125   : > { %2196 = vmax.xlane.f32.xlu1 %v2195_v21  ;;  %2199 = vmax.xlane.f32.xlu0 %v2198_v26  ;;  %v5599_v27 = vpop.f32.mrf.mxu0  ;;  %v5605_v30 = vpop.f32.mrf.mxu1 }
 0x127   : > { %v6675_v32 = vpop.f32.mrf.mxu0  ;;  %v6677_v37 = vpop.f32.mrf.mxu1 }
 0x128   : > { %v2201_v38 = vsel %vm2089_vm2, %v6675_v32, -inf  ;;  %v2207_v49 = vsel %vm2089_vm2, %v6677_v37, -inf }
 0x129   : > { %2205 = vmax.xlane.f32.xlu0 %v2204_v31  ;;  %2202 = vmax.xlane.f32.xlu1 %v2201_v38  ;;  %v5600_v39 = vpop.f32.mrf.mxu0  ;;  %v5606_v44 = vpop.f32.mrf.mxu1 }
 0x12b   : > { %v6681_v47 = vpop.f32.mrf.mxu0  ;;  %v6683_v48 = vpop.f32.mrf.mxu1 }
 0x12c   : > { %v2210_v50 = vsel %vm2089_vm2, %v6681_v47, -inf  ;;  %v2216_v59 = vsel %vm2089_vm2, %v6683_v48, -inf }
 0x12d   : > { %2208 = vmax.xlane.f32.xlu1 %v2207_v49  ;;  %2211 = vmax.xlane.f32.xlu0 %v2210_v50  ;;  %v5611_v55 = vpop.f32.mrf.mxu0  ;;  %v5617_v56 = vpop.f32.mrf.mxu1 }
 0x12f   : > { %v6691_v62 = vpop.f32.mrf.mxu0  ;;  %v6693_v63 = vpop.f32.mrf.mxu1 }
 0x130   : > { %v2213_v3 = vsel %vm2089_vm2, %v6691_v62, -inf  ;;  %v2219_v14 = vsel %vm2089_vm2, %v6693_v63, -inf }
 0x131   : > { %2217 = vmax.xlane.f32.xlu0 %v2216_v59  ;;  %2214 = vmax.xlane.f32.xlu1 %v2213_v3  ;;  %v5612_v4 = vpop.f32.mrf.mxu0  ;;  %v5618_v5 = vpop.f32.mrf.mxu1 }
 0x133   : > { %v6697_v12 = vpop.f32.mrf.mxu0  ;;  %v6699_v13 = vpop.f32.mrf.mxu1 }
 0x134   : > { %v2222_v21 = vsel %vm2089_vm2, %v6697_v12, -inf  ;;  %v2228_v30 = vsel %vm2089_vm2, %v6699_v13, -inf }
 0x135   : > { %2220 = vmax.xlane.f32.xlu1 %v2219_v14  ;;  %2223 = vmax.xlane.f32.xlu0 %v2222_v21  ;;  %v5623_v26 = vpop.f32.mrf.mxu0  ;;  %v5629_v27 = vpop.f32.mrf.mxu1 }
 0x137   : > { %v6707_v31 = vpop.f32.mrf.mxu0  ;;  %v6709_v38 = vpop.f32.mrf.mxu1 }
 0x138   : > { %v2225_v39 = vsel %vm2089_vm2, %v6707_v31, -inf  ;;  %v2231_v56 = vsel %vm2089_vm2, %v6709_v38, -inf }
 0x139   : > { %2229 = vmax.xlane.f32.xlu0 %v2228_v30  ;;  %2226 = vmax.xlane.f32.xlu1 %v2225_v39  ;;  %v5624_v44 = vpop.f32.mrf.mxu0  ;;  %v5630_v49 = vpop.f32.mrf.mxu1 }
 0x13b   : > { %v6713_v50 = vpop.f32.mrf.mxu0  ;;  %v6715_v55 = vpop.f32.mrf.mxu1 }
 0x13c   : > { %v2234_v59 = vsel %vm2089_vm2, %v6713_v50, -inf  ;;  %v2240_v5 = vsel %vm2089_vm2, %v6715_v55, -inf }
 0x13d   : > { %2232 = vmax.xlane.f32.xlu1 %v2231_v56  ;;  %2235 = vmax.xlane.f32.xlu0 %v2234_v59  ;;  %v5635_v3 = vpop.f32.mrf.mxu0  ;;  %v5641_v4 = vpop.f32.mrf.mxu1 }
 0x13f   : > { %v6723_v14 = vpop.f32.mrf.mxu0  ;;  %v6725_v21 = vpop.f32.mrf.mxu1 }
 0x140   : > { %7743 = vst [vmem:[#allocation2_spill] sm:$0xff] %v6723_v14  ;;  %7744 = vst [vmem:[#allocation3_spill] sm:$0xff] %v6725_v21  ;;  %v2237_v26 = vsel %vm2089_vm2, %v6723_v14, -inf  ;;  %v2243_v49 = vsel %vm2089_vm2, %v6725_v21, -inf }
 0x141   : > { %2241 = vmax.xlane.f32.xlu0 %v2240_v5  ;;  %2238 = vmax.xlane.f32.xlu1 %v2237_v26  ;;  %v5636_v27 = vpop.f32.mrf.mxu0  ;;  %v5642_v30 = vpop.f32.mrf.mxu1 }
 0x143   : > { %v6729_v39 = vpop.f32.mrf.mxu0  ;;  %v6731_v44 = vpop.f32.mrf.mxu1 }
 0x144   : > { %7745 = vst [vmem:[#allocation4_spill] sm:$0xff] %v6729_v39  ;;  %7746 = vst [vmem:[#allocation5_spill] sm:$0xff] %v6731_v44  ;;  %v2246_v56 = vsel %vm2089_vm2, %v6729_v39, -inf  ;;  %v2252_v4 = vsel %vm2089_vm2, %v6731_v44, -inf }
 0x145   : > { %2244 = vmax.xlane.f32.xlu1 %v2243_v49  ;;  %2247 = vmax.xlane.f32.xlu0 %v2246_v56  ;;  %v5647_v59 = vpop.f32.mrf.mxu0  ;;  %v5653_v3 = vpop.f32.mrf.mxu1 }
 0x147   : > { %v6739_v5 = vpop.f32.mrf.mxu0  ;;  %v6741_v26 = vpop.f32.mrf.mxu1 }
 0x148   : > { %7747 = vst [vmem:[#allocation6_spill] sm:$0xff] %v6739_v5  ;;  %7748 = vst [vmem:[#allocation7_spill] sm:$0xff] %v6741_v26  ;;  %v2249_v27 = vsel %vm2089_vm2, %v6739_v5, -inf  ;;  %v2255_v56 = vsel %vm2089_vm2, %v6741_v26, -inf }
 0x149   : > { %2253 = vmax.xlane.f32.xlu0 %v2252_v4  ;;  %2250 = vmax.xlane.f32.xlu1 %v2249_v27  ;;  %v5648_v30 = vpop.f32.mrf.mxu0  ;;  %v5654_v0 = vpop.f32.mrf.mxu1 }
 0x14b   : > { %v6745_v21 = vpop.f32.mrf.mxu0  ;;  %v6747_v49 = vpop.f32.mrf.mxu1 }
 0x14c   : > { %7749 = vst [vmem:[#allocation8_spill] sm:$0xff] %v6745_v21  ;;  %7750 = vst [vmem:[#allocation9_spill] sm:$0xff] %v6747_v49  ;;  %v2258_v59 = vsel %vm2089_vm2, %v6745_v21, -inf  ;;  %v2264_v4 = vsel %vm2089_vm2, %v6747_v49, -inf }
 0x14d   : > { %2256 = vmax.xlane.f32.xlu1 %v2255_v56  ;;  %2259 = vmax.xlane.f32.xlu0 %v2258_v59  ;;  %v5659_v3 = vpop.f32.mrf.mxu0  ;;  %v5665_v44 = vpop.f32.mrf.mxu1 }
 0x14f   : > { %v6755_v27 = vpop.f32.mrf.mxu0  ;;  %v6757_v0 = vpop.f32.mrf.mxu1 }
 0x150   : > { %7751 = vst [vmem:[#allocation10_spill] sm:$0xff] %v6755_v27  ;;  %7752 = vst [vmem:[#allocation11_spill] sm:$0xff] %v6757_v0  ;;  %v2261_v30 = vsel %vm2089_vm2, %v6755_v27, -inf  ;;  %v2267_v44 = vsel %vm2089_vm2, %v6757_v0, -inf }
 0x151   : > { %2265 = vmax.xlane.f32.xlu0 %v2264_v4  ;;  %2262 = vmax.xlane.f32.xlu1 %v2261_v30  ;;  %v5660_v26 = vpop.f32.mrf.mxu0  ;;  %v5666_v5 = vpop.f32.mrf.mxu1 }
 0x153   : > { %v6761_v39 = vpop.f32.mrf.mxu0  ;;  %v6763_v56 = vpop.f32.mrf.mxu1 }
 0x154   : > { %7753 = vst [vmem:[#allocation12_spill] sm:$0xff] %v6761_v39  ;;  %7754 = vst [vmem:[#allocation13_spill] sm:$0xff] %v6763_v56  ;;  %v2270_v59 = vsel %vm2089_vm2, %v6761_v39, -inf  ;;  %v2276_v4 = vsel %vm2089_vm2, %v6763_v56, -inf }
 0x155   : > { %2268 = vmax.xlane.f32.xlu1 %v2267_v44  ;;  %2271 = vmax.xlane.f32.xlu0 %v2270_v59  ;;  %v5671_v3 = vpop.f32.mrf.mxu0  ;;  %v5677_v49 = vpop.f32.mrf.mxu1 }
 0x157   : > { %v6771_v30 = vpop.f32.mrf.mxu0  ;;  %v6773_v5 = vpop.f32.mrf.mxu1 }
 0x158   : > { %7755 = vst [vmem:[#allocation14_spill] sm:$0xff] %v6771_v30  ;;  %7756 = vst [vmem:[#allocation15_spill] sm:$0xff] %v6773_v5  ;;  %v2273_v26 = vsel %vm2089_vm2, %v6771_v30, -inf  ;;  %v2279_v49 = vsel %vm2089_vm2, %v6773_v5, -inf }
 0x159   : > { %2277 = vmax.xlane.f32.xlu0 %v2276_v4  ;;  %2274 = vmax.xlane.f32.xlu1 %v2273_v26  ;;  %v5672_v0 = vpop.f32.mrf.mxu0  ;;  %v5678_v27 = vpop.f32.mrf.mxu1 }
 0x15b   : > { %v6777_v21 = vpop.f32.mrf.mxu0  ;;  %v6779_v44 = vpop.f32.mrf.mxu1 }
 0x15c   : > { %7757 = vst [vmem:[#allocation16_spill] sm:$0xff] %v6777_v21  ;;  %7758 = vst [vmem:[#allocation17_spill] sm:$0xff] %v6779_v44  ;;  %v2282_v59 = vsel %vm2089_vm2, %v6777_v21, -inf  ;;  %v2288_v4 = vsel %vm2089_vm2, %v6779_v44, -inf }
 0x15d   : > { %2280 = vmax.xlane.f32.xlu1 %v2279_v49  ;;  %2283 = vmax.xlane.f32.xlu0 %v2282_v59  ;;  %v5683_v3 = vpop.f32.mrf.mxu0  ;;  %v5689_v56 = vpop.f32.mrf.mxu1 }
 0x15f   : > { %v6787_v26 = vpop.f32.mrf.mxu0  ;;  %v6789_v27 = vpop.f32.mrf.mxu1 }
 0x160   : > { %7759 = vst [vmem:[#allocation18_spill] sm:$0xff] %v6787_v26  ;;  %7760 = vst [vmem:[#allocation19_spill] sm:$0xff] %v6789_v27  ;;  %v2285_v0 = vsel %vm2089_vm2, %v6787_v26, -inf  ;;  %v2291_v56 = vsel %vm2089_vm2, %v6789_v27, -inf }
 0x161   : > { %2289 = vmax.xlane.f32.xlu0 %v2288_v4  ;;  %2286 = vmax.xlane.f32.xlu1 %v2285_v0  ;;  %v5684_v5 = vpop.f32.mrf.mxu0  ;;  %v5690_v30 = vpop.f32.mrf.mxu1 }
 0x163   : > { %v6793_v39 = vpop.f32.mrf.mxu0  ;;  %v6795_v49 = vpop.f32.mrf.mxu1 }
 0x164   : > { %7761 = vst [vmem:[#allocation20_spill] sm:$0xff] %v6793_v39  ;;  %7762 = vst [vmem:[#allocation21_spill] sm:$0xff] %v6795_v49  ;;  %v2294_v59 = vsel %vm2089_vm2, %v6793_v39, -inf  ;;  %v2300_v4 = vsel %vm2089_vm2, %v6795_v49, -inf }
 0x165   : > { %2292 = vmax.xlane.f32.xlu1 %v2291_v56  ;;  %2295 = vmax.xlane.f32.xlu0 %v2294_v59  ;;  %v5695_v3 = vpop.f32.mrf.mxu0  ;;  %v5701_v44 = vpop.f32.mrf.mxu1 }
 0x166   : > { %v2092_v21 = vpop.xlane.xlu0 %2091  ;;  %v2098_v5 = vpop.xlane.xlu1 %2097 }
 0x167   : > { %v2306_v30 = vsub.f32 %v6523_v10, %v2092_v21  ;;  %v6804_v0 = vpop.f32.mrf.mxu0  ;;  %v2308_v26 = vsub.f32 %v6525_v11, %v2098_v5  ;;  %v6807_v14 = vpop.f32.mrf.mxu1 }
 0x168   : > { %7763 = vst [vmem:[#allocation22_spill] sm:$0xff] %v6804_v0  ;;  %v2297_v39 = vsel %vm2089_vm2, %v6804_v0, -inf  ;;  %v2303_v11 = vsel %vm2089_vm2, %v6807_v14, -inf }
 0x169   : > { %v2378_v56 = vmul.f32 1.442695, %v2306_v30  ;;  %2301 = vmax.xlane.f32.xlu0 %v2300_v4  ;;  %2298 = vmax.xlane.f32.xlu1 %v2297_v39  ;;  %v5696_v44 = vpop.f32.mrf.mxu0  ;;  %v2382_v59 = vmul.f32 1.442695, %v2308_v26  ;;  %v5702_v3 = vpop.f32.mrf.mxu1 }
 0x16a   : > { %v2095_v27 = vpop.xlane.xlu0 %2094  ;;  %v2101_v49 = vpop.xlane.xlu1 %2100 }
 0x16b   : > { %5965 = vpow2.f32 %v2378_v56  ;;  %v2307_v10 = vsub.f32 %v6531_v16, %v2095_v27  ;;  %v2309_v21 = vsub.f32 %v6533_v17, %v2101_v49 }
 0x16c   : > { %5967 = vpow2.f32 %v2382_v59 }
 0x16d   : > { %v2380_v5 = vmul.f32 1.442695, %v2307_v10  ;;  %2304 = vmax.xlane.f32.xlu1 %v2303_v11  ;;  %v2384_v0 = vmul.f32 1.442695, %v2309_v21 }
 0x16e   : > { %v2104_v30 = vpop.xlane.xlu0 %2103 }
 0x16f   : > { %5969 = vpow2.f32 %v2380_v5  ;;  %v2310_v39 = vsub.f32 %v6539_v22, %v2104_v30 }
 0x170   : > { %5971 = vpow2.f32 %v2384_v0 }
 0x171   : > { %v2386_v26 = vmul.f32 1.442695, %v2310_v39 }
 0x172   : > { %v2110_v4 = vpop.xlane.xlu0 %2109  ;;  %v2107_v56 = vpop.xlane.xlu1 %2106 }
 0x173   : > { %5973 = vpow2.f32 %v2386_v26  ;;  %v2312_v16 = vsub.f32 %v6541_v23, %v2110_v4  ;;  %v2311_v17 = vsub.f32 %v6547_v28, %v2107_v56 }
 0x175   : > { %v2390_v27 = vmul.f32 1.442695, %v2312_v16  ;;  %v2388_v49 = vmul.f32 1.442695, %v2311_v17 }
 0x176   : > { %v2113_v44 = vpop.xlane.xlu1 %2112  ;;  %v2116_v59 = vpop.xlane.xlu0 %2115 }
 0x177   : > { %5975 = vpow2.f32 %v2390_v27  ;;  %v2313_v3 = vsub.f32 %v6549_v29, %v2113_v44  ;;  %v2314_v10 = vsub.f32 %v6553_v33, %v2116_v59 }
 0x178   : > { %v6820_v21 = vpop.eup %5965  ;;  %5977 = vpow2.f32 %v2388_v49 }
 0x179   : > { %v2392_v22 = vmul.f32 1.442695, %v2313_v3  ;;  %v2394_v0 = vmul.f32 1.442695, %v2314_v10  ;;  %v2522_v11 = vsel %vm2089_vm2, %v6820_v21, 0.0  ;;  %v6824_v23 = vpop.eup %5967 }
 0x17a   : > { %v2122_v28 = vpop.xlane.xlu0 %2121  ;;  %v2119_v5 = vpop.xlane.xlu1 %2118  ;;  %2523 = vadd.xlane.f32.xlu0 %v2522_v11  ;;  %v2528_v4 = vsel %vm2089_vm2, %v6824_v23, 0.0 }
 0x17b   : > { %5979 = vpow2.f32 %v2392_v22  ;;  %v2316_v30 = vsub.f32 %v6555_v34, %v2122_v28  ;;  %v2315_v29 = vsub.f32 %v6563_v40, %v2119_v5 }
 0x17c   : > { %v6828_v39 = vpop.eup %5969  ;;  %5981 = vpow2.f32 %v2394_v0 }
 0x17d   : > { %v2398_v33 = vmul.f32 1.442695, %v2316_v30  ;;  %v2396_v26 = vmul.f32 1.442695, %v2315_v29  ;;  %v2525_v56 = vsel %vm2089_vm2, %v6828_v39, 0.0  ;;  %v6834_v16 = vpop.eup %5971 }
 0x17e   : > { %v2125_v17 = vpop.xlane.xlu1 %2124  ;;  %v2128_v27 = vpop.xlane.xlu0 %2127  ;;  %2529 = vadd.xlane.f32.xlu0 %v2528_v4  ;;  %2526 = vadd.xlane.f32.xlu1 %v2525_v56  ;;  %v2531_v10 = vsel %vm2089_vm2, %v6834_v16, 0.0 }
 0x17f   : > { %5983 = vpow2.f32 %v2398_v33  ;;  %v2317_v34 = vsub.f32 %v6565_v41, %v2125_v17  ;;  %v2318_v40 = vsub.f32 %v6569_v45, %v2128_v27 }
 0x180   : > { %v6838_v49 = vpop.eup %5973  ;;  %5985 = vpow2.f32 %v2396_v26 }
 0x181   : > { %v2400_v44 = vmul.f32 1.442695, %v2317_v34  ;;  %v2402_v59 = vmul.f32 1.442695, %v2318_v40  ;;  %v2534_v3 = vsel %vm2089_vm2, %v6838_v49, 0.0 }
 0x182   : > { %v2134_v22 = vpop.xlane.xlu0 %2133  ;;  %v2131_v0 = vpop.xlane.xlu1 %2130  ;;  %2535 = vadd.xlane.f32.xlu0 %v2534_v3  ;;  %2532 = vadd.xlane.f32.xlu1 %v2531_v10 }
 0x183   : > { %5987 = vpow2.f32 %v2400_v44  ;;  %v2320_v41 = vsub.f32 %v6571_v46, %v2134_v22  ;;  %v2319_v45 = vsub.f32 %v6579_v52, %v2131_v0 }
 0x184   : > { %v6846_v11 = vpop.eup %5975  ;;  %5989 = vpow2.f32 %v2402_v59 }
 0x185   : > { %v6848_v28 = vpop.eup %5977  ;;  %v2406_v5 = vmul.f32 1.442695, %v2320_v41  ;;  %v2404_v30 = vmul.f32 1.442695, %v2319_v45  ;;  %v2540_v29 = vsel %vm2089_vm2, %v6846_v11, 0.0 }
 0x186   : > { %v2137_v33 = vpop.xlane.xlu1 %2136  ;;  %v2140_v26 = vpop.xlane.xlu0 %2139  ;;  %2541 = vadd.xlane.f32.xlu0 %v2540_v29  ;;  %v2537_v4 = vsel %vm2089_vm2, %v6848_v28, 0.0 }
 0x187   : > { %5991 = vpow2.f32 %v2406_v5  ;;  %v2321_v46 = vsub.f32 %v6581_v53, %v2137_v33  ;;  %v2322_v52 = vsub.f32 %v6585_v57, %v2140_v26  ;;  %2538 = vadd.xlane.f32.xlu1 %v2537_v4 }
 0x188   : > { %v6856_v56 = vpop.eup %5979  ;;  %5993 = vpow2.f32 %v2404_v30 }
 0x189   : > { %v6858_v17 = vpop.eup %5981  ;;  %v2408_v27 = vmul.f32 1.442695, %v2321_v46  ;;  %v2410_v34 = vmul.f32 1.442695, %v2322_v52  ;;  %v2543_v40 = vsel %vm2089_vm2, %v6856_v56, 0.0 }
 0x18a   : > { %v2146_v44 = vpop.xlane.xlu0 %2145  ;;  %v2143_v59 = vpop.xlane.xlu1 %2142  ;;  %v2546_v3 = vsel %vm2089_vm2, %v6858_v17, 0.0 }
 0x18b   : > { %5995 = vpow2.f32 %v2408_v27  ;;  %v2324_v53 = vsub.f32 %v6587_v58, %v2146_v44  ;;  %v2323_v57 = vsub.f32 %v6595_v1, %v2143_v59  ;;  %2547 = vadd.xlane.f32.xlu0 %v2546_v3  ;;  %2544 = vadd.xlane.f32.xlu1 %v2543_v40 }
 0x18c   : > { %v6866_v10 = vpop.eup %5983  ;;  %5997 = vpow2.f32 %v2410_v34 }
 0x18d   : > { %v6868_v22 = vpop.eup %5985  ;;  %v2414_v0 = vmul.f32 1.442695, %v2324_v53  ;;  %v2412_v41 = vmul.f32 1.442695, %v2323_v57  ;;  %v2552_v45 = vsel %vm2089_vm2, %v6866_v10, 0.0 }
 0x18e   : > { %v2149_v5 = vpop.xlane.xlu1 %2148  ;;  %v2152_v30 = vpop.xlane.xlu0 %2151  ;;  %v2549_v29 = vsel %vm2089_vm2, %v6868_v22, 0.0 }
 0x18f   : > { %5999 = vpow2.f32 %v2414_v0  ;;  %v2325_v58 = vsub.f32 %v6597_v2, %v2149_v5  ;;  %v2326_v1 = vsub.f32 %v6601_v6, %v2152_v30  ;;  %2553 = vadd.xlane.f32.xlu0 %v2552_v45  ;;  %2550 = vadd.xlane.f32.xlu1 %v2549_v29 }
 0x190   : > { %v6876_v33 = vpop.eup %5987  ;;  %6001 = vpow2.f32 %v2412_v41 }
 0x191   : > { %v6878_v26 = vpop.eup %5989  ;;  %v2416_v4 = vmul.f32 1.442695, %v2325_v58  ;;  %v2418_v46 = vmul.f32 1.442695, %v2326_v1  ;;  %v2555_v52 = vsel %vm2089_vm2, %v6876_v33, 0.0 }
 0x192   : > { %v2158_v27 = vpop.xlane.xlu0 %2157  ;;  %v2155_v34 = vpop.xlane.xlu1 %2154  ;;  %v2558_v40 = vsel %vm2089_vm2, %v6878_v26, 0.0 }
 0x193   : > { %6003 = vpow2.f32 %v2416_v4  ;;  %v2328_v2 = vsub.f32 %v6603_v7, %v2158_v27  ;;  %v2327_v6 = vsub.f32 %v6611_v15, %v2155_v34  ;;  %2559 = vadd.xlane.f32.xlu0 %v2558_v40  ;;  %2556 = vadd.xlane.f32.xlu1 %v2555_v52 }
 0x194   : > { %v6886_v44 = vpop.eup %5991  ;;  %6005 = vpow2.f32 %v2418_v46 }
 0x195   : > { %v6888_v59 = vpop.eup %5993  ;;  %v2422_v3 = vmul.f32 1.442695, %v2328_v2  ;;  %v2420_v53 = vmul.f32 1.442695, %v2327_v6  ;;  %v2564_v57 = vsel %vm2089_vm2, %v6886_v44, 0.0 }
 0x196   : > { %v2161_v0 = vpop.xlane.xlu1 %2160  ;;  %v2164_v41 = vpop.xlane.xlu0 %2163  ;;  %v2561_v45 = vsel %vm2089_vm2, %v6888_v59, 0.0 }
 0x197   : > { %6007 = vpow2.f32 %v2422_v3  ;;  %v2329_v7 = vsub.f32 %v6613_v18, %v2161_v0  ;;  %v2330_v15 = vsub.f32 %v6617_v24, %v2164_v41  ;;  %2565 = vadd.xlane.f32.xlu0 %v2564_v57  ;;  %2562 = vadd.xlane.f32.xlu1 %v2561_v45 }
 0x198   : > { %v6896_v5 = vpop.eup %5995  ;;  %6009 = vpow2.f32 %v2420_v53 }
 0x199   : > { %v6898_v30 = vpop.eup %5997  ;;  %v2424_v29 = vmul.f32 1.442695, %v2329_v7  ;;  %v2426_v58 = vmul.f32 1.442695, %v2330_v15  ;;  %v2567_v1 = vsel %vm2089_vm2, %v6896_v5, 0.0 }
 0x19a   : > { %v2170_v4 = vpop.xlane.xlu0 %2169  ;;  %v2167_v46 = vpop.xlane.xlu1 %2166  ;;  %v2570_v52 = vsel %vm2089_vm2, %v6898_v30, 0.0 }
 0x19b   : > { %6011 = vpow2.f32 %v2424_v29  ;;  %v2332_v18 = vsub.f32 %v6619_v25, %v2170_v4  ;;  %v2331_v24 = vsub.f32 %v6627_v35, %v2167_v46  ;;  %2571 = vadd.xlane.f32.xlu0 %v2570_v52  ;;  %2568 = vadd.xlane.f32.xlu1 %v2567_v1 }
 0x19c   : > { %v6906_v27 = vpop.eup %5999  ;;  %6013 = vpow2.f32 %v2426_v58 }
 0x19d   : > { %v6908_v34 = vpop.eup %6001  ;;  %v2430_v40 = vmul.f32 1.442695, %v2332_v18  ;;  %v2428_v2 = vmul.f32 1.442695, %v2331_v24  ;;  %v2576_v6 = vsel %vm2089_vm2, %v6906_v27, 0.0 }
 0x19e   : > { %v2173_v3 = vpop.xlane.xlu1 %2172  ;;  %v2176_v53 = vpop.xlane.xlu0 %2175  ;;  %v2573_v57 = vsel %vm2089_vm2, %v6908_v34, 0.0 }
 0x19f   : > { %6015 = vpow2.f32 %v2430_v40  ;;  %v2333_v25 = vsub.f32 %v6629_v36, %v2173_v3  ;;  %v2334_v35 = vsub.f32 %v6633_v42, %v2176_v53  ;;  %2577 = vadd.xlane.f32.xlu0 %v2576_v6  ;;  %2574 = vadd.xlane.f32.xlu1 %v2573_v57 }
 0x1a0   : > { %v6916_v0 = vpop.eup %6003  ;;  %6017 = vpow2.f32 %v2428_v2 }
 0x1a1   : > { %v6918_v41 = vpop.eup %6005  ;;  %v2432_v45 = vmul.f32 1.442695, %v2333_v25  ;;  %v2434_v7 = vmul.f32 1.442695, %v2334_v35  ;;  %v2579_v15 = vsel %vm2089_vm2, %v6916_v0, 0.0 }
 0x1a2   : > { %v2182_v29 = vpop.xlane.xlu0 %2181  ;;  %v2179_v58 = vpop.xlane.xlu1 %2178  ;;  %v2582_v1 = vsel %vm2089_vm2, %v6918_v41, 0.0 }
 0x1a3   : > { %6019 = vpow2.f32 %v2432_v45  ;;  %v2336_v36 = vsub.f32 %v6635_v43, %v2182_v29  ;;  %v2335_v42 = vsub.f32 %v6643_v51, %v2179_v58  ;;  %2583 = vadd.xlane.f32.xlu0 %v2582_v1  ;;  %2580 = vadd.xlane.f32.xlu1 %v2579_v15 }
 0x1a4   : > { %v6926_v4 = vpop.eup %6007  ;;  %6021 = vpow2.f32 %v2434_v7 }
 0x1a5   : > { %v6928_v46 = vpop.eup %6009  ;;  %v2438_v52 = vmul.f32 1.442695, %v2336_v36  ;;  %v2436_v18 = vmul.f32 1.442695, %v2335_v42  ;;  %v2588_v24 = vsel %vm2089_vm2, %v6926_v4, 0.0 }
 0x1a6   : > { %v2185_v40 = vpop.xlane.xlu1 %2184  ;;  %v2188_v2 = vpop.xlane.xlu0 %2187  ;;  %v2585_v6 = vsel %vm2089_vm2, %v6928_v46, 0.0 }
 0x1a7   : > { %6023 = vpow2.f32 %v2438_v52  ;;  %v2337_v43 = vsub.f32 %v6645_v54, %v2185_v40  ;;  %v2338_v51 = vsub.f32 %v6649_v60, %v2188_v2  ;;  %2589 = vadd.xlane.f32.xlu0 %v2588_v24  ;;  %2586 = vadd.xlane.f32.xlu1 %v2585_v6 }
 0x1a8   : > { %v6936_v3 = vpop.eup %6011  ;;  %6025 = vpow2.f32 %v2436_v18 }
 0x1a9   : > { %v6938_v53 = vpop.eup %6013  ;;  %v2440_v57 = vmul.f32 1.442695, %v2337_v43  ;;  %v2442_v25 = vmul.f32 1.442695, %v2338_v51  ;;  %v2591_v35 = vsel %vm2089_vm2, %v6936_v3, 0.0 }
 0x1aa   : > { %v2194_v45 = vpop.xlane.xlu0 %2193  ;;  %v2191_v7 = vpop.xlane.xlu1 %2190  ;;  %v2594_v15 = vsel %vm2089_vm2, %v6938_v53, 0.0 }
 0x1ab   : > { %6027 = vpow2.f32 %v2440_v57  ;;  %v2340_v54 = vsub.f32 %v6651_v61, %v2194_v45  ;;  %v2339_v60 = vsub.f32 %v6659_v8, %v2191_v7  ;;  %2595 = vadd.xlane.f32.xlu0 %v2594_v15  ;;  %2592 = vadd.xlane.f32.xlu1 %v2591_v35 }
 0x1ac   : > { %v6946_v29 = vpop.eup %6015  ;;  %6029 = vpow2.f32 %v2442_v25 }
 0x1ad   : > { %v6948_v58 = vpop.eup %6017  ;;  %v2446_v1 = vmul.f32 1.442695, %v2340_v54  ;;  %v2444_v36 = vmul.f32 1.442695, %v2339_v60  ;;  %v2600_v42 = vsel %vm2089_vm2, %v6946_v29, 0.0 }
 0x1ae   : > { %v2197_v52 = vpop.xlane.xlu1 %2196  ;;  %v2200_v18 = vpop.xlane.xlu0 %2199  ;;  %v2597_v24 = vsel %vm2089_vm2, %v6948_v58, 0.0 }
 0x1af   : > { %6031 = vpow2.f32 %v2446_v1  ;;  %v2341_v61 = vsub.f32 %v6661_v9, %v2197_v52  ;;  %v2342_v8 = vsub.f32 %v6665_v19, %v2200_v18  ;;  %2601 = vadd.xlane.f32.xlu0 %v2600_v42  ;;  %2598 = vadd.xlane.f32.xlu1 %v2597_v24 }
 0x1b0   : > { %v6956_v40 = vpop.eup %6019  ;;  %6033 = vpow2.f32 %v2444_v36 }
 0x1b1   : > { %v6958_v2 = vpop.eup %6021  ;;  %v2448_v6 = vmul.f32 1.442695, %v2341_v61  ;;  %v2450_v43 = vmul.f32 1.442695, %v2342_v8  ;;  %v2603_v51 = vsel %vm2089_vm2, %v6956_v40, 0.0 }
 0x1b2   : > { %v2206_v57 = vpop.xlane.xlu0 %2205  ;;  %v2203_v25 = vpop.xlane.xlu1 %2202  ;;  %v2606_v35 = vsel %vm2089_vm2, %v6958_v2, 0.0 }
 0x1b3   : > { %6035 = vpow2.f32 %v2448_v6  ;;  %v2344_v9 = vsub.f32 %v6667_v20, %v2206_v57  ;;  %v2343_v19 = vsub.f32 %v6675_v32, %v2203_v25  ;;  %2607 = vadd.xlane.f32.xlu0 %v2606_v35  ;;  %2604 = vadd.xlane.f32.xlu1 %v2603_v51 }
 0x1b4   : > { %v6966_v45 = vpop.eup %6023  ;;  %6037 = vpow2.f32 %v2450_v43 }
 0x1b5   : > { %v6968_v7 = vpop.eup %6025  ;;  %v2454_v15 = vmul.f32 1.442695, %v2344_v9  ;;  %v2452_v54 = vmul.f32 1.442695, %v2343_v19  ;;  %v2612_v60 = vsel %vm2089_vm2, %v6966_v45, 0.0 }
 0x1b6   : > { %v2209_v1 = vpop.xlane.xlu1 %2208  ;;  %v2212_v36 = vpop.xlane.xlu0 %2211  ;;  %v2609_v42 = vsel %vm2089_vm2, %v6968_v7, 0.0 }
 0x1b7   : > { %6039 = vpow2.f32 %v2454_v15  ;;  %v2345_v20 = vsub.f32 %v6677_v37, %v2209_v1  ;;  %v2346_v32 = vsub.f32 %v6681_v47, %v2212_v36  ;;  %2613 = vadd.xlane.f32.xlu0 %v2612_v60  ;;  %2610 = vadd.xlane.f32.xlu1 %v2609_v42 }
 0x1b8   : > { %v6976_v52 = vpop.eup %6027  ;;  %6041 = vpow2.f32 %v2452_v54 }
 0x1b9   : > { %v6978_v18 = vpop.eup %6029  ;;  %v2456_v24 = vmul.f32 1.442695, %v2345_v20  ;;  %v2458_v61 = vmul.f32 1.442695, %v2346_v32  ;;  %v2615_v8 = vsel %vm2089_vm2, %v6976_v52, 0.0 }
 0x1ba   : > { %v2218_v6 = vpop.xlane.xlu0 %2217  ;;  %v2215_v43 = vpop.xlane.xlu1 %2214  ;;  %v2618_v51 = vsel %vm2089_vm2, %v6978_v18, 0.0 }
 0x1bb   : > { %6043 = vpow2.f32 %v2456_v24  ;;  %v2348_v37 = vsub.f32 %v6683_v48, %v2218_v6  ;;  %v2347_v47 = vsub.f32 %v6691_v62, %v2215_v43  ;;  %2619 = vadd.xlane.f32.xlu0 %v2618_v51  ;;  %2616 = vadd.xlane.f32.xlu1 %v2615_v8 }
 0x1bc   : > { %v6986_v57 = vpop.eup %6031  ;;  %6045 = vpow2.f32 %v2458_v61 }
 0x1bd   : > { %v6988_v25 = vpop.eup %6033  ;;  %v2462_v35 = vmul.f32 1.442695, %v2348_v37  ;;  %v2460_v9 = vmul.f32 1.442695, %v2347_v47  ;;  %v2624_v19 = vsel %vm2089_vm2, %v6986_v57, 0.0 }
 0x1be   : > { %v2221_v15 = vpop.xlane.xlu1 %2220  ;;  %v2224_v54 = vpop.xlane.xlu0 %2223  ;;  %v2621_v60 = vsel %vm2089_vm2, %v6988_v25, 0.0 }
 0x1bf   : > { %6047 = vpow2.f32 %v2462_v35  ;;  %v2349_v48 = vsub.f32 %v6693_v63, %v2221_v15  ;;  %v2350_v62 = vsub.f32 %v6697_v12, %v2224_v54  ;;  %2625 = vadd.xlane.f32.xlu0 %v2624_v19  ;;  %2622 = vadd.xlane.f32.xlu1 %v2621_v60 }
 0x1c0   : > { %v6996_v1 = vpop.eup %6035  ;;  %6049 = vpow2.f32 %v2460_v9 }
 0x1c1   : > { %v6998_v36 = vpop.eup %6037  ;;  %v2464_v42 = vmul.f32 1.442695, %v2349_v48  ;;  %v2466_v20 = vmul.f32 1.442695, %v2350_v62  ;;  %v2627_v32 = vsel %vm2089_vm2, %v6996_v1, 0.0 }
 0x1c2   : > { %v2230_v24 = vpop.xlane.xlu0 %2229  ;;  %v2227_v61 = vpop.xlane.xlu1 %2226  ;;  %v2630_v8 = vsel %vm2089_vm2, %v6998_v36, 0.0 }
 0x1c3   : > { %6051 = vpow2.f32 %v2464_v42  ;;  %v2352_v63 = vsub.f32 %v6699_v13, %v2230_v24  ;;  %v2351_v12 = vsub.f32 %v6707_v31, %v2227_v61  ;;  %2631 = vadd.xlane.f32.xlu0 %v2630_v8  ;;  %2628 = vadd.xlane.f32.xlu1 %v2627_v32 }
 0x1c4   : > { %v7006_v6 = vpop.eup %6039  ;;  %6053 = vpow2.f32 %v2466_v20 }
 0x1c5   : > { %v7008_v43 = vpop.eup %6041  ;;  %v2470_v51 = vmul.f32 1.442695, %v2352_v63  ;;  %v2468_v37 = vmul.f32 1.442695, %v2351_v12  ;;  %v2636_v47 = vsel %vm2089_vm2, %v7006_v6, 0.0 }
 0x1c6   : > { %v2233_v35 = vpop.xlane.xlu1 %2232  ;;  %v2236_v9 = vpop.xlane.xlu0 %2235  ;;  %v2633_v19 = vsel %vm2089_vm2, %v7008_v43, 0.0 }
 0x1c7   : > { %6055 = vpow2.f32 %v2470_v51  ;;  %v2353_v13 = vsub.f32 %v6709_v38, %v2233_v35  ;;  %v2354_v31 = vsub.f32 %v6713_v50, %v2236_v9  ;;  %2637 = vadd.xlane.f32.xlu0 %v2636_v47  ;;  %2634 = vadd.xlane.f32.xlu1 %v2633_v19  ;;  %v7764_v50 = vld [vmem:[#allocation2_spill] sm:$0xff]  ;;  %v7766_v19 = vld [vmem:[#allocation4_spill] sm:$0xff] }
 0x1c8   : > { %v7016_v15 = vpop.eup %6043  ;;  %6057 = vpow2.f32 %v2468_v37 }
 0x1c9   : > { %v7018_v54 = vpop.eup %6045  ;;  %v2472_v60 = vmul.f32 1.442695, %v2353_v13  ;;  %v2474_v48 = vmul.f32 1.442695, %v2354_v31  ;;  %v2639_v62 = vsel %vm2089_vm2, %v7016_v15, 0.0 }
 0x1ca   : > { %v2242_v42 = vpop.xlane.xlu0 %2241  ;;  %v2239_v20 = vpop.xlane.xlu1 %2238  ;;  %v2642_v32 = vsel %vm2089_vm2, %v7018_v54, 0.0 }
 0x1cb   : > { %6059 = vpow2.f32 %v2472_v60  ;;  %v2356_v38 = vsub.f32 %v6715_v55, %v2242_v42  ;;  %v2355_v24 = vsub.f32 %v7764_v50, %v2239_v20  ;;  %2643 = vadd.xlane.f32.xlu0 %v2642_v32  ;;  %2640 = vadd.xlane.f32.xlu1 %v2639_v62  ;;  %v7765_v55 = vld [vmem:[#allocation3_spill] sm:$0xff]  ;;  %v7767_v50 = vld [vmem:[#allocation5_spill] sm:$0xff] }
 0x1cc   : > { %v7026_v61 = vpop.eup %6047  ;;  %6061 = vpow2.f32 %v2474_v48 }
 0x1cd   : > { %v7028_v8 = vpop.eup %6049  ;;  %v2478_v63 = vmul.f32 1.442695, %v2356_v38  ;;  %v2476_v12 = vmul.f32 1.442695, %v2355_v24  ;;  %v2648_v51 = vsel %vm2089_vm2, %v7026_v61, 0.0 }
 0x1ce   : > { %v2245_v37 = vpop.xlane.xlu1 %2244  ;;  %v2248_v47 = vpop.xlane.xlu0 %2247  ;;  %v2645_v35 = vsel %vm2089_vm2, %v7028_v8, 0.0 }
 0x1cf   : > { %6063 = vpow2.f32 %v2478_v63  ;;  %v2357_v9 = vsub.f32 %v7765_v55, %v2245_v37  ;;  %v2358_v13 = vsub.f32 %v7766_v19, %v2248_v47  ;;  %2649 = vadd.xlane.f32.xlu0 %v2648_v51  ;;  %2646 = vadd.xlane.f32.xlu1 %v2645_v35  ;;  %v7768_v63 = vld [vmem:[#allocation6_spill] sm:$0xff] }
 0x1d0   : > { %v7036_v31 = vpop.eup %6051  ;;  %6065 = vpow2.f32 %v2476_v12 }
 0x1d1   : > { %v7038_v60 = vpop.eup %6053  ;;  %v2480_v48 = vmul.f32 1.442695, %v2357_v9  ;;  %v2482_v62 = vmul.f32 1.442695, %v2358_v13  ;;  %v2651_v42 = vsel %vm2089_vm2, %v7036_v31, 0.0 }
 0x1d2   : > { %v2254_v20 = vpop.xlane.xlu0 %2253  ;;  %v2251_v32 = vpop.xlane.xlu1 %2250  ;;  %v2654_v38 = vsel %vm2089_vm2, %v7038_v60, 0.0 }
 0x1d3   : > { %6067 = vpow2.f32 %v2480_v48  ;;  %v2360_v24 = vsub.f32 %v7767_v50, %v2254_v20  ;;  %v2359_v51 = vsub.f32 %v7768_v63, %v2251_v32  ;;  %2655 = vadd.xlane.f32.xlu0 %v2654_v38  ;;  %2652 = vadd.xlane.f32.xlu1 %v2651_v42  ;;  %v7771_v48 = vld [vmem:[#allocation7_spill] sm:$0xff]  ;;  %v7772_v32 = vld [vmem:[#allocation8_spill] sm:$0xff] }
 0x1d4   : > { %v7046_v12 = vpop.eup %6055  ;;  %6069 = vpow2.f32 %v2482_v62 }
 0x1d5   : > { %7769 = vst [vmem:[#allocation2_spill] sm:$0xff] %v7046_v12  ;;  %v7048_v37 = vpop.eup %6057  ;;  %v2486_v47 = vmul.f32 1.442695, %v2360_v24  ;;  %v2484_v35 = vmul.f32 1.442695, %v2359_v51  ;;  %v2660_v55 = vsel %vm2089_vm2, %v7046_v12, 0.0 }
 0x1d6   : > { %7770 = vst [vmem:[#allocation3_spill] sm:$0xff] %v7048_v37  ;;  %v2257_v9 = vpop.xlane.xlu1 %2256  ;;  %v2260_v19 = vpop.xlane.xlu0 %2259  ;;  %v2657_v13 = vsel %vm2089_vm2, %v7048_v37, 0.0 }
 0x1d7   : > { %6071 = vpow2.f32 %v2486_v47  ;;  %v2361_v20 = vsub.f32 %v7771_v48, %v2257_v9  ;;  %v2362_v42 = vsub.f32 %v7772_v32, %v2260_v19  ;;  %2661 = vadd.xlane.f32.xlu0 %v2660_v55  ;;  %2658 = vadd.xlane.f32.xlu1 %v2657_v13  ;;  %v7775_v9 = vld [vmem:[#allocation9_spill] sm:$0xff]  ;;  %v7776_v55 = vld [vmem:[#allocation10_spill] sm:$0xff] }
 0x1d8   : > { %v7056_v62 = vpop.eup %6059  ;;  %6073 = vpow2.f32 %v2484_v35 }
 0x1d9   : > { %7773 = vst [vmem:[#allocation4_spill] sm:$0xff] %v7056_v62  ;;  %v7058_v38 = vpop.eup %6061  ;;  %v2488_v50 = vmul.f32 1.442695, %v2361_v20  ;;  %v2490_v24 = vmul.f32 1.442695, %v2362_v42  ;;  %v2663_v63 = vsel %vm2089_vm2, %v7056_v62, 0.0 }
 0x1da   : > { %7774 = vst [vmem:[#allocation5_spill] sm:$0xff] %v7058_v38  ;;  %v2266_v51 = vpop.xlane.xlu0 %2265  ;;  %v2263_v12 = vpop.xlane.xlu1 %2262  ;;  %v2666_v47 = vsel %vm2089_vm2, %v7058_v38, 0.0 }
 0x1db   : > { %6075 = vpow2.f32 %v2488_v50  ;;  %v2364_v19 = vsub.f32 %v7775_v9, %v2266_v51  ;;  %v2363_v13 = vsub.f32 %v7776_v55, %v2263_v12  ;;  %2667 = vadd.xlane.f32.xlu0 %v2666_v47  ;;  %2664 = vadd.xlane.f32.xlu1 %v2663_v63  ;;  %v7779_v51 = vld [vmem:[#allocation11_spill] sm:$0xff]  ;;  %v7780_v47 = vld [vmem:[#allocation12_spill] sm:$0xff] }
 0x1dc   : > { %v7066_v35 = vpop.eup %6063  ;;  %6077 = vpow2.f32 %v2490_v24 }
 0x1dd   : > { %7777 = vst [vmem:[#allocation6_spill] sm:$0xff] %v7066_v35  ;;  %v7068_v48 = vpop.eup %6065  ;;  %v2494_v20 = vmul.f32 1.442695, %v2364_v19  ;;  %v2492_v32 = vmul.f32 1.442695, %v2363_v13  ;;  %v2672_v42 = vsel %vm2089_vm2, %v7066_v35, 0.0 }
 0x1de   : > { %7778 = vst [vmem:[#allocation7_spill] sm:$0xff] %v7068_v48  ;;  %v2269_v62 = vpop.xlane.xlu1 %2268  ;;  %v2272_v37 = vpop.xlane.xlu0 %2271  ;;  %v2669_v50 = vsel %vm2089_vm2, %v7068_v48, 0.0 }
 0x1df   : > { %6079 = vpow2.f32 %v2494_v20  ;;  %v2365_v12 = vsub.f32 %v7779_v51, %v2269_v62  ;;  %v2366_v63 = vsub.f32 %v7780_v47, %v2272_v37  ;;  %2673 = vadd.xlane.f32.xlu0 %v2672_v42  ;;  %2670 = vadd.xlane.f32.xlu1 %v2669_v50  ;;  %v7783_v62 = vld [vmem:[#allocation13_spill] sm:$0xff]  ;;  %v7784_v42 = vld [vmem:[#allocation14_spill] sm:$0xff] }
 0x1e0   : > { %v7076_v24 = vpop.eup %6067  ;;  %6081 = vpow2.f32 %v2492_v32 }
 0x1e1   : > { %7781 = vst [vmem:[#allocation8_spill] sm:$0xff] %v7076_v24  ;;  %v7078_v9 = vpop.eup %6069  ;;  %v2496_v19 = vmul.f32 1.442695, %v2365_v12  ;;  %v2498_v55 = vmul.f32 1.442695, %v2366_v63  ;;  %v2675_v13 = vsel %vm2089_vm2, %v7076_v24, 0.0 }
 0x1e2   : > { %7782 = vst [vmem:[#allocation9_spill] sm:$0xff] %v7078_v9  ;;  %v2278_v35 = vpop.xlane.xlu0 %2277  ;;  %v2275_v38 = vpop.xlane.xlu1 %2274  ;;  %v2678_v20 = vsel %vm2089_vm2, %v7078_v9, 0.0 }
 0x1e3   : > { %6083 = vpow2.f32 %v2496_v19  ;;  %v2368_v37 = vsub.f32 %v7783_v62, %v2278_v35  ;;  %v2367_v50 = vsub.f32 %v7784_v42, %v2275_v38  ;;  %2679 = vadd.xlane.f32.xlu0 %v2678_v20  ;;  %2676 = vadd.xlane.f32.xlu1 %v2675_v13  ;;  %v7787_v35 = vld [vmem:[#allocation15_spill] sm:$0xff]  ;;  %v7788_v20 = vld [vmem:[#allocation16_spill] sm:$0xff] }
 0x1e4   : > { %v7086_v32 = vpop.eup %6071  ;;  %6085 = vpow2.f32 %v2498_v55 }
 0x1e5   : > { %7785 = vst [vmem:[#allocation10_spill] sm:$0xff] %v7086_v32  ;;  %v7088_v51 = vpop.eup %6073  ;;  %v2502_v12 = vmul.f32 1.442695, %v2368_v37  ;;  %v2500_v47 = vmul.f32 1.442695, %v2367_v50  ;;  %v2684_v63 = vsel %vm2089_vm2, %v7086_v32, 0.0 }
 0x1e6   : > { %7786 = vst [vmem:[#allocation11_spill] sm:$0xff] %v7088_v51  ;;  %v2281_v24 = vpop.xlane.xlu1 %2280  ;;  %v2284_v48 = vpop.xlane.xlu0 %2283  ;;  %v2681_v19 = vsel %vm2089_vm2, %v7088_v51, 0.0 }
 0x1e7   : > { %6087 = vpow2.f32 %v2502_v12  ;;  %v2369_v38 = vsub.f32 %v7787_v35, %v2281_v24  ;;  %v2370_v13 = vsub.f32 %v7788_v20, %v2284_v48  ;;  %2685 = vadd.xlane.f32.xlu0 %v2684_v63  ;;  %2682 = vadd.xlane.f32.xlu1 %v2681_v19  ;;  %v7790_v24 = vld [vmem:[#allocation17_spill] sm:$0xff]  ;;  %v7791_v63 = vld [vmem:[#allocation18_spill] sm:$0xff] }
 0x1e8   : > { %v7096_v55 = vpop.eup %6075  ;;  %6089 = vpow2.f32 %v2500_v47 }
 0x1e9   : > { %7789 = vst [vmem:[#allocation12_spill] sm:$0xff] %v7096_v55  ;;  %v7098_v62 = vpop.eup %6077  ;;  %v2504_v37 = vmul.f32 1.442695, %v2369_v38  ;;  %v2506_v42 = vmul.f32 1.442695, %v2370_v13  ;;  %v2687_v50 = vsel %vm2089_vm2, %v7096_v55, 0.0 }
 0x1ea   : > { %v2290_v32 = vpop.xlane.xlu0 %2289  ;;  %v2287_v9 = vpop.xlane.xlu1 %2286  ;;  %v2690_v12 = vsel %vm2089_vm2, %v7098_v62, 0.0 }
 0x1eb   : > { %6091 = vpow2.f32 %v2504_v37  ;;  %v2372_v48 = vsub.f32 %v7790_v24, %v2290_v32  ;;  %v2371_v19 = vsub.f32 %v7791_v63, %v2287_v9  ;;  %2691 = vadd.xlane.f32.xlu0 %v2690_v12  ;;  %2688 = vadd.xlane.f32.xlu1 %v2687_v50  ;;  %v7794_v32 = vld [vmem:[#allocation19_spill] sm:$0xff]  ;;  %v7795_v50 = vld [vmem:[#allocation20_spill] sm:$0xff] }
 0x1ec   : > { %v7106_v47 = vpop.eup %6079  ;;  %6093 = vpow2.f32 %v2506_v42 }
 0x1ed   : > { %7792 = vst [vmem:[#allocation13_spill] sm:$0xff] %v7106_v47  ;;  %v7108_v35 = vpop.eup %6081  ;;  %v2510_v38 = vmul.f32 1.442695, %v2372_v48  ;;  %v2508_v20 = vmul.f32 1.442695, %v2371_v19  ;;  %v2696_v13 = vsel %vm2089_vm2, %v7106_v47, 0.0 }
 0x1ee   : > { %7793 = vst [vmem:[#allocation14_spill] sm:$0xff] %v7108_v35  ;;  %v2293_v55 = vpop.xlane.xlu1 %2292  ;;  %v2296_v51 = vpop.xlane.xlu0 %2295  ;;  %v2693_v37 = vsel %vm2089_vm2, %v7108_v35, 0.0 }
 0x1ef   : > { %6095 = vpow2.f32 %v2510_v38  ;;  %v2373_v9 = vsub.f32 %v7794_v32, %v2293_v55  ;;  %2697 = vadd.xlane.f32.xlu0 %v2696_v13  ;;  %v2374_v12 = vsub.f32 %v7795_v50, %v2296_v51  ;;  %2694 = vadd.xlane.f32.xlu1 %v2693_v37  ;;  %v7797_v55 = vld [vmem:[#allocation21_spill] sm:$0xff]  ;;  %v7798_v13 = vld [vmem:[#allocation22_spill] sm:$0xff] }
 0x1f0   : > { %v7116_v42 = vpop.eup %6083  ;;  %6097 = vpow2.f32 %v2508_v20 }
 0x1f1   : > { %7796 = vst [vmem:[#allocation15_spill] sm:$0xff] %v7116_v42  ;;  %v7118_v24 = vpop.eup %6085  ;;  %v2512_v48 = vmul.f32 1.442695, %v2373_v9  ;;  %v2514_v63 = vmul.f32 1.442695, %v2374_v12  ;;  %v2699_v19 = vsel %vm2089_vm2, %v7116_v42, 0.0 }
 0x1f2   : > { %v2702_v35 = vsel %vm2089_vm2, %v7118_v24, 0.0  ;;  %v2302_v38 = vpop.xlane.xlu0 %2301  ;;  %v2299_v47 = vpop.xlane.xlu1 %2298 }
 0x1f3   : > { %6099 = vpow2.f32 %v2512_v48  ;;  %2703 = vadd.xlane.f32.xlu0 %v2702_v35  ;;  %v2376_v51 = vsub.f32 %v7797_v55, %v2302_v38  ;;  %2700 = vadd.xlane.f32.xlu1 %v2699_v19  ;;  %v2375_v37 = vsub.f32 %v7798_v13, %v2299_v47 }
 0x1f4   : > { %v7126_v20 = vpop.eup %6087  ;;  %6101 = vpow2.f32 %v2514_v63 }
 0x1f5   : > { %v7128_v32 = vpop.eup %6089  ;;  %v2518_v9 = vmul.f32 1.442695, %v2376_v51  ;;  %v2516_v50 = vmul.f32 1.442695, %v2375_v37  ;;  %v2708_v12 = vsel %vm2089_vm2, %v7126_v20, 0.0 }
 0x1f6   : > { %v2705_v42 = vsel %vm2089_vm2, %v7128_v32, 0.0  ;;  %v2305_v48 = vpop.xlane.xlu1 %2304 }
 0x1f7   : > { %6103 = vpow2.f32 %v2518_v9  ;;  %2709 = vadd.xlane.f32.xlu0 %v2708_v12  ;;  %2706 = vadd.xlane.f32.xlu1 %v2705_v42  ;;  %v2377_v35 = vsub.f32 %v6807_v14, %v2305_v48 }
 0x1f8   : > { %v7135_v47 = vpop.eup %6091  ;;  %6105 = vpow2.f32 %v2516_v50 }
 0x1f9   : > { %7799 = vst [vmem:[#allocation16_spill] sm:$0xff] %v7135_v47  ;;  %v7137_v63 = vpop.eup %6093  ;;  %v2520_v19 = vmul.f32 1.442695, %v2377_v35  ;;  %v2711_v38 = vsel %vm2089_vm2, %v7135_v47, 0.0 }
 0x1fa   : > { %v2714_v55 = vsel %vm2089_vm2, %v7137_v63, 0.0 }
 0x1fb   : > { %6107 = vpow2.f32 %v2520_v19  ;;  %2715 = vadd.xlane.f32.xlu0 %v2714_v55  ;;  %2712 = vadd.xlane.f32.xlu1 %v2711_v38 }
 0x1fc   : > { %v7143_v51 = vpop.eup %6095 }
 0x1fd   : > { %7800 = vst [vmem:[#allocation17_spill] sm:$0xff] %v7143_v51  ;;  %v7145_v42 = vpop.eup %6097  ;;  %v2720_v14 = vsel %vm2089_vm2, %v7143_v51, 0.0 }
 0x1fe   : > { %7801 = vst [vmem:[#allocation18_spill] sm:$0xff] %v7145_v42  ;;  %v2717_v13 = vsel %vm2089_vm2, %v7145_v42, 0.0 }
 0x1ff   : > { %2721 = vadd.xlane.f32.xlu0 %v2720_v14  ;;  %2718 = vadd.xlane.f32.xlu1 %v2717_v13 }
 0x200   : > { %v7151_v37 = vpop.eup %6099 }
 0x201   : > { %7802 = vst [vmem:[#allocation19_spill] sm:$0xff] %v7151_v37  ;;  %v7153_v9 = vpop.eup %6101  ;;  %v2723_v50 = vsel %vm2089_vm2, %v7151_v37, 0.0 }
 0x202   : > { %7803 = vst [vmem:[#allocation20_spill] sm:$0xff] %v7153_v9  ;;  %v2726_v12 = vsel %vm2089_vm2, %v7153_v9, 0.0 }
 0x203   : > { %2727 = vadd.xlane.f32.xlu0 %v2726_v12  ;;  %2724 = vadd.xlane.f32.xlu1 %v2723_v50  ;;  %v2524_v48 = vpop.xlane.xlu0 %2523 }
 0x204   : > { %v7159_v35 = vpop.eup %6103  ;;  %6109 = vrcp.f32 %v2524_v48 }
 0x205   : > { %7804 = vst [vmem:[#allocation21_spill] sm:$0xff] %v7159_v35  ;;  %v7161_v19 = vpop.eup %6105  ;;  %v2732_v38 = vsel %vm2089_vm2, %v7159_v35, 0.0 }
 0x206   : > { %7805 = vst [vmem:[#allocation22_spill] sm:$0xff] %v7161_v19  ;;  %v2729_v55 = vsel %vm2089_vm2, %v7161_v19, 0.0 }
 0x207   : > { %2733 = vadd.xlane.f32.xlu0 %v2732_v38  ;;  %2730 = vadd.xlane.f32.xlu1 %v2729_v55  ;;  %v2530_v14 = vpop.xlane.xlu0 %2529  ;;  %v2527_v13 = vpop.xlane.xlu1 %2526 }
 0x208   : > { %v7167_v37 = vpop.eup %6107  ;;  %6111 = vrcp.f32 %v2530_v14 }
 0x209   : > { %7806 = vst [vmem:[#allocation23_spill] sm:$0xff] %v7167_v37  ;;  %6113 = vrcp.f32 %v2527_v13  ;;  %v2735_v50 = vsel %vm2089_vm2, %v7167_v37, 0.0 }
 0x20b   : > { %2736 = vadd.xlane.f32.xlu1 %v2735_v50  ;;  %v2536_v12 = vpop.xlane.xlu0 %2535  ;;  %v2533_v48 = vpop.xlane.xlu1 %2532 }
 0x20c   : > { %6115 = vrcp.f32 %v2536_v12 }
 0x20d   : > { %6117 = vrcp.f32 %v2533_v48 }
 0x20f   : > { %v2542_v35 = vpop.xlane.xlu0 %2541 }
 0x210   : > { %6119 = vrcp.f32 %v2542_v35  ;;  %v2539_v19 = vpop.xlane.xlu1 %2538 }
 0x211   : > { %v6110_v38 = vpop.eup %6109  ;;  %6121 = vrcp.f32 %v2539_v19 }
 0x212   : > { %v2810_v55 = vmul.f32 %v6110_v38, %v6820_v21 }
 0x214   : > { %v2548_v14 = vpop.xlane.xlu0 %2547  ;;  %v2545_v13 = vpop.xlane.xlu1 %2544  ;;  %v5271_v50 = vpack.c.bf16 %v2810_v55, %v2810_v55 }
 0x215   : > { %v6112_v12 = vpop.eup %6111  ;;  %6123 = vrcp.f32 %v2548_v14 }
 0x216   : > { %v6114_v35 = vpop.eup %6113  ;;  %6125 = vrcp.f32 %v2545_v13  ;;  %3171 = vst.msk [vmem:[%s7177_s21] sm:$0xf] %vm3170_vm3, %v5271_v50  ;;  %v2812_v21 = vmul.f32 %v6112_v12, %v6824_v23 }
 0x217   : > { %v2811_v19 = vmul.f32 %v6114_v35, %v6828_v39 }
 0x218   : > { %v2554_v48 = vpop.xlane.xlu0 %2553  ;;  %v2551_v38 = vpop.xlane.xlu1 %2550  ;;  %v5273_v37 = vpack.c.bf16 %v2812_v21, %v2812_v21 }
 0x219   : > { %v6116_v9 = vpop.eup %6115  ;;  %6127 = vrcp.f32 %v2554_v48  ;;  %v2882_v42 = vpack.c.bf16 %v2811_v19, %v2810_v55  ;;  %v5272_v51 = vpack.c.bf16 %v2811_v19, %v2811_v19 }
 0x21a   : > { %v6118_v47 = vpop.eup %6117  ;;  %6129 = vrcp.f32 %v2551_v38  ;;  %3173 = vst.msk [vmem:[%s7177_s21 + $0x8] sm:$0xf] %vm3170_vm3, %v5273_v37  ;;  %v2814_v14 = vmul.f32 %v6116_v9, %v6838_v49  ;;  %v7807_v49 = vmov 0.0  }
 0x21b   : > { %3172 = vst.msk [vmem:[%s7177_s21 + $0x4] sm:$0xf] %vm3170_vm3, %v5272_v51  ;;  %v3247_v23 = vsel %vm2089_vm2, %v2882_v42, 0  ;;  %v2813_v39 = vmul.f32 %v6118_v47, %v6834_v16 }
 0x21c   : > { %v2560_v13 = vpop.xlane.xlu0 %2559  ;;  %5704 = vmatpush3.bf16.xpose.msra.mxu0 %v3247_v23  ;;  %v2557_v55 = vpop.xlane.xlu1 %2556  ;;  %v5275_v50 = vpack.c.bf16 %v2814_v14, %v2814_v14 }
 0x21d   : > { %v6120_v12 = vpop.eup %6119  ;;  %6131 = vrcp.f32 %v2560_v13  ;;  %v2883_v35 = vpack.c.bf16 %v2813_v39, %v2812_v21  ;;  %v5274_v19 = vpack.c.bf16 %v2813_v39, %v2813_v39  ;;  %5715 = vmatprep.subr.bf16.mxu0 %v7807_v49  ;;  %v288_v21 = vld [vmem:[%s7196_s25] sm:$0x3] }
 0x21e   : > { %v6122_v51 = vpop.eup %6121  ;;  %6133 = vrcp.f32 %v2557_v55  ;;  %3175 = vst.msk [vmem:[%s7177_s21 + $0x10] sm:$0xf] %vm3170_vm3, %v5275_v50  ;;  %v2816_v16 = vmul.f32 %v6120_v12, %v6846_v11  ;;  %v289_v50 = vld [vmem:[%s7196_s25 + $0x2] sm:$0x3] }
 0x21f   : > { %3174 = vst.msk [vmem:[%s7177_s21 + $0xc] sm:$0xf] %vm3170_vm3, %v5274_v19  ;;  %v3293_v47 = vsel %vm2089_vm2, %v2883_v35, 0  ;;  %v2815_v42 = vmul.f32 %v6122_v51, %v6848_v28 }
 0x220   : > { %v2566_v37 = vpop.xlane.xlu0 %2565  ;;  %5710 = vmatpush3.bf16.xpose.msra.mxu1 %v3293_v47  ;;  %v2563_v9 = vpop.xlane.xlu1 %2562  ;;  %v5277_v48 = vpack.c.bf16 %v2816_v16, %v2816_v16 }
 0x221   : > { %6135 = vrcp.f32 %v2566_v37  ;;  %v2884_v38 = vpack.c.bf16 %v2815_v42, %v2814_v14  ;;  %v5276_v23 = vpack.c.bf16 %v2815_v42, %v2815_v42  ;;  %5721 = vmatprep.subr.bf16.mxu1 %v7807_v49 }
 0x222   : > { %v6124_v39 = vpop.eup %6123  ;;  %6137 = vrcp.f32 %v2563_v9  ;;  %3177 = vst.msk [vmem:[%s7177_s21 + $0x18] sm:$0xf] %vm3170_vm3, %v5277_v48 }
 0x223   : > { %v6126_v11 = vpop.eup %6125  ;;  %5706 = vmatmul.mubr.msk.bf16.vlgmr.msra.gmra.mxu0 %vm2089_vm2, %v288_v21  ;;  %3176 = vst.msk [vmem:[%s7177_s21 + $0x14] sm:$0xf] %vm3170_vm3, %v5276_v23  ;;  %v3339_v28 = vsel %vm2089_vm2, %v2884_v38, 0  ;;  %v2818_v13 = vmul.f32 %v6124_v39, %v6858_v17  ;;  %v290_v21 = vld [vmem:[%s7196_s25 + $0x4] sm:$0x3] }
 0x224   : > { %v2572_v55 = vpop.xlane.xlu0 %2571  ;;  %5716 = vmatpush3.bf16.xpose.msra.mxu0 %v3339_v28  ;;  %v2569_v14 = vpop.xlane.xlu1 %2568  ;;  %v2817_v12 = vmul.f32 %v6126_v11, %v6856_v56  ;;  %5717 = vmatprep.mubr.msk.bf16.mxu0 %vm6262_vm0, %v7807_v49 }
 0x225   : > { %6139 = vrcp.f32 %v2572_v55  ;;  %5727 = vmatprep.subr.bf16.mxu0 %v7807_v49  ;;  %v5279_v35 = vpack.c.bf16 %v2818_v13, %v2818_v13 }
 0x226   : > { %v6128_v19 = vpop.eup %6127  ;;  %6141 = vrcp.f32 %v2569_v14  ;;  %v2885_v51 = vpack.c.bf16 %v2817_v12, %v2816_v16  ;;  %v5278_v17 = vpack.c.bf16 %v2817_v12, %v2817_v12 }
 0x227   : > { %v6130_v47 = vpop.eup %6129  ;;  %5712 = vmatmul.mubr.msk.bf16.vlgmr.msra.gmra.mxu1 %vm2089_vm2, %v289_v50  ;;  %3179 = vst.msk [vmem:[%s7177_s21 + $0x20] sm:$0xf] %vm3170_vm3, %v5279_v35  ;;  %v2820_v42 = vmul.f32 %v6128_v19, %v6866_v10 }
 0x228   : > { %v2578_v56 = vpop.xlane.xlu0 %2577  ;;  %3178 = vst.msk [vmem:[%s7177_s21 + $0x1c] sm:$0xf] %vm3170_vm3, %v5278_v17  ;;  %v3385_v37 = vsel %vm2089_vm2, %v2885_v51, 0  ;;  %v2575_v9 = vpop.xlane.xlu1 %2574  ;;  %v2819_v48 = vmul.f32 %v6130_v47, %v6868_v22  ;;  %5723 = vmatprep.mubr.msk.bf16.mxu1 %vm6262_vm0, %v7807_v49 }
 0x229   : > { %6143 = vrcp.f32 %v2578_v56  ;;  %5722 = vmatpush3.bf16.xpose.msra.mxu1 %v3385_v37  ;;  %v5281_v16 = vpack.c.bf16 %v2820_v42, %v2820_v42 }
 0x22a   : > { %v6132_v38 = vpop.eup %6131  ;;  %6145 = vrcp.f32 %v2575_v9  ;;  %v2886_v10 = vpack.c.bf16 %v2819_v48, %v2818_v13  ;;  %v5280_v23 = vpack.c.bf16 %v2819_v48, %v2819_v48  ;;  %5733 = vmatprep.subr.bf16.mxu1 %v7807_v49  ;;  %v291_v13 = vld [vmem:[%s7196_s25 + $0x6] sm:$0x3] }
 0x22b   : > { %v6134_v39 = vpop.eup %6133  ;;  %5718 = vmatmul.mubr.msk.bf16.vlgmr.msra.gmra.mxu0 %vm2089_vm2, %v290_v21  ;;  %3181 = vst.msk [vmem:[%s7177_s21 + $0x28] sm:$0xf] %vm3170_vm3, %v5281_v16  ;;  %v2822_v22 = vmul.f32 %v6132_v38, %v6878_v26 }
 0x22c   : > { %v2584_v11 = vpop.xlane.xlu0 %2583  ;;  %3180 = vst.msk [vmem:[%s7177_s21 + $0x24] sm:$0xf] %vm3170_vm3, %v5280_v23  ;;  %v3431_v28 = vsel %vm2089_vm2, %v2886_v10, 0  ;;  %v2581_v55 = vpop.xlane.xlu1 %2580  ;;  %v2821_v14 = vmul.f32 %v6134_v39, %v6876_v33  ;;  %5729 = vmatprep.mubr.msk.bf16.mxu0 %vm6262_vm0, %v7807_v49  ;;  %v293_v39 = vld [vmem:[%s7196_s25 + $0xa] sm:$0x3] }
 0x22d   : > { %6147 = vrcp.f32 %v2584_v11  ;;  %5728 = vmatpush3.bf16.xpose.msra.mxu0 %v3431_v28  ;;  %v5283_v50 = vpack.c.bf16 %v2822_v22, %v2822_v22 }
 0x22e   : > { %v6136_v12 = vpop.eup %6135  ;;  %6149 = vrcp.f32 %v2581_v55  ;;  %v2887_v26 = vpack.c.bf16 %v2821_v14, %v2820_v42  ;;  %v5282_v35 = vpack.c.bf16 %v2821_v14, %v2821_v14  ;;  %5739 = vmatprep.subr.bf16.mxu0 %v7807_v49  ;;  %v292_v42 = vld [vmem:[%s7196_s25 + $0x8] sm:$0x3] }
 0x22f   : > { %v6138_v19 = vpop.eup %6137  ;;  %3183 = vst.msk [vmem:[%s7177_s21 + $0x30] sm:$0xf] %vm3170_vm3, %v5283_v50  ;;  %v2824_v33 = vmul.f32 %v6136_v12, %v6886_v44 }
 0x230   : > { %5724 = vmatmul.mubr.msk.bf16.vlgmr.msra.gmra.mxu1 %vm2089_vm2, %v291_v13  ;;  %v2590_v51 = vpop.xlane.xlu0 %2589  ;;  %3182 = vst.msk [vmem:[%s7177_s21 + $0x2c] sm:$0xf] %vm3170_vm3, %v5282_v35  ;;  %v3477_v17 = vsel %vm2089_vm2, %v2887_v26, 0  ;;  %v2587_v47 = vpop.xlane.xlu1 %2586  ;;  %v2823_v56 = vmul.f32 %v6138_v19, %v6888_v59  ;;  %v294_v26 = vld [vmem:[%s7196_s25 + $0xc] sm:$0x3] }
 0x231   : > { %6151 = vrcp.f32 %v2590_v51  ;;  %5734 = vmatpush3.bf16.xpose.msra.mxu1 %v3477_v17  ;;  %5735 = vmatprep.mubr.msk.bf16.mxu1 %vm6262_vm0, %v7807_v49  ;;  %v5285_v37 = vpack.c.bf16 %v2824_v33, %v2824_v33 }
 0x232   : > { %v6140_v44 = vpop.eup %6139  ;;  %6153 = vrcp.f32 %v2587_v47  ;;  %v2888_v9 = vpack.c.bf16 %v2823_v56, %v2822_v22  ;;  %v5284_v21 = vpack.c.bf16 %v2823_v56, %v2823_v56  ;;  %5745 = vmatprep.subr.bf16.mxu1 %v7807_v49 }
 0x233   : > { %v6142_v48 = vpop.eup %6141  ;;  %3185 = vst.msk [vmem:[%s7177_s21 + $0x38] sm:$0xf] %vm3170_vm3, %v5285_v37  ;;  %v2826_v59 = vmul.f32 %v6140_v44, %v6898_v30  ;;  %v295_v37 = vld [vmem:[%s7196_s25 + $0xe] sm:$0x3] }
 0x234   : > { %5730 = vmatmul.mubr.msk.bf16.vlgmr.msra.gmra.mxu0 %vm2089_vm2, %v292_v42  ;;  %v2596_v16 = vpop.xlane.xlu0 %2595  ;;  %3184 = vst.msk [vmem:[%s7177_s21 + $0x34] sm:$0xf] %vm3170_vm3, %v5284_v21  ;;  %v3523_v38 = vsel %vm2089_vm2, %v2888_v9, 0  ;;  %v2593_v10 = vpop.xlane.xlu1 %2592  ;;  %v2825_v23 = vmul.f32 %v6142_v48, %v6896_v5 }
 0x235   : > { %6155 = vrcp.f32 %v2596_v16  ;;  %5740 = vmatpush3.bf16.xpose.msra.mxu0 %v3523_v38  ;;  %5741 = vmatprep.mubr.msk.bf16.mxu0 %vm6262_vm0, %v7807_v49  ;;  %v5287_v22 = vpack.c.bf16 %v2826_v59, %v2826_v59 }
 0x236   : > { %v6144_v30 = vpop.eup %6143  ;;  %6157 = vrcp.f32 %v2593_v10  ;;  %v2889_v11 = vpack.c.bf16 %v2825_v23, %v2824_v33  ;;  %v5286_v28 = vpack.c.bf16 %v2825_v23, %v2825_v23  ;;  %5751 = vmatprep.subr.bf16.mxu0 %v7807_v49  ;;  %v296_v23 = vld [vmem:[%s7196_s25 + $0x10] sm:$0x3] }
 0x237   : > { %v6146_v55 = vpop.eup %6145  ;;  %3187 = vst.msk [vmem:[%s7177_s21 + $0x40] sm:$0xf] %vm3170_vm3, %v5287_v22  ;;  %v2828_v5 = vmul.f32 %v6144_v30, %v6906_v27 }
 0x238   : > { %5736 = vmatmul.mubr.msk.bf16.vlgmr.msra.gmra.mxu1 %vm2089_vm2, %v293_v39  ;;  %v2602_v14 = vpop.xlane.xlu0 %2601  ;;  %3186 = vst.msk [vmem:[%s7177_s21 + $0x3c] sm:$0xf] %vm3170_vm3, %v5286_v28  ;;  %v3569_v13 = vsel %vm2089_vm2, %v2889_v11, 0  ;;  %v2599_v50 = vpop.xlane.xlu1 %2598  ;;  %v2827_v12 = vmul.f32 %v6146_v55, %v6908_v34 }
 0x239   : > { %6159 = vrcp.f32 %v2602_v14  ;;  %5746 = vmatpush3.bf16.xpose.msra.mxu1 %v3569_v13  ;;  %5747 = vmatprep.mubr.msk.bf16.mxu1 %vm6262_vm0, %v7807_v49  ;;  %v5289_v35 = vpack.c.bf16 %v2828_v5, %v2828_v5  ;;  %v297_v13 = vld [vmem:[%s7196_s25 + $0x12] sm:$0x3] }
 0x23a   : > { %v6148_v27 = vpop.eup %6147  ;;  %6161 = vrcp.f32 %v2599_v50  ;;  %v2890_v19 = vpack.c.bf16 %v2827_v12, %v2826_v59  ;;  %v5288_v33 = vpack.c.bf16 %v2827_v12, %v2827_v12  ;;  %5757 = vmatprep.subr.bf16.mxu1 %v7807_v49 }
 0x23b   : > { %v6150_v51 = vpop.eup %6149  ;;  %3189 = vst.msk [vmem:[%s7177_s21 + $0x48] sm:$0xf] %vm3170_vm3, %v5289_v35  ;;  %v2830_v34 = vmul.f32 %v6148_v27, %v6918_v41 }
 0x23c   : > { %5742 = vmatmul.mubr.msk.bf16.vlgmr.msra.gmra.mxu0 %vm2089_vm2, %v294_v26  ;;  %v2608_v17 = vpop.xlane.xlu0 %2607  ;;  %3188 = vst.msk [vmem:[%s7177_s21 + $0x44] sm:$0xf] %vm3170_vm3, %v5288_v33  ;;  %v3615_v47 = vsel %vm2089_vm2, %v2890_v19, 0  ;;  %v2605_v56 = vpop.xlane.xlu1 %2604  ;;  %v2829_v42 = vmul.f32 %v6150_v51, %v6916_v0 }
 0x23d   : > { %6163 = vrcp.f32 %v2608_v17  ;;  %5752 = vmatpush3.bf16.xpose.msra.mxu0 %v3615_v47  ;;  %5753 = vmatprep.mubr.msk.bf16.mxu0 %vm6262_vm0, %v7807_v49  ;;  %v5291_v44 = vpack.c.bf16 %v2830_v34, %v2830_v34 }
 0x23e   : > { %v6152_v41 = vpop.eup %6151  ;;  %6165 = vrcp.f32 %v2605_v56  ;;  %v2891_v9 = vpack.c.bf16 %v2829_v42, %v2828_v5  ;;  %v5290_v21 = vpack.c.bf16 %v2829_v42, %v2829_v42  ;;  %5763 = vmatprep.subr.bf16.mxu0 %v7807_v49 }
 0x23f   : > { %v6154_v48 = vpop.eup %6153  ;;  %3191 = vst.msk [vmem:[%s7177_s21 + $0x50] sm:$0xf] %vm3170_vm3, %v5291_v44  ;;  %v2832_v0 = vmul.f32 %v6152_v41, %v6926_v4 }
 0x240   : > { %5748 = vmatmul.mubr.msk.bf16.vlgmr.msra.gmra.mxu1 %vm2089_vm2, %v295_v37  ;;  %v2614_v59 = vpop.xlane.xlu0 %2613  ;;  %3190 = vst.msk [vmem:[%s7177_s21 + $0x4c] sm:$0xf] %vm3170_vm3, %v5290_v21  ;;  %v3661_v16 = vsel %vm2089_vm2, %v2891_v9, 0  ;;  %v2611_v38 = vpop.xlane.xlu1 %2610  ;;  %v2831_v10 = vmul.f32 %v6154_v48, %v6928_v46  ;;  %v299_v21 = vld [vmem:[%s7196_s25 + $0x16] sm:$0x3] }
 0x241   : > { %6167 = vrcp.f32 %v2614_v59  ;;  %5758 = vmatpush3.bf16.xpose.msra.mxu1 %v3661_v16  ;;  %5759 = vmatprep.mubr.msk.bf16.mxu1 %vm6262_vm0, %v7807_v49  ;;  %v5293_v39 = vpack.c.bf16 %v2832_v0, %v2832_v0 }
 0x242   : > { %v6156_v4 = vpop.eup %6155  ;;  %6169 = vrcp.f32 %v2611_v38  ;;  %v2892_v22 = vpack.c.bf16 %v2831_v10, %v2830_v34  ;;  %v5292_v30 = vpack.c.bf16 %v2831_v10, %v2831_v10  ;;  %5769 = vmatprep.subr.bf16.mxu1 %v7807_v49  ;;  %v298_v34 = vld [vmem:[%s7196_s25 + $0x14] sm:$0x3] }
 0x243   : > { %v6158_v11 = vpop.eup %6157  ;;  %3193 = vst.msk [vmem:[%s7177_s21 + $0x58] sm:$0xf] %vm3170_vm3, %v5293_v39  ;;  %v2834_v46 = vmul.f32 %v6156_v4, %v6938_v53  ;;  %v300_v4 = vld [vmem:[%s7196_s25 + $0x18] sm:$0x3] }
 0x244   : > { %5754 = vmatmul.mubr.msk.bf16.vlgmr.msra.gmra.mxu0 %vm2089_vm2, %v296_v23  ;;  %v2620_v28 = vpop.xlane.xlu0 %2619  ;;  %3192 = vst.msk [vmem:[%s7177_s21 + $0x54] sm:$0xf] %vm3170_vm3, %v5292_v30  ;;  %v3707_v55 = vsel %vm2089_vm2, %v2892_v22, 0  ;;  %v2617_v5 = vpop.xlane.xlu1 %2616  ;;  %v2833_v14 = vmul.f32 %v6158_v11, %v6936_v3 }
 0x245   : > { %6171 = vrcp.f32 %v2620_v28  ;;  %5764 = vmatpush3.bf16.xpose.msra.mxu0 %v3707_v55  ;;  %5765 = vmatprep.mubr.msk.bf16.mxu0 %vm6262_vm0, %v7807_v49  ;;  %v5295_v50 = vpack.c.bf16 %v2834_v46, %v2834_v46 }
 0x246   : > { %v6160_v53 = vpop.eup %6159  ;;  %6173 = vrcp.f32 %v2617_v5  ;;  %v2893_v12 = vpack.c.bf16 %v2833_v14, %v2832_v0  ;;  %v5294_v26 = vpack.c.bf16 %v2833_v14, %v2833_v14  ;;  %5775 = vmatprep.subr.bf16.mxu0 %v7807_v49 }
 0x247   : > { %v6162_v35 = vpop.eup %6161  ;;  %3195 = vst.msk [vmem:[%s7177_s21 + $0x60] sm:$0xf] %vm3170_vm3, %v5295_v50  ;;  %v2836_v3 = vmul.f32 %v6160_v53, %v6946_v29 }
 0x248   : > { %5760 = vmatmul.mubr.msk.bf16.vlgmr.msra.gmra.mxu1 %vm2089_vm2, %v297_v13  ;;  %v2626_v27 = vpop.xlane.xlu0 %2625  ;;  %3194 = vst.msk [vmem:[%s7177_s21 + $0x5c] sm:$0xf] %vm3170_vm3, %v5294_v26  ;;  %v3753_v19 = vsel %vm2089_vm2, %v2893_v12, 0  ;;  %v2623_v33 = vpop.xlane.xlu1 %2622  ;;  %v2835_v51 = vmul.f32 %v6162_v35, %v6948_v58  ;;  %v301_v13 = vld [vmem:[%s7196_s25 + $0x1a] sm:$0x3] }
 0x249   : > { %6175 = vrcp.f32 %v2626_v27  ;;  %5770 = vmatpush3.bf16.xpose.msra.mxu1 %v3753_v19  ;;  %5771 = vmatprep.mubr.msk.bf16.mxu1 %vm6262_vm0, %v7807_v49  ;;  %v5297_v17 = vpack.c.bf16 %v2836_v3, %v2836_v3 }
 0x24a   : > { %v6164_v29 = vpop.eup %6163  ;;  %6177 = vrcp.f32 %v2623_v33  ;;  %v2894_v47 = vpack.c.bf16 %v2835_v51, %v2834_v46  ;;  %v5296_v56 = vpack.c.bf16 %v2835_v51, %v2835_v51  ;;  %5781 = vmatprep.subr.bf16.mxu1 %v7807_v49  ;;  %v302_v33 = vld [vmem:[%s7196_s25 + $0x1c] sm:$0x3] }
 0x24b   : > { %v6166_v42 = vpop.eup %6165  ;;  %3197 = vst.msk [vmem:[%s7177_s21 + $0x68] sm:$0xf] %vm3170_vm3, %v5297_v17  ;;  %v2838_v58 = vmul.f32 %v6164_v29, %v6958_v2 }
 0x24c   : > { %5766 = vmatmul.mubr.msk.bf16.vlgmr.msra.gmra.mxu0 %vm2089_vm2, %v298_v34  ;;  %v2632_v37 = vpop.xlane.xlu0 %2631  ;;  %3196 = vst.msk [vmem:[%s7177_s21 + $0x64] sm:$0xf] %vm3170_vm3, %v5296_v56  ;;  %v3799_v44 = vsel %vm2089_vm2, %v2894_v47, 0  ;;  %v2629_v41 = vpop.xlane.xlu1 %2628  ;;  %v2837_v9 = vmul.f32 %v6166_v42, %v6956_v40 }
 0x24d   : > { %6179 = vrcp.f32 %v2632_v37  ;;  %5776 = vmatpush3.bf16.xpose.msra.mxu0 %v3799_v44  ;;  %5777 = vmatprep.mubr.msk.bf16.mxu0 %vm6262_vm0, %v7807_v49  ;;  %v5299_v48 = vpack.c.bf16 %v2838_v58, %v2838_v58  ;;  %v303_v37 = vld [vmem:[%s7196_s25 + $0x1e] sm:$0x3] }
 0x24e   : > { %v6168_v2 = vpop.eup %6167  ;;  %6181 = vrcp.f32 %v2629_v41  ;;  %v2895_v0 = vpack.c.bf16 %v2837_v9, %v2836_v3  ;;  %v5298_v59 = vpack.c.bf16 %v2837_v9, %v2837_v9  ;;  %5787 = vmatprep.subr.bf16.mxu0 %v7807_v49 }
 0x24f   : > { %v6170_v16 = vpop.eup %6169  ;;  %3199 = vst.msk [vmem:[%s7177_s21 + $0x70] sm:$0xf] %vm3170_vm3, %v5299_v48  ;;  %v2840_v40 = vmul.f32 %v6168_v2, %v6966_v45 }
 0x250   : > { %5772 = vmatmul.mubr.msk.bf16.vlgmr.msra.gmra.mxu1 %vm2089_vm2, %v299_v21  ;;  %v2638_v38 = vpop.xlane.xlu0 %2637  ;;  %3198 = vst.msk [vmem:[%s7177_s21 + $0x6c] sm:$0xf] %vm3170_vm3, %v5298_v59  ;;  %v3845_v10 = vsel %vm2089_vm2, %v2895_v0, 0  ;;  %v2635_v23 = vpop.xlane.xlu1 %2634  ;;  %v2839_v39 = vmul.f32 %v6170_v16, %v6968_v7  ;;  %v304_v16 = vld [vmem:[%s7196_s25 + $0x20] sm:$0x3] }
 0x251   : > { %6183 = vrcp.f32 %v2638_v38  ;;  %5782 = vmatpush3.bf16.xpose.msra.mxu1 %v3845_v10  ;;  %5783 = vmatprep.mubr.msk.bf16.mxu1 %vm6262_vm0, %v7807_v49  ;;  %v5301_v22 = vpack.c.bf16 %v2840_v40, %v2840_v40 }
 0x252   : > { %v6172_v45 = vpop.eup %6171  ;;  %6185 = vrcp.f32 %v2635_v23  ;;  %v2896_v30 = vpack.c.bf16 %v2839_v39, %v2838_v58  ;;  %v5300_v11 = vpack.c.bf16 %v2839_v39, %v2839_v39  ;;  %5793 = vmatprep.subr.bf16.mxu1 %v7807_v49 }
 0x253   : > { %v6174_v46 = vpop.eup %6173  ;;  %3201 = vst.msk [vmem:[%s7177_s21 + $0x78] sm:$0xf] %vm3170_vm3, %v5301_v22  ;;  %v2842_v7 = vmul.f32 %v6172_v45, %v6978_v18 }
 0x254   : > { %5778 = vmatmul.mubr.msk.bf16.vlgmr.msra.gmra.mxu0 %vm2089_vm2, %v300_v4  ;;  %v2644_v28 = vpop.xlane.xlu0 %2643  ;;  %3200 = vst.msk [vmem:[%s7177_s21 + $0x74] sm:$0xf] %vm3170_vm3, %v5300_v11  ;;  %v3891_v55 = vsel %vm2089_vm2, %v2896_v30, 0  ;;  %v2641_v5 = vpop.xlane.xlu1 %2640  ;;  %v2841_v14 = vmul.f32 %v6174_v46, %v6976_v52  ;;  %v305_v30 = vld [vmem:[%s7196_s25 + $0x22] sm:$0x3] }
 0x255   : > { %6187 = vrcp.f32 %v2644_v28  ;;  %5788 = vmatpush3.bf16.xpose.msra.mxu0 %v3891_v55  ;;  %5789 = vmatprep.mubr.msk.bf16.mxu0 %vm6262_vm0, %v7807_v49  ;;  %v5303_v50 = vpack.c.bf16 %v2842_v7, %v2842_v7 }
 0x256   : > { %v6176_v18 = vpop.eup %6175  ;;  %6189 = vrcp.f32 %v2641_v5  ;;  %v2897_v53 = vpack.c.bf16 %v2841_v14, %v2840_v40  ;;  %v5302_v12 = vpack.c.bf16 %v2841_v14, %v2841_v14  ;;  %5799 = vmatprep.subr.bf16.mxu0 %v7807_v49 }
 0x257   : > { %v6178_v26 = vpop.eup %6177  ;;  %3203 = vst.msk [vmem:[%s7177_s21 + $0x80] sm:$0xf] %vm3170_vm3, %v5303_v50  ;;  %v2844_v52 = vmul.f32 %v6176_v18, %v6986_v57  ;;  %v306_v50 = vld [vmem:[%s7196_s25 + $0x24] sm:$0x3] }
 0x258   : > { %5784 = vmatmul.mubr.msk.bf16.vlgmr.msra.gmra.mxu1 %vm2089_vm2, %v301_v13  ;;  %v2650_v35 = vpop.xlane.xlu0 %2649  ;;  %3202 = vst.msk [vmem:[%s7177_s21 + $0x7c] sm:$0xf] %vm3170_vm3, %v5302_v12  ;;  %v3937_v3 = vsel %vm2089_vm2, %v2897_v53, 0  ;;  %v2647_v27 = vpop.xlane.xlu1 %2646  ;;  %v2843_v19 = vmul.f32 %v6178_v26, %v6988_v25 }
 0x259   : > { %6191 = vrcp.f32 %v2650_v35  ;;  %5794 = vmatpush3.bf16.xpose.msra.mxu1 %v3937_v3  ;;  %5795 = vmatprep.mubr.msk.bf16.mxu1 %vm6262_vm0, %v7807_v49  ;;  %v5305_v51 = vpack.c.bf16 %v2844_v52, %v2844_v52 }
 0x25a   : > { %v6180_v57 = vpop.eup %6179  ;;  %6193 = vrcp.f32 %v2647_v27  ;;  %v2898_v34 = vpack.c.bf16 %v2843_v19, %v2842_v7  ;;  %v5304_v17 = vpack.c.bf16 %v2843_v19, %v2843_v19  ;;  %5805 = vmatprep.subr.bf16.mxu1 %v7807_v49  ;;  %v307_v19 = vld [vmem:[%s7196_s25 + $0x26] sm:$0x3] }
 0x25b   : > { %v6182_v29 = vpop.eup %6181  ;;  %3205 = vst.msk [vmem:[%s7177_s21 + $0x88] sm:$0xf] %vm3170_vm3, %v5305_v51  ;;  %v2846_v25 = vmul.f32 %v6180_v57, %v6998_v36 }
 0x25c   : > { %5790 = vmatmul.mubr.msk.bf16.vlgmr.msra.gmra.mxu0 %vm2089_vm2, %v302_v33  ;;  %v2656_v47 = vpop.xlane.xlu0 %2655  ;;  %3204 = vst.msk [vmem:[%s7177_s21 + $0x84] sm:$0xf] %vm3170_vm3, %v5304_v17  ;;  %v3983_v56 = vsel %vm2089_vm2, %v2898_v34, 0  ;;  %v2653_v42 = vpop.xlane.xlu1 %2652  ;;  %v2845_v58 = vmul.f32 %v6182_v29, %v6996_v1  ;;  %v7808_v17 = vld [vmem:[#allocation2_spill] sm:$0xff] }
 0x25d   : > { %6195 = vrcp.f32 %v2656_v47  ;;  %5800 = vmatpush3.bf16.xpose.msra.mxu0 %v3983_v56  ;;  %5801 = vmatprep.mubr.msk.bf16.mxu0 %vm6262_vm0, %v7807_v49  ;;  %v5307_v44 = vpack.c.bf16 %v2846_v25, %v2846_v25  ;;  %v7809_v56 = vld [vmem:[#allocation3_spill] sm:$0xff] }
 0x25e   : > { %v6184_v36 = vpop.eup %6183  ;;  %6197 = vrcp.f32 %v2653_v42  ;;  %v2899_v41 = vpack.c.bf16 %v2845_v58, %v2844_v52  ;;  %v5306_v9 = vpack.c.bf16 %v2845_v58, %v2845_v58  ;;  %5811 = vmatprep.subr.bf16.mxu0 %v7807_v49  ;;  %v308_v58 = vld [vmem:[%s7196_s25 + $0x28] sm:$0x3] }
 0x25f   : > { %v6186_v21 = vpop.eup %6185  ;;  %3207 = vst.msk [vmem:[%s7177_s21 + $0x90] sm:$0xf] %vm3170_vm3, %v5307_v44  ;;  %v2848_v1 = vmul.f32 %v6184_v36, %v7006_v6 }
 0x260   : > { %5796 = vmatmul.mubr.msk.bf16.vlgmr.msra.gmra.mxu1 %vm2089_vm2, %v303_v37  ;;  %v2662_v48 = vpop.xlane.xlu0 %2661  ;;  %3206 = vst.msk [vmem:[%s7177_s21 + $0x8c] sm:$0xf] %vm3170_vm3, %v5306_v9  ;;  %v4029_v2 = vsel %vm2089_vm2, %v2899_v41, 0  ;;  %v2659_v0 = vpop.xlane.xlu1 %2658  ;;  %v2847_v59 = vmul.f32 %v6186_v21, %v7008_v43  ;;  %v7810_v21 = vld [vmem:[#allocation5_spill] sm:$0xff] }
 0x261   : > { %6199 = vrcp.f32 %v2662_v48  ;;  %5806 = vmatpush3.bf16.xpose.msra.mxu1 %v4029_v2  ;;  %5807 = vmatprep.mubr.msk.bf16.mxu1 %vm6262_vm0, %v7807_v49  ;;  %v5309_v40 = vpack.c.bf16 %v2848_v1, %v2848_v1 }
 0x262   : > { %v6188_v6 = vpop.eup %6187  ;;  %6201 = vrcp.f32 %v2659_v0  ;;  %v2900_v38 = vpack.c.bf16 %v2847_v59, %v2846_v25  ;;  %v5308_v10 = vpack.c.bf16 %v2847_v59, %v2847_v59  ;;  %5817 = vmatprep.subr.bf16.mxu1 %v7807_v49  ;;  %v7811_v59 = vld [vmem:[#allocation4_spill] sm:$0xff] }
 0x263   : > { %v6190_v23 = vpop.eup %6189  ;;  %3209 = vst.msk [vmem:[%s7177_s21 + $0x98] sm:$0xf] %vm3170_vm3, %v5309_v40  ;;  %v2850_v43 = vmul.f32 %v6188_v6, %v7018_v54  ;;  %v309_v40 = vld [vmem:[%s7196_s25 + $0x2a] sm:$0x3] }
 0x264   : > { %5802 = vmatmul.mubr.msk.bf16.vlgmr.msra.gmra.mxu0 %vm2089_vm2, %v304_v16  ;;  %v2668_v39 = vpop.xlane.xlu0 %2667  ;;  %3208 = vst.msk [vmem:[%s7177_s21 + $0x94] sm:$0xf] %vm3170_vm3, %v5308_v10  ;;  %v4075_v4 = vsel %vm2089_vm2, %v2900_v38, 0  ;;  %v2665_v22 = vpop.xlane.xlu1 %2664  ;;  %v2849_v45 = vmul.f32 %v6190_v23, %v7016_v15 }
 0x265   : > { %6203 = vrcp.f32 %v2668_v39  ;;  %5812 = vmatpush3.bf16.xpose.msra.mxu0 %v4075_v4  ;;  %5813 = vmatprep.mubr.msk.bf16.mxu0 %vm6262_vm0, %v7807_v49  ;;  %v5311_v11 = vpack.c.bf16 %v2850_v43, %v2850_v43  ;;  %v7812_v39 = vld [vmem:[#allocation6_spill] sm:$0xff] }
 0x266   : > { %v6192_v54 = vpop.eup %6191  ;;  %6205 = vrcp.f32 %v2665_v22  ;;  %v2901_v46 = vpack.c.bf16 %v2849_v45, %v2848_v1  ;;  %v5310_v7 = vpack.c.bf16 %v2849_v45, %v2849_v45  ;;  %5823 = vmatprep.subr.bf16.mxu0 %v7807_v49 }
 0x267   : > { %v6194_v28 = vpop.eup %6193  ;;  %3211 = vst.msk [vmem:[%s7177_s21 + $0xa0] sm:$0xf] %vm3170_vm3, %v5311_v11  ;;  %v2852_v15 = vmul.f32 %v6192_v54, %v7026_v61  ;;  %v7813_v11 = vld [vmem:[#allocation7_spill] sm:$0xff] }
 0x268   : > { %5808 = vmatmul.mubr.msk.bf16.vlgmr.msra.gmra.mxu1 %vm2089_vm2, %v305_v30  ;;  %v2674_v55 = vpop.xlane.xlu0 %2673  ;;  %3210 = vst.msk [vmem:[%s7177_s21 + $0x9c] sm:$0xf] %vm3170_vm3, %v5310_v7  ;;  %v4121_v5 = vsel %vm2089_vm2, %v2901_v46, 0  ;;  %v2671_v14 = vpop.xlane.xlu1 %2670  ;;  %v2851_v13 = vmul.f32 %v6194_v28, %v7028_v8  ;;  %v310_v46 = vld [vmem:[%s7196_s25 + $0x2c] sm:$0x3] }
 0x269   : > { %6207 = vrcp.f32 %v2674_v55  ;;  %5818 = vmatpush3.bf16.xpose.msra.mxu1 %v4121_v5  ;;  %5819 = vmatprep.mubr.msk.bf16.mxu1 %vm6262_vm0, %v7807_v49  ;;  %v5313_v18 = vpack.c.bf16 %v2852_v15, %v2852_v15 }
 0x26a   : > { %v6196_v61 = vpop.eup %6195  ;;  %6209 = vrcp.f32 %v2671_v14  ;;  %v2902_v53 = vpack.c.bf16 %v2851_v13, %v2850_v43  ;;  %v5312_v12 = vpack.c.bf16 %v2851_v13, %v2851_v13  ;;  %5829 = vmatprep.subr.bf16.mxu1 %v7807_v49  ;;  %v7814_v14 = vld [vmem:[#allocation9_spill] sm:$0xff] }
 0x26b   : > { %v6198_v26 = vpop.eup %6197  ;;  %3213 = vst.msk [vmem:[%s7177_s21 + $0xa8] sm:$0xf] %vm3170_vm3, %v5313_v18  ;;  %v2854_v8 = vmul.f32 %v6196_v61, %v7038_v60 }
 0x26c   : > { %5814 = vmatmul.mubr.msk.bf16.vlgmr.msra.gmra.mxu0 %vm2089_vm2, %v306_v50  ;;  %v2680_v52 = vpop.xlane.xlu0 %2679  ;;  %3212 = vst.msk [vmem:[%s7177_s21 + $0xa4] sm:$0xf] %vm3170_vm3, %v5312_v12  ;;  %v4167_v35 = vsel %vm2089_vm2, %v2902_v53, 0  ;;  %v2677_v3 = vpop.xlane.xlu1 %2676  ;;  %v2853_v27 = vmul.f32 %v6198_v26, %v7036_v31  ;;  %v7815_v53 = vld [vmem:[#allocation8_spill] sm:$0xff]  ;;  %v311_v26 = vld [vmem:[%s7196_s25 + $0x2e] sm:$0x3] }
 0x26d   : > { %6211 = vrcp.f32 %v2680_v52  ;;  %5824 = vmatpush3.bf16.xpose.msra.mxu0 %v4167_v35  ;;  %5825 = vmatprep.mubr.msk.bf16.mxu0 %vm6262_vm0, %v7807_v49  ;;  %v5315_v33 = vpack.c.bf16 %v2854_v8, %v2854_v8 }
 0x26e   : > { %v6200_v60 = vpop.eup %6199  ;;  %6213 = vrcp.f32 %v2677_v3  ;;  %v2903_v51 = vpack.c.bf16 %v2853_v27, %v2852_v15  ;;  %v5314_v57 = vpack.c.bf16 %v2853_v27, %v2853_v27  ;;  %5835 = vmatprep.subr.bf16.mxu0 %v7807_v49 }
 0x26f   : > { %v6202_v34 = vpop.eup %6201  ;;  %3215 = vst.msk [vmem:[%s7177_s21 + $0xb0] sm:$0xf] %vm3170_vm3, %v5315_v33  ;;  %v2856_v31 = vmul.f32 %v6200_v60, %v7808_v17 }
 0x270   : > { %5820 = vmatmul.mubr.msk.bf16.vlgmr.msra.gmra.mxu1 %vm2089_vm2, %v307_v19  ;;  %v2686_v29 = vpop.xlane.xlu0 %2685  ;;  %3214 = vst.msk [vmem:[%s7177_s21 + $0xac] sm:$0xf] %vm3170_vm3, %v5314_v57  ;;  %v4213_v25 = vsel %vm2089_vm2, %v2903_v51, 0  ;;  %v2683_v47 = vpop.xlane.xlu1 %2682  ;;  %v2855_v42 = vmul.f32 %v6202_v34, %v7809_v56  ;;  %v7816_v19 = vld [vmem:[#allocation10_spill] sm:$0xff]  ;;  %v7817_v34 = vld [vmem:[#allocation11_spill] sm:$0xff] }
 0x271   : > { %6215 = vrcp.f32 %v2686_v29  ;;  %5830 = vmatpush3.bf16.xpose.msra.mxu1 %v4213_v25  ;;  %5831 = vmatprep.mubr.msk.bf16.mxu1 %vm6262_vm0, %v7807_v49  ;;  %v5317_v37 = vpack.c.bf16 %v2856_v31, %v2856_v31 }
 0x272   : > { %v6204_v44 = vpop.eup %6203  ;;  %6217 = vrcp.f32 %v2683_v47  ;;  %v2904_v36 = vpack.c.bf16 %v2855_v42, %v2854_v8  ;;  %v5316_v41 = vpack.c.bf16 %v2855_v42, %v2855_v42  ;;  %5841 = vmatprep.subr.bf16.mxu1 %v7807_v49 }
 0x273   : > { %v6206_v9 = vpop.eup %6205  ;;  %3217 = vst.msk [vmem:[%s7177_s21 + $0xb8] sm:$0xf] %vm3170_vm3, %v5317_v37  ;;  %v2858_v1 = vmul.f32 %v6204_v44, %v7810_v21  ;;  %v313_v21 = vld [vmem:[%s7196_s25 + $0x32] sm:$0x3] }
 0x274   : > { %5826 = vmatmul.mubr.msk.bf16.vlgmr.msra.gmra.mxu0 %vm2089_vm2, %v308_v58  ;;  %v2692_v48 = vpop.xlane.xlu0 %2691  ;;  %3216 = vst.msk [vmem:[%s7177_s21 + $0xb4] sm:$0xf] %vm3170_vm3, %v5316_v41  ;;  %v4259_v2 = vsel %vm2089_vm2, %v2904_v36, 0  ;;  %v2689_v0 = vpop.xlane.xlu1 %2688  ;;  %v2857_v16 = vmul.f32 %v6206_v9, %v7811_v59  ;;  %v7818_v41 = vld [vmem:[#allocation12_spill] sm:$0xff]  ;;  %v7819_v59 = vld [vmem:[#allocation13_spill] sm:$0xff] }
 0x275   : > { %6219 = vrcp.f32 %v2692_v48  ;;  %5836 = vmatpush3.bf16.xpose.msra.mxu0 %v4259_v2  ;;  %5837 = vmatprep.mubr.msk.bf16.mxu0 %vm6262_vm0, %v7807_v49  ;;  %v5319_v6 = vpack.c.bf16 %v2858_v1, %v2858_v1 }
 0x276   : > { %v6208_v38 = vpop.eup %6207  ;;  %6221 = vrcp.f32 %v2689_v0  ;;  %v2905_v10 = vpack.c.bf16 %v2857_v16, %v2856_v31  ;;  %v5318_v23 = vpack.c.bf16 %v2857_v16, %v2857_v16  ;;  %5847 = vmatprep.subr.bf16.mxu0 %v7807_v49  ;;  %v312_v31 = vld [vmem:[%s7196_s25 + $0x30] sm:$0x3] }
 0x277   : > { %v6210_v43 = vpop.eup %6209  ;;  %3219 = vst.msk [vmem:[%s7177_s21 + $0xc0] sm:$0xf] %vm3170_vm3, %v5319_v6  ;;  %v2860_v4 = vmul.f32 %v6208_v38, %v7812_v39 }
 0x278   : > { %5832 = vmatmul.mubr.msk.bf16.vlgmr.msra.gmra.mxu1 %vm2089_vm2, %v309_v40  ;;  %v2698_v22 = vpop.xlane.xlu0 %2697  ;;  %3218 = vst.msk [vmem:[%s7177_s21 + $0xbc] sm:$0xf] %vm3170_vm3, %v5318_v23  ;;  %v4305_v45 = vsel %vm2089_vm2, %v2905_v10, 0  ;;  %v2695_v30 = vpop.xlane.xlu1 %2694  ;;  %v2859_v54 = vmul.f32 %v6210_v43, %v7813_v11  ;;  %v7820_v10 = vld [vmem:[#allocation14_spill] sm:$0xff]  ;;  %v314_v43 = vld [vmem:[%s7196_s25 + $0x34] sm:$0x3] }
 0x279   : > { %6223 = vrcp.f32 %v2698_v22  ;;  %5842 = vmatpush3.bf16.xpose.msra.mxu1 %v4305_v45  ;;  %5843 = vmatprep.mubr.msk.bf16.mxu1 %vm6262_vm0, %v7807_v49  ;;  %v5321_v7 = vpack.c.bf16 %v2860_v4, %v2860_v4 }
 0x27a   : > { %v6212_v28 = vpop.eup %6211  ;;  %6225 = vrcp.f32 %v2695_v30  ;;  %v2906_v15 = vpack.c.bf16 %v2859_v54, %v2858_v1  ;;  %v5320_v55 = vpack.c.bf16 %v2859_v54, %v2859_v54  ;;  %5853 = vmatprep.subr.bf16.mxu1 %v7807_v49 }
 0x27b   : > { %v6214_v5 = vpop.eup %6213  ;;  %3221 = vst.msk [vmem:[%s7177_s21 + $0xc8] sm:$0xf] %vm3170_vm3, %v5321_v7  ;;  %v2862_v13 = vmul.f32 %v6212_v28, %v7814_v14  ;;  %v7821_v28 = vld [vmem:[#allocation15_spill] sm:$0xff] }
 0x27c   : > { %5838 = vmatmul.mubr.msk.bf16.vlgmr.msra.gmra.mxu0 %vm2089_vm2, %v310_v46  ;;  %v2704_v50 = vpop.xlane.xlu0 %2703  ;;  %3220 = vst.msk [vmem:[%s7177_s21 + $0xc4] sm:$0xf] %vm3170_vm3, %v5320_v55  ;;  %v4351_v18 = vsel %vm2089_vm2, %v2906_v15, 0  ;;  %v2701_v61 = vpop.xlane.xlu1 %2700  ;;  %v2861_v12 = vmul.f32 %v6214_v5, %v7815_v53  ;;  %v315_v55 = vld [vmem:[%s7196_s25 + $0x36] sm:$0x3] }
 0x27d   : > { %6227 = vrcp.f32 %v2704_v50  ;;  %5848 = vmatpush3.bf16.xpose.msra.mxu0 %v4351_v18  ;;  %5849 = vmatprep.mubr.msk.bf16.mxu0 %vm6262_vm0, %v7807_v49  ;;  %v5323_v8 = vpack.c.bf16 %v2862_v13, %v2862_v13 }
 0x27e   : > { %v6216_v52 = vpop.eup %6215  ;;  %6229 = vrcp.f32 %v2701_v61  ;;  %v2907_v35 = vpack.c.bf16 %v2861_v12, %v2860_v4  ;;  %v5322_v3 = vpack.c.bf16 %v2861_v12, %v2861_v12  ;;  %5859 = vmatprep.subr.bf16.mxu0 %v7807_v49 }
 0x27f   : > { %v6218_v27 = vpop.eup %6217  ;;  %3223 = vst.msk [vmem:[%s7177_s21 + $0xd0] sm:$0xf] %vm3170_vm3, %v5323_v8  ;;  %v2864_v33 = vmul.f32 %v6216_v52, %v7816_v19  ;;  %v316_v8 = vld [vmem:[%s7196_s25 + $0x38] sm:$0x3] }
 0x280   : > { %5844 = vmatmul.mubr.msk.bf16.vlgmr.msra.gmra.mxu1 %vm2089_vm2, %v311_v26  ;;  %v2710_v60 = vpop.xlane.xlu0 %2709  ;;  %3222 = vst.msk [vmem:[%s7177_s21 + $0xcc] sm:$0xf] %vm3170_vm3, %v5322_v3  ;;  %v4397_v51 = vsel %vm2089_vm2, %v2907_v35, 0  ;;  %v2707_v57 = vpop.xlane.xlu1 %2706  ;;  %v2863_v17 = vmul.f32 %v6218_v27, %v7817_v34 }
 0x281   : > { %6231 = vrcp.f32 %v2710_v60  ;;  %5854 = vmatpush3.bf16.xpose.msra.mxu1 %v4397_v51  ;;  %5855 = vmatprep.mubr.msk.bf16.mxu1 %vm6262_vm0, %v7807_v49  ;;  %v5325_v29 = vpack.c.bf16 %v2864_v33, %v2864_v33  ;;  %v7822_v60 = vld [vmem:[#allocation16_spill] sm:$0xff] }
 0x282   : > { %v6220_v25 = vpop.eup %6219  ;;  %6233 = vrcp.f32 %v2707_v57  ;;  %v2908_v47 = vpack.c.bf16 %v2863_v17, %v2862_v13  ;;  %v5324_v56 = vpack.c.bf16 %v2863_v17, %v2863_v17  ;;  %5865 = vmatprep.subr.bf16.mxu1 %v7807_v49  ;;  %v317_v57 = vld [vmem:[%s7196_s25 + $0x3a] sm:$0x3] }
 0x283   : > { %v6222_v42 = vpop.eup %6221  ;;  %3225 = vst.msk [vmem:[%s7177_s21 + $0xd8] sm:$0xf] %vm3170_vm3, %v5325_v29  ;;  %v2866_v58 = vmul.f32 %v6220_v25, %v7098_v62  ;;  %v7823_v25 = vld [vmem:[#allocation17_spill] sm:$0xff] }
 0x284   : > { %5850 = vmatmul.mubr.msk.bf16.vlgmr.msra.gmra.mxu0 %vm2089_vm2, %v312_v31  ;;  %v2716_v37 = vpop.xlane.xlu0 %2715  ;;  %3224 = vst.msk [vmem:[%s7177_s21 + $0xd4] sm:$0xf] %vm3170_vm3, %v5324_v56  ;;  %v4443_v44 = vsel %vm2089_vm2, %v2908_v47, 0  ;;  %v2713_v36 = vpop.xlane.xlu1 %2712  ;;  %v2865_v9 = vmul.f32 %v6222_v42, %v7818_v41  ;;  %v7824_v42 = vld [vmem:[#allocation18_spill] sm:$0xff] }
 0x285   : > { %6235 = vrcp.f32 %v2716_v37  ;;  %5860 = vmatpush3.bf16.xpose.msra.mxu0 %v4443_v44  ;;  %5861 = vmatprep.mubr.msk.bf16.mxu0 %vm6262_vm0, %v7807_v49  ;;  %v5327_v1 = vpack.c.bf16 %v2866_v58, %v2866_v58  ;;  %v318_v37 = vld [vmem:[%s7196_s25 + $0x3c] sm:$0x3] }
 0x286   : > { %v6224_v62 = vpop.eup %6223  ;;  %6237 = vrcp.f32 %v2713_v36  ;;  %v2909_v48 = vpack.c.bf16 %v2865_v9, %v2864_v33  ;;  %v5326_v2 = vpack.c.bf16 %v2865_v9, %v2865_v9  ;;  %5871 = vmatprep.subr.bf16.mxu0 %v7807_v49 }
 0x287   : > { %v6226_v0 = vpop.eup %6225  ;;  %3227 = vst.msk [vmem:[%s7177_s21 + $0xe0] sm:$0xf] %vm3170_vm3, %v5327_v1  ;;  %v2868_v16 = vmul.f32 %v6224_v62, %v7819_v59  ;;  %v7825_v1 = vld [vmem:[#allocation20_spill] sm:$0xff]  ;;  %v319_v59 = vld [vmem:[%s7196_s25 + $0x3e] sm:$0x3] }
 0x288   : > { %5856 = vmatmul.mubr.msk.bf16.vlgmr.msra.gmra.mxu1 %vm2089_vm2, %v313_v21  ;;  %v2722_v40 = vpop.xlane.xlu0 %2721  ;;  %3226 = vst.msk [vmem:[%s7177_s21 + $0xdc] sm:$0xf] %vm3170_vm3, %v5326_v2  ;;  %v4489_v6 = vsel %vm2089_vm2, %v2909_v48, 0  ;;  %v2719_v38 = vpop.xlane.xlu1 %2718  ;;  %v2867_v23 = vmul.f32 %v6226_v0, %v7820_v10  ;;  %v7826_v2 = vld [vmem:[#allocation19_spill] sm:$0xff] }
 0x289   : > { %6239 = vrcp.f32 %v2722_v40  ;;  %5866 = vmatpush3.bf16.xpose.msra.mxu1 %v4489_v6  ;;  %5867 = vmatprep.mubr.msk.bf16.mxu1 %vm6262_vm0, %v7807_v49  ;;  %v5329_v39 = vpack.c.bf16 %v2868_v16, %v2868_v16 }
 0x28a   : > { %v6228_v4 = vpop.eup %6227  ;;  %6241 = vrcp.f32 %v2719_v38  ;;  %v2910_v22 = vpack.c.bf16 %v2867_v23, %v2866_v58  ;;  %v5328_v45 = vpack.c.bf16 %v2867_v23, %v2867_v23  ;;  %5877 = vmatprep.subr.bf16.mxu1 %v7807_v49  ;;  %v7827_v23 = vld [vmem:[#allocation21_spill] sm:$0xff] }
 0x28b   : > { %v6230_v30 = vpop.eup %6229  ;;  %3229 = vst.msk [vmem:[%s7177_s21 + $0xe8] sm:$0xf] %vm3170_vm3, %v5329_v39  ;;  %v2870_v11 = vmul.f32 %v6228_v4, %v7118_v24  ;;  %v7828_v4 = vld [vmem:[#allocation22_spill] sm:$0xff] }
 0x28c   : > { %5862 = vmatmul.mubr.msk.bf16.vlgmr.msra.gmra.mxu0 %vm2089_vm2, %v314_v43  ;;  %v2728_v54 = vpop.xlane.xlu0 %2727  ;;  %3228 = vst.msk [vmem:[%s7177_s21 + $0xe4] sm:$0xf] %vm3170_vm3, %v5328_v45  ;;  %v4535_v46 = vsel %vm2089_vm2, %v2910_v22, 0  ;;  %v2725_v7 = vpop.xlane.xlu1 %2724  ;;  %v2869_v15 = vmul.f32 %v6230_v30, %v7821_v28  ;;  %v320_v45 = vld [vmem:[%s7196_s25 + $0x40] sm:$0x3] }
 0x28d   : > { %6243 = vrcp.f32 %v2728_v54  ;;  %5872 = vmatpush3.bf16.xpose.msra.mxu0 %v4535_v46  ;;  %5873 = vmatprep.mubr.msk.bf16.mxu0 %vm6262_vm0, %v7807_v49  ;;  %v5331_v5 = vpack.c.bf16 %v2870_v11, %v2870_v11 }
 0x28e   : > { %v6232_v24 = vpop.eup %6231  ;;  %6245 = vrcp.f32 %v2725_v7  ;;  %v2911_v14 = vpack.c.bf16 %v2869_v15, %v2868_v16  ;;  %v5330_v13 = vpack.c.bf16 %v2869_v15, %v2869_v15  ;;  %5883 = vmatprep.subr.bf16.mxu0 %v7807_v49  ;;  %v7829_v7 = vld [vmem:[#allocation23_spill] sm:$0xff] }
 0x28f   : > { %v6234_v50 = vpop.eup %6233  ;;  %3231 = vst.msk [vmem:[%s7177_s21 + $0xf0] sm:$0xf] %vm3170_vm3, %v5331_v5  ;;  %v2872_v18 = vmul.f32 %v6232_v24, %v7126_v20 }
 0x290   : > { %5868 = vmatmul.mubr.msk.bf16.vlgmr.msra.gmra.mxu1 %vm2089_vm2, %v315_v55  ;;  %v2734_v61 = vpop.xlane.xlu0 %2733  ;;  %3230 = vst.msk [vmem:[%s7177_s21 + $0xec] sm:$0xf] %vm3170_vm3, %v5330_v13  ;;  %v4581_v53 = vsel %vm2089_vm2, %v2911_v14, 0  ;;  %v2731_v12 = vpop.xlane.xlu1 %2730  ;;  %v2871_v26 = vmul.f32 %v6234_v50, %v7128_v32  ;;  %v321_v55 = vld [vmem:[%s7196_s25 + $0x42] sm:$0x3] }
 0x291   : > { %6247 = vrcp.f32 %v2734_v61  ;;  %5878 = vmatpush3.bf16.xpose.msra.mxu1 %v4581_v53  ;;  %5879 = vmatprep.mubr.msk.bf16.mxu1 %vm6262_vm0, %v7807_v49  ;;  %v5333_v52 = vpack.c.bf16 %v2872_v18, %v2872_v18  ;;  %v322_v13 = vld [vmem:[%s7196_s25 + $0x44] sm:$0x3]  ;;  %v323_v50 = vld [vmem:[%s7196_s25 + $0x46] sm:$0x3] }
 0x292   : > { %v6236_v20 = vpop.eup %6235  ;;  %6249 = vrcp.f32 %v2731_v12  ;;  %v2912_v35 = vpack.c.bf16 %v2871_v26, %v2870_v11  ;;  %v5332_v3 = vpack.c.bf16 %v2871_v26, %v2871_v26  ;;  %5889 = vmatprep.subr.bf16.mxu1 %v7807_v49 }
 0x293   : > { %v6238_v27 = vpop.eup %6237  ;;  %3233 = vst.msk [vmem:[%s7177_s21 + $0xf8] sm:$0xf] %vm3170_vm3, %v5333_v52  ;;  %v2874_v19 = vmul.f32 %v6236_v20, %v7137_v63 }
 0x294   : > { %5874 = vmatmul.mubr.msk.bf16.vlgmr.msra.gmra.mxu0 %vm2089_vm2, %v316_v8  ;;  %3232 = vst.msk [vmem:[%s7177_s21 + $0xf4] sm:$0xf] %vm3170_vm3, %v5332_v3  ;;  %v4627_v32 = vsel %vm2089_vm2, %v2912_v35, 0  ;;  %v2737_v33 = vpop.xlane.xlu1 %2736  ;;  %v2873_v51 = vmul.f32 %v6238_v27, %v7822_v60 }
 0x295   : > { %5884 = vmatpush3.bf16.xpose.msra.mxu0 %v4627_v32  ;;  %6251 = vrcp.f32 %v2737_v33  ;;  %5885 = vmatprep.mubr.msk.bf16.mxu0 %vm6262_vm0, %v7807_v49  ;;  %v5335_v34 = vpack.c.bf16 %v2874_v19, %v2874_v19 }
 0x296   : > { %v6240_v63 = vpop.eup %6239  ;;  %v2913_v17 = vpack.c.bf16 %v2873_v51, %v2872_v18  ;;  %v5334_v31 = vpack.c.bf16 %v2873_v51, %v2873_v51  ;;  %5895 = vmatprep.subr.bf16.mxu0 %v7807_v49 }
 0x297   : > { %v6242_v29 = vpop.eup %6241  ;;  %3235 = vst.msk [vmem:[%s7177_s21 + $0x100] sm:$0xf] %vm3170_vm3, %v5335_v34  ;;  %v2876_v47 = vmul.f32 %v6240_v63, %v7823_v25 }
 0x298   : > { %5880 = vmatmul.mubr.msk.bf16.vlgmr.msra.gmra.mxu1 %vm2089_vm2, %v317_v57  ;;  %3234 = vst.msk [vmem:[%s7177_s21 + $0xfc] sm:$0xf] %vm3170_vm3, %v5334_v31  ;;  %v4673_v56 = vsel %vm2089_vm2, %v2913_v17, 0  ;;  %v2875_v58 = vmul.f32 %v6242_v29, %v7824_v42 }
 0x299   : > { %5890 = vmatpush3.bf16.xpose.msra.mxu1 %v4673_v56  ;;  %5891 = vmatprep.mubr.msk.bf16.mxu1 %vm6262_vm0, %v7807_v49  ;;  %v5337_v44 = vpack.c.bf16 %v2876_v47, %v2876_v47 }
 0x29a   : > { %v6244_v36 = vpop.eup %6243  ;;  %v2914_v41 = vpack.c.bf16 %v2875_v58, %v2874_v19  ;;  %v5336_v9 = vpack.c.bf16 %v2875_v58, %v2875_v58  ;;  %5901 = vmatprep.subr.bf16.mxu1 %v7807_v49 }
 0x29b   : > { %v6246_v21 = vpop.eup %6245  ;;  %3237 = vst.msk [vmem:[%s7177_s21 + $0x108] sm:$0xf] %vm3170_vm3, %v5337_v44  ;;  %v2878_v62 = vmul.f32 %v6244_v36, %v7825_v1 }
 0x29c   : > { %5886 = vmatmul.mubr.msk.bf16.vlgmr.msra.gmra.mxu0 %vm2089_vm2, %v318_v37  ;;  %3236 = vst.msk [vmem:[%s7177_s21 + $0x104] sm:$0xf] %vm3170_vm3, %v5336_v9  ;;  %v4719_v48 = vsel %vm2089_vm2, %v2914_v41, 0  ;;  %v2877_v0 = vmul.f32 %v6246_v21, %v7826_v2 }
 0x29d   : > { %5896 = vmatpush3.bf16.xpose.msra.mxu0 %v4719_v48  ;;  %5897 = vmatprep.mubr.msk.bf16.mxu0 %vm6262_vm0, %v7807_v49  ;;  %v5339_v16 = vpack.c.bf16 %v2878_v62, %v2878_v62 }
 0x29e   : > { %v6248_v40 = vpop.eup %6247  ;;  %v2915_v6 = vpack.c.bf16 %v2877_v0, %v2876_v47  ;;  %v5338_v38 = vpack.c.bf16 %v2877_v0, %v2877_v0  ;;  %5907 = vmatprep.subr.bf16.mxu0 %v7807_v49 }
 0x29f   : > { %v6250_v10 = vpop.eup %6249  ;;  %3239 = vst.msk [vmem:[%s7177_s21 + $0x110] sm:$0xf] %vm3170_vm3, %v5339_v16  ;;  %v2880_v43 = vmul.f32 %v6248_v40, %v7827_v23 }
 0x2a0   : > { %5892 = vmatmul.mubr.msk.bf16.vlgmr.msra.gmra.mxu1 %vm2089_vm2, %v319_v59  ;;  %3238 = vst.msk [vmem:[%s7177_s21 + $0x10c] sm:$0xf] %vm3170_vm3, %v5338_v38  ;;  %v4765_v39 = vsel %vm2089_vm2, %v2915_v6, 0  ;;  %v2879_v22 = vmul.f32 %v6250_v10, %v7828_v4 }
 0x2a1   : > { %5902 = vmatpush3.bf16.xpose.msra.mxu1 %v4765_v39  ;;  %5903 = vmatprep.mubr.msk.bf16.mxu1 %vm6262_vm0, %v7807_v49  ;;  %v5341_v30 = vpack.c.bf16 %v2880_v43, %v2880_v43 }
 0x2a2   : > { %v6252_v11 = vpop.eup %6251  ;;  %v2916_v54 = vpack.c.bf16 %v2879_v22, %v2878_v62  ;;  %v5340_v46 = vpack.c.bf16 %v2879_v22, %v2879_v22  ;;  %5913 = vmatprep.subr.bf16.mxu1 %v7807_v49 }
 0x2a3   : > { %v2881_v28 = vmul.f32 %v6252_v11, %v7829_v7  ;;  %3241 = vst.msk [vmem:[%s7177_s21 + $0x118] sm:$0xf] %vm3170_vm3, %v5341_v30 }
 0x2a4   : > { %5898 = vmatmul.mubr.msk.bf16.vlgmr.msra.gmra.mxu0 %vm2089_vm2, %v320_v45  ;;  %3240 = vst.msk [vmem:[%s7177_s21 + $0x114] sm:$0xf] %vm3170_vm3, %v5340_v46  ;;  %v4811_v15 = vsel %vm2089_vm2, %v2916_v54, 0 }
 0x2a5   : > { %5908 = vmatpush3.bf16.xpose.msra.mxu0 %v4811_v15  ;;  %v2917_v5 = vpack.c.bf16 %v2881_v28, %v2880_v43  ;;  %v5342_v24 = vpack.c.bf16 %v2881_v28, %v2881_v28  ;;  %5909 = vmatprep.mubr.msk.bf16.mxu0 %vm6262_vm0, %v7807_v49 }
 0x2a7   : > { %3242 = vst.msk [vmem:[%s7177_s21 + $0x11c] sm:$0xf] %vm3170_vm3, %v5342_v24  ;;  %v4857_v14 = vsel %vm2089_vm2, %v2917_v5, 0 }
 0x2a8   : > { %5904 = vmatmul.mubr.msk.bf16.vlgmr.msra.gmra.mxu1 %vm2089_vm2, %v321_v55 }
 0x2a9   : > { %5914 = vmatpush3.bf16.xpose.msra.mxu1 %v4857_v14  ;;  %5915 = vmatprep.mubr.msk.bf16.mxu1 %vm6262_vm0, %v7807_v49 }
 0x2ac   : > { %5910 = vmatmul.mubr.msk.bf16.vlgmr.msra.gmra.mxu0 %vm2089_vm2, %v322_v13 }
 0x2b0   : > { %5916 = vmatmul.mubr.msk.bf16.vlgmr.msra.gmra.mxu1 %vm2089_vm2, %v323_v50 }
 0x2e3   : > { %v3283_v18 = vpop.f32.mrf.mxu0 }
 0x2e4   : > { %v4899_v61 = vpack.c.bf16 %v3283_v18, %v3283_v18 }
 0x2e5   : > { %v5707_v53 = vpop.f32.mrf.mxu0 }
 0x2e6   : > { %4936 = vst.msk [vmem:[%s7617_s28] sm:$0x3] %vm4935_vm4, %v4899_v61 }
 0x2e7   : > { %v3286_v49 = vpop.f32.mrf.mxu0  ;;  %v3329_v12 = vpop.f32.mrf.mxu1 }
 0x2e8   : > { %v4900_v26 = vpack.c.bf16 %v3329_v12, %v3329_v12 }
 0x2e9   : > { %v5708_v8 = vpop.f32.mrf.mxu0  ;;  %v5713_v52 = vpop.f32.mrf.mxu1 }
 0x2ea   : > { %4937 = vst.msk [vmem:[%s7617_s28 + $0x2] sm:$0x3] %vm4935_vm4, %v4900_v26 }
 0x2eb   : > { %v3332_v20 = vpop.f32.mrf.mxu1  ;;  %v3375_v35 = vpop.f32.mrf.mxu0 }
 0x2ec   : > { %v4901_v3 = vpack.c.bf16 %v3375_v35, %v3375_v35 }
 0x2ed   : > { %v5714_v27 = vpop.f32.mrf.mxu1  ;;  %v5719_v19 = vpop.f32.mrf.mxu0 }
 0x2ee   : > { %4938 = vst.msk [vmem:[%s7617_s28 + $0x4] sm:$0x3] %vm4935_vm4, %v4901_v3 }
 0x2ef   : > { %v3378_v32 = vpop.f32.mrf.mxu0 }
 0x2f0   : > { %v3421_v33 = vpop.f32.mrf.mxu1 }
 0x2f1   : > { %v4902_v60 = vpack.c.bf16 %v3421_v33, %v3421_v33  ;;  %v5720_v51 = vpop.f32.mrf.mxu0 }
 0x2f2   : > { %v5725_v57 = vpop.f32.mrf.mxu1 }
 0x2f3   : > { %4939 = vst.msk [vmem:[%s7617_s28 + $0x6] sm:$0x3] %vm4935_vm4, %v4902_v60 }
 0x2f4   : > { %v3424_v34 = vpop.f32.mrf.mxu1  ;;  %v3467_v63 = vpop.f32.mrf.mxu0 }
 0x2f5   : > { %v4903_v17 = vpack.c.bf16 %v3467_v63, %v3467_v63 }
 0x2f6   : > { %v5726_v31 = vpop.f32.mrf.mxu1  ;;  %v5731_v29 = vpop.f32.mrf.mxu0 }
 0x2f7   : > { %4940 = vst.msk [vmem:[%s7617_s28 + $0x8] sm:$0x3] %vm4935_vm4, %v4903_v17 }
 0x2f8   : > { %v3470_v25 = vpop.f32.mrf.mxu0  ;;  %v3513_v47 = vpop.f32.mrf.mxu1 }
 0x2f9   : > { %v4904_v56 = vpack.c.bf16 %v3513_v47, %v3513_v47 }
 0x2fa   : > { %v5732_v42 = vpop.f32.mrf.mxu0  ;;  %v5737_v58 = vpop.f32.mrf.mxu1 }
 0x2fb   : > { %4941 = vst.msk [vmem:[%s7617_s28 + $0xa] sm:$0x3] %vm4935_vm4, %v4904_v56 }
 0x2fc   : > { %v3516_v37 = vpop.f32.mrf.mxu1  ;;  %v3559_v44 = vpop.f32.mrf.mxu0 }
 0x2fd   : > { %v4905_v36 = vpack.c.bf16 %v3559_v44, %v3559_v44 }
 0x2fe   : > { %v5738_v41 = vpop.f32.mrf.mxu1  ;;  %v5743_v9 = vpop.f32.mrf.mxu0 }
 0x2ff   : > { %4942 = vst.msk [vmem:[%s7617_s28 + $0xc] sm:$0x3] %vm4935_vm4, %v4905_v36 }
 0x300   : > { %v3562_v21 = vpop.f32.mrf.mxu0  ;;  %v3605_v1 = vpop.f32.mrf.mxu1 }
 0x301   : > { %v4906_v62 = vpack.c.bf16 %v3605_v1, %v3605_v1 }
 0x302   : > { %v5744_v48 = vpop.f32.mrf.mxu0  ;;  %v5749_v2 = vpop.f32.mrf.mxu1 }
 0x303   : > { %4943 = vst.msk [vmem:[%s7617_s28 + $0xe] sm:$0x3] %vm4935_vm4, %v4906_v62 }
 0x304   : > { %v3608_v0 = vpop.f32.mrf.mxu1  ;;  %v3651_v59 = vpop.f32.mrf.mxu0 }
 0x305   : > { %v4907_v16 = vpack.c.bf16 %v3651_v59, %v3651_v59 }
 0x306   : > { %v5750_v40 = vpop.f32.mrf.mxu1  ;;  %v5755_v6 = vpop.f32.mrf.mxu0 }
 0x307   : > { %4944 = vst.msk [vmem:[%s7617_s28 + $0x10] sm:$0x3] %vm4935_vm4, %v4907_v16 }
 0x308   : > { %v3654_v38 = vpop.f32.mrf.mxu0  ;;  %v3697_v10 = vpop.f32.mrf.mxu1 }
 0x309   : > { %v4908_v23 = vpack.c.bf16 %v3697_v10, %v3697_v10 }
 0x30a   : > { %v5756_v43 = vpop.f32.mrf.mxu0  ;;  %v5761_v39 = vpop.f32.mrf.mxu1 }
 0x30b   : > { %4945 = vst.msk [vmem:[%s7617_s28 + $0x12] sm:$0x3] %vm4935_vm4, %v4908_v23 }
 0x30c   : > { %v3700_v4 = vpop.f32.mrf.mxu1  ;;  %v3743_v22 = vpop.f32.mrf.mxu0 }
 0x30d   : > { %v4909_v45 = vpack.c.bf16 %v3743_v22, %v3743_v22 }
 0x30e   : > { %v5762_v30 = vpop.f32.mrf.mxu1  ;;  %v5767_v11 = vpop.f32.mrf.mxu0 }
 0x30f   : > { %4946 = vst.msk [vmem:[%s7617_s28 + $0x14] sm:$0x3] %vm4935_vm4, %v4909_v45 }
 0x310   : > { %v3746_v54 = vpop.f32.mrf.mxu0  ;;  %v3789_v46 = vpop.f32.mrf.mxu1 }
 0x311   : > { %v4910_v7 = vpack.c.bf16 %v3789_v46, %v3789_v46 }
 0x312   : > { %v5768_v28 = vpop.f32.mrf.mxu0  ;;  %v5773_v15 = vpop.f32.mrf.mxu1 }
 0x313   : > { %4947 = vst.msk [vmem:[%s7617_s28 + $0x16] sm:$0x3] %vm4935_vm4, %v4910_v7 }
 0x314   : > { %v3792_v55 = vpop.f32.mrf.mxu1  ;;  %v3835_v5 = vpop.f32.mrf.mxu0 }
 0x315   : > { %v4911_v24 = vpack.c.bf16 %v3835_v5, %v3835_v5 }
 0x316   : > { %v5774_v14 = vpop.f32.mrf.mxu1  ;;  %v5779_v13 = vpop.f32.mrf.mxu0 }
 0x317   : > { %4948 = vst.msk [vmem:[%s7617_s28 + $0x18] sm:$0x3] %vm4935_vm4, %v4911_v24 }
 0x318   : > { %v3838_v50 = vpop.f32.mrf.mxu0  ;;  %v3881_v18 = vpop.f32.mrf.mxu1 }
 0x319   : > { %v4912_v61 = vpack.c.bf16 %v3881_v18, %v3881_v18 }
 0x31a   : > { %v5780_v53 = vpop.f32.mrf.mxu0  ;;  %v5785_v49 = vpop.f32.mrf.mxu1 }
 0x31b   : > { %4949 = vst.msk [vmem:[%s7617_s28 + $0x1a] sm:$0x3] %vm4935_vm4, %v4912_v61 }
 0x31c   : > { %v3884_v12 = vpop.f32.mrf.mxu1  ;;  %v3927_v26 = vpop.f32.mrf.mxu0 }
 0x31d   : > { %v4913_v8 = vpack.c.bf16 %v3927_v26, %v3927_v26 }
 0x31e   : > { %v5786_v52 = vpop.f32.mrf.mxu1  ;;  %v5791_v20 = vpop.f32.mrf.mxu0 }
 0x31f   : > { %4950 = vst.msk [vmem:[%s7617_s28 + $0x1c] sm:$0x3] %vm4935_vm4, %v4913_v8 }
 0x320   : > { %v3930_v35 = vpop.f32.mrf.mxu0  ;;  %v3973_v3 = vpop.f32.mrf.mxu1 }
 0x321   : > { %v4914_v27 = vpack.c.bf16 %v3973_v3, %v3973_v3 }
 0x322   : > { %v5792_v19 = vpop.f32.mrf.mxu0  ;;  %v5797_v32 = vpop.f32.mrf.mxu1 }
 0x323   : > { %4951 = vst.msk [vmem:[%s7617_s28 + $0x1e] sm:$0x3] %vm4935_vm4, %v4914_v27 }
 0x324   : > { %v3976_v33 = vpop.f32.mrf.mxu1  ;;  %v4019_v60 = vpop.f32.mrf.mxu0 }
 0x325   : > { %v4915_v51 = vpack.c.bf16 %v4019_v60, %v4019_v60 }
 0x326   : > { %v5798_v57 = vpop.f32.mrf.mxu1  ;;  %v5803_v34 = vpop.f32.mrf.mxu0 }
 0x327   : > { %4952 = vst.msk [vmem:[%s7617_s28 + $0x20] sm:$0x3] %vm4935_vm4, %v4915_v51 }
 0x328   : > { %v4022_v63 = vpop.f32.mrf.mxu0  ;;  %v4065_v17 = vpop.f32.mrf.mxu1 }
 0x329   : > { %v4916_v31 = vpack.c.bf16 %v4065_v17, %v4065_v17 }
 0x32a   : > { %v5804_v29 = vpop.f32.mrf.mxu0  ;;  %v5809_v25 = vpop.f32.mrf.mxu1 }
 0x32b   : > { %4953 = vst.msk [vmem:[%s7617_s28 + $0x22] sm:$0x3] %vm4935_vm4, %v4916_v31 }
 0x32c   : > { %v4068_v47 = vpop.f32.mrf.mxu1  ;;  %v4111_v56 = vpop.f32.mrf.mxu0 }
 0x32d   : > { %v4917_v42 = vpack.c.bf16 %v4111_v56, %v4111_v56 }
 0x32e   : > { %v5810_v58 = vpop.f32.mrf.mxu1  ;;  %v5815_v37 = vpop.f32.mrf.mxu0 }
 0x32f   : > { %4954 = vst.msk [vmem:[%s7617_s28 + $0x24] sm:$0x3] %vm4935_vm4, %v4917_v42 }
 0x330   : > { %v4114_v44 = vpop.f32.mrf.mxu0  ;;  %v4157_v36 = vpop.f32.mrf.mxu1 }
 0x331   : > { %v4918_v41 = vpack.c.bf16 %v4157_v36, %v4157_v36 }
 0x332   : > { %v5816_v9 = vpop.f32.mrf.mxu0  ;;  %v5821_v21 = vpop.f32.mrf.mxu1 }
 0x333   : > { %4955 = vst.msk [vmem:[%s7617_s28 + $0x26] sm:$0x3] %vm4935_vm4, %v4918_v41 }
 0x334   : > { %v4160_v1 = vpop.f32.mrf.mxu1  ;;  %v4203_v62 = vpop.f32.mrf.mxu0 }
 0x335   : > { %v4919_v48 = vpack.c.bf16 %v4203_v62, %v4203_v62 }
 0x336   : > { %v5822_v2 = vpop.f32.mrf.mxu1  ;;  %v5827_v0 = vpop.f32.mrf.mxu0 }
 0x337   : > { %4956 = vst.msk [vmem:[%s7617_s28 + $0x28] sm:$0x3] %vm4935_vm4, %v4919_v48 }
 0x338   : > { %v4206_v59 = vpop.f32.mrf.mxu0  ;;  %v4249_v16 = vpop.f32.mrf.mxu1 }
 0x339   : > { %v4920_v40 = vpack.c.bf16 %v4249_v16, %v4249_v16 }
 0x33a   : > { %v5828_v6 = vpop.f32.mrf.mxu0  ;;  %v5833_v38 = vpop.f32.mrf.mxu1 }
 0x33b   : > { %4957 = vst.msk [vmem:[%s7617_s28 + $0x2a] sm:$0x3] %vm4935_vm4, %v4920_v40 }
 0x33c   : > { %v4252_v10 = vpop.f32.mrf.mxu1  ;;  %v4295_v23 = vpop.f32.mrf.mxu0 }
 0x33d   : > { %v4921_v43 = vpack.c.bf16 %v4295_v23, %v4295_v23 }
 0x33e   : > { %v5834_v39 = vpop.f32.mrf.mxu1  ;;  %v5839_v4 = vpop.f32.mrf.mxu0 }
 0x33f   : > { %4958 = vst.msk [vmem:[%s7617_s28 + $0x2c] sm:$0x3] %vm4935_vm4, %v4921_v43 }
 0x340   : > { %v4298_v22 = vpop.f32.mrf.mxu0  ;;  %v4341_v45 = vpop.f32.mrf.mxu1 }
 0x341   : > { %v4922_v30 = vpack.c.bf16 %v4341_v45, %v4341_v45 }
 0x342   : > { %v5840_v11 = vpop.f32.mrf.mxu0  ;;  %v5845_v54 = vpop.f32.mrf.mxu1 }
 0x343   : > { %4959 = vst.msk [vmem:[%s7617_s28 + $0x2e] sm:$0x3] %vm4935_vm4, %v4922_v30 }
 0x344   : > { %v4344_v46 = vpop.f32.mrf.mxu1  ;;  %v4387_v7 = vpop.f32.mrf.mxu0 }
 0x345   : > { %v4923_v28 = vpack.c.bf16 %v4387_v7, %v4387_v7 }
 0x346   : > { %v5846_v15 = vpop.f32.mrf.mxu1  ;;  %v5851_v55 = vpop.f32.mrf.mxu0 }
 0x347   : > { %4960 = vst.msk [vmem:[%s7617_s28 + $0x30] sm:$0x3] %vm4935_vm4, %v4923_v28 }
 0x348   : > { %v4390_v5 = vpop.f32.mrf.mxu0  ;;  %v4433_v24 = vpop.f32.mrf.mxu1 }
 0x349   : > { %v4924_v14 = vpack.c.bf16 %v4433_v24, %v4433_v24 }
 0x34a   : > { %v5852_v13 = vpop.f32.mrf.mxu0  ;;  %v5857_v50 = vpop.f32.mrf.mxu1 }
 0x34b   : > { %4961 = vst.msk [vmem:[%s7617_s28 + $0x32] sm:$0x3] %vm4935_vm4, %v4924_v14 }
 0x34c   : > { %v4436_v18 = vpop.f32.mrf.mxu1  ;;  %v4479_v61 = vpop.f32.mrf.mxu0 }
 0x34d   : > { %v4925_v53 = vpack.c.bf16 %v4479_v61, %v4479_v61 }
 0x34e   : > { %v5858_v49 = vpop.f32.mrf.mxu1  ;;  %v5863_v12 = vpop.f32.mrf.mxu0 }
 0x34f   : > { %4962 = vst.msk [vmem:[%s7617_s28 + $0x34] sm:$0x3] %vm4935_vm4, %v4925_v53 }
 0x350   : > { %v4482_v26 = vpop.f32.mrf.mxu0  ;;  %v4525_v8 = vpop.f32.mrf.mxu1 }
 0x351   : > { %v4926_v52 = vpack.c.bf16 %v4525_v8, %v4525_v8 }
 0x352   : > { %v5864_v20 = vpop.f32.mrf.mxu0  ;;  %v5869_v35 = vpop.f32.mrf.mxu1 }
 0x353   : > { %4963 = vst.msk [vmem:[%s7617_s28 + $0x36] sm:$0x3] %vm4935_vm4, %v4926_v52 }
 0x354   : > { %v4528_v3 = vpop.f32.mrf.mxu1  ;;  %v4571_v27 = vpop.f32.mrf.mxu0 }
 0x355   : > { %v4927_v19 = vpack.c.bf16 %v4571_v27, %v4571_v27 }
 0x356   : > { %v5870_v32 = vpop.f32.mrf.mxu1  ;;  %v5875_v33 = vpop.f32.mrf.mxu0 }
 0x357   : > { %4964 = vst.msk [vmem:[%s7617_s28 + $0x38] sm:$0x3] %vm4935_vm4, %v4927_v19 }
 0x358   : > { %v4574_v60 = vpop.f32.mrf.mxu0  ;;  %v4617_v51 = vpop.f32.mrf.mxu1 }
 0x359   : > { %v4928_v57 = vpack.c.bf16 %v4617_v51, %v4617_v51 }
 0x35a   : > { %v5876_v34 = vpop.f32.mrf.mxu0  ;;  %v5881_v63 = vpop.f32.mrf.mxu1 }
 0x35b   : > { %4965 = vst.msk [vmem:[%s7617_s28 + $0x3a] sm:$0x3] %vm4935_vm4, %v4928_v57 }
 0x35c   : > { %v4620_v17 = vpop.f32.mrf.mxu1  ;;  %v4663_v31 = vpop.f32.mrf.mxu0 }
 0x35d   : > { %v4929_v29 = vpack.c.bf16 %v4663_v31, %v4663_v31 }
 0x35e   : > { %v5882_v25 = vpop.f32.mrf.mxu1  ;;  %v5887_v47 = vpop.f32.mrf.mxu0 }
 0x35f   : > { %4966 = vst.msk [vmem:[%s7617_s28 + $0x3c] sm:$0x3] %vm4935_vm4, %v4929_v29 }
 0x360   : > { %v4666_v56 = vpop.f32.mrf.mxu0  ;;  %v4709_v42 = vpop.f32.mrf.mxu1 }
 0x361   : > { %v4930_v58 = vpack.c.bf16 %v4709_v42, %v4709_v42 }
 0x362   : > { %v5888_v37 = vpop.f32.mrf.mxu0  ;;  %v5893_v44 = vpop.f32.mrf.mxu1 }
 0x363   : > { %4967 = vst.msk [vmem:[%s7617_s28 + $0x3e] sm:$0x3] %vm4935_vm4, %v4930_v58 }
 0x364   : > { %v4712_v36 = vpop.f32.mrf.mxu1  ;;  %v4755_v41 = vpop.f32.mrf.mxu0 }
 0x365   : > { %v4931_v9 = vpack.c.bf16 %v4755_v41, %v4755_v41 }
 0x366   : > { %v5894_v21 = vpop.f32.mrf.mxu1  ;;  %v5899_v1 = vpop.f32.mrf.mxu0 }
 0x367   : > { %4968 = vst.msk [vmem:[%s7617_s28 + $0x40] sm:$0x3] %vm4935_vm4, %v4931_v9 }
 0x368   : > { %v4758_v62 = vpop.f32.mrf.mxu0  ;;  %v4801_v48 = vpop.f32.mrf.mxu1 }
 0x369   : > { %v4932_v2 = vpack.c.bf16 %v4801_v48, %v4801_v48 }
 0x36a   : > { %v5900_v0 = vpop.f32.mrf.mxu0  ;;  %v5905_v59 = vpop.f32.mrf.mxu1 }
 0x36b   : > { %4969 = vst.msk [vmem:[%s7617_s28 + $0x42] sm:$0x3] %vm4935_vm4, %v4932_v2 }
 0x36c   : > { %v4804_v16 = vpop.f32.mrf.mxu1  ;;  %v4847_v40 = vpop.f32.mrf.mxu0 }
 0x36d   : > { %v4933_v6 = vpack.c.bf16 %v4847_v40, %v4847_v40 }
 0x36e   : > { %v5906_v38 = vpop.f32.mrf.mxu1  ;;  %v5911_v10 = vpop.f32.mrf.mxu0 }
 0x36f   : > { %4970 = vst.msk [vmem:[%s7617_s28 + $0x44] sm:$0x3] %vm4935_vm4, %v4933_v6 }
 0x370   : > { %v4850_v23 = vpop.f32.mrf.mxu0  ;;  %v4893_v43 = vpop.f32.mrf.mxu1 }
 0x371   : > { %v4934_v39 = vpack.c.bf16 %v4893_v43, %v4893_v43 }
 0x372   : > { %v5912_v4 = vpop.f32.mrf.mxu0  ;;  %v5917_v22 = vpop.f32.mrf.mxu1 }
 0x373   : > { %4971 = vst.msk [vmem:[%s7617_s28 + $0x46] sm:$0x3] %vm4935_vm4, %v4934_v39 }
 0x374   : > { %v4896_v45 = vpop.f32.mrf.mxu1 }
 0x376   : > { %v5918_v30 = vpop.f32.mrf.mxu1 }
 0x377 PF: > { %s14_s12 = sadd.s32 1, %s6259_s12  }
 0x378   : > { %p11_p4 = scmp.ge.s32.totalorder %s14_s12, 4  }
 0x37a   :  { %13 = sbr.rel (!%p11_p4) target bundleno = 1 (0x1), region = 73 }

// kernel: gmsa_forward.7
= control target key start
LH: loop header
LB: loop body
LE: loop exit
PB: predicated region body
PF: predicated region fallthrough
CT: control target
= control target key end

     0   :  { %9 = vsyncpa [#allocation3], 0  ;;  %s5524_s0 = inlined_call_operand.vmem [shape: bf16[18,64,4], index: 0, kind: input, shape index: {}]   ;;  %s5525_s1 = inlined_call_operand.vmem [shape: bf16[18,4,64], index: 1, kind: input, shape index: {}]   ;;  %s5526_s2 = inlined_call_operand.vmem [shape: bf16[18,4,64], index: 2, kind: output, shape index: {0}]   ;;  %s5527_s3 = inlined_call_operand.hbm [shape: bf16[18,64,64], index: 3, kind: output, shape index: {1}]  }
   0x1   :  { %11 = vsyncpa [#allocation3 + $0x1], 0  ;;  %s4059_s12 = smov 0   ;;  %s4061_s13 = smov 0  }
   0x2   :  { %s4063_s14 = smov 0   ;;  %s4065_s15 = smov 0  }
   0x3 LB: > { %s4080_s16 = sadd.s32 4294967295, %s4032_s15   ;;  %s2958_s17 = sadd.s32 4294967294, %s4032_s15   ;;  %s4032_s15 = sphi %s4065_s15, %s5677_s15   ;;  %s4028_s14 = sphi %s4063_s14, %s5676_s14   ;;  %s4024_s13 = sphi %s4061_s13, %s5675_s13   ;;  %s4020_s12 = sphi %s4059_s12, %s5674_s12  }
   0x4   : > { %s4084_s18 = sadd.s32 1, %s4032_s15   ;;  %s102_s19 = sadd.s32 1, %s4028_s14 }
   0x5   : > { %s99_s20 = ssub.s32 %s4032_s15, %s4084_s18  ;;  %p112_p0 = scmp.ne.s32.totalorder %s4028_s14, %s4024_s13 }
   0x6   : > { %p100_p1 = scmp.eq.s32.totalorder %s99_s20, 0  ;;  %p113_p2 = scmp.eq.s32.totalorder %s4080_s16, 1 }
   0x7   : > { %p118_p3 = scmp.ne.s32.totalorder %s4024_s13, %s4020_s12  ;;  %p119_p4 = scmp.eq.s32.totalorder %s2958_s17, 1 }
   0x8   : > { %s4095_s21 = scalar_select %p100_p1, %s4028_s14, %s102_s19  }
   0x9   : > { %p4097_p5 = por %p113_p2, %p112_p0  ;;  %p4101_p6 = por %p119_p4, %p118_p3 }
   0xa   : > { %p2961_p7 = scmp.ge.s32.totalorder %s4032_s15, 1  ;;  %p156_p8 = scmp.lt.s32.totalorder %s4032_s15, 3 }
   0xc   : > { %p157_p9 = pnand %p2961_p7, %p156_p8 }
   0xe   : > { %160 = sbr.rel (%p157_p9) target bundleno = 1014 (0x3f6), region = 28 }
  0x13   : > { %s191_s24 = smul.u32 9, %s4080_s16  ;;  %vm313_vm0 = vcmask 31744   ;;  %vm1167_vm1 = vcmask 523264   ;;  %vm4035_vm2 = vmmov 0   ;;  %s188_s29 = sand.u32 1, %s4024_s13   ;;  %vm2248_vm3 = vcmask 519168  }
  0x14   : > { %s3604_s30 = smul.u32 288, %s188_s29  ;;  %vm2825_vm4 = vcmask 517120   ;;  %s5476_s26 = scalar_lea.sflag [#allocation3], %s188_s29 }
  0x15   : > { %p192_p10 = scmp.lt.s32.totalorder %s191_s24, 17  ;;  %s3198_s17 = smul.u32 4608, %s4080_s16 }
  0x16   : > { %s4983_s4 = scalar_lea.vmem [#allocation2], %s3604_s30  ;;  %s4036_s27 = smov [#allocation2]  }
  0x17   : > { %s5679_s24 = smov (!%p192_p10, %s191_s24), 17  ;;  %s2859_s19 = sshll.u32 %s4983_s4, 4  ;;  %s5472_s19 = int_to_ptr.vmem [resolvable:$true] %s2859_s19 }
  0x18   : > { %s3123_s25 = sshll.u32 %s5679_s24, 5  ;;  %s2964_s5 = sshll.u32 %s5679_s24, 1 }
  0x19   : > { %s4114_s28 = scalar_lea.vmem %s5524_s0, %s3123_s25  ;;  %s5117_s8 = scalar_lea.vmem %s5525_s1, %s2964_s5 }
  0x1a   : > { %v3648_v0 = vld [vmem:[%s4114_s28 + $0x18] sm:$0xff]   ;;  %v3650_v3 = vld [vmem:[%s4114_s28 + $0x10] sm:$0xff]   ;;  %v3654_v6 = vld [vmem:[%s4114_s28] sm:$0xff]   ;;  %s5453_s11 = scalar_lea.vmem %s5526_s2, %s2964_s5  ;;  %s5470_s25 = scalar_lea.hbm %s5527_s3, %s3198_s17 }
  0x1b   : > { %v3649_v1 = vld [vmem:[%s4114_s28 + $0x38] sm:$0xff]   ;;  %3568 = vmatprep.subr.msk.bf16.mxu0 %vm313_vm0, %v3648_v0  ;;  %v324_v2 = vsel %vm313_vm0, %v3648_v0, 0  ;;  %v3651_v5 = vld [vmem:[%s4114_s28 + $0x30] sm:$0xff]   ;;  %v3655_v7 = vld [vmem:[%s4114_s28 + $0x20] sm:$0xff]   ;;  %v321_v8 = vsel %vm313_vm0, %v3650_v3, 0  ;;  %3324 = vmatprep.mubr.msk.bf16.mxu0 %vm313_vm0, %v3654_v6  ;;  %v315_v14 = vsel %vm313_vm0, %v3654_v6, 0 }
  0x1c   : > { %3572 = vmatprep.subr.msk.bf16.mxu1 %vm313_vm0, %v3649_v1  ;;  %3317 = vmatpush3.bf16.xpose.msra.mxu0 %v324_v2  ;;  %v421_v4 = vsel %vm313_vm0, %v3649_v1, 0  ;;  %v3652_v9 = vld [vmem:[%s4114_s28 + $0x8] sm:$0xff]   ;;  %v418_v10 = vsel %vm313_vm0, %v3651_v5, 0  ;;  %v4142_v15 = vld [vmem:[%s4114_s28 + $0x58] sm:$0xff]   ;;  %v412_v16 = vsel %vm313_vm0, %v3655_v7, 0  ;;  %v3658_v19 = vld [vmem:[%s4114_s28 + $0x50] sm:$0xff]  }
  0x1d   : > { %3333 = vmatpush3.bf16.xpose.msra.mxu1 %v421_v4  ;;  %3569 = vmatprep.subr.msk.bf16.mxu0 %vm313_vm0, %v3650_v3  ;;  %v3653_v11 = vld [vmem:[%s4114_s28 + $0x28] sm:$0xff]   ;;  %v318_v12 = vsel %vm313_vm0, %v3652_v9, 0  ;;  %v4146_v17 = vld [vmem:[%s4114_s28 + $0x78] sm:$0xff]   ;;  %v518_v18 = vsel %vm313_vm0, %v4142_v15, 0  ;;  %v3659_v21 = vld [vmem:[%s4114_s28 + $0x70] sm:$0xff]   ;;  %v515_v22 = vsel %vm313_vm0, %v3658_v19, 0 }
  0x1e   : > { %3573 = vmatprep.subr.msk.bf16.mxu1 %vm313_vm0, %v3651_v5  ;;  %3340 = vmatprep.mubr.msk.bf16.mxu1 %vm313_vm0, %v3655_v7  ;;  %v415_v13 = vsel %vm313_vm0, %v3653_v11, 0  ;;  %v615_v20 = vsel %vm313_vm0, %v4146_v17, 0  ;;  %v3660_v23 = vld [vmem:[%s4114_s28 + $0x48] sm:$0xff]   ;;  %v612_v24 = vsel %vm313_vm0, %v3659_v21, 0  ;;  %v3662_v26 = vld [vmem:[%s4114_s28 + $0x40] sm:$0xff]   ;;  %v4182_v31 = vld [vmem:[%s4114_s28 + $0x98] sm:$0xff]  }
  0x1f   : > { %v3661_v25 = vld [vmem:[%s4114_s28 + $0x68] sm:$0xff]   ;;  %v3663_v27 = vld [vmem:[%s4114_s28 + $0x60] sm:$0xff]   ;;  %v512_v28 = vsel %vm313_vm0, %v3660_v23, 0  ;;  %v509_v30 = vsel %vm313_vm0, %v3662_v26, 0  ;;  %v4186_v33 = vld [vmem:[%s4114_s28 + $0xb8] sm:$0xff]   ;;  %v712_v34 = vsel %vm313_vm0, %v4182_v31, 0 }
  0x20   : > { %v609_v29 = vsel %vm313_vm0, %v3661_v25, 0  ;;  %v606_v32 = vsel %vm313_vm0, %v3663_v27, 0  ;;  %v3666_v35 = vld [vmem:[%s4114_s28 + $0x90] sm:$0xff]   ;;  %v809_v36 = vsel %vm313_vm0, %v4186_v33, 0  ;;  %v3668_v39 = vld [vmem:[%s4114_s28 + $0x88] sm:$0xff]   ;;  %v3670_v42 = vld [vmem:[%s4114_s28 + $0x80] sm:$0xff]  }
  0x21   : > { %v3667_v37 = vld [vmem:[%s4114_s28 + $0xb0] sm:$0xff]   ;;  %v709_v38 = vsel %vm313_vm0, %v3666_v35, 0  ;;  %v3669_v41 = vld [vmem:[%s4114_s28 + $0xa8] sm:$0xff]   ;;  %v3671_v43 = vld [vmem:[%s4114_s28 + $0xa0] sm:$0xff]   ;;  %v706_v44 = vsel %vm313_vm0, %v3668_v39, 0  ;;  %v703_v46 = vsel %vm313_vm0, %v3670_v42, 0 }
  0x22   : > { %v806_v40 = vsel %vm313_vm0, %v3667_v37, 0  ;;  %v803_v45 = vsel %vm313_vm0, %v3669_v41, 0  ;;  %v3672_v47 = vld [vmem:[%s4114_s28 + $0xd8] sm:$0xff]   ;;  %v800_v48 = vsel %vm313_vm0, %v3671_v43, 0  ;;  %v3674_v51 = vld [vmem:[%s4114_s28 + $0xd0] sm:$0xff]   ;;  %v3676_v55 = vld [vmem:[%s4114_s28 + $0xc8] sm:$0xff]  }
  0x23   : > { %v3673_v49 = vld [vmem:[%s4114_s28 + $0xf8] sm:$0xff]   ;;  %v906_v50 = vsel %vm313_vm0, %v3672_v47, 0  ;;  %v3675_v53 = vld [vmem:[%s4114_s28 + $0xf0] sm:$0xff]   ;;  %v903_v54 = vsel %vm313_vm0, %v3674_v51, 0  ;;  %v3677_v57 = vld [vmem:[%s4114_s28 + $0xe8] sm:$0xff]   ;;  %v900_v60 = vsel %vm313_vm0, %v3676_v55, 0 }
  0x24   : > { %3319 = vmatpush3.bf16.xpose.msra.mxu0 %v321_v8  ;;  %v1003_v52 = vsel %vm313_vm0, %v3673_v49, 0  ;;  %v1000_v56 = vsel %vm313_vm0, %v3675_v53, 0  ;;  %v3678_v58 = vld [vmem:[%s4114_s28 + $0xc0] sm:$0xff]   ;;  %v997_v61 = vsel %vm313_vm0, %v3677_v57, 0  ;;  %v3680_v63 = vld [vmem:[%s4114_s28 + $0x118] sm:$0xff]   ;;  %v3681_v2 = vld [vmem:[%s4114_s28 + $0x110] sm:$0xff]  }
  0x25   : > { %3335 = vmatpush3.bf16.xpose.msra.mxu1 %v418_v10  ;;  %3570 = vmatprep.subr.msk.bf16.mxu0 %vm313_vm0, %v3652_v9  ;;  %v3679_v59 = vld [vmem:[%s4114_s28 + $0xe0] sm:$0xff]   ;;  %v897_v62 = vsel %vm313_vm0, %v3678_v58, 0  ;;  %v3682_v4 = vld [vmem:[%s4114_s28 + $0x108] sm:$0xff]   ;;  %s3972_s16 = scalar_lea.vmem %s5472_s19, 4608 }
  0x26   : > { %3574 = vmatprep.subr.msk.bf16.mxu1 %vm313_vm0, %v3653_v11  ;;  %p3973_p11 = scmp.ne.s32.totalorder %s5472_s19, %s3972_s16 }
  0x28   : > { %p3974_p12 = pnand %p3973_p11, %p4097_p5 }
  0x2a   : > { %p3975_p13 = pneg %p3974_p12 }
  0x2c   : > { %3321 = vmatpush3.bf16.xpose.msra.mxu0 %v318_v12 }
  0x2d   : > { %3337 = vmatpush3.bf16.xpose.msra.mxu1 %v415_v13  ;;  %3571 = vmatprep.subr.msk.bf16.mxu0 %vm313_vm0, %v3654_v6  ;;  %v1094_v6 = vsel %vm313_vm0, %v3682_v4, 0 }
  0x2e   : > { %3575 = vmatprep.subr.msk.bf16.mxu1 %vm313_vm0, %v3655_v7 }
  0x34   : > { %3323 = vmatpush3.bf16.xpose.msra.mxu0 %v315_v14 }
  0x35   : > { %3339 = vmatpush3.bf16.xpose.msra.mxu1 %v412_v16  ;;  %3576 = vmatprep.subr.msk.bf16.mxu0 %vm313_vm0, %v4142_v15 }
  0x36   : > { %3580 = vmatprep.subr.msk.bf16.mxu1 %vm313_vm0, %v4146_v17 }
  0x3b   : > { %3325 = vmatmul.mubr.msk.bf16.vlgmr.msra.gmra.mxu0 %vm313_vm0, %v3652_v9 }
  0x3c   : > { %3341 = vmatmul.mubr.msk.bf16.vlgmr.msra.gmra.mxu1 %vm313_vm0, %v3653_v11  ;;  %3349 = vmatpush3.bf16.xpose.msra.mxu0 %v518_v18 }
  0x3d   : > { %3365 = vmatpush3.bf16.xpose.msra.mxu1 %v615_v20  ;;  %3577 = vmatprep.subr.msk.bf16.mxu0 %vm313_vm0, %v3658_v19 }
  0x3e   : > { %3328 = vmatprep.mubr.msk.bf16.mxu0 %vm313_vm0, %v3650_v3  ;;  %3581 = vmatprep.subr.msk.bf16.mxu1 %vm313_vm0, %v3659_v21  ;;  %v1097_v3 = vsel %vm313_vm0, %v3681_v2, 0 }
  0x3f   : > { %3344 = vmatprep.mubr.msk.bf16.mxu1 %vm313_vm0, %v3651_v5  ;;  %v3683_v5 = vld [vmem:[%s4114_s28 + $0x100] sm:$0xff]   ;;  %s3976_s28 = sshll.u32 %s4036_s27, 4  ;;  %s3977_s28 = int_to_ptr.vmem [resolvable:$false] %s3976_s28 }
  0x40   : > { %v1091_v7 = vsel %vm313_vm0, %v3683_v5, 0  ;;  %s3978_s30 = scalar_lea.vmem %s3977_s28, 9216  ;;  %p3979_p0 = scmp.lt.s32.totalorder %s5472_s19, %s3977_s28 }
  0x41   : > { %p3980_p1 = scmp.lt.s32.totalorder %s3978_s30, %s3972_s16 }
  0x43   : > { %3329 = vmatmul.mubr.msk.bf16.gmra.mxu0 %vm313_vm0, %v3648_v0  ;;  %v994_v0 = vsel %vm313_vm0, %v3679_v59, 0  ;;  %p3981_p2 = por %p3980_p1, %p3979_p0 }
  0x44   : > { %3351 = vmatpush3.bf16.xpose.msra.mxu0 %v515_v22  ;;  %3345 = vmatmul.mubr.msk.bf16.gmra.mxu1 %vm313_vm0, %v3649_v1  ;;  %v1100_v1 = vsel %vm313_vm0, %v3680_v63, 0 }
  0x45   : > { %3367 = vmatpush3.bf16.xpose.msra.mxu1 %v612_v24  ;;  %3578 = vmatprep.subr.msk.bf16.mxu0 %vm313_vm0, %v3660_v23  ;;  %p3982_p3 = pnand %p3981_p2, %p3975_p13 }
  0x46   : > { %3582 = vmatprep.subr.msk.bf16.mxu1 %vm313_vm0, %v3661_v25  ;;  %3356 = vmatprep.mubr.msk.bf16.mxu0 %vm313_vm0, %v3662_v26 }
  0x47   : > { %3372 = vmatprep.mubr.msk.bf16.mxu1 %vm313_vm0, %v3663_v27 }
  0x4c   : > { %3353 = vmatpush3.bf16.xpose.msra.mxu0 %v512_v28 }
  0x4d   : > { %3369 = vmatpush3.bf16.xpose.msra.mxu1 %v609_v29  ;;  %3579 = vmatprep.subr.msk.bf16.mxu0 %vm313_vm0, %v3662_v26 }
  0x4e   : > { %3583 = vmatprep.subr.msk.bf16.mxu1 %vm313_vm0, %v3663_v27 }
  0x54   : > { %3355 = vmatpush3.bf16.xpose.msra.mxu0 %v509_v30 }
  0x55   : > { %3371 = vmatpush3.bf16.xpose.msra.mxu1 %v606_v32  ;;  %3584 = vmatprep.subr.msk.bf16.mxu0 %vm313_vm0, %v4182_v31 }
  0x56   : > { %3588 = vmatprep.subr.msk.bf16.mxu1 %vm313_vm0, %v4186_v33 }
  0x5b   : > { %3357 = vmatmul.mubr.msk.bf16.vlgmr.msra.gmra.mxu0 %vm313_vm0, %v3660_v23 }
  0x5c   : > { %3381 = vmatpush3.bf16.xpose.msra.mxu0 %v712_v34  ;;  %3373 = vmatmul.mubr.msk.bf16.vlgmr.msra.gmra.mxu1 %vm313_vm0, %v3661_v25 }
  0x5d   : > { %3397 = vmatpush3.bf16.xpose.msra.mxu1 %v809_v36  ;;  %3585 = vmatprep.subr.msk.bf16.mxu0 %vm313_vm0, %v3666_v35 }
  0x5e   : > { %3589 = vmatprep.subr.msk.bf16.mxu1 %vm313_vm0, %v3667_v37  ;;  %3360 = vmatprep.mubr.msk.bf16.mxu0 %vm313_vm0, %v3658_v19 }
  0x5f   : > { %3376 = vmatprep.mubr.msk.bf16.mxu1 %vm313_vm0, %v3659_v21 }
  0x63   : > { %3361 = vmatmul.mubr.msk.bf16.gmra.mxu0 %vm313_vm0, %v4142_v15 }
  0x64   : > { %3383 = vmatpush3.bf16.xpose.msra.mxu0 %v709_v38  ;;  %3377 = vmatmul.mubr.msk.bf16.gmra.mxu1 %vm313_vm0, %v4146_v17 }
  0x65   : > { %3399 = vmatpush3.bf16.xpose.msra.mxu1 %v806_v40  ;;  %3586 = vmatprep.subr.msk.bf16.mxu0 %vm313_vm0, %v3668_v39 }
  0x66   : > { %3590 = vmatprep.subr.msk.bf16.mxu1 %vm313_vm0, %v3669_v41  ;;  %3388 = vmatprep.mubr.msk.bf16.mxu0 %vm313_vm0, %v3670_v42 }
  0x67   : > { %3404 = vmatprep.mubr.msk.bf16.mxu1 %vm313_vm0, %v3671_v43 }
  0x6c   : > { %3385 = vmatpush3.bf16.xpose.msra.mxu0 %v706_v44 }
  0x6d   : > { %3401 = vmatpush3.bf16.xpose.msra.mxu1 %v803_v45  ;;  %3587 = vmatprep.subr.msk.bf16.mxu0 %vm313_vm0, %v3670_v42 }
  0x6e   : > { %3591 = vmatprep.subr.msk.bf16.mxu1 %vm313_vm0, %v3671_v43 }
  0x74   : > { %3387 = vmatpush3.bf16.xpose.msra.mxu0 %v703_v46 }
  0x75   : > { %3403 = vmatpush3.bf16.xpose.msra.mxu1 %v800_v48  ;;  %3592 = vmatprep.subr.msk.bf16.mxu0 %vm313_vm0, %v3672_v47 }
  0x76   : > { %3596 = vmatprep.subr.msk.bf16.mxu1 %vm313_vm0, %v3673_v49 }
  0x7b   : > { %3389 = vmatmul.mubr.msk.bf16.vlgmr.msra.gmra.mxu0 %vm313_vm0, %v3668_v39 }
  0x7c   : > { %3413 = vmatpush3.bf16.xpose.msra.mxu0 %v906_v50  ;;  %3405 = vmatmul.mubr.msk.bf16.vlgmr.msra.gmra.mxu1 %vm313_vm0, %v3669_v41 }
  0x7d   : > { %3429 = vmatpush3.bf16.xpose.msra.mxu1 %v1003_v52  ;;  %3593 = vmatprep.subr.msk.bf16.mxu0 %vm313_vm0, %v3674_v51 }
  0x7e   : > { %3597 = vmatprep.subr.msk.bf16.mxu1 %vm313_vm0, %v3675_v53  ;;  %3392 = vmatprep.mubr.msk.bf16.mxu0 %vm313_vm0, %v3666_v35 }
  0x7f   : > { %3408 = vmatprep.mubr.msk.bf16.mxu1 %vm313_vm0, %v3667_v37 }
  0x83   : > { %3393 = vmatmul.mubr.msk.bf16.gmra.mxu0 %vm313_vm0, %v4182_v31 }
  0x84   : > { %3415 = vmatpush3.bf16.xpose.msra.mxu0 %v903_v54  ;;  %3409 = vmatmul.mubr.msk.bf16.gmra.mxu1 %vm313_vm0, %v4186_v33 }
  0x85   : > { %3431 = vmatpush3.bf16.xpose.msra.mxu1 %v1000_v56  ;;  %3594 = vmatprep.subr.msk.bf16.mxu0 %vm313_vm0, %v3676_v55 }
  0x86   : > { %3598 = vmatprep.subr.msk.bf16.mxu1 %vm313_vm0, %v3677_v57  ;;  %3420 = vmatprep.mubr.msk.bf16.mxu0 %vm313_vm0, %v3678_v58 }
  0x87   : > { %3436 = vmatprep.mubr.msk.bf16.mxu1 %vm313_vm0, %v3679_v59 }
  0x8c   : > { %3417 = vmatpush3.bf16.xpose.msra.mxu0 %v900_v60 }
  0x8d   : > { %3433 = vmatpush3.bf16.xpose.msra.mxu1 %v997_v61  ;;  %3595 = vmatprep.subr.msk.bf16.mxu0 %vm313_vm0, %v3678_v58 }
  0x8e   : > { %3599 = vmatprep.subr.msk.bf16.mxu1 %vm313_vm0, %v3679_v59 }
  0x94   : > { %3419 = vmatpush3.bf16.xpose.msra.mxu0 %v897_v62 }
  0x95   : > { %3435 = vmatpush3.bf16.xpose.msra.mxu1 %v994_v0  ;;  %3600 = vmatprep.subr.msk.bf16.mxu0 %vm313_vm0, %v3680_v63 }
  0x9b   : > { %3421 = vmatmul.mubr.msk.bf16.vlgmr.msra.gmra.mxu0 %vm313_vm0, %v3676_v55 }
  0x9c   : > { %3445 = vmatpush3.bf16.xpose.msra.mxu0 %v1100_v1  ;;  %3437 = vmatmul.mubr.msk.bf16.vlgmr.msra.gmra.mxu1 %vm313_vm0, %v3677_v57 }
  0x9d   : > { %3424 = vmatprep.mubr.msk.bf16.mxu0 %vm313_vm0, %v3674_v51  ;;  %3601 = vmatprep.subr.msk.bf16.mxu0 %vm313_vm0, %v3681_v2 }
  0x9e   : > { %3440 = vmatprep.mubr.msk.bf16.mxu1 %vm313_vm0, %v3675_v53 }
  0xa3   : > { %3425 = vmatmul.mubr.msk.bf16.gmra.mxu0 %vm313_vm0, %v3672_v47 }
  0xa4   : > { %3447 = vmatpush3.bf16.xpose.msra.mxu0 %v1097_v3  ;;  %3441 = vmatmul.mubr.msk.bf16.gmra.mxu1 %vm313_vm0, %v3673_v49 }
  0xa5   : > { %3602 = vmatprep.subr.msk.bf16.mxu0 %vm313_vm0, %v3682_v4  ;;  %3452 = vmatprep.mubr.msk.bf16.mxu0 %vm313_vm0, %v3683_v5 }
  0xac   : > { %3449 = vmatpush3.bf16.xpose.msra.mxu0 %v1094_v6 }
  0xad   : > { %3603 = vmatprep.subr.msk.bf16.mxu0 %vm313_vm0, %v3683_v5 }
  0xb4   : > { %3451 = vmatpush3.bf16.xpose.msra.mxu0 %v1091_v7 }
  0xbb   : > { %3453 = vmatmul.mubr.msk.bf16.vlgmr.msra.gmra.mxu0 %vm313_vm0, %v3682_v4 }
  0xbc   : > { %3456 = vmatprep.mubr.msk.bf16.mxu0 %vm313_vm0, %v3681_v2 }
  0xc3   : > { %3457 = vmatmul.mubr.msk.bf16.gmra.mxu0 %vm313_vm0, %v3680_v63 }
  0xfb   : > { %v4280_v8 = vpop.f32.mrf.mxu0 }
  0xfc   : > { %v4282_v9 = vpop.f32.mrf.mxu1  ;;  %v1174_v10 = vsel %vm1167_vm1, %v4280_v8, -inf }
  0xfd   : > { %1175 = vmax.xlane.f32.xlu0 %v1174_v10  ;;  %v4286_v11 = vpop.f32.mrf.mxu0  ;;  %v1198_v13 = vsel %vm1167_vm1, %v4282_v9, -inf }
  0xfe   : > { %v4288_v12 = vpop.f32.mrf.mxu1  ;;  %v1168_v17 = vsel %vm1167_vm1, %v4286_v11, -inf }
  0xff   : > { %v4292_v14 = vpop.f32.mrf.mxu0  ;;  %v1192_v20 = vsel %vm1167_vm1, %v4288_v12, -inf }
 0x100   : > { %v1177_v15 = vsel %vm1167_vm1, %v4292_v14, -inf  ;;  %v4296_v16 = vpop.f32.mrf.mxu1 }
 0x101   : > { %1199 = vmax.xlane.f32.xlu0 %v1198_v13  ;;  %1178 = vmax.xlane.f32.xlu1 %v1177_v15  ;;  %v1201_v18 = vsel %vm1167_vm1, %v4296_v16, -inf  ;;  %v4302_v19 = vpop.f32.mrf.mxu0 }
 0x102   : > { %v1171_v21 = vsel %vm1167_vm1, %v4302_v19, -inf  ;;  %v4308_v22 = vpop.f32.mrf.mxu1 }
 0x103   : > { %v4310_v23 = vpop.f32.mrf.mxu0  ;;  %v1195_v26 = vsel %vm1167_vm1, %v4308_v22, -inf }
 0x104   : > { %v1186_v24 = vsel %vm1167_vm1, %v4310_v23, -inf  ;;  %v4314_v25 = vpop.f32.mrf.mxu1 }
 0x105   : > { %1169 = vmax.xlane.f32.xlu0 %v1168_v17  ;;  %1202 = vmax.xlane.f32.xlu1 %v1201_v18  ;;  %v4318_v27 = vpop.f32.mrf.mxu0  ;;  %v1210_v28 = vsel %vm1167_vm1, %v4314_v25, -inf }
 0x106   : > { %v4322_v29 = vpop.f32.mrf.mxu1  ;;  %v1180_v30 = vsel %vm1167_vm1, %v4318_v27, -inf }
 0x107   : > { %v4326_v31 = vpop.f32.mrf.mxu0  ;;  %v1204_v33 = vsel %vm1167_vm1, %v4322_v29, -inf }
 0x108   : > { %v4328_v32 = vpop.f32.mrf.mxu1  ;;  %v1189_v36 = vsel %vm1167_vm1, %v4326_v31, -inf }
 0x109   : > { %1193 = vmax.xlane.f32.xlu0 %v1192_v20  ;;  %1172 = vmax.xlane.f32.xlu1 %v1171_v21  ;;  %v1213_v34 = vsel %vm1167_vm1, %v4328_v32, -inf  ;;  %v4334_v35 = vpop.f32.mrf.mxu0 }
 0x10a   : > { %v1183_v37 = vsel %vm1167_vm1, %v4334_v35, -inf  ;;  %v4340_v38 = vpop.f32.mrf.mxu1 }
 0x10b   : > { %v1207_v40 = vsel %vm1167_vm1, %v4340_v38, -inf }
 0x10d   : > { %1196 = vmax.xlane.f32.xlu1 %v1195_v26  ;;  %1187 = vmax.xlane.f32.xlu0 %v1186_v24 }
 0x111   : > { %1211 = vmax.xlane.f32.xlu0 %v1210_v28  ;;  %1181 = vmax.xlane.f32.xlu1 %v1180_v30 }
 0x115   : > { %1205 = vmax.xlane.f32.xlu0 %v1204_v33  ;;  %1214 = vmax.xlane.f32.xlu1 %v1213_v34 }
 0x119   : > { %1190 = vmax.xlane.f32.xlu0 %v1189_v36  ;;  %1184 = vmax.xlane.f32.xlu1 %v1183_v37 }
 0x11b   : > { %v4342_v39 = vpop.f32.mrf.mxu0 }
 0x11c   : > { %v1222_v41 = vsel %vm1167_vm1, %v4342_v39, -inf  ;;  %v4348_v42 = vpop.f32.mrf.mxu1 }
 0x11d   : > { %1208 = vmax.xlane.f32.xlu1 %v1207_v40  ;;  %1223 = vmax.xlane.f32.xlu0 %v1222_v41  ;;  %v4350_v43 = vpop.f32.mrf.mxu0  ;;  %v1246_v45 = vsel %vm1167_vm1, %v4348_v42, -inf }
 0x11e   : > { %v4352_v44 = vpop.f32.mrf.mxu1  ;;  %v1216_v50 = vsel %vm1167_vm1, %v4350_v43, -inf }
 0x11f   : > { %v4356_v46 = vpop.f32.mrf.mxu0  ;;  %v1240_v54 = vsel %vm1167_vm1, %v4352_v44, -inf }
 0x120   : > { %v1225_v47 = vsel %vm1167_vm1, %v4356_v46, -inf  ;;  %v4360_v48 = vpop.f32.mrf.mxu1 }
 0x121   : > { %1247 = vmax.xlane.f32.xlu0 %v1246_v45  ;;  %1226 = vmax.xlane.f32.xlu1 %v1225_v47  ;;  %v4362_v49 = vpop.f32.mrf.mxu0  ;;  %v1249_v51 = vsel %vm1167_vm1, %v4360_v48, -inf }
 0x122   : > { %v4370_v53 = vpop.f32.mrf.mxu1  ;;  %v1219_v57 = vsel %vm1167_vm1, %v4362_v49, -inf }
 0x123   : > { %v4368_v52 = vpop.f32.mrf.mxu0  ;;  %v1243_v61 = vsel %vm1167_vm1, %v4370_v53, -inf }
 0x124   : > { %v4376_v56 = vpop.f32.mrf.mxu1  ;;  %v1234_v58 = vsel %vm1167_vm1, %v4368_v52, -inf }
 0x125   : > { %1217 = vmax.xlane.f32.xlu0 %v1216_v50  ;;  %1250 = vmax.xlane.f32.xlu1 %v1249_v51  ;;  %v4374_v55 = vpop.f32.mrf.mxu0  ;;  %v1258_v62 = vsel %vm1167_vm1, %v4376_v56, -inf }
 0x126   : > { %v4384_v60 = vpop.f32.mrf.mxu1  ;;  %v1228_v1 = vsel %vm1167_vm1, %v4374_v55, -inf }
 0x127   : > { %v4382_v59 = vpop.f32.mrf.mxu0  ;;  %v1252_v4 = vsel %vm1167_vm1, %v4384_v60, -inf }
 0x128   : > { %v1237_v63 = vsel %vm1167_vm1, %v4382_v59, -inf  ;;  %v4392_v0 = vpop.f32.mrf.mxu1 }
 0x129   : > { %1241 = vmax.xlane.f32.xlu0 %v1240_v54  ;;  %1220 = vmax.xlane.f32.xlu1 %v1219_v57  ;;  %v1261_v2 = vsel %vm1167_vm1, %v4392_v0, -inf  ;;  %v4398_v3 = vpop.f32.mrf.mxu0 }
 0x12a   : > { %v1231_v5 = vsel %vm1167_vm1, %v4398_v3, -inf  ;;  %v4404_v6 = vpop.f32.mrf.mxu1 }
 0x12b   : > { %v1255_v10 = vsel %vm1167_vm1, %v4404_v6, -inf }
 0x12d   : > { %1244 = vmax.xlane.f32.xlu1 %v1243_v61  ;;  %1235 = vmax.xlane.f32.xlu0 %v1234_v58 }
 0x131   : > { %1259 = vmax.xlane.f32.xlu0 %v1258_v62  ;;  %1238 = vmax.xlane.f32.xlu1 %v1237_v63 }
 0x135   : > { %1229 = vmax.xlane.f32.xlu0 %v1228_v1  ;;  %1262 = vmax.xlane.f32.xlu1 %v1261_v2 }
 0x139   : > { %1253 = vmax.xlane.f32.xlu0 %v1252_v4  ;;  %1232 = vmax.xlane.f32.xlu1 %v1231_v5 }
 0x13b   : > { %v4406_v7 = vpop.f32.mrf.mxu0 }
 0x13c   : > { %v1270_v13 = vsel %vm1167_vm1, %v4406_v7, -inf  ;;  %v4412_v15 = vpop.f32.mrf.mxu1 }
 0x13d   : > { %5579 = vst [vmem:[#allocation5_spill] sm:$0xff] %v4412_v15  ;;  %1256 = vmax.xlane.f32.xlu1 %v1255_v10  ;;  %1271 = vmax.xlane.f32.xlu0 %v1270_v13  ;;  %v4414_v17 = vpop.f32.mrf.mxu0  ;;  %v1294_v20 = vsel %vm1167_vm1, %v4412_v15, -inf }
 0x13e   : > { %v4416_v18 = vpop.f32.mrf.mxu1  ;;  %v1264_v30 = vsel %vm1167_vm1, %v4414_v17, -inf }
 0x13f   : > { %5580 = vst [vmem:[#allocation6_spill] sm:$0xff] %v4416_v18  ;;  %v4420_v21 = vpop.f32.mrf.mxu0  ;;  %v1288_v37 = vsel %vm1167_vm1, %v4416_v18, -inf }
 0x140   : > { %v1273_v24 = vsel %vm1167_vm1, %v4420_v21, -inf  ;;  %v4424_v26 = vpop.f32.mrf.mxu1 }
 0x141   : > { %5581 = vst [vmem:[#allocation7_spill] sm:$0xff] %v4424_v26  ;;  %1295 = vmax.xlane.f32.xlu0 %v1294_v20  ;;  %1274 = vmax.xlane.f32.xlu1 %v1273_v24  ;;  %v4426_v28 = vpop.f32.mrf.mxu0  ;;  %v1297_v33 = vsel %vm1167_vm1, %v4424_v26, -inf }
 0x142   : > { %v4434_v36 = vpop.f32.mrf.mxu1  ;;  %v1267_v40 = vsel %vm1167_vm1, %v4426_v28, -inf }
 0x143   : > { %v4432_v34 = vpop.f32.mrf.mxu0  ;;  %5582 = vst [vmem:[#allocation8_spill] sm:$0xff] %v4434_v36  ;;  %v1291_v47 = vsel %vm1167_vm1, %v4434_v36, -inf }
 0x144   : > { %v4442_v45 = vpop.f32.mrf.mxu1  ;;  %v1282_v50 = vsel %vm1167_vm1, %v4432_v34, -inf }
 0x145   : > { %1265 = vmax.xlane.f32.xlu0 %v1264_v30  ;;  %1298 = vmax.xlane.f32.xlu1 %v1297_v33  ;;  %v4440_v41 = vpop.f32.mrf.mxu0  ;;  %v1306_v57 = vsel %vm1167_vm1, %v4442_v45, -inf }
 0x146   : > { %v4450_v54 = vpop.f32.mrf.mxu1  ;;  %v1276_v62 = vsel %vm1167_vm1, %v4440_v41, -inf }
 0x147   : > { %v4448_v51 = vpop.f32.mrf.mxu0  ;;  %5583 = vst [vmem:[#allocation9_spill] sm:$0xff] %v4450_v54  ;;  %v1300_v2 = vsel %vm1167_vm1, %v4450_v54, -inf }
 0x148   : > { %v1285_v58 = vsel %vm1167_vm1, %v4448_v51, -inf  ;;  %v4456_v61 = vpop.f32.mrf.mxu1 }
 0x149   : > { %1289 = vmax.xlane.f32.xlu0 %v1288_v37  ;;  %1268 = vmax.xlane.f32.xlu1 %v1267_v40  ;;  %5584 = vst [vmem:[#allocation10_spill] sm:$0xff] %v4456_v61  ;;  %v1309_v63 = vsel %vm1167_vm1, %v4456_v61, -inf  ;;  %v4462_v1 = vpop.f32.mrf.mxu0 }
 0x14a   : > { %v1279_v4 = vsel %vm1167_vm1, %v4462_v1, -inf  ;;  %v4468_v5 = vpop.f32.mrf.mxu1 }
 0x14b   : > { %5585 = vst [vmem:[#allocation11_spill] sm:$0xff] %v4468_v5  ;;  %v1303_v10 = vsel %vm1167_vm1, %v4468_v5, -inf }
 0x14d   : > { %1292 = vmax.xlane.f32.xlu1 %v1291_v47  ;;  %1283 = vmax.xlane.f32.xlu0 %v1282_v50 }
 0x151   : > { %1307 = vmax.xlane.f32.xlu0 %v1306_v57  ;;  %1286 = vmax.xlane.f32.xlu1 %v1285_v58 }
 0x155   : > { %1277 = vmax.xlane.f32.xlu0 %v1276_v62  ;;  %1310 = vmax.xlane.f32.xlu1 %v1309_v63 }
 0x159   : > { %1301 = vmax.xlane.f32.xlu0 %v1300_v2  ;;  %1280 = vmax.xlane.f32.xlu1 %v1279_v4 }
 0x15b   : > { %v4472_v13 = vpop.f32.mrf.mxu0 }
 0x15c   : > { %5586 = vst [vmem:[#allocation12_spill] sm:$0xff] %v4472_v13  ;;  %v1318_v20 = vsel %vm1167_vm1, %v4472_v13, -inf  ;;  %v4476_v24 = vpop.f32.mrf.mxu1 }
 0x15d   : > { %1304 = vmax.xlane.f32.xlu1 %v1303_v10  ;;  %1319 = vmax.xlane.f32.xlu0 %v1318_v20  ;;  %v4478_v30 = vpop.f32.mrf.mxu0 }
 0x15e   : > { %5587 = vst [vmem:[#allocation13_spill] sm:$0xff] %v4478_v30  ;;  %v4480_v33 = vpop.f32.mrf.mxu1  ;;  %v1312_v37 = vsel %vm1167_vm1, %v4478_v30, -inf }
 0x15f   : > { %v4484_v40 = vpop.f32.mrf.mxu0 }
 0x160   : > { %5588 = vst [vmem:[#allocation14_spill] sm:$0xff] %v4484_v40  ;;  %v1321_v47 = vsel %vm1167_vm1, %v4484_v40, -inf  ;;  %v4488_v50 = vpop.f32.mrf.mxu1 }
 0x161   : > { %1313 = vmax.xlane.f32.xlu0 %v1312_v37  ;;  %1322 = vmax.xlane.f32.xlu1 %v1321_v47  ;;  %v4490_v57 = vpop.f32.mrf.mxu0 }
 0x162   : > { %5589 = vst [vmem:[#allocation15_spill] sm:$0xff] %v4490_v57  ;;  %v4492_v58 = vpop.f32.mrf.mxu1  ;;  %v1315_v62 = vsel %vm1167_vm1, %v4490_v57, -inf }
 0x163   : > { %v4496_v63 = vpop.f32.mrf.mxu0 }
 0x164   : > { %v1330_v2 = vsel %vm1167_vm1, %v4496_v63, -inf  ;;  %v4500_v4 = vpop.f32.mrf.mxu1 }
 0x165   : > { %5590 = vst [vmem:[#allocation16_spill] sm:$0xff] %v4500_v4  ;;  %1316 = vmax.xlane.f32.xlu1 %v1315_v62  ;;  %1331 = vmax.xlane.f32.xlu0 %v1330_v2  ;;  %v4502_v10 = vpop.f32.mrf.mxu0  ;;  %v1354_v37 = vsel %vm1167_vm1, %v4500_v4, -inf }
 0x166   : > { %5591 = vst [vmem:[#allocation17_spill] sm:$0xff] %v4502_v10  ;;  %v4504_v20 = vpop.f32.mrf.mxu1  ;;  %v1324_v62 = vsel %vm1167_vm1, %v4502_v10, -inf }
 0x167   : > { %5592 = vst [vmem:[#allocation18_spill] sm:$0xff] %v4504_v20  ;;  %v4508_v47 = vpop.f32.mrf.mxu0  ;;  %v1348_v4 = vsel %vm1167_vm1, %v4504_v20, -inf }
 0x168   : > { %5593 = vst [vmem:[#allocation19_spill] sm:$0xff] %v4508_v47  ;;  %v1333_v57 = vsel %vm1167_vm1, %v4508_v47, -inf  ;;  %v4512_v36 = vpop.f32.mrf.mxu1 }
 0x169   : > { %5594 = vst [vmem:[#allocation20_spill] sm:$0xff] %v4512_v36  ;;  %1355 = vmax.xlane.f32.xlu0 %v1354_v37  ;;  %1334 = vmax.xlane.f32.xlu1 %v1333_v57  ;;  %v1357_v2 = vsel %vm1167_vm1, %v4512_v36, -inf  ;;  %v4518_v40 = vpop.f32.mrf.mxu0 }
 0x16a   : > { %5595 = vst [vmem:[#allocation21_spill] sm:$0xff] %v4518_v40  ;;  %v1327_v30 = vsel %vm1167_vm1, %v4518_v40, -inf  ;;  %v4524_v26 = vpop.f32.mrf.mxu1 }
 0x16b   : > { %5596 = vst [vmem:[#allocation22_spill] sm:$0xff] %v4524_v26  ;;  %v1351_v57 = vsel %vm1167_vm1, %v4524_v26, -inf }
 0x16d   : > { %1325 = vmax.xlane.f32.xlu0 %v1324_v62  ;;  %1358 = vmax.xlane.f32.xlu1 %v1357_v2 }
 0x171   : > { %1349 = vmax.xlane.f32.xlu0 %v1348_v4  ;;  %1328 = vmax.xlane.f32.xlu1 %v1327_v30 }
 0x175   : > { %1352 = vmax.xlane.f32.xlu1 %v1351_v57 }
 0x17b   : > { %v4528_v37 = vpop.f32.mrf.mxu0 }
 0x17d   : > { %v4530_v36 = vpop.f32.mrf.mxu0 }
 0x17f   : > { %v4532_v62 = vpop.f32.mrf.mxu0 }
 0x181   : > { %v4534_v2 = vpop.f32.mrf.mxu0 }
 0x183   : > { %v4536_v20 = vpop.f32.mrf.mxu0 }
 0x184   : > { %5597 = vst [vmem:[#allocation23_spill] sm:$0xff] %v4536_v20  ;;  %v1378_v18 = vsel %vm1167_vm1, %v4536_v20, -inf }
 0x185   : > { %1379 = vmax.xlane.f32.xlu0 %v1378_v18  ;;  %v4540_v4 = vpop.f32.mrf.mxu0 }
 0x186   : > { %v1176_v30 = vpop.xlane.xlu0 %1175 }
 0x187   : > { %v1386_v26 = vsub.f32 %v4280_v8, %v1176_v30  ;;  %v4543_v57 = vpop.f32.mrf.mxu0 }
 0x188   : > { %5598 = vst [vmem:[#allocation24_spill] sm:$0xff] %v4543_v57  ;;  %v1381_v40 = vsel %vm1167_vm1, %v4543_v57, -inf }
 0x189   : > { %v1460_v13 = vmul.f32 1.442695, %v1386_v26  ;;  %1382 = vmax.xlane.f32.xlu1 %v1381_v40 }
 0x18a   : > { %v1200_v5 = vpop.xlane.xlu0 %1199  ;;  %v1179_v15 = vpop.xlane.xlu1 %1178 }
 0x18b   : > { %3684 = vpow2.f32 %v1460_v13  ;;  %v1387_v47 = vsub.f32 %v4292_v14, %v1179_v15 }
 0x18d   : > { %v1462_v10 = vmul.f32 1.442695, %v1387_v47 }
 0x18e   : > { %v1170_v20 = vpop.xlane.xlu0 %1169  ;;  %v4548_v18 = vpop.xlane.xlu1 %1202 }
 0x18f   : > { %v1384_v61 = vsub.f32 %v4286_v11, %v1170_v20  ;;  %3686 = vpow2.f32 %v1462_v10 }
 0x191   : > { %v1456_v8 = vmul.f32 1.442695, %v1384_v61 }
 0x192   : > { %v4551_v30 = vpop.xlane.xlu0 %1193  ;;  %v1173_v54 = vpop.xlane.xlu1 %1172 }
 0x193   : > { %3688 = vpow2.f32 %v1456_v8  ;;  %v1385_v26 = vsub.f32 %v4302_v19, %v1173_v54 }
 0x195   : > { %v1458_v40 = vmul.f32 1.442695, %v1385_v26 }
 0x196   : > { %v4554_v57 = vpop.xlane.xlu1 %1196  ;;  %v1188_v13 = vpop.xlane.xlu0 %1187 }
 0x197   : > { %v1390_v14 = vsub.f32 %v4310_v23, %v1188_v13  ;;  %3690 = vpow2.f32 %v1458_v40 }
 0x198   : > { %v4557_v15 = vpop.eup %3684 }
 0x199   : > { %5599 = vst [vmem:[#allocation25_spill] sm:$0xff] %v4557_v15  ;;  %v1468_v47 = vmul.f32 1.442695, %v1390_v14  ;;  %v1606_v11 = vsel %vm1167_vm1, %v4557_v15, 0.0 }
 0x19a   : > { %v1212_v61 = vpop.xlane.xlu0 %1211  ;;  %v1182_v10 = vpop.xlane.xlu1 %1181  ;;  %1607 = vadd.xlane.f32.xlu0 %v1606_v11 }
 0x19b   : > { %v1398_v20 = vsub.f32 %v4314_v25, %v1212_v61  ;;  %v1388_v19 = vsub.f32 %v4318_v27, %v1182_v10  ;;  %3692 = vpow2.f32 %v1468_v47 }
 0x19c   : > { %v4563_v54 = vpop.eup %3686 }
 0x19d   : > { %5600 = vst [vmem:[#allocation26_spill] sm:$0xff] %v4563_v54  ;;  %v1484_v8 = vmul.f32 1.442695, %v1398_v20  ;;  %v1464_v26 = vmul.f32 1.442695, %v1388_v19  ;;  %v1609_v40 = vsel %vm1167_vm1, %v4563_v54, 0.0  ;;  %v1394_v54 = vsub.f32 %v4282_v9, %v1200_v5 }
 0x19e   : > { %v1206_v23 = vpop.xlane.xlu0 %1205  ;;  %v1215_v13 = vpop.xlane.xlu1 %1214  ;;  %1610 = vadd.xlane.f32.xlu1 %v1609_v40  ;;  %v1395_v5 = vsub.f32 %v4296_v16, %v4548_v18 }
 0x19f   : > { %3694 = vpow2.f32 %v1484_v8  ;;  %v1399_v11 = vsub.f32 %v4328_v32, %v1215_v13  ;;  %v1396_v27 = vsub.f32 %v4322_v29, %v1206_v23  ;;  %v1476_v23 = vmul.f32 1.442695, %v1394_v54 }
 0x1a0   : > { %v4567_v14 = vpop.eup %3688  ;;  %3696 = vpow2.f32 %v1464_v26 }
 0x1a1   : > { %v1600_v25 = vsel %vm1167_vm1, %v4567_v14, 0.0  ;;  %v1486_v19 = vmul.f32 1.442695, %v1399_v11  ;;  %v1480_v32 = vmul.f32 1.442695, %v1396_v27 }
 0x1a2   : > { %v1191_v47 = vpop.xlane.xlu0 %1190  ;;  %v1185_v61 = vpop.xlane.xlu1 %1184  ;;  %1601 = vadd.xlane.f32.xlu0 %v1600_v25 }
 0x1a3   : > { %v1391_v10 = vsub.f32 %v4326_v31, %v1191_v47  ;;  %v1389_v40 = vsub.f32 %v4334_v35, %v1185_v61 }
 0x1a4   : > { %v4574_v20 = vpop.eup %3690 }
 0x1a5   : > { %v1470_v8 = vmul.f32 1.442695, %v1391_v10  ;;  %v1603_v26 = vsel %vm1167_vm1, %v4574_v20, 0.0  ;;  %v1466_v31 = vmul.f32 1.442695, %v1389_v40 }
 0x1a6   : > { %v1209_v13 = vpop.xlane.xlu1 %1208  ;;  %v1224_v15 = vpop.xlane.xlu0 %1223  ;;  %1604 = vadd.xlane.f32.xlu1 %v1603_v26 }
 0x1a7   : > { %3698 = vpow2.f32 %v1470_v8  ;;  %v1402_v54 = vsub.f32 %v4342_v39, %v1224_v15  ;;  %v1397_v39 = vsub.f32 %v4340_v38, %v1209_v13 }
 0x1a8   : > { %v4580_v29 = vpop.eup %3692  ;;  %3700 = vpow2.f32 %v1486_v19  ;;  %v1478_v19 = vmul.f32 1.442695, %v1395_v5 }
 0x1a9   : > { %3702 = vpow2.f32 %v1480_v32  ;;  %v1618_v9 = vsel %vm1167_vm1, %v4580_v29, 0.0  ;;  %v1492_v8 = vmul.f32 1.442695, %v1402_v54  ;;  %v1482_v54 = vmul.f32 1.442695, %v1397_v39 }
 0x1aa   : > { %v4582_v11 = vpop.xlane.xlu0 %1247  ;;  %v1227_v25 = vpop.xlane.xlu1 %1226  ;;  %1619 = vadd.xlane.f32.xlu0 %v1618_v9  ;;  %3704 = vpow2.f32 %v1466_v31  ;;  %v1372_v9 = vsel %vm1167_vm1, %v4540_v4, -inf }
 0x1ab   : > { %3706 = vpow2.f32 %v1476_v23  ;;  %v1403_v38 = vsub.f32 %v4356_v46, %v1227_v25 }
 0x1ac   : > { %v4586_v35 = vpop.eup %3694  ;;  %3708 = vpow2.f32 %v1478_v19 }
 0x1ad   : > { %v1642_v27 = vsel %vm1167_vm1, %v4586_v35, 0.0  ;;  %v4597_v10 = vpop.eup %3696  ;;  %3710 = vpow2.f32 %v1492_v8  ;;  %v1494_v46 = vmul.f32 1.442695, %v1403_v38 }
 0x1ae   : > { %v4593_v47 = vpop.xlane.xlu0 %1217  ;;  %v4595_v61 = vpop.xlane.xlu1 %1250  ;;  %5601 = vst [vmem:[#allocation27_spill] sm:$0xff] %v4597_v10  ;;  %1643 = vadd.xlane.f32.xlu0 %v1642_v27  ;;  %v1612_v16 = vsel %vm1167_vm1, %v4597_v10, 0.0 }
 0x1b2   : > { %v4599_v40 = vpop.xlane.xlu0 %1241  ;;  %v4601_v32 = vpop.xlane.xlu1 %1220  ;;  %1613 = vadd.xlane.f32.xlu0 %v1612_v16 }
 0x1b4   : > { %v4605_v18 = vpop.eup %3698 }
 0x1b5   : > { %5602 = vst [vmem:[#allocation28_spill] sm:$0xff] %v4605_v18  ;;  %v1621_v15 = vsel %vm1167_vm1, %v4605_v18, 0.0  ;;  %v4610_v26 = vpop.eup %3700 }
 0x1b6   : > { %v4612_v31 = vpop.xlane.xlu1 %1244  ;;  %v1236_v23 = vpop.xlane.xlu0 %1235  ;;  %1622 = vadd.xlane.f32.xlu1 %v1621_v15  ;;  %1373 = vmax.xlane.f32.xlu0 %v1372_v9  ;;  %v1645_v19 = vsel %vm1167_vm1, %v4610_v26, 0.0 }
 0x1b7   : > { %v4616_v5 = vpop.eup %3702  ;;  %v1406_v27 = vsub.f32 %v4368_v52, %v1236_v23  ;;  %v4630_v52 = vpop.f32.mrf.mxu0  ;;  %v1392_v23 = vsub.f32 %v4288_v12, %v4551_v30  ;;  %v1400_v12 = vsub.f32 %v4350_v43, %v4593_v47 }
 0x1b8   : > { %v4622_v8 = vpop.eup %3704  ;;  %v1636_v15 = vsel %vm1167_vm1, %v4616_v5, 0.0 }
 0x1b9   : > { %v1500_v13 = vmul.f32 1.442695, %v1406_v27  ;;  %5603 = vst [vmem:[#allocation29_spill] sm:$0xff] %v4622_v8  ;;  %v4628_v10 = vpop.eup %3706  ;;  %v1615_v39 = vsel %vm1167_vm1, %v4622_v8, 0.0 }
 0x1ba   : > { %v4624_v16 = vpop.xlane.xlu0 %1259  ;;  %v1239_v18 = vpop.xlane.xlu1 %1238  ;;  %1646 = vadd.xlane.f32.xlu1 %v1645_v19  ;;  %1637 = vadd.xlane.f32.xlu0 %v1636_v15  ;;  %v1630_v19 = vsel %vm1167_vm1, %v4628_v10, 0.0  ;;  %v1472_v15 = vmul.f32 1.442695, %v1392_v23  ;;  %v1488_v23 = vmul.f32 1.442695, %v1400_v12 }
 0x1bb   : > { %3712 = vpow2.f32 %v1500_v13  ;;  %v1407_v25 = vsub.f32 %v4382_v59, %v1239_v18  ;;  %v1375_v59 = vsel %vm1167_vm1, %v4630_v52, -inf  ;;  %v4644_v18 = vpop.eup %3708 }
 0x1bc   : > { %3714 = vpow2.f32 %v1482_v54 }
 0x1bd   : > { %3716 = vpow2.f32 %v1494_v46  ;;  %v1502_v54 = vmul.f32 1.442695, %v1407_v25  ;;  %v1633_v25 = vsel %vm1167_vm1, %v4644_v18, 0.0 }
 0x1be   : > { %v1230_v9 = vpop.xlane.xlu0 %1229  ;;  %v4637_v27 = vpop.xlane.xlu1 %1262  ;;  %1616 = vadd.xlane.f32.xlu1 %v1615_v39  ;;  %1631 = vadd.xlane.f32.xlu0 %v1630_v19  ;;  %v1342_v39 = vsel %vm1167_vm1, %v4476_v24, -inf  ;;  %v1393_v19 = vsub.f32 %v4308_v22, %v4554_v57  ;;  %v1401_v22 = vsub.f32 %v4362_v49, %v4601_v32 }
 0x1bf   : > { %v1404_v13 = vsub.f32 %v4374_v55, %v1230_v9  ;;  %v4652_v55 = vpop.eup %3710 }
 0x1c0   : > { %v1654_v9 = vsel %vm1167_vm1, %v4652_v55, 0.0  ;;  %v1474_v12 = vmul.f32 1.442695, %v1393_v19  ;;  %v1490_v49 = vmul.f32 1.442695, %v1401_v22 }
 0x1c1   : > { %v1496_v38 = vmul.f32 1.442695, %v1404_v13 }
 0x1c2   : > { %v4648_v30 = vpop.xlane.xlu0 %1253  ;;  %v1233_v8 = vpop.xlane.xlu1 %1232  ;;  %1376 = vmax.xlane.f32.xlu1 %v1375_v59  ;;  %1343 = vmax.xlane.f32.xlu0 %v1342_v39 }
 0x1c3   : > { %3718 = vpow2.f32 %v1496_v38  ;;  %v1405_v46 = vsub.f32 %v4398_v3, %v1233_v8  ;;  %v1345_v8 = vsel %vm1167_vm1, %v4488_v50, -inf  ;;  %v1412_v22 = vsub.f32 %v4384_v60, %v4648_v30 }
 0x1c4   : > { %3720 = vpow2.f32 %v1502_v54 }
 0x1c5   : > { %3722 = vpow2.f32 %v1472_v15  ;;  %v1498_v3 = vmul.f32 1.442695, %v1405_v46  ;;  %v1414_v46 = vsub.f32 %v4376_v56, %v4624_v16  ;;  %v1512_v30 = vmul.f32 1.442695, %v1412_v22 }
 0x1c6   : > { %v4657_v43 = vpop.xlane.xlu1 %1256  ;;  %v4659_v47 = vpop.xlane.xlu0 %1271  ;;  %1634 = vadd.xlane.f32.xlu1 %v1633_v25  ;;  %1655 = vadd.xlane.f32.xlu0 %v1654_v9  ;;  %3724 = vpow2.f32 %v1488_v23  ;;  %v1366_v9 = vsel %vm1167_vm1, %v4528_v37, -inf }
 0x1c7   : > { %3726 = vpow2.f32 %v1498_v3  ;;  %v1516_v16 = vmul.f32 1.442695, %v1414_v46 }
 0x1c8   : > { %v4665_v13 = vpop.eup %3712  ;;  %3728 = vpow2.f32 %v1474_v12 }
 0x1c9   : > { %v4669_v54 = vpop.eup %3714  ;;  %v1666_v15 = vsel %vm1167_vm1, %v4665_v13, 0.0  ;;  %3730 = vpow2.f32 %v1490_v49  ;;  %v1415_v49 = vsub.f32 %v4392_v0, %v4637_v27 }
 0x1ca   : > { %5604 = vst [vmem:[#allocation30_spill] sm:$0xff] %v4669_v54  ;;  %v4671_v38 = vpop.xlane.xlu0 %1295  ;;  %v4673_v59 = vpop.xlane.xlu1 %1274  ;;  %1346 = vmax.xlane.f32.xlu1 %v1345_v8  ;;  %1667 = vadd.xlane.f32.xlu0 %v1666_v15  ;;  %v1639_v57 = vsel %vm1167_vm1, %v4669_v54, 0.0  ;;  %3732 = vpow2.f32 %v1516_v16  ;;  %v1369_v16 = vsel %vm1167_vm1, %v4532_v62, -inf }
 0x1cb   : > { %v4681_v39 = vpop.eup %3716 }
 0x1cc   : > { %5605 = vst [vmem:[#allocation31_spill] sm:$0xff] %v4681_v39  ;;  %v1657_v3 = vsel %vm1167_vm1, %v4681_v39, 0.0 }
 0x1ce   : > { %v4685_v25 = vpop.xlane.xlu0 %1265  ;;  %v4687_v23 = vpop.xlane.xlu1 %1298  ;;  %1640 = vadd.xlane.f32.xlu1 %v1639_v57  ;;  %1367 = vmax.xlane.f32.xlu0 %v1366_v9  ;;  %v5555_v9 = vmov 0.0  }
 0x1cf   : > { %3460 = vmatprep.subr.bf16.mxu1 %v5555_v9  ;;  %3472 = vmatprep.subr.bf16.mxu0 %v5555_v9 }
 0x1d0   : > { %v4691_v19 = vpop.eup %3718 }
 0x1d1   : > { %5606 = vst [vmem:[#allocation32_spill] sm:$0xff] %v4691_v19  ;;  %v1660_v32 = vsel %vm1167_vm1, %v4691_v19, 0.0  ;;  %v4697_v56 = vpop.eup %3720 }
 0x1d2   : > { %5607 = vst [vmem:[#allocation33_spill] sm:$0xff] %v4697_v56  ;;  %v4699_v8 = vpop.xlane.xlu0 %1289  ;;  %v4701_v15 = vpop.xlane.xlu1 %1268  ;;  %1658 = vadd.xlane.f32.xlu1 %v1657_v3  ;;  %1661 = vadd.xlane.f32.xlu0 %v1660_v32  ;;  %v1669_v12 = vsel %vm1167_vm1, %v4697_v56, 0.0 }
 0x1d3   : > { %v4703_v57 = vpop.eup %3722 }
 0x1d4   : > { %v1624_v3 = vsel %vm1167_vm1, %v4703_v57, 0.0  ;;  %v4715_v32 = vpop.eup %3724 }
 0x1d5   : > { %v4722_v60 = vpop.eup %3726 }
 0x1d6   : > { %v4711_v46 = vpop.xlane.xlu1 %1292  ;;  %v1284_v19 = vpop.xlane.xlu0 %1283  ;;  %1670 = vadd.xlane.f32.xlu1 %v1669_v12  ;;  %1625 = vadd.xlane.f32.xlu0 %v1624_v3  ;;  %5608 = vst [vmem:[#allocation34_spill] sm:$0xff] %v4722_v60  ;;  %v1648_v12 = vsel %vm1167_vm1, %v4715_v32, 0.0  ;;  %v1663_v27 = vsel %vm1167_vm1, %v4722_v60, 0.0 }
 0x1d7   : > { %v1422_v39 = vsub.f32 %v4432_v34, %v1284_v19  ;;  %v4728_v34 = vpop.eup %3728  ;;  %v1518_v19 = vmul.f32 1.442695, %v1415_v49 }
 0x1d9   : > { %v1532_v9 = vmul.f32 1.442695, %v1422_v39  ;;  %v1410_v39 = vsub.f32 %v4348_v42, %v4582_v11  ;;  %v4744_v11 = vpop.eup %3730 }
 0x1da   : > { %v4724_v56 = vpop.xlane.xlu0 %1307  ;;  %v1287_v54 = vpop.xlane.xlu1 %1286  ;;  %1370 = vmax.xlane.f32.xlu1 %v1369_v16  ;;  %1649 = vadd.xlane.f32.xlu0 %v1648_v12  ;;  %v1336_v16 = vsel %vm1167_vm1, %v4480_v33, -inf  ;;  %v1418_v12 = vsub.f32 %v4406_v7, %v4659_v47  ;;  %v1408_v7 = vsub.f32 %v4352_v44, %v4599_v40  ;;  %v1339_v44 = vsel %vm1167_vm1, %v4492_v58, -inf }
 0x1db   : > { %3734 = vpow2.f32 %v1532_v9  ;;  %v1423_v0 = vsub.f32 %v4448_v51, %v1287_v54  ;;  %v1627_v51 = vsel %vm1167_vm1, %v4728_v34, 0.0  ;;  %v1413_v54 = vsub.f32 %v4404_v6, %v4657_v43 }
 0x1dc   : > { %3736 = vpow2.f32 %v1512_v30  ;;  %v1508_v30 = vmul.f32 1.442695, %v1410_v39  ;;  %v1524_v47 = vmul.f32 1.442695, %v1418_v12  ;;  %v1504_v40 = vmul.f32 1.442695, %v1408_v7 }
 0x1dd   : > { %3738 = vpow2.f32 %v1518_v19  ;;  %v1534_v49 = vmul.f32 1.442695, %v1423_v0  ;;  %v1514_v6 = vmul.f32 1.442695, %v1413_v54  ;;  %v1651_v19 = vsel %vm1167_vm1, %v4744_v11, 0.0 }
 0x1de   : > { %v1278_v22 = vpop.xlane.xlu0 %1277  ;;  %v4735_v3 = vpop.xlane.xlu1 %1310  ;;  %1664 = vadd.xlane.f32.xlu1 %v1663_v27  ;;  %1337 = vmax.xlane.f32.xlu0 %v1336_v16  ;;  %v1416_v54 = vsub.f32 %v4414_v17, %v4685_v25  ;;  %v1419_v12 = vsub.f32 %v4420_v21, %v4673_v59  ;;  %v1409_v59 = vsub.f32 %v4370_v53, %v4612_v31  ;;  %v5609_v53 = vmov 0.0  }
 0x1df   : > { %v1420_v9 = vsub.f32 %v4440_v41, %v1278_v22  ;;  %v1360_v41 = vsel %vm1167_vm1, %v4530_v36, -inf  ;;  %v4752_v22 = vpop.eup %3732  ;;  %3468 = vmatprep.mubr.msk.bf16.mxu1 %vm4035_vm2, %v5609_v53  ;;  %3480 = vmatprep.mubr.msk.bf16.mxu0 %vm4035_vm2, %v5609_v53 }
 0x1e0   : > { %v1690_v16 = vsel %vm1167_vm1, %v4752_v22, 0.0  ;;  %v1520_v25 = vmul.f32 1.442695, %v1416_v54  ;;  %v1526_v7 = vmul.f32 1.442695, %v1419_v12 }
 0x1e1   : > { %v1528_v42 = vmul.f32 1.442695, %v1420_v9  ;;  %v1506_v31 = vmul.f32 1.442695, %v1409_v59 }
 0x1e2   : > { %v4748_v60 = vpop.xlane.xlu0 %1301  ;;  %v1281_v27 = vpop.xlane.xlu1 %1280  ;;  %1628 = vadd.xlane.f32.xlu1 %v1627_v51  ;;  %1361 = vmax.xlane.f32.xlu0 %v1360_v41  ;;  %v1430_v41 = vsub.f32 %v4442_v45, %v4724_v56 }
 0x1e3   : > { %3740 = vpow2.f32 %v1528_v42  ;;  %v1421_v43 = vsub.f32 %v4462_v1, %v1281_v27  ;;  %v1411_v1 = vsub.f32 %v4360_v48, %v4595_v61  ;;  %v1363_v27 = vsel %vm1167_vm1, %v4534_v2, -inf }
 0x1e4   : > { %3742 = vpow2.f32 %v1534_v49 }
 0x1e5   : > { %3744 = vpow2.f32 %v1508_v30  ;;  %v1530_v51 = vmul.f32 1.442695, %v1421_v43  ;;  %v1510_v61 = vmul.f32 1.442695, %v1411_v1 }
 0x1e6   : > { %v4759_v0 = vpop.xlane.xlu1 %1304  ;;  %v4761_v39 = vpop.xlane.xlu0 %1319  ;;  %1652 = vadd.xlane.f32.xlu1 %v1651_v19  ;;  %1691 = vadd.xlane.f32.xlu0 %v1690_v16  ;;  %3746 = vpow2.f32 %v1514_v6  ;;  %v1548_v16 = vmul.f32 1.442695, %v1430_v41 }
 0x1e7   : > { %3748 = vpow2.f32 %v1524_v47 }
 0x1e8   : > { %v4767_v9 = vpop.eup %3734  ;;  %3750 = vpow2.f32 %v1530_v51 }
 0x1e9   : > { %v1714_v30 = vsel %vm1167_vm1, %v4767_v9, 0.0  ;;  %v4779_v48 = vpop.eup %3736  ;;  %3752 = vpow2.f32 %v1504_v40  ;;  %v1417_v40 = vsub.f32 %v4426_v28, %v4701_v15  ;;  %v5611_v15 = vld [vmem:[#allocation10_spill] sm:$0xff] }
 0x1ea   : > { %v4773_v49 = vpop.xlane.xlu0 %1313  ;;  %v4775_v42 = vpop.xlane.xlu1 %1322  ;;  %1340 = vmax.xlane.f32.xlu1 %v1339_v44  ;;  %1715 = vadd.xlane.f32.xlu0 %v1714_v30  ;;  %v1684_v43 = vsel %vm1167_vm1, %v4779_v48, 0.0  ;;  %3754 = vpow2.f32 %v1510_v61  ;;  %v5610_v30 = vld [vmem:[#allocation9_spill] sm:$0xff] }
 0x1eb   : > { %v4785_v17 = vpop.eup %3738  ;;  %3756 = vpow2.f32 %v1520_v25  ;;  %v1428_v61 = vsub.f32 %v5610_v30, %v4748_v60  ;;  %v1522_v28 = vmul.f32 1.442695, %v1417_v40 }
 0x1ec   : > { %v1693_v45 = vsel %vm1167_vm1, %v4785_v17, 0.0  ;;  %3758 = vpow2.f32 %v1526_v7 }
 0x1ed   : > { %3760 = vpow2.f32 %v1548_v16  ;;  %v1544_v60 = vmul.f32 1.442695, %v1428_v61 }
 0x1ee   : > { %v1332_v6 = vpop.xlane.xlu0 %1331  ;;  %1364 = vmax.xlane.f32.xlu1 %v1363_v27  ;;  %1685 = vadd.xlane.f32.xlu0 %v1684_v43  ;;  %v4793_v21 = vpop.xlane.xlu1 %1316  ;;  %3762 = vpow2.f32 %v1506_v31  ;;  %v1431_v43 = vsub.f32 %v5611_v15, %v4735_v3 }
 0x1ef   : > { %v1438_v1 = vsub.f32 %v4496_v63, %v1332_v6 }
 0x1f0   : > { %v4791_v19 = vpop.eup %3740  ;;  %v1550_v3 = vmul.f32 1.442695, %v1431_v43 }
 0x1f1   : > { %v1708_v47 = vsel %vm1167_vm1, %v4791_v19, 0.0  ;;  %v4801_v56 = vpop.eup %3742  ;;  %v1564_v12 = vmul.f32 1.442695, %v1438_v1 }
 0x1f2   : > { %v4804_v51 = vpop.xlane.xlu0 %1355  ;;  %1694 = vadd.xlane.f32.xlu1 %v1693_v45  ;;  %v4806_v44 = vpop.eup %3744  ;;  %1709 = vadd.xlane.f32.xlu0 %v1708_v47  ;;  %v1717_v63 = vsel %vm1167_vm1, %v4801_v56, 0.0  ;;  %v5612_v47 = vld [vmem:[#allocation17_spill] sm:$0xff] }
 0x1f3   : > { %v4816_v54 = vpop.eup %3746  ;;  %v1335_v27 = vpop.xlane.xlu1 %1334  ;;  %v1678_v25 = vsel %vm1167_vm1, %v4806_v44, 0.0  ;;  %3764 = vpow2.f32 %v1564_v12  ;;  %v5614_v12 = vld [vmem:[#allocation5_spill] sm:$0xff] }
 0x1f4   : > { %v4822_v41 = vpop.eup %3748  ;;  %v1687_v59 = vsel %vm1167_vm1, %v4816_v54, 0.0  ;;  %3766 = vpow2.f32 %v1522_v28  ;;  %v5615_v28 = vld [vmem:[#allocation11_spill] sm:$0xff] }
 0x1f5   : > { %v4828_v7 = vpop.eup %3750  ;;  %v1702_v16 = vsel %vm1167_vm1, %v4822_v41, 0.0  ;;  %3768 = vpow2.f32 %v1544_v60  ;;  %v1429_v43 = vsub.f32 %v5615_v28, %v4759_v0  ;;  %v5616_v60 = vld [vmem:[#allocation12_spill] sm:$0xff] }
 0x1f6   : > { %1718 = vadd.xlane.f32.xlu1 %v1717_v63  ;;  %v1326_v6 = vpop.xlane.xlu0 %1325  ;;  %1679 = vadd.xlane.f32.xlu0 %v1678_v25  ;;  %v4833_v1 = vpop.eup %3752  ;;  %v5613_v63 = vld [vmem:[#allocation19_spill] sm:$0xff]  ;;  %v1711_v61 = vsel %vm1167_vm1, %v4828_v7, 0.0  ;;  %v1426_v25 = vsub.f32 %v5614_v12, %v4671_v38  ;;  %3770 = vpow2.f32 %v1550_v3 }
 0x1f7   : > { %v1436_v45 = vsub.f32 %v5612_v47, %v1326_v6  ;;  %v4835_v31 = vpop.xlane.xlu1 %1358  ;;  %v4837_v40 = vpop.eup %3754  ;;  %v1439_v30 = vsub.f32 %v5613_v63, %v1335_v27  ;;  %v1672_v15 = vsel %vm1167_vm1, %v4833_v1, 0.0  ;;  %v1546_v0 = vmul.f32 1.442695, %v1429_v43  ;;  %v5619_v43 = vld [vmem:[#allocation7_spill] sm:$0xff] }
 0x1f8   : > { %v1681_v47 = vsel %vm1167_vm1, %v4837_v40, 0.0  ;;  %v1540_v38 = vmul.f32 1.442695, %v1426_v25 }
 0x1f9   : > { %v1560_v6 = vmul.f32 1.442695, %v1436_v45  ;;  %v1566_v27 = vmul.f32 1.442695, %v1439_v30  ;;  %v1434_v45 = vsub.f32 %v5616_v60, %v4761_v39  ;;  %v5617_v30 = vld [vmem:[#allocation21_spill] sm:$0xff]  ;;  %v5618_v39 = vld [vmem:[#allocation6_spill] sm:$0xff] }
 0x1fa   : > { %1688 = vadd.xlane.f32.xlu1 %v1687_v59  ;;  %1703 = vadd.xlane.f32.xlu0 %v1702_v16  ;;  %v4846_v59 = vpop.eup %3756 }
 0x1fb   : > { %v4852_v16 = vpop.eup %3758  ;;  %3772 = vpow2.f32 %v1560_v6  ;;  %v1329_v63 = vpop.xlane.xlu1 %1328  ;;  %v1424_v6 = vsub.f32 %v5618_v39, %v4699_v8  ;;  %v1556_v28 = vmul.f32 1.442695, %v1434_v45  ;;  %v5621_v8 = vld [vmem:[#allocation13_spill] sm:$0xff] }
 0x1fc   : > { %v4858_v3 = vpop.eup %3760  ;;  %3774 = vpow2.f32 %v1566_v27  ;;  %v1437_v12 = vsub.f32 %v5617_v30, %v1329_v63  ;;  %v1427_v27 = vsub.f32 %v5619_v43, %v4687_v23  ;;  %v1432_v45 = vsub.f32 %v5621_v8, %v4773_v49  ;;  %v5624_v43 = vld [vmem:[#allocation16_spill] sm:$0xff] }
 0x1fd   : > { %v4863_v25 = vpop.eup %3762  ;;  %3776 = vpow2.f32 %v1540_v38  ;;  %v1536_v30 = vmul.f32 1.442695, %v1424_v6  ;;  %v1446_v8 = vsub.f32 %v5624_v43, %v4804_v51  ;;  %v5626_v43 = vld [vmem:[#allocation23_spill] sm:$0xff] }
 0x1fe   : > { %1712 = vadd.xlane.f32.xlu1 %v1711_v61  ;;  %1673 = vadd.xlane.f32.xlu0 %v1672_v15  ;;  %v1696_v61 = vsel %vm1167_vm1, %v4846_v59, 0.0  ;;  %v1705_v15 = vsel %vm1167_vm1, %v4852_v16, 0.0  ;;  %3778 = vpow2.f32 %v1546_v0  ;;  %v1562_v63 = vmul.f32 1.442695, %v1437_v12  ;;  %v5623_v0 = vld [vmem:[#allocation14_spill] sm:$0xff] }
 0x1ff   : > { %3780 = vpow2.f32 %v1556_v28  ;;  %v1542_v23 = vmul.f32 1.442695, %v1427_v27  ;;  %v1435_v12 = vsub.f32 %v5623_v0, %v4775_v42  ;;  %v1552_v49 = vmul.f32 1.442695, %v1432_v45  ;;  %v5625_v42 = vld [vmem:[#allocation8_spill] sm:$0xff] }
 0x200   : > { %v4869_v60 = vpop.eup %3764  ;;  %3782 = vpow2.f32 %v1562_v63  ;;  %v1425_v63 = vsub.f32 %v5625_v42, %v4711_v46  ;;  %v1580_v51 = vmul.f32 1.442695, %v1446_v8  ;;  %v5627_v46 = vld [vmem:[#allocation15_spill] sm:$0xff] }
 0x201   : > { %v4875_v38 = vpop.eup %3766  ;;  %3784 = vpow2.f32 %v1536_v30  ;;  %v1558_v0 = vmul.f32 1.442695, %v1435_v12  ;;  %v1433_v12 = vsub.f32 %v5627_v46, %v4793_v21  ;;  %v5631_v21 = vld [vmem:[#allocation20_spill] sm:$0xff] }
 0x202   : > { %1682 = vadd.xlane.f32.xlu1 %v1681_v47  ;;  %1697 = vadd.xlane.f32.xlu0 %v1696_v61  ;;  %v1738_v47 = vsel %vm1167_vm1, %v4858_v3, 0.0  ;;  %v1675_v61 = vsel %vm1167_vm1, %v4863_v25, 0.0  ;;  %5620 = vst [vmem:[#allocation9_spill] sm:$0xff] %v4875_v38  ;;  %v4881_v39 = vpop.eup %3768  ;;  %v1699_v6 = vsel %vm1167_vm1, %v4875_v38, 0.0  ;;  %3786 = vpow2.f32 %v1542_v23 }
 0x203   : > { %5622 = vst [vmem:[#allocation10_spill] sm:$0xff] %v4881_v39  ;;  %v4887_v28 = vpop.eup %3770  ;;  %3788 = vpow2.f32 %v1552_v49  ;;  %v1538_v23 = vmul.f32 1.442695, %v1425_v63  ;;  %v5629_v49 = vld [vmem:[#allocation18_spill] sm:$0xff]  ;;  %v1554_v63 = vmul.f32 1.442695, %v1433_v12 }
 0x204   : > { %v1741_v30 = vsel %vm1167_vm1, %v4887_v28, 0.0  ;;  %3790 = vpow2.f32 %v1558_v0  ;;  %v1447_v0 = vsub.f32 %v5631_v21, %v4835_v31  ;;  %v5634_v12 = vld [vmem:[#allocation24_spill] sm:$0xff] }
 0x205   : > { %3792 = vpow2.f32 %v1580_v51 }
 0x206   : > { %1706 = vadd.xlane.f32.xlu1 %v1705_v15  ;;  %1739 = vadd.xlane.f32.xlu0 %v1738_v47  ;;  %v1762_v15 = vsel %vm1167_vm1, %v4869_v60, 0.0  ;;  %v1350_v47 = vpop.xlane.xlu0 %1349  ;;  %3794 = vpow2.f32 %v1538_v23  ;;  %v1582_v23 = vmul.f32 1.442695, %v1447_v0 }
 0x207   : > { %v1444_v8 = vsub.f32 %v5629_v49, %v1350_v47 }
 0x209   : > { %v1576_v47 = vmul.f32 1.442695, %v1444_v8 }
 0x20a   : > { %1676 = vadd.xlane.f32.xlu1 %v1675_v61  ;;  %1763 = vadd.xlane.f32.xlu0 %v1762_v15  ;;  %v1732_v61 = vsel %vm1167_vm1, %v4881_v39, 0.0  ;;  %v4893_v15 = vpop.eup %3772 }
 0x20b   : > { %v4899_v45 = vpop.eup %3774 }
 0x20c   : > { %v4904_v39 = vpop.eup %3776 }
 0x20d   : > { %v4910_v42 = vpop.eup %3778 }
 0x20e   : > { %1700 = vadd.xlane.f32.xlu1 %v1699_v6  ;;  %v1380_v27 = vpop.xlane.xlu0 %1379  ;;  %1733 = vadd.xlane.f32.xlu0 %v1732_v61  ;;  %v1756_v6 = vsel %vm1167_vm1, %v4893_v15, 0.0  ;;  %v1765_v61 = vsel %vm1167_vm1, %v4899_v45, 0.0  ;;  %5628 = vst [vmem:[#allocation17_spill] sm:$0xff] %v4910_v42  ;;  %v1735_v46 = vsel %vm1167_vm1, %v4910_v42, 0.0 }
 0x20f   : > { %v1454_v38 = vsub.f32 %v5626_v43, %v1380_v27  ;;  %v1353_v27 = vpop.xlane.xlu1 %1352 }
 0x211   : > { %v1596_v43 = vmul.f32 1.442695, %v1454_v38 }
 0x212   : > { %1742 = vadd.xlane.f32.xlu1 %v1741_v30  ;;  %1757 = vadd.xlane.f32.xlu0 %v1756_v6  ;;  %v1726_v30 = vsel %vm1167_vm1, %v4904_v39, 0.0  ;;  %v4915_v6 = vpop.eup %3780 }
 0x213   : > { %5630 = vst [vmem:[#allocation19_spill] sm:$0xff] %v4915_v6  ;;  %v4921_v51 = vpop.eup %3782  ;;  %3796 = vpow2.f32 %v1596_v43  ;;  %v1383_v38 = vpop.xlane.xlu1 %1382  ;;  %v1750_v49 = vsel %vm1167_vm1, %v4915_v6, 0.0 }
 0x214   : > { %5632 = vst [vmem:[#allocation5_spill] sm:$0xff] %v4921_v51  ;;  %3798 = vpow2.f32 %v1554_v63  ;;  %v1759_v31 = vsel %vm1167_vm1, %v4921_v51, 0.0 }
 0x215   : > { %3800 = vpow2.f32 %v1576_v47 }
 0x216   : > { %1766 = vadd.xlane.f32.xlu1 %v1765_v61  ;;  %1727 = vadd.xlane.f32.xlu0 %v1726_v30  ;;  %v4925_v61 = vpop.eup %3784  ;;  %v1455_v30 = vsub.f32 %v5634_v12, %v1383_v38  ;;  %3802 = vpow2.f32 %v1582_v23 }
 0x217   : > { %5633 = vst [vmem:[#allocation11_spill] sm:$0xff] %v4925_v61  ;;  %v4930_v21 = vpop.eup %3786  ;;  %v1720_v8 = vsel %vm1167_vm1, %v4925_v61, 0.0 }
 0x218   : > { %5635 = vst [vmem:[#allocation12_spill] sm:$0xff] %v4930_v21  ;;  %v4934_v43 = vpop.eup %3788  ;;  %v1598_v63 = vmul.f32 1.442695, %v1455_v30  ;;  %v1729_v0 = vsel %vm1167_vm1, %v4930_v21, 0.0 }
 0x219   : > { %5636 = vst [vmem:[#allocation21_spill] sm:$0xff] %v4934_v43  ;;  %v4939_v38 = vpop.eup %3790 }
 0x21a   : > { %1736 = vadd.xlane.f32.xlu1 %v1735_v46  ;;  %1751 = vadd.xlane.f32.xlu0 %v1750_v49  ;;  %v5637_v46 = vld [vmem:[#allocation22_spill] sm:$0xff]  ;;  %5638 = vst [vmem:[#allocation6_spill] sm:$0xff] %v4939_v38  ;;  %v1744_v49 = vsel %vm1167_vm1, %v4934_v43, 0.0  ;;  %v4943_v47 = vpop.eup %3792 }
 0x21b   : > { %v1445_v6 = vsub.f32 %v5637_v46, %v1353_v27  ;;  %5639 = vst [vmem:[#allocation7_spill] sm:$0xff] %v4943_v47  ;;  %v1753_v27 = vsel %vm1167_vm1, %v4939_v38, 0.0  ;;  %v4947_v23 = vpop.eup %3794  ;;  %v1786_v30 = vsel %vm1167_vm1, %v4943_v47, 0.0 }
 0x21c   : > { %5640 = vst [vmem:[#allocation13_spill] sm:$0xff] %v4947_v23 }
 0x21e   : > { %1760 = vadd.xlane.f32.xlu1 %v1759_v31  ;;  %1721 = vadd.xlane.f32.xlu0 %v1720_v8  ;;  %v1578_v31 = vmul.f32 1.442695, %v1445_v6  ;;  %v1723_v6 = vsel %vm1167_vm1, %v4947_v23, 0.0 }
 0x220   : > { %v4951_v8 = vpop.eup %3796 }
 0x221   : > { %5641 = vst [vmem:[#allocation14_spill] sm:$0xff] %v4951_v8 }
 0x222   : > { %1730 = vadd.xlane.f32.xlu1 %v1729_v0  ;;  %1745 = vadd.xlane.f32.xlu0 %v1744_v49  ;;  %v1810_v0 = vsel %vm1167_vm1, %v4951_v8, 0.0  ;;  %v5646_v8 = vld [vmem:[#allocation25_spill] sm:$0xff] }
 0x223   : > { %v1608_v12 = vpop.xlane.xlu0 %1607 }
 0x224   : > { %3804 = vrcp.f32 %v1608_v12 }
 0x225   : > { %3806 = vpow2.f32 %v1598_v63  ;;  %v4955_v63 = vpop.eup %3798 }
 0x226   : > { %1754 = vadd.xlane.f32.xlu1 %v1753_v27  ;;  %1787 = vadd.xlane.f32.xlu0 %v1786_v30  ;;  %3808 = vpow2.f32 %v1578_v31  ;;  %5642 = vst [vmem:[#allocation16_spill] sm:$0xff] %v4955_v63  ;;  %v4959_v49 = vpop.eup %3800  ;;  %v1747_v31 = vsel %vm1167_vm1, %v4955_v63, 0.0 }
 0x227   : > { %v1611_v46 = vpop.xlane.xlu1 %1610  ;;  %5643 = vst [vmem:[#allocation8_spill] sm:$0xff] %v4959_v49  ;;  %v4964_v27 = vpop.eup %3802  ;;  %v1780_v30 = vsel %vm1167_vm1, %v4959_v49, 0.0 }
 0x228   : > { %3810 = vrcp.f32 %v1611_v46  ;;  %5644 = vst [vmem:[#allocation23_spill] sm:$0xff] %v4964_v27 }
 0x22a   : > { %1724 = vadd.xlane.f32.xlu1 %v1723_v6  ;;  %1811 = vadd.xlane.f32.xlu0 %v1810_v0  ;;  %v1789_v0 = vsel %vm1167_vm1, %v4964_v27, 0.0 }
 0x22b   : > { %v1602_v12 = vpop.xlane.xlu0 %1601 }
 0x22c   : > { %3812 = vrcp.f32 %v1602_v12 }
 0x22e   : > { %1748 = vadd.xlane.f32.xlu1 %v1747_v31  ;;  %1781 = vadd.xlane.f32.xlu0 %v1780_v30 }
 0x22f   : > { %v1605_v46 = vpop.xlane.xlu1 %1604 }
 0x230   : > { %3814 = vrcp.f32 %v1605_v46 }
 0x231   : > { %v3805_v6 = vpop.eup %3804 }
 0x232   : > { %v4972_v12 = vpop.eup %3806  ;;  %1790 = vadd.xlane.f32.xlu1 %v1789_v0  ;;  %v4975_v63 = vmul.f32 %v3805_v6, %v5646_v8  ;;  %v5648_v8 = vld [vmem:[#allocation26_spill] sm:$0xff] }
 0x233   : > { %5645 = vst [vmem:[#allocation15_spill] sm:$0xff] %v4972_v12  ;;  %v1620_v23 = vpop.xlane.xlu0 %1619  ;;  %v4979_v30 = vpop.eup %3808  ;;  %v1813_v46 = vsel %vm1167_vm1, %v4972_v12, 0.0 }
 0x234   : > { %v3126_v31 = vpack.c.bf16 %v4975_v63, %v4975_v63  ;;  %5647 = vst [vmem:[#allocation18_spill] sm:$0xff] %v4979_v30  ;;  %3816 = vrcp.f32 %v1620_v23  ;;  %v1783_v23 = vsel %vm1167_vm1, %v4979_v30, 0.0 }
 0x235   : > { %v3811_v49 = vpop.eup %3810 }
 0x236   : > { %1814 = vadd.xlane.f32.xlu1 %v1813_v46  ;;  %2251 = vst.msk [vmem:[%s4983_s4 + $0x8] sm:$0xf] %vm2248_vm3, %v3126_v31  ;;  %v4988_v6 = vmul.f32 %v3811_v49, %v5648_v8 }
 0x237   : > { %v1644_v0 = vpop.xlane.xlu0 %1643 }
 0x238   : > { %3818 = vrcp.f32 %v1644_v0  ;;  %v3127_v12 = vpack.c.bf16 %v4988_v6, %v4988_v6 }
 0x239   : > { %v3813_v27 = vpop.eup %3812 }
 0x23a   : > { %1784 = vadd.xlane.f32.xlu1 %v1783_v23  ;;  %v4995_v46 = vmul.f32 %v3813_v27, %v4567_v14  ;;  %2252 = vst.msk [vmem:[%s4983_s4 + $0xc] sm:$0xf] %vm2248_vm3, %v3127_v12 }
 0x23b   : > { %v1614_v31 = vpop.xlane.xlu0 %1613 }
 0x23c   : > { %v3124_v49 = vpack.c.bf16 %v4995_v46, %v4995_v46  ;;  %3820 = vrcp.f32 %v1614_v31 }
 0x23d   : > { %v3815_v8 = vpop.eup %3814 }
 0x23e   : > { %2249 = vst.msk [vmem:[%s4983_s4] sm:$0xf] %vm2248_vm3, %v3124_v49  ;;  %v5004_v30 = vmul.f32 %v3815_v8, %v4574_v20 }
 0x23f   : > { %v1623_v0 = vpop.xlane.xlu1 %1622  ;;  %v1374_v47 = vpop.xlane.xlu0 %1373 }
 0x240   : > { %3822 = vrcp.f32 %v1623_v0  ;;  %v1452_v14 = vsub.f32 %v4540_v4, %v1374_v47  ;;  %v3125_v27 = vpack.c.bf16 %v5004_v30, %v5004_v30 }
 0x241   : > { %v3817_v12 = vpop.eup %3816 }
 0x242   : > { %v1592_v23 = vmul.f32 1.442695, %v1452_v14  ;;  %v1894_v31 = vmul.f32 %v3817_v12, %v4580_v29  ;;  %2250 = vst.msk [vmem:[%s4983_s4 + $0x4] sm:$0xf] %vm2248_vm3, %v3125_v27  ;;  %v5649_v27 = vld [vmem:[#allocation27_spill] sm:$0xff] }
 0x243   : > { %v1647_v38 = vpop.xlane.xlu1 %1646  ;;  %v1638_v49 = vpop.xlane.xlu0 %1637 }
 0x244   : > { %3824 = vrcp.f32 %v1647_v38  ;;  %v3130_v20 = vpack.c.bf16 %v1894_v31, %v1894_v31 }
 0x245   : > { %3826 = vpow2.f32 %v1592_v23  ;;  %v3819_v8 = vpop.eup %3818 }
 0x246   : > { %3828 = vrcp.f32 %v1638_v49  ;;  %2255 = vst.msk [vmem:[%s4983_s4 + $0x18] sm:$0xf] %vm2248_vm3, %v3130_v20  ;;  %v1902_v4 = vmul.f32 %v3819_v8, %v4586_v35  ;;  %v5650_v8 = vld [vmem:[#allocation28_spill] sm:$0xff] }
 0x247   : > { %v1617_v0 = vpop.xlane.xlu1 %1616  ;;  %v1632_v47 = vpop.xlane.xlu0 %1631 }
 0x248   : > { %3830 = vrcp.f32 %v1617_v0  ;;  %v3138_v14 = vpack.c.bf16 %v1902_v4, %v1902_v4 }
 0x249   : > { %3832 = vrcp.f32 %v1632_v47  ;;  %v3821_v29 = vpop.eup %3820 }
 0x24a   : > { %2263 = vst.msk [vmem:[%s4983_s4 + $0x38] sm:$0xf] %vm2248_vm3, %v3138_v14  ;;  %v1892_v38 = vmul.f32 %v3821_v29, %v5649_v27 }
 0x24b   : > { %v1377_v12 = vpop.xlane.xlu1 %1376  ;;  %v1344_v23 = vpop.xlane.xlu0 %1343 }
 0x24c   : > { %v1453_v43 = vsub.f32 %v4630_v52, %v1377_v12  ;;  %v1442_v20 = vsub.f32 %v4476_v24, %v1344_v23  ;;  %v3128_v21 = vpack.c.bf16 %v1892_v38, %v1892_v38 }
 0x24d   : > { %v3823_v49 = vpop.eup %3822 }
 0x24e   : > { %v1594_v35 = vmul.f32 1.442695, %v1453_v43  ;;  %v1895_v0 = vmul.f32 %v3823_v49, %v5650_v8  ;;  %v1572_v61 = vmul.f32 1.442695, %v1442_v20  ;;  %2253 = vst.msk [vmem:[%s4983_s4 + $0x10] sm:$0xf] %vm2248_vm3, %v3128_v21 }
 0x24f   : > { %v1635_v47 = vpop.xlane.xlu1 %1634  ;;  %v1656_v51 = vpop.xlane.xlu0 %1655  ;;  %v5651_v8 = vld [vmem:[#allocation29_spill] sm:$0xff] }
 0x250   : > { %3834 = vpow2.f32 %v1594_v35  ;;  %v1963_v14 = vpack.c.bf16 %v1895_v0, %v1894_v31  ;;  %v3131_v42 = vpack.c.bf16 %v1895_v0, %v1895_v0 }
 0x251   : > { %v3825_v29 = vpop.eup %3824  ;;  %3836 = vpow2.f32 %v1572_v61 }
 0x252   : > { %v5023_v27 = vpop.eup %3826  ;;  %3838 = vrcp.f32 %v1656_v51  ;;  %2256 = vst.msk [vmem:[%s4983_s4 + $0x1c] sm:$0xf] %vm2248_vm3, %v3131_v42  ;;  %v2334_v24 = vsel %vm1167_vm1, %v1963_v14, 0  ;;  %v1903_v52 = vmul.f32 %v3825_v29, %v4610_v26 }
 0x253   : > { %v3829_v43 = vpop.eup %3828  ;;  %3840 = vrcp.f32 %v1635_v47  ;;  %v1804_v21 = vsel %vm1167_vm1, %v5023_v27, 0.0  ;;  %3461 = vmatpush3.bf16.xpose.msra.mxu1 %v2334_v24  ;;  %v1347_v31 = vpop.xlane.xlu1 %1346 }
 0x254   : > { %1805 = vadd.xlane.f32.xlu0 %v1804_v21  ;;  %v1668_v12 = vpop.xlane.xlu0 %1667  ;;  %v1443_v61 = vsub.f32 %v4488_v50, %v1347_v31  ;;  %v1967_v23 = vpack.c.bf16 %v1903_v52, %v1902_v4  ;;  %v3139_v51 = vpack.c.bf16 %v1903_v52, %v1903_v52  ;;  %3462 = vmatprep.subr.bf16.mxu1 %v5609_v53 }
 0x255   : > { %v3831_v42 = vpop.eup %3830  ;;  %3842 = vrcp.f32 %v1668_v12  ;;  %v5034_v26 = vmul.f32 %v3829_v43, %v4616_v5 }
 0x256   : > { %v3833_v49 = vpop.eup %3832  ;;  %v1574_v20 = vmul.f32 1.442695, %v1443_v61  ;;  %2264 = vst.msk [vmem:[%s4983_s4 + $0x3c] sm:$0xf] %vm2248_vm3, %v3139_v51  ;;  %v2389_v35 = vsel %vm1167_vm1, %v1967_v23, 0  ;;  %v1893_v0 = vmul.f32 %v3831_v42, %v5651_v8  ;;  %v1961_v61 = vpack.c.bf16 %v4988_v6, %v4975_v63 }
 0x257   : > { %3473 = vmatpush3.bf16.xpose.msra.mxu0 %v2389_v35  ;;  %v1641_v50 = vpop.xlane.xlu1 %1640  ;;  %v3136_v4 = vpack.c.bf16 %v5034_v26, %v5034_v26  ;;  %v5043_v47 = vmul.f32 %v3833_v49, %v4628_v10 }
 0x258   : > { %3844 = vpow2.f32 %v1574_v20  ;;  %v1368_v5 = vpop.xlane.xlu0 %1367  ;;  %v1962_v14 = vpack.c.bf16 %v1893_v0, %v1892_v38  ;;  %v3129_v29 = vpack.c.bf16 %v1893_v0, %v1893_v0  ;;  %3474 = vmatprep.subr.bf16.mxu0 %v5609_v53  ;;  %v2328_v6 = vsel %vm1167_vm1, %v1961_v61, 0 }
 0x259   : > { %v1450_v24 = vsub.f32 %v4528_v37, %v1368_v5  ;;  %3846 = vrcp.f32 %v1641_v50  ;;  %2261 = vst.msk [vmem:[%s4983_s4 + $0x30] sm:$0xf] %vm2248_vm3, %v3136_v4  ;;  %v3134_v52 = vpack.c.bf16 %v5043_v47, %v5043_v47 }
 0x25a   : > { %2254 = vst.msk [vmem:[%s4983_s4 + $0x14] sm:$0xf] %vm2248_vm3, %v3129_v29  ;;  %v2331_v43 = vsel %vm1167_vm1, %v1962_v14, 0 }
 0x25b   : > { %v1588_v10 = vmul.f32 1.442695, %v1450_v24  ;;  %3463 = vmatpush3.bf16.xpose.msra.mxu1 %v2331_v43  ;;  %v1659_v21 = vpop.xlane.xlu1 %1658  ;;  %2259 = vst.msk [vmem:[%s4983_s4 + $0x28] sm:$0xf] %vm2248_vm3, %v3134_v52 }
 0x25c   : > { %v1662_v38 = vpop.xlane.xlu0 %1661  ;;  %3848 = vrcp.f32 %v1659_v21  ;;  %3464 = vmatprep.subr.bf16.mxu1 %v5609_v53 }
 0x25d   : > { %v5057_v37 = vpop.eup %3834  ;;  %3850 = vpow2.f32 %v1588_v10  ;;  %v5652_v10 = vld [vmem:[#allocation30_spill] sm:$0xff] }
 0x25e   : > { %v5059_v31 = vpop.eup %3836  ;;  %3852 = vrcp.f32 %v1662_v38  ;;  %v1807_v12 = vsel %vm1167_vm1, %v5057_v37, 0.0 }
 0x25f   : > { %v3839_v23 = vpop.eup %3838  ;;  %v1774_v51 = vsel %vm1167_vm1, %v5059_v31, 0.0  ;;  %1808 = vadd.xlane.f32.xlu1 %v1807_v12  ;;  %v1671_v42 = vpop.xlane.xlu1 %1670 }
 0x260   : > { %v3841_v49 = vpop.eup %3840  ;;  %1775 = vadd.xlane.f32.xlu0 %v1774_v51  ;;  %v1626_v20 = vpop.xlane.xlu0 %1625  ;;  %3854 = vrcp.f32 %v1671_v42  ;;  %v5068_v35 = vmul.f32 %v3839_v23, %v4652_v55 }
 0x261   : > { %3856 = vrcp.f32 %v1626_v20  ;;  %v5071_v8 = vmul.f32 %v3841_v49, %v4644_v18 }
 0x262   : > { %v3843_v63 = vpop.eup %3842  ;;  %v3142_v0 = vpack.c.bf16 %v5068_v35, %v5068_v35 }
 0x263   : > { %3465 = vmatpush3.bf16.xpose.msra.mxu1 %v2328_v6  ;;  %v1371_v50 = vpop.xlane.xlu1 %1370  ;;  %v3135_v4 = vpack.c.bf16 %v5071_v8, %v5071_v8  ;;  %v5079_v5 = vmul.f32 %v3843_v63, %v4665_v13 }
 0x264   : > { %v1650_v55 = vpop.xlane.xlu0 %1649  ;;  %v1451_v14 = vsub.f32 %v4532_v62, %v1371_v50  ;;  %3466 = vmatprep.subr.bf16.mxu1 %v5609_v53  ;;  %2267 = vst.msk [vmem:[%s4983_s4 + $0x48] sm:$0xf] %vm2248_vm3, %v3142_v0  ;;  %v1960_v62 = vpack.c.bf16 %v5004_v30, %v4995_v46  ;;  %v5653_v46 = vld [vmem:[#allocation31_spill] sm:$0xff]  ;;  %v5654_v50 = vld [vmem:[#allocation32_spill] sm:$0xff] }
 0x265   : > { %v5085_v18 = vpop.eup %3844  ;;  %3858 = vrcp.f32 %v1650_v55  ;;  %2260 = vst.msk [vmem:[%s4983_s4 + $0x2c] sm:$0xf] %vm2248_vm3, %v3135_v4  ;;  %v3146_v29 = vpack.c.bf16 %v5079_v5, %v5079_v5 }
 0x266   : > { %v3847_v24 = vpop.eup %3846  ;;  %v1590_v13 = vmul.f32 1.442695, %v1451_v14  ;;  %v1777_v52 = vsel %vm1167_vm1, %v5085_v18, 0.0  ;;  %v2325_v30 = vsel %vm1167_vm1, %v1960_v62, 0 }
 0x267   : > { %1778 = vadd.xlane.f32.xlu1 %v1777_v52  ;;  %v1665_v43 = vpop.xlane.xlu1 %1664  ;;  %v1901_v21 = vmul.f32 %v3847_v24, %v5652_v10  ;;  %2271 = vst.msk [vmem:[%s4983_s4 + $0x58] sm:$0xf] %vm2248_vm3, %v3146_v29 }
 0x268   : > { %3860 = vpow2.f32 %v1590_v13  ;;  %v1338_v38 = vpop.xlane.xlu0 %1337  ;;  %v5655_v13 = vld [vmem:[#allocation33_spill] sm:$0xff] }
 0x269   : > { %v3849_v12 = vpop.eup %3848  ;;  %v1440_v61 = vsub.f32 %v4480_v33, %v1338_v38  ;;  %3862 = vrcp.f32 %v1665_v43  ;;  %v1966_v23 = vpack.c.bf16 %v1901_v21, %v5034_v26  ;;  %v3137_v51 = vpack.c.bf16 %v1901_v21, %v1901_v21  ;;  %v284_v21 = vld [vmem:[%s5117_s8] sm:$0x3] }
 0x26a   : > { %v5101_v42 = vpop.eup %3850  ;;  %v5105_v49 = vmul.f32 %v3849_v12, %v5653_v46  ;;  %v1965_v38 = vpack.c.bf16 %v5071_v8, %v5043_v47 }
 0x26b   : > { %v3853_v20 = vpop.eup %3852  ;;  %v1568_v63 = vmul.f32 1.442695, %v1440_v61  ;;  %v1798_v6 = vsel %vm1167_vm1, %v5101_v42, 0.0  ;;  %3467 = vmatpush3.bf16.xpose.msra.mxu1 %v2325_v30  ;;  %2262 = vst.msk [vmem:[%s4983_s4 + $0x34] sm:$0xf] %vm2248_vm3, %v3137_v51  ;;  %v2386_v33 = vsel %vm1167_vm1, %v1966_v23, 0  ;;  %v1629_v26 = vpop.xlane.xlu1 %1628 }
 0x26c   : > { %1799 = vadd.xlane.f32.xlu0 %v1798_v6  ;;  %v1362_v0 = vpop.xlane.xlu0 %1361  ;;  %3475 = vmatpush3.bf16.xpose.msra.mxu0 %v2386_v33  ;;  %3864 = vrcp.f32 %v1629_v26  ;;  %v1908_v4 = vmul.f32 %v3853_v20, %v5654_v50  ;;  %v3143_v55 = vpack.c.bf16 %v5105_v49, %v5105_v49  ;;  %v5656_v50 = vld [vmem:[#allocation34_spill] sm:$0xff] }
 0x26d   : > { %v3855_v14 = vpop.eup %3854  ;;  %3866 = vpow2.f32 %v1568_v63  ;;  %v1448_v29 = vsub.f32 %v4530_v36, %v1362_v0  ;;  %3476 = vmatprep.subr.bf16.mxu0 %v5609_v53  ;;  %3484 = vmatprep.subr.bf16.mxu1 %v5609_v53 }
 0x26e   : > { %v3857_v24 = vpop.eup %3856  ;;  %v1911_v52 = vmul.f32 %v3855_v14, %v5655_v13  ;;  %v3144_v62 = vpack.c.bf16 %v1908_v4, %v1908_v4  ;;  %2268 = vst.msk [vmem:[%s4983_s4 + $0x4c] sm:$0xf] %vm2248_vm3, %v3143_v55 }
 0x26f   : > { %v1584_v43 = vmul.f32 1.442695, %v1448_v29  ;;  %v1653_v10 = vpop.xlane.xlu1 %1652  ;;  %v1896_v36 = vmul.f32 %v3857_v24, %v4703_v57  ;;  %v2383_v57 = vsel %vm1167_vm1, %v1965_v38, 0 }
 0x270   : > { %v1692_v12 = vpop.xlane.xlu0 %1691  ;;  %3868 = vrcp.f32 %v1653_v10  ;;  %v1971_v61 = vpack.c.bf16 %v1911_v52, %v5079_v5  ;;  %v3147_v23 = vpack.c.bf16 %v1911_v52, %v1911_v52  ;;  %2269 = vst.msk [vmem:[%s4983_s4 + $0x50] sm:$0xf] %vm2248_vm3, %v3144_v62 }
 0x271   : > { %3870 = vpow2.f32 %v1584_v43  ;;  %v3132_v51 = vpack.c.bf16 %v1896_v36, %v1896_v36 }
 0x272   : > { %v3859_v30 = vpop.eup %3858  ;;  %3872 = vrcp.f32 %v1692_v12  ;;  %3469 = vmatmul.mubr.msk.bf16.vlgmr.msra.gmra.mxu1 %vm1167_vm1, %v284_v21  ;;  %2272 = vst.msk [vmem:[%s4983_s4 + $0x5c] sm:$0xf] %vm2248_vm3, %v3147_v23  ;;  %v2444_v47 = vsel %vm1167_vm1, %v1971_v61, 0 }
 0x273   : > { %3485 = vmatpush3.bf16.xpose.msra.mxu1 %v2444_v47  ;;  %v1341_v8 = vpop.xlane.xlu1 %1340  ;;  %2257 = vst.msk [vmem:[%s4983_s4 + $0x20] sm:$0xf] %vm2248_vm3, %v3132_v51  ;;  %v5143_v5 = vmul.f32 %v3859_v30, %v4715_v32  ;;  %3492 = vmatprep.mubr.msk.bf16.mxu1 %vm4035_vm2, %v5609_v53 }
 0x274   : > { %v1716_v46 = vpop.xlane.xlu0 %1715  ;;  %3477 = vmatpush3.bf16.xpose.msra.mxu0 %v2383_v57  ;;  %v1441_v20 = vsub.f32 %v4492_v58, %v1341_v8  ;;  %3486 = vmatprep.subr.bf16.mxu1 %v5609_v53  ;;  %v1969_v57 = vpack.c.bf16 %v5105_v49, %v5068_v35 }
 0x275   : > { %v5149_v63 = vpop.eup %3860  ;;  %3874 = vrcp.f32 %v1716_v46  ;;  %3478 = vmatprep.subr.bf16.mxu0 %v5609_v53  ;;  %v3140_v6 = vpack.c.bf16 %v5143_v5, %v5143_v5 }
 0x276   : > { %v3863_v32 = vpop.eup %3862  ;;  %v1570_v33 = vmul.f32 1.442695, %v1441_v20  ;;  %v1801_v26 = vsel %vm1167_vm1, %v5149_v63, 0.0 }
 0x277   : > { %1802 = vadd.xlane.f32.xlu1 %v1801_v26  ;;  %v1365_v0 = vpop.xlane.xlu1 %1364  ;;  %v1909_v58 = vmul.f32 %v3863_v32, %v5656_v50  ;;  %2265 = vst.msk [vmem:[%s4983_s4 + $0x40] sm:$0xf] %vm2248_vm3, %v3140_v6  ;;  %v2438_v32 = vsel %vm1167_vm1, %v1969_v57, 0  ;;  %v285_v26 = vld [vmem:[%s5117_s8 + $0x2] sm:$0x3] }
 0x278   : > { %3876 = vpow2.f32 %v1570_v33  ;;  %v1686_v55 = vpop.xlane.xlu0 %1685  ;;  %v1449_v14 = vsub.f32 %v4534_v2, %v1365_v0  ;;  %v286_v57 = vld [vmem:[%s5117_s8 + $0x4] sm:$0x3] }
 0x279   : > { %v3865_v29 = vpop.eup %3864  ;;  %3878 = vrcp.f32 %v1686_v55  ;;  %v1970_v24 = vpack.c.bf16 %v1909_v58, %v1908_v4  ;;  %v3145_v13 = vpack.c.bf16 %v1909_v58, %v1909_v58 }
 0x27a   : > { %v5160_v52 = vpop.eup %3866  ;;  %v1586_v62 = vmul.f32 1.442695, %v1449_v14  ;;  %v1897_v43 = vmul.f32 %v3865_v29, %v4728_v34 }
 0x27b   : > { %v1768_v10 = vsel %vm1167_vm1, %v5160_v52, 0.0  ;;  %2270 = vst.msk [vmem:[%s4983_s4 + $0x54] sm:$0xf] %vm2248_vm3, %v3145_v13  ;;  %v2441_v21 = vsel %vm1167_vm1, %v1970_v24, 0  ;;  %v1695_v38 = vpop.xlane.xlu1 %1694 }
 0x27c   : > { %3880 = vpow2.f32 %v1586_v62  ;;  %1769 = vadd.xlane.f32.xlu0 %v1768_v10  ;;  %v1710_v2 = vpop.xlane.xlu0 %1709  ;;  %3487 = vmatpush3.bf16.xpose.msra.mxu1 %v2441_v21  ;;  %v1964_v4 = vpack.c.bf16 %v1897_v43, %v1896_v36  ;;  %v3133_v12 = vpack.c.bf16 %v1897_v43, %v1897_v43 }
 0x27d   : > { %v3869_v61 = vpop.eup %3868  ;;  %3882 = vrcp.f32 %v1710_v2  ;;  %3488 = vmatprep.subr.bf16.mxu1 %v5609_v53 }
 0x27e   : > { %v5169_v34 = vpop.eup %3870  ;;  %3884 = vrcp.f32 %v1695_v38  ;;  %2258 = vst.msk [vmem:[%s4983_s4 + $0x24] sm:$0xf] %vm2248_vm3, %v3133_v12  ;;  %v2380_v23 = vsel %vm1167_vm1, %v1964_v4, 0  ;;  %v1905_v51 = vmul.f32 %v3869_v61, %v4744_v11 }
 0x27f   : > { %v3873_v30 = vpop.eup %3872  ;;  %v1792_v47 = vsel %vm1167_vm1, %v5169_v34, 0.0  ;;  %3479 = vmatpush3.bf16.xpose.msra.mxu0 %v2380_v23  ;;  %v1719_v36 = vpop.xlane.xlu1 %1718 }
 0x280   : > { %1793 = vadd.xlane.f32.xlu0 %v1792_v47  ;;  %v1680_v8 = vpop.xlane.xlu0 %1679  ;;  %3886 = vrcp.f32 %v1719_v36  ;;  %v3141_v46 = vpack.c.bf16 %v1905_v51, %v1905_v51  ;;  %3496 = vmatprep.subr.bf16.mxu0 %v5609_v53  ;;  %v1918_v20 = vmul.f32 %v3873_v30, %v4752_v22 }
 0x281   : > { %3888 = vrcp.f32 %v1680_v8 }
 0x282   : > { %v3875_v11 = vpop.eup %3874  ;;  %2266 = vst.msk [vmem:[%s4983_s4 + $0x44] sm:$0xf] %vm2248_vm3, %v3141_v46  ;;  %v3154_v6 = vpack.c.bf16 %v1918_v20, %v1918_v20 }
 0x283   : > { %v1689_v33 = vpop.xlane.xlu1 %1688  ;;  %v1926_v35 = vmul.f32 %v3875_v11, %v4767_v9  ;;  %v1968_v9 = vpack.c.bf16 %v1905_v51, %v5143_v5 }
 0x284   : > { %v1704_v49 = vpop.xlane.xlu0 %1703  ;;  %3489 = vmatpush3.bf16.xpose.msra.mxu1 %v2438_v32  ;;  %3890 = vrcp.f32 %v1689_v33  ;;  %2279 = vst.msk [vmem:[%s4983_s4 + $0x78] sm:$0xf] %vm2248_vm3, %v3154_v6 }
 0x285   : > { %v5188_v0 = vpop.eup %3876  ;;  %3892 = vrcp.f32 %v1704_v49  ;;  %3490 = vmatprep.subr.bf16.mxu1 %v5609_v53  ;;  %v3162_v22 = vpack.c.bf16 %v1926_v35, %v1926_v35  ;;  %v2435_v10 = vsel %vm1167_vm1, %v1968_v9, 0 }
 0x286   : > { %v3879_v50 = vpop.eup %3878  ;;  %v1771_v58 = vsel %vm1167_vm1, %v5188_v0, 0.0  ;;  %3481 = vmatmul.mubr.msk.bf16.vlgmr.msra.gmra.mxu0 %vm1167_vm1, %v285_v26 }
 0x287   : > { %1772 = vadd.xlane.f32.xlu1 %v1771_v58  ;;  %v1713_v55 = vpop.xlane.xlu1 %1712  ;;  %2287 = vst.msk [vmem:[%s4983_s4 + $0x98] sm:$0xf] %vm2248_vm3, %v3162_v22  ;;  %v5198_v14 = vmul.f32 %v3879_v50, %v4779_v48  ;;  %3504 = vmatprep.mubr.msk.bf16.mxu0 %vm4035_vm2, %v5609_v53 }
 0x288   : > { %v1674_v29 = vpop.xlane.xlu0 %1673  ;;  %3894 = vrcp.f32 %v1713_v55 }
 0x289   : > { %v5202_v24 = vpop.eup %3880  ;;  %3896 = vrcp.f32 %v1674_v29  ;;  %v3152_v13 = vpack.c.bf16 %v5198_v14, %v5198_v14 }
 0x28a   : > { %v3883_v62 = vpop.eup %3882  ;;  %v1795_v5 = vsel %vm1167_vm1, %v5202_v24, 0.0 }
 0x28b   : > { %v3885_v43 = vpop.eup %3884  ;;  %1796 = vadd.xlane.f32.xlu1 %v1795_v5  ;;  %v1683_v48 = vpop.xlane.xlu1 %1682  ;;  %2277 = vst.msk [vmem:[%s4983_s4 + $0x70] sm:$0xf] %vm2248_vm3, %v3152_v13  ;;  %v5212_v21 = vmul.f32 %v3883_v62, %v4791_v19 }
 0x28c   : > { %v1698_v38 = vpop.xlane.xlu0 %1697  ;;  %3491 = vmatpush3.bf16.xpose.msra.mxu1 %v2435_v10  ;;  %3898 = vrcp.f32 %v1683_v48  ;;  %v1919_v2 = vmul.f32 %v3885_v43, %v4785_v17 }
 0x28d   : > { %v3887_v4 = vpop.eup %3886  ;;  %3900 = vrcp.f32 %v1698_v38  ;;  %3508 = vmatprep.subr.bf16.mxu1 %v5609_v53  ;;  %v3160_v12 = vpack.c.bf16 %v5212_v21, %v5212_v21 }
 0x28e   : > { %v3889_v61 = vpop.eup %3888  ;;  %v1975_v23 = vpack.c.bf16 %v1919_v2, %v1918_v20  ;;  %v3155_v51 = vpack.c.bf16 %v1919_v2, %v1919_v2  ;;  %v1927_v19 = vmul.f32 %v3887_v4, %v4801_v56 }
 0x28f   : > { %v1707_v30 = vpop.xlane.xlu1 %1706  ;;  %2285 = vst.msk [vmem:[%s4983_s4 + $0x90] sm:$0xf] %vm2248_vm3, %v3160_v12  ;;  %v5222_v47 = vmul.f32 %v3889_v61, %v4806_v44 }
 0x290   : > { %v1740_v17 = vpop.xlane.xlu0 %1739  ;;  %2280 = vst.msk [vmem:[%s4983_s4 + $0x7c] sm:$0xf] %vm2248_vm3, %v3155_v51  ;;  %v2499_v36 = vsel %vm1167_vm1, %v1975_v23, 0  ;;  %3902 = vrcp.f32 %v1707_v30  ;;  %v1979_v8 = vpack.c.bf16 %v1927_v19, %v1926_v35  ;;  %v3163_v46 = vpack.c.bf16 %v1927_v19, %v1927_v19 }
 0x291   : > { %v3891_v20 = vpop.eup %3890  ;;  %3904 = vrcp.f32 %v1740_v17  ;;  %3497 = vmatpush3.bf16.xpose.msra.mxu0 %v2499_v36  ;;  %v3150_v56 = vpack.c.bf16 %v5222_v47, %v5222_v47 }
 0x292   : > { %v3893_v11 = vpop.eup %3892  ;;  %2288 = vst.msk [vmem:[%s4983_s4 + $0x9c] sm:$0xf] %vm2248_vm3, %v3163_v46  ;;  %v2554_v44 = vsel %vm1167_vm1, %v1979_v8, 0  ;;  %3498 = vmatprep.subr.bf16.mxu0 %v5609_v53  ;;  %v1917_v6 = vmul.f32 %v3891_v20, %v4816_v54 }
 0x293   : > { %3493 = vmatmul.mubr.msk.bf16.vlgmr.msra.gmra.mxu1 %vm1167_vm1, %v286_v57  ;;  %v1677_v32 = vpop.xlane.xlu1 %1676  ;;  %2275 = vst.msk [vmem:[%s4983_s4 + $0x68] sm:$0xf] %vm2248_vm3, %v3150_v56  ;;  %v1922_v33 = vmul.f32 %v3893_v11, %v4822_v41 }
 0x294   : > { %v1764_v26 = vpop.xlane.xlu0 %1763  ;;  %3509 = vmatpush3.bf16.xpose.msra.mxu1 %v2554_v44  ;;  %3906 = vrcp.f32 %v1677_v32  ;;  %v1974_v35 = vpack.c.bf16 %v1917_v6, %v5198_v14  ;;  %v3153_v49 = vpack.c.bf16 %v1917_v6, %v1917_v6  ;;  %3516 = vmatprep.mubr.msk.bf16.mxu1 %vm4035_vm2, %v5609_v53 }
 0x295   : > { %v3895_v22 = vpop.eup %3894  ;;  %3908 = vrcp.f32 %v1764_v26  ;;  %3510 = vmatprep.subr.bf16.mxu1 %v5609_v53  ;;  %v3158_v54 = vpack.c.bf16 %v1922_v33, %v1922_v33 }
 0x296   : > { %v3897_v50 = vpop.eup %3896  ;;  %2278 = vst.msk [vmem:[%s4983_s4 + $0x74] sm:$0xf] %vm2248_vm3, %v3153_v49  ;;  %v2496_v41 = vsel %vm1167_vm1, %v1974_v35, 0  ;;  %v1925_v58 = vmul.f32 %v3895_v22, %v4828_v7  ;;  %v5658_v35 = vld [vmem:[#allocation10_spill] sm:$0xff] }
 0x297   : > { %v1701_v55 = vpop.xlane.xlu1 %1700  ;;  %2283 = vst.msk [vmem:[%s4983_s4 + $0x88] sm:$0xf] %vm2248_vm3, %v3158_v54  ;;  %v1912_v9 = vmul.f32 %v3897_v50, %v4833_v1 }
 0x298   : > { %v1734_v14 = vpop.xlane.xlu0 %1733  ;;  %3910 = vrcp.f32 %v1701_v55  ;;  %v1978_v29 = vpack.c.bf16 %v1925_v58, %v5212_v21  ;;  %v3161_v13 = vpack.c.bf16 %v1925_v58, %v1925_v58 }
 0x299   : > { %v3899_v62 = vpop.eup %3898  ;;  %3912 = vrcp.f32 %v1734_v14  ;;  %3499 = vmatpush3.bf16.xpose.msra.mxu0 %v2496_v41  ;;  %v3148_v5 = vpack.c.bf16 %v1912_v9, %v1912_v9 }
 0x29a   : > { %v3901_v43 = vpop.eup %3900  ;;  %2286 = vst.msk [vmem:[%s4983_s4 + $0x94] sm:$0xf] %vm2248_vm3, %v3161_v13  ;;  %v2551_v7 = vsel %vm1167_vm1, %v1978_v29, 0  ;;  %3500 = vmatprep.subr.bf16.mxu0 %v5609_v53  ;;  %v1915_v10 = vmul.f32 %v3899_v62, %v4837_v40 }
 0x29b   : > { %v1743_v1 = vpop.xlane.xlu1 %1742  ;;  %2273 = vst.msk [vmem:[%s4983_s4 + $0x60] sm:$0xf] %vm2248_vm3, %v3148_v5  ;;  %v1920_v48 = vmul.f32 %v3901_v43, %v4846_v59 }
 0x29c   : > { %v1758_v21 = vpop.xlane.xlu0 %1757  ;;  %3511 = vmatpush3.bf16.xpose.msra.mxu1 %v2551_v7  ;;  %3914 = vrcp.f32 %v1743_v1  ;;  %v1973_v38 = vpack.c.bf16 %v1915_v10, %v5222_v47  ;;  %v3151_v2 = vpack.c.bf16 %v1915_v10, %v1915_v10  ;;  %v287_v10 = vld [vmem:[%s5117_s8 + $0x6] sm:$0x3] }
 0x29d   : > { %v3903_v4 = vpop.eup %3902  ;;  %3916 = vrcp.f32 %v1758_v21  ;;  %3512 = vmatprep.subr.bf16.mxu1 %v5609_v53  ;;  %v3156_v12 = vpack.c.bf16 %v1920_v48, %v1920_v48 }
 0x29e   : > { %v3905_v61 = vpop.eup %3904  ;;  %2276 = vst.msk [vmem:[%s4983_s4 + $0x6c] sm:$0xf] %vm2248_vm3, %v3151_v2  ;;  %v2493_v40 = vsel %vm1167_vm1, %v1973_v38, 0  ;;  %v1923_v23 = vmul.f32 %v3903_v4, %v4852_v16  ;;  %v288_v4 = vld [vmem:[%s5117_s8 + $0x8] sm:$0x3] }
 0x29f   : > { %v1767_v59 = vpop.xlane.xlu1 %1766  ;;  %2281 = vst.msk [vmem:[%s4983_s4 + $0x80] sm:$0xf] %vm2248_vm3, %v3156_v12  ;;  %v1934_v51 = vmul.f32 %v3905_v61, %v4858_v3 }
 0x2a0   : > { %v1728_v19 = vpop.xlane.xlu0 %1727  ;;  %3918 = vrcp.f32 %v1767_v59  ;;  %v1977_v30 = vpack.c.bf16 %v1923_v23, %v1922_v33  ;;  %v3159_v47 = vpack.c.bf16 %v1923_v23, %v1923_v23  ;;  %v5659_v59 = vld [vmem:[#allocation17_spill] sm:$0xff] }
 0x2a1   : > { %v3907_v17 = vpop.eup %3906  ;;  %3920 = vrcp.f32 %v1728_v19  ;;  %3501 = vmatpush3.bf16.xpose.msra.mxu0 %v2493_v40  ;;  %v3170_v36 = vpack.c.bf16 %v1934_v51, %v1934_v51 }
 0x2a2   : > { %v3909_v57 = vpop.eup %3908  ;;  %2284 = vst.msk [vmem:[%s4983_s4 + $0x8c] sm:$0xf] %vm2248_vm3, %v3159_v47  ;;  %v2548_v8 = vsel %vm1167_vm1, %v1977_v30, 0  ;;  %3502 = vmatprep.subr.bf16.mxu0 %v5609_v53  ;;  %v1913_v16 = vmul.f32 %v3907_v17, %v4863_v25  ;;  %v5660_v30 = vld [vmem:[#allocation19_spill] sm:$0xff] }
 0x2a3   : > { %v1737_v46 = vpop.xlane.xlu1 %1736  ;;  %2295 = vst.msk [vmem:[%s4983_s4 + $0xb8] sm:$0xf] %vm2248_vm3, %v3170_v36  ;;  %v5276_v3 = vmul.f32 %v3909_v57, %v4869_v60  ;;  %v5657_v60 = vld [vmem:[#allocation9_spill] sm:$0xff] }
 0x2a4   : > { %v1752_v20 = vpop.xlane.xlu0 %1751  ;;  %3513 = vmatpush3.bf16.xpose.msra.mxu1 %v2548_v8  ;;  %3922 = vrcp.f32 %v1737_v46  ;;  %v1972_v56 = vpack.c.bf16 %v1913_v16, %v1912_v9  ;;  %v3149_v11 = vpack.c.bf16 %v1913_v16, %v1913_v16 }
 0x2a5   : > { %v3911_v44 = vpop.eup %3910  ;;  %3924 = vrcp.f32 %v1752_v20  ;;  %3514 = vmatprep.subr.bf16.mxu1 %v5609_v53  ;;  %v3178_v6 = vpack.c.bf16 %v5276_v3, %v5276_v3  ;;  %v5661_v20 = vld [vmem:[#allocation5_spill] sm:$0xff] }
 0x2a6   : > { %v3913_v25 = vpop.eup %3912  ;;  %2274 = vst.msk [vmem:[%s4983_s4 + $0x64] sm:$0xf] %vm2248_vm3, %v3149_v11  ;;  %v2490_v32 = vsel %vm1167_vm1, %v1972_v56, 0  ;;  %v1921_v33 = vmul.f32 %v3911_v44, %v5657_v60  ;;  %v5662_v44 = vld [vmem:[#allocation11_spill] sm:$0xff] }
 0x2a7   : > { %v1761_v26 = vpop.xlane.xlu1 %1760  ;;  %2303 = vst.msk [vmem:[%s4983_s4 + $0xd8] sm:$0xf] %vm2248_vm3, %v3178_v6  ;;  %v5288_v49 = vmul.f32 %v3913_v25, %v5658_v35 }
 0x2a8   : > { %v1722_v22 = vpop.xlane.xlu0 %1721  ;;  %3926 = vrcp.f32 %v1761_v26  ;;  %v1976_v54 = vpack.c.bf16 %v1921_v33, %v1920_v48  ;;  %v3157_v50 = vpack.c.bf16 %v1921_v33, %v1921_v33 }
 0x2a9   : > { %v3915_v41 = vpop.eup %3914  ;;  %3928 = vrcp.f32 %v1722_v22  ;;  %3503 = vmatpush3.bf16.xpose.msra.mxu0 %v2490_v32  ;;  %v3168_v58 = vpack.c.bf16 %v5288_v49, %v5288_v49  ;;  %v5663_v22 = vld [vmem:[#allocation12_spill] sm:$0xff] }
 0x2aa   : > { %v3917_v55 = vpop.eup %3916  ;;  %2282 = vst.msk [vmem:[%s4983_s4 + $0x84] sm:$0xf] %vm2248_vm3, %v3157_v50  ;;  %v2545_v9 = vsel %vm1167_vm1, %v1976_v54, 0  ;;  %3520 = vmatprep.subr.bf16.mxu0 %v5609_v53  ;;  %v1935_v14 = vmul.f32 %v3915_v41, %v4887_v28  ;;  %v5664_v41 = vld [vmem:[#allocation21_spill] sm:$0xff] }
 0x2ab   : > { %v1731_v29 = vpop.xlane.xlu1 %1730  ;;  %2293 = vst.msk [vmem:[%s4983_s4 + $0xb0] sm:$0xf] %vm2248_vm3, %v3168_v58  ;;  %v5300_v13 = vmul.f32 %v3917_v55, %v4893_v15 }
 0x2ac   : > { %v1746_v62 = vpop.xlane.xlu0 %1745  ;;  %3515 = vmatpush3.bf16.xpose.msra.mxu1 %v2545_v9  ;;  %3930 = vrcp.f32 %v1731_v29  ;;  %v1983_v5 = vpack.c.bf16 %v1935_v14, %v1934_v51  ;;  %v3171_v43 = vpack.c.bf16 %v1935_v14, %v1935_v14 }
 0x2ad   : > { %v3919_v7 = vpop.eup %3918  ;;  %3932 = vrcp.f32 %v1746_v62  ;;  %3532 = vmatprep.subr.bf16.mxu1 %v5609_v53  ;;  %v3176_v28 = vpack.c.bf16 %v5300_v13, %v5300_v13 }
 0x2ae   : > { %v3921_v1 = vpop.eup %3920  ;;  %2296 = vst.msk [vmem:[%s4983_s4 + $0xbc] sm:$0xf] %vm2248_vm3, %v3171_v43  ;;  %v2609_v15 = vsel %vm1167_vm1, %v1983_v5, 0  ;;  %v1943_v48 = vmul.f32 %v3919_v7, %v4899_v45  ;;  %v5665_v5 = vld [vmem:[#allocation6_spill] sm:$0xff] }
 0x2af   : > { %v1755_v21 = vpop.xlane.xlu1 %1754  ;;  %2301 = vst.msk [vmem:[%s4983_s4 + $0xd0] sm:$0xf] %vm2248_vm3, %v3176_v28  ;;  %v5313_v38 = vmul.f32 %v3921_v1, %v4904_v39 }
 0x2b0   : > { %v1788_v2 = vpop.xlane.xlu0 %1787  ;;  %3505 = vmatmul.mubr.msk.bf16.vlgmr.msra.gmra.mxu0 %vm1167_vm1, %v287_v10  ;;  %3934 = vrcp.f32 %v1755_v21  ;;  %v1987_v12 = vpack.c.bf16 %v1943_v48, %v5276_v3  ;;  %v3179_v61 = vpack.c.bf16 %v1943_v48, %v1943_v48  ;;  %v5666_v10 = vld [vmem:[#allocation7_spill] sm:$0xff] }
 0x2b1   : > { %v3923_v40 = vpop.eup %3922  ;;  %3936 = vrcp.f32 %v1788_v2  ;;  %3521 = vmatpush3.bf16.xpose.msra.mxu0 %v2609_v15  ;;  %v3166_v45 = vpack.c.bf16 %v5313_v38, %v5313_v38  ;;  %3528 = vmatprep.mubr.msk.bf16.mxu0 %vm4035_vm2, %v5609_v53 }
 0x2b2   : > { %v3925_v39 = vpop.eup %3924  ;;  %2304 = vst.msk [vmem:[%s4983_s4 + $0xdc] sm:$0xf] %vm2248_vm3, %v3179_v61  ;;  %v2664_v23 = vsel %vm1167_vm1, %v1987_v12, 0  ;;  %3522 = vmatprep.subr.bf16.mxu0 %v5609_v53  ;;  %v1933_v51 = vmul.f32 %v3923_v40, %v5659_v59  ;;  %v5668_v40 = vld [vmem:[#allocation14_spill] sm:$0xff] }
 0x2b3   : > { %3517 = vmatmul.mubr.msk.bf16.vlgmr.msra.gmra.mxu1 %vm1167_vm1, %v288_v4  ;;  %v1725_v19 = vpop.xlane.xlu1 %1724  ;;  %2291 = vst.msk [vmem:[%s4983_s4 + $0xa8] sm:$0xf] %vm2248_vm3, %v3166_v45  ;;  %v1938_v47 = vmul.f32 %v3925_v39, %v5660_v30  ;;  %v5667_v4 = vld [vmem:[#allocation13_spill] sm:$0xff] }
 0x2b4   : > { %v1812_v17 = vpop.xlane.xlu0 %1811  ;;  %3533 = vmatpush3.bf16.xpose.msra.mxu1 %v2664_v23  ;;  %3938 = vrcp.f32 %v1725_v19  ;;  %v1982_v36 = vpack.c.bf16 %v1933_v51, %v5288_v49  ;;  %v3169_v57 = vpack.c.bf16 %v1933_v51, %v1933_v51  ;;  %3540 = vmatprep.mubr.msk.bf16.mxu1 %vm4035_vm2, %v5609_v53 }
 0x2b5   : > { %v3927_v8 = vpop.eup %3926  ;;  %3940 = vrcp.f32 %v1812_v17  ;;  %3534 = vmatprep.subr.bf16.mxu1 %v5609_v53  ;;  %v3174_v16 = vpack.c.bf16 %v1938_v47, %v1938_v47 }
 0x2b6   : > { %v3929_v46 = vpop.eup %3928  ;;  %2294 = vst.msk [vmem:[%s4983_s4 + $0xb4] sm:$0xf] %vm2248_vm3, %v3169_v57  ;;  %v2606_v3 = vsel %vm1167_vm1, %v1982_v36, 0  ;;  %v1941_v56 = vmul.f32 %v3927_v8, %v5661_v20  ;;  %v5670_v36 = vld [vmem:[#allocation8_spill] sm:$0xff] }
 0x2b7   : > { %v1749_v11 = vpop.xlane.xlu1 %1748  ;;  %2299 = vst.msk [vmem:[%s4983_s4 + $0xc8] sm:$0xf] %vm2248_vm3, %v3174_v16  ;;  %v1928_v6 = vmul.f32 %v3929_v46, %v5662_v44 }
 0x2b8   : > { %v1782_v25 = vpop.xlane.xlu0 %1781  ;;  %3942 = vrcp.f32 %v1749_v11  ;;  %v1986_v32 = vpack.c.bf16 %v1941_v56, %v5300_v13  ;;  %v3177_v60 = vpack.c.bf16 %v1941_v56, %v1941_v56  ;;  %v5671_v56 = vld [vmem:[#allocation23_spill] sm:$0xff] }
 0x2b9   : > { %v3931_v33 = vpop.eup %3930  ;;  %3944 = vrcp.f32 %v1782_v25  ;;  %3523 = vmatpush3.bf16.xpose.msra.mxu0 %v2606_v3  ;;  %v3164_v26 = vpack.c.bf16 %v1928_v6, %v1928_v6 }
 0x2ba   : > { %v3933_v35 = vpop.eup %3932  ;;  %2302 = vst.msk [vmem:[%s4983_s4 + $0xd4] sm:$0xf] %vm2248_vm3, %v3177_v60  ;;  %v2661_v49 = vsel %vm1167_vm1, %v1986_v32, 0  ;;  %3524 = vmatprep.subr.bf16.mxu0 %v5609_v53  ;;  %v1931_v54 = vmul.f32 %v3931_v33, %v5663_v22  ;;  %v289_v32 = vld [vmem:[%s5117_s8 + $0xa] sm:$0x3]  ;;  %v5672_v33 = vld [vmem:[#allocation15_spill] sm:$0xff] }
 0x2bb   : > { %v1791_v50 = vpop.xlane.xlu1 %1790  ;;  %2289 = vst.msk [vmem:[%s4983_s4 + $0xa0] sm:$0xf] %vm2248_vm3, %v3164_v26  ;;  %v1936_v58 = vmul.f32 %v3933_v35, %v5664_v41  ;;  %v290_v35 = vld [vmem:[%s5117_s8 + $0xc] sm:$0x3] }
 0x2bc   : > { %3535 = vmatpush3.bf16.xpose.msra.mxu1 %v2661_v49  ;;  %3946 = vrcp.f32 %v1791_v50  ;;  %v1981_v55 = vpack.c.bf16 %v1931_v54, %v5313_v38  ;;  %v3167_v9 = vpack.c.bf16 %v1931_v54, %v1931_v54  ;;  %v5673_v41 = vld [vmem:[#allocation18_spill] sm:$0xff] }
 0x2bd   : > { %v3935_v14 = vpop.eup %3934  ;;  %3536 = vmatprep.subr.bf16.mxu1 %v5609_v53  ;;  %v3172_v29 = vpack.c.bf16 %v1936_v58, %v1936_v58 }
 0x2be   : > { %v3937_v13 = vpop.eup %3936  ;;  %2292 = vst.msk [vmem:[%s4983_s4 + $0xac] sm:$0xf] %vm2248_vm3, %v3167_v9  ;;  %v2603_v62 = vsel %vm1167_vm1, %v1981_v55, 0  ;;  %v1939_v43 = vmul.f32 %v3935_v14, %v5665_v5 }
 0x2bf   : > { %v1815_v7 = vpop.xlane.xlu1 %1814  ;;  %2297 = vst.msk [vmem:[%s4983_s4 + $0xc0] sm:$0xf] %vm2248_vm3, %v3172_v29  ;;  %v1950_v28 = vmul.f32 %v3937_v13, %v5666_v10 }
 0x2c0   : > { %3948 = vrcp.f32 %v1815_v7  ;;  %v1985_v1 = vpack.c.bf16 %v1939_v43, %v1938_v47  ;;  %v3175_v15 = vpack.c.bf16 %v1939_v43, %v1939_v43  ;;  %v5669_v47 = vld [vmem:[#allocation16_spill] sm:$0xff] }
 0x2c1   : > { %v3939_v48 = vpop.eup %3938  ;;  %3525 = vmatpush3.bf16.xpose.msra.mxu0 %v2603_v62  ;;  %v3186_v21 = vpack.c.bf16 %v1950_v28, %v1950_v28 }
 0x2c2   : > { %v3941_v38 = vpop.eup %3940  ;;  %2300 = vst.msk [vmem:[%s4983_s4 + $0xcc] sm:$0xf] %vm2248_vm3, %v3175_v15  ;;  %v2658_v2 = vsel %vm1167_vm1, %v1985_v1, 0  ;;  %3526 = vmatprep.subr.bf16.mxu0 %v5609_v53  ;;  %v1929_v12 = vmul.f32 %v3939_v48, %v5667_v4 }
 0x2c3   : > { %v1785_v61 = vpop.xlane.xlu1 %1784  ;;  %2311 = vst.msk [vmem:[%s4983_s4 + $0xf8] sm:$0xf] %vm2248_vm3, %v3186_v21  ;;  %v1958_v45 = vmul.f32 %v3941_v38, %v5668_v40 }
 0x2c4   : > { %3537 = vmatpush3.bf16.xpose.msra.mxu1 %v2658_v2  ;;  %3950 = vrcp.f32 %v1785_v61  ;;  %v1980_v39 = vpack.c.bf16 %v1929_v12, %v1928_v6  ;;  %v3165_v23 = vpack.c.bf16 %v1929_v12, %v1929_v12 }
 0x2c5   : > { %v3943_v59 = vpop.eup %3942  ;;  %3538 = vmatprep.subr.bf16.mxu1 %v5609_v53  ;;  %v3194_v51 = vpack.c.bf16 %v1958_v45, %v1958_v45 }
 0x2c6   : > { %v3945_v19 = vpop.eup %3944  ;;  %2290 = vst.msk [vmem:[%s4983_s4 + $0xa4] sm:$0xf] %vm2248_vm3, %v3165_v23  ;;  %v2600_v30 = vsel %vm1167_vm1, %v1980_v39, 0  ;;  %v1937_v17 = vmul.f32 %v3943_v59, %v5669_v47 }
 0x2c7   : > { %2319 = vst.msk [vmem:[%s4983_s4 + $0x118] sm:$0xf] %vm2248_vm3, %v3194_v51  ;;  %v1948_v57 = vmul.f32 %v3945_v19, %v5670_v36 }
 0x2c8   : > { %v1984_v8 = vpack.c.bf16 %v1937_v17, %v1936_v58  ;;  %v3173_v16 = vpack.c.bf16 %v1937_v17, %v1937_v17 }
 0x2c9   : > { %v3947_v46 = vpop.eup %3946  ;;  %3527 = vmatpush3.bf16.xpose.msra.mxu0 %v2600_v30  ;;  %v3184_v3 = vpack.c.bf16 %v1948_v57, %v1948_v57 }
 0x2ca   : > { %2298 = vst.msk [vmem:[%s4983_s4 + $0xc4] sm:$0xf] %vm2248_vm3, %v3173_v16  ;;  %v2655_v20 = vsel %vm1167_vm1, %v1984_v8, 0  ;;  %3544 = vmatprep.subr.bf16.mxu0 %v5609_v53  ;;  %v1951_v11 = vmul.f32 %v3947_v46, %v5671_v56 }
 0x2cb   : > { %2309 = vst.msk [vmem:[%s4983_s4 + $0xf0] sm:$0xf] %vm2248_vm3, %v3184_v3 }
 0x2cc   : > { %3539 = vmatpush3.bf16.xpose.msra.mxu1 %v2655_v20  ;;  %v1991_v44 = vpack.c.bf16 %v1951_v11, %v1950_v28  ;;  %v3187_v6 = vpack.c.bf16 %v1951_v11, %v1951_v11 }
 0x2cd   : > { %v3949_v25 = vpop.eup %3948  ;;  %3556 = vmatprep.subr.bf16.mxu1 %v5609_v53 }
 0x2ce   : > { %2312 = vst.msk [vmem:[%s4983_s4 + $0xfc] sm:$0xf] %vm2248_vm3, %v3187_v6  ;;  %v2719_v60 = vsel %vm1167_vm1, %v1991_v44, 0  ;;  %v1959_v26 = vmul.f32 %v3949_v25, %v5672_v33  ;;  %v291_v33 = vld [vmem:[%s5117_s8 + $0xe] sm:$0x3] }
 0x2d0   : > { %3529 = vmatmul.mubr.msk.bf16.vlgmr.msra.gmra.mxu0 %vm1167_vm1, %v289_v32  ;;  %v1995_v49 = vpack.c.bf16 %v1959_v26, %v1958_v45  ;;  %v3195_v22 = vpack.c.bf16 %v1959_v26, %v1959_v26 }
 0x2d1   : > { %v3951_v54 = vpop.eup %3950  ;;  %3545 = vmatpush3.bf16.xpose.msra.mxu0 %v2719_v60  ;;  %3552 = vmatprep.mubr.msk.bf16.mxu0 %vm4035_vm2, %v5609_v53 }
 0x2d2   : > { %2320 = vst.msk [vmem:[%s4983_s4 + $0x11c] sm:$0xf] %vm2248_vm3, %v3195_v22  ;;  %v2774_v50 = vsel %vm1167_vm1, %v1995_v49, 0  ;;  %3546 = vmatprep.subr.bf16.mxu0 %v5609_v53  ;;  %v1949_v58 = vmul.f32 %v3951_v54, %v5673_v41 }
 0x2d3   : > { %3541 = vmatmul.mubr.msk.bf16.vlgmr.msra.gmra.mxu1 %vm1167_vm1, %v290_v35 }
 0x2d4   : > { %3557 = vmatpush3.bf16.xpose.msra.mxu1 %v2774_v50  ;;  %v1990_v55 = vpack.c.bf16 %v1949_v58, %v1948_v57  ;;  %v3185_v9 = vpack.c.bf16 %v1949_v58, %v1949_v58  ;;  %3564 = vmatprep.mubr.msk.bf16.mxu1 %vm4035_vm2, %v5609_v53 }
 0x2d5   : > { %3558 = vmatprep.subr.bf16.mxu1 %v5609_v53 }
 0x2d6   : > { %2310 = vst.msk [vmem:[%s4983_s4 + $0xf4] sm:$0xf] %vm2248_vm3, %v3185_v9  ;;  %v2716_v14 = vsel %vm1167_vm1, %v1990_v55, 0 }
 0x2d9   : > { %3547 = vmatpush3.bf16.xpose.msra.mxu0 %v2716_v14 }
 0x2da   : > { %3548 = vmatprep.subr.bf16.mxu0 %v5609_v53 }
 0x2dd   : > { %v1806_v29 = vpop.xlane.xlu0 %1805 }
 0x2de   : > { %3952 = vrcp.f32 %v1806_v29 }
 0x2e8   : > { %v1809_v13 = vpop.xlane.xlu1 %1808 }
 0x2e9   : > { %v1776_v62 = vpop.xlane.xlu0 %1775  ;;  %3954 = vrcp.f32 %v1809_v13 }
 0x2ea   : > { %3956 = vrcp.f32 %v1776_v62 }
 0x2eb   : > { %v3953_v5 = vpop.eup %3952 }
 0x2ec   : > { %v1956_v43 = vmul.f32 %v3953_v5, %v5023_v27 }
 0x2ee   : > { %v3192_v7 = vpack.c.bf16 %v1956_v43, %v1956_v43 }
 0x2f0   : > { %v1779_v10 = vpop.xlane.xlu1 %1778  ;;  %2317 = vst.msk [vmem:[%s4983_s4 + $0x110] sm:$0xf] %vm2248_vm3, %v3192_v7 }
 0x2f1   : > { %3958 = vrcp.f32 %v1779_v10 }
 0x2f5   : > { %v1800_v28 = vpop.xlane.xlu0 %1799 }
 0x2f6   : > { %v3955_v1 = vpop.eup %3954  ;;  %3960 = vrcp.f32 %v1800_v28 }
 0x2f7   : > { %v3957_v15 = vpop.eup %3956  ;;  %v1957_v48 = vmul.f32 %v3955_v1, %v5057_v37 }
 0x2f8   : > { %v1946_v21 = vmul.f32 %v3957_v15, %v5059_v31 }
 0x2f9   : > { %v1994_v38 = vpack.c.bf16 %v1957_v48, %v1956_v43  ;;  %v3193_v2 = vpack.c.bf16 %v1957_v48, %v1957_v48 }
 0x2fa   : > { %v3182_v4 = vpack.c.bf16 %v1946_v21, %v1946_v21 }
 0x2fb   : > { %2318 = vst.msk [vmem:[%s4983_s4 + $0x114] sm:$0xf] %vm2248_vm3, %v3193_v2  ;;  %v2771_v27 = vsel %vm1167_vm1, %v1994_v38, 0 }
 0x2fc   : > { %3559 = vmatpush3.bf16.xpose.msra.mxu1 %v2771_v27  ;;  %2307 = vst.msk [vmem:[%s4983_s4 + $0xe8] sm:$0xf] %vm2248_vm3, %v3182_v4 }
 0x2fd   : > { %3560 = vmatprep.subr.bf16.mxu1 %v5609_v53 }
 0x2fe   : > { %v3959_v12 = vpop.eup %3958 }
 0x2ff   : > { %v1947_v61 = vmul.f32 %v3959_v12, %v5085_v18 }
 0x300   : > { %v1803_v37 = vpop.xlane.xlu1 %1802 }
 0x301   : > { %3962 = vrcp.f32 %v1803_v37  ;;  %v1989_v31 = vpack.c.bf16 %v1947_v61, %v1946_v21  ;;  %v3183_v40 = vpack.c.bf16 %v1947_v61, %v1947_v61 }
 0x303   : > { %v3961_v45 = vpop.eup %3960  ;;  %2308 = vst.msk [vmem:[%s4983_s4 + $0xec] sm:$0xf] %vm2248_vm3, %v3183_v40  ;;  %v2713_v39 = vsel %vm1167_vm1, %v1989_v31, 0 }
 0x304   : > { %3549 = vmatpush3.bf16.xpose.msra.mxu0 %v2713_v39  ;;  %v1954_v23 = vmul.f32 %v3961_v45, %v5101_v42 }
 0x305   : > { %v1770_v59 = vpop.xlane.xlu0 %1769  ;;  %3550 = vmatprep.subr.bf16.mxu0 %v5609_v53 }
 0x306   : > { %3964 = vrcp.f32 %v1770_v59  ;;  %v3190_v51 = vpack.c.bf16 %v1954_v23, %v1954_v23 }
 0x308   : > { %2315 = vst.msk [vmem:[%s4983_s4 + $0x108] sm:$0xf] %vm2248_vm3, %v3190_v51 }
 0x309   : > { %v1794_v18 = vpop.xlane.xlu0 %1793 }
 0x30a   : > { %3966 = vrcp.f32 %v1794_v18 }
 0x30e   : > { %v3963_v19 = vpop.eup %3962 }
 0x30f   : > { %v1955_v30 = vmul.f32 %v3963_v19, %v5149_v63 }
 0x310   : > { %v1773_v47 = vpop.xlane.xlu1 %1772 }
 0x311   : > { %3968 = vrcp.f32 %v1773_v47  ;;  %v1993_v17 = vpack.c.bf16 %v1955_v30, %v1954_v23  ;;  %v3191_v36 = vpack.c.bf16 %v1955_v30, %v1955_v30 }
 0x313   : > { %v3965_v57 = vpop.eup %3964  ;;  %2316 = vst.msk [vmem:[%s4983_s4 + $0x10c] sm:$0xf] %vm2248_vm3, %v3191_v36  ;;  %v2768_v42 = vsel %vm1167_vm1, %v1993_v17, 0 }
 0x314   : > { %3561 = vmatpush3.bf16.xpose.msra.mxu1 %v2768_v42  ;;  %v1797_v8 = vpop.xlane.xlu1 %1796  ;;  %v1944_v16 = vmul.f32 %v3965_v57, %v5160_v52 }
 0x315   : > { %3970 = vrcp.f32 %v1797_v8  ;;  %3562 = vmatprep.subr.bf16.mxu1 %v5609_v53 }
 0x316   : > { %v3180_v46 = vpack.c.bf16 %v1944_v16, %v1944_v16 }
 0x317   : > { %v3967_v63 = vpop.eup %3966 }
 0x318   : > { %2305 = vst.msk [vmem:[%s4983_s4 + $0xe0] sm:$0xf] %vm2248_vm3, %v3180_v46  ;;  %v1952_v3 = vmul.f32 %v3967_v63, %v5169_v34 }
 0x31a   : > { %v3188_v20 = vpack.c.bf16 %v1952_v3, %v1952_v3 }
 0x31c   : > { %2313 = vst.msk [vmem:[%s4983_s4 + $0x100] sm:$0xf] %vm2248_vm3, %v3188_v20 }
 0x31e   : > { %v3969_v56 = vpop.eup %3968 }
 0x31f   : > { %v1945_v11 = vmul.f32 %v3969_v56, %v5188_v0  ;;  %v292_v0 = vld [vmem:[%s5117_s8 + $0x10] sm:$0x3] }
 0x321   : > { %v1988_v44 = vpack.c.bf16 %v1945_v11, %v1944_v16  ;;  %v3181_v52 = vpack.c.bf16 %v1945_v11, %v1945_v11 }
 0x322   : > { %v3971_v6 = vpop.eup %3970 }
 0x323   : > { %2306 = vst.msk [vmem:[%s4983_s4 + $0xe4] sm:$0xf] %vm2248_vm3, %v3181_v52  ;;  %v2710_v53 = vsel %vm1167_vm1, %v1988_v44, 0  ;;  %v1953_v25 = vmul.f32 %v3971_v6, %v5202_v24 }
 0x324   : > { %3551 = vmatpush3.bf16.xpose.msra.mxu0 %v2710_v53 }
 0x325   : > { %v1992_v34 = vpack.c.bf16 %v1953_v25, %v1952_v3  ;;  %v3189_v32 = vpack.c.bf16 %v1953_v25, %v1953_v25 }
 0x327   : > { %2314 = vst.msk [vmem:[%s4983_s4 + $0x104] sm:$0xf] %vm2248_vm3, %v3189_v32  ;;  %v2765_v60 = vsel %vm1167_vm1, %v1992_v34, 0 }
 0x328   : > { %3563 = vmatpush3.bf16.xpose.msra.mxu1 %v2765_v60 }
 0x32b   : > { %3553 = vmatmul.mubr.msk.bf16.vlgmr.msra.gmra.mxu0 %vm1167_vm1, %v291_v33 }
 0x32f   : > { %3565 = vmatmul.mubr.msk.bf16.vlgmr.msra.gmra.mxu1 %vm1167_vm1, %v292_v0 }
 0x332   : > { %v2370_v24 = vpop.f32.mrf.mxu1 }
 0x333   : > { %v2816_v26 = vpack.c.bf16 %v2370_v24, %v2370_v24 }
 0x334   : > { %v3470_v35 = vpop.f32.mrf.mxu1 }
 0x335   : > { %2826 = vst.msk [vmem:[%s5453_s11] sm:$0x3] %vm2825_vm4, %v2816_v26 }
 0x336   : > { %v2373_v49 = vpop.f32.mrf.mxu1 }
 0x338   : > { %v3471_v22 = vpop.f32.mrf.mxu1 }
 0x346   : > { %v2425_v54 = vpop.f32.mrf.mxu0 }
 0x347   : > { %v2817_v50 = vpack.c.bf16 %v2425_v54, %v2425_v54 }
 0x348   : > { %v3482_v41 = vpop.f32.mrf.mxu0 }
 0x349   : > { %2827 = vst.msk [vmem:[%s5453_s11 + $0x2] sm:$0x3] %vm2825_vm4, %v2817_v50 }
 0x34a   : > { %v2428_v58 = vpop.f32.mrf.mxu0 }
 0x34c   : > { %v3483_v55 = vpop.f32.mrf.mxu0 }
 0x353   : > { %v2480_v9 = vpop.f32.mrf.mxu1 }
 0x354   : > { %v2818_v14 = vpack.c.bf16 %v2480_v9, %v2480_v9 }
 0x355   : > { %v3494_v29 = vpop.f32.mrf.mxu1 }
 0x356   : > { %2828 = vst.msk [vmem:[%s5453_s11 + $0x4] sm:$0x3] %vm2825_vm4, %v2818_v14 }
 0x357   : > { %v2483_v13 = vpop.f32.mrf.mxu1 }
 0x359   : > { %v3495_v62 = vpop.f32.mrf.mxu1 }
 0x370   : > { %v2535_v5 = vpop.f32.mrf.mxu0 }
 0x371   : > { %v2819_v43 = vpack.c.bf16 %v2535_v5, %v2535_v5 }
 0x372   : > { %v3506_v7 = vpop.f32.mrf.mxu0 }
 0x373   : > { %2829 = vst.msk [vmem:[%s5453_s11 + $0x6] sm:$0x3] %vm2825_vm4, %v2819_v43  ;;  %v2590_v10 = vpop.f32.mrf.mxu1 }
 0x374   : > { %v2820_v28 = vpack.c.bf16 %v2590_v10, %v2590_v10  ;;  %v2538_v1 = vpop.f32.mrf.mxu0 }
 0x375   : > { %v3518_v15 = vpop.f32.mrf.mxu1 }
 0x376   : > { %2830 = vst.msk [vmem:[%s5453_s11 + $0x8] sm:$0x3] %vm2825_vm4, %v2820_v28  ;;  %v3507_v48 = vpop.f32.mrf.mxu0 }
 0x377   : > { %v2593_v21 = vpop.f32.mrf.mxu1 }
 0x379   : > { %v3519_v38 = vpop.f32.mrf.mxu1 }
 0x37a   : > { %3985 = shalt.err (!%p3982_p3)
}
 0x37b   : > { %s3986_s29 = scalar_lea.hbm %s5470_s25, 4608  ;;  %s3990_s6 = scalar_lea.hbm %s5527_s3, 9216 }
 0x37c   : > { %p3987_p4 = scmp.ne.s32.totalorder %s5470_s25, %s3986_s29  ;;  %p3991_p9 = scmp.lt.s32.totalorder %s5470_s25, %s5527_s3 }
 0x37d   : > { %p3992_p10 = scmp.lt.s32.totalorder %s3990_s6, %s3986_s29 }
 0x37e   : > { %p3988_p7 = pnand %p3987_p4, %p4097_p5 }
 0x37f   : > { %p3993_p11 = por %p3992_p10, %p3991_p9 }
 0x380   : > { %p3989_p8 = pneg %p3988_p7 }
 0x382   : > { %p3994_p12 = pnand %p3993_p11, %p3989_p8 }
 0x384   : > { %3997 = shalt.err (!%p3994_p12)
}
 0x385   : > { %s4037_s9 = smov 64   ;;  %s4038_s10 = smov 4  }
 0x386   : > { %3605 = dma.vmem_to_hbm [thread:$0]  (%p4097_p5), %s5472_s19, 4608, %s5470_s25, %s5476_s26, %s4037_s9, %s4037_s9, %s4038_s10  }
 0x390   : > { %v2645_v2 = vpop.f32.mrf.mxu0 }
 0x391   : > { %v2821_v4 = vpack.c.bf16 %v2645_v2, %v2645_v2 }
 0x392   : > { %v3530_v27 = vpop.f32.mrf.mxu0 }
 0x393   : > { %2831 = vst.msk [vmem:[%s5453_s11 + $0xa] sm:$0x3] %vm2825_vm4, %v2821_v4  ;;  %v2700_v12 = vpop.f32.mrf.mxu1 }
 0x394   : > { %v2822_v61 = vpack.c.bf16 %v2700_v12, %v2700_v12  ;;  %v2648_v37 = vpop.f32.mrf.mxu0 }
 0x395   : > { %v3542_v31 = vpop.f32.mrf.mxu1 }
 0x396   : > { %2832 = vst.msk [vmem:[%s5453_s11 + $0xc] sm:$0x3] %vm2825_vm4, %v2822_v61  ;;  %v3531_v40 = vpop.f32.mrf.mxu0 }
 0x397   : > { %v2703_v45 = vpop.f32.mrf.mxu1 }
 0x399   : > { %v3543_v39 = vpop.f32.mrf.mxu1 }
 0x3eb   : > { %v2755_v23 = vpop.f32.mrf.mxu0 }
 0x3ec   : > { %v2823_v59 = vpack.c.bf16 %v2755_v23, %v2755_v23 }
 0x3ed   : > { %v3554_v51 = vpop.f32.mrf.mxu0 }
 0x3ee   : > { %2833 = vst.msk [vmem:[%s5453_s11 + $0xe] sm:$0x3] %vm2825_vm4, %v2823_v59 }
 0x3ef   : > { %v2758_v18 = vpop.f32.mrf.mxu0  ;;  %v2810_v19 = vpop.f32.mrf.mxu1 }
 0x3f0   : > { %v2824_v30 = vpack.c.bf16 %v2810_v19, %v2810_v19 }
 0x3f1   : > { %v3555_v47 = vpop.f32.mrf.mxu0  ;;  %v3566_v17 = vpop.f32.mrf.mxu1 }
 0x3f2   : > { %2834 = vst.msk [vmem:[%s5453_s11 + $0x10] sm:$0x3] %vm2825_vm4, %v2824_v30 }
 0x3f3   : > { %v2813_v36 = vpop.f32.mrf.mxu1 }
 0x3f5   : > { %v3567_v57 = vpop.f32.mrf.mxu1 }
 0x3f6 PF: > { %p3611_p5 = scmp.ge.s32.totalorder %s4032_s15, 2  ;;  %s2882_s22 = sand.u32 1, %s4020_s12  }
 0x3f7   : > { %s2883_s17 = scalar_lea.sflag [#allocation3], %s2882_s22 }
 0x3f8   : > { %p3608_p13 = pnand %p3611_p5, %p4101_p6 }
 0x3fa   : > { %p3609_p0 = pneg %p3608_p13 }
 0x3fc   : > { %4015 = dma.done.wait (%p3609_p0), %s2883_s17, 4608  }
 0x3fd   : > { %4017 = vsyncadd (%p3609_p0), %s2883_s17, 4294962688  ;;  %p14_p1 = scmp.ge.s32.totalorder %s4084_s18, 4   ;;  %s5674_s12 = smov %s4024_s13 }
 0x3fe   : > { %s5675_s13 = smov %s4028_s14  ;;  %s5676_s14 = smov %s4095_s21 }
 0x3ff   : > { %s5677_s15 = smov %s4084_s18  ;;  %16 = sbr.rel (!%p14_p1) target bundleno = 3 (0x3), region = 78 }
 0x404   :  { %2888 = vsyncpa [#allocation3], 1 }
 0x405   :  { %2890 = vsyncpa [#allocation3 + $0x1], 1 }

// kernel: gmsa_forward.9
= control target key start
LH: loop header
LB: loop body
LE: loop exit
PB: predicated region body
PF: predicated region fallthrough
CT: control target
= control target key end

     0   :  { %s616_s12 = smov 0   ;;  %s618_s13 = smov 0   ;;  %s679_s0 = inlined_call_operand.vmem [shape: bf16[2,12,576], index: 0, kind: input, shape index: {}]   ;;  %s680_s1 = inlined_call_operand.vmem [shape: bf16[12,12], index: 1, kind: input, shape index: {}]   ;;  %s681_s2 = inlined_call_operand.vmem [shape: f32[12,1], index: 2, kind: input, shape index: {}]   ;;  %s682_s3 = inlined_call_operand.vmem [shape: f32[2,12,576], index: 3, kind: output, shape index: {}]  }
   0x1   :  { %s620_s14 = smov 0  }
   0x2 LB: > { %s25_s15 = sadd.s32 1, %s587_s13  ;;  %p507_p0 = scmp.ge.s32.totalorder %s591_s14, 1  ;;  %s591_s14 = sphi %s620_s14, %s13_s14   ;;  %s587_s13 = sphi %s618_s13, %s684_s13   ;;  %s583_s12 = sphi %s616_s12, %s683_s12  }
   0x3   : > { %p27_p1 = scmp.ge.s32.totalorder %s25_s15, 2  ;;  %p158_p2 = scmp.lt.s32.totalorder %s591_s14, 3 }
   0x5   : > { %s686_s15 = smov (%p27_p1, %s25_s15), 0  ;;  %p159_p3 = pnand %p507_p0, %p158_p2 }
   0x6   : > { %p191_p4 = scmp.lt.s32.totalorder (!%p159_p3), %s583_s12, 1 }
   0x7   : > { %162 = sbr.rel (%p159_p3) target bundleno = 230 (0xe6), region = 32 }
   0xc   : > { %v593_v0 = vmov 0   ;;  %s688_s12 = smov (!%p191_p4, %s583_s12), 1  ;;  %v219_v1 = vld [vmem:[%s681_s2] sm:$0xff]  ;;  %v220_v2 = vld [vmem:[%s681_s2 + $0x8] sm:$0xf]  ;;  %vm261_vm0 = vcmask 1045504  }
   0xd   : > { %309 = vmatprep.mubr.bf16.mxu0 %v593_v0  ;;  %352 = vmatprep.mubr.bf16.mxu1 %v593_v0  ;;  %s531_s18 = smul.u32 40, %s688_s12  ;;  %v567_v5 = vld [vmem:[%s680_s1] sm:$0x3f]   ;;  %vm257_vm1 = vcmask 97280   ;;  %v594_v11 = vmov 0.0   ;;  %vm595_vm2 = vmmov 0  }
   0xe   : > { %560 = vset.pattern.permute.xlu0 %v593_v0  ;;  %s532_s26 = smul.u32 80, %s688_s12  ;;  %vm408_vm3 = vcmask 523264   ;;  %vm414_vm4 = vcmask 519168  }
   0xf   : > { %223 = vperm.xlu0 %560, %v219_v1   ;;  %s198_s23 = scalar_lea.vmem %s679_s0, %s531_s18 }
  0x10   : > { %v561_v3 = vld [vmem:[%s198_s23 + $0x4] ss:$20 sps:$4 sm:$0x3f]   ;;  %v563_v4 = vld [vmem:[%s198_s23] ss:$20 sps:$4 sm:$0x3f]   ;;  %s658_s29 = scalar_lea.vmem %s682_s3, %s532_s26 }
  0x11   : > { %516 = vmatprep.subr.msk.bf16.mxu0 %vm261_vm0, %v561_v3  ;;  %v564_v6 = vld [vmem:[%s198_s23 + $0xc] ss:$20 sps:$4 sm:$0x3f]   ;;  %v566_v7 = vld [vmem:[%s198_s23 + $0x8] ss:$20 sps:$4 sm:$0x3f]  }
  0x12   : > { %v263_v8 = vsel %vm261_vm0, %v563_v4, 0  ;;  %518 = vmatprep.subr.msk.bf16.mxu1 %vm261_vm0, %v564_v6  ;;  %v269_v9 = vsel %vm261_vm0, %v566_v7, 0  ;;  %v568_v10 = vld [vmem:[%s198_s23 + $0x10] ss:$20 sps:$4 sm:$0x3f]  }
  0x13   : > { %228 = vperm.xlu0 %560, %v220_v2   ;;  %292 = vmatpush1.bf16.msra.mxu0 %v263_v8  ;;  %v275_v12 = vsel %vm261_vm0, %v568_v10, 0 }
  0x14   : > { %335 = vmatpush1.bf16.msra.mxu1 %v269_v9  ;;  %525 = vmatprep.subr.bf16.mxu0 %v594_v11 }
  0x16   : > { %517 = vmatmul.mubr.msk.bf16.vlgmr.msra.gmra.mxu0 %vm257_vm1, %v567_v5 }
  0x17   : > { %519 = vmatmul.mubr.msk.bf16.vlgmr.msra.gmra.mxu1 %vm257_vm1, %v567_v5  ;;  %526 = vmatpush3.bf16.msra.mxu0 %v275_v12 }
  0x18   : > { %527 = vmatprep.mubr.msk.bf16.mxu0 %vm595_vm2, %v594_v11 }
  0x1e   : > { %528 = vmatmul.mubr.msk.bf16.vlgmr.msra.gmra.mxu0 %vm257_vm1, %v567_v5 }
  0x8a   : > { %v224_v13 = vpop.permute.xlu0 %223 }
  0x8e   : > { %v229_v19 = vpop.permute.xlu0 %228 }
  0xd6   : > { %v311_v14 = vpop.f32.mrf.mxu0 }
  0xd7   : > { %v312_v15 = vadd.f32 %v311_v14, %v224_v13  ;;  %v354_v16 = vpop.f32.mrf.mxu1 }
  0xd8   : > { %v355_v17 = vadd.f32 %v354_v16, %v224_v13  ;;  %v313_v18 = vpop.f32.mrf.mxu0 }
  0xd9   : > { %404 = vst [vmem:[%s658_s29] sm:$0xff] %v312_v15  ;;  %v314_v20 = vadd.f32 %v313_v18, %v224_v13  ;;  %v356_v21 = vpop.f32.mrf.mxu1 }
  0xda   : > { %406 = vst [vmem:[%s658_s29 + $0x10] sm:$0xff] %v355_v17  ;;  %v357_v22 = vadd.f32 %v356_v21, %v224_v13  ;;  %v315_v23 = vpop.f32.mrf.mxu0 }
  0xdb   : > { %405 = vst [vmem:[%s658_s29 + $0x8] sm:$0xff] %v314_v20  ;;  %v316_v24 = vadd.f32 %v315_v23, %v229_v19  ;;  %v358_v25 = vpop.f32.mrf.mxu1 }
  0xdc   : > { %407 = vst [vmem:[%s658_s29 + $0x18] sm:$0xff] %v357_v22  ;;  %v359_v26 = vadd.f32 %v358_v25, %v229_v19  ;;  %v317_v27 = vpop.f32.mrf.mxu0 }
  0xdd   : > { %410 = vst [vmem:[%s658_s29 + $0x28] sm:$0xf] %v316_v24  ;;  %v318_v28 = vadd.f32 %v317_v27, %v229_v19  ;;  %v360_v29 = vpop.f32.mrf.mxu1 }
  0xde   : > { %412 = vst [vmem:[%s658_s29 + $0x38] sm:$0xf] %v359_v26  ;;  %v361_v30 = vadd.f32 %v360_v29, %v229_v19  ;;  %v397_v31 = vpop.f32.mrf.mxu0 }
  0xdf   : > { %411 = vst [vmem:[%s658_s29 + $0x30] sm:$0xf] %v318_v28  ;;  %v398_v32 = vadd.f32 %v397_v31, %v224_v13 }
  0xe0   : > { %413 = vst [vmem:[%s658_s29 + $0x40] sm:$0xf] %v361_v30  ;;  %v529_v33 = vpop.f32.mrf.mxu0 }
  0xe1   : > { %409 = vst.msk [vmem:[%s658_s29 + $0x20] sm:$0xff] %vm408_vm3, %v398_v32 }
  0xe2   : > { %v400_v34 = vpop.f32.mrf.mxu0 }
  0xe3   : > { %v401_v35 = vadd.f32 %v400_v34, %v229_v19 }
  0xe4   : > { %v530_v36 = vpop.f32.mrf.mxu0 }
  0xe5   : > { %415 = vst.msk [vmem:[%s658_s29 + $0x48] sm:$0xf] %vm414_vm4, %v401_v35 }
  0xe6 PF: > { %s13_s14 = sadd.s32 1, %s591_s14   ;;  %s683_s12 = smov %s587_s13 }
  0xe7   : > { %p10_p5 = scmp.ge.s32.totalorder %s13_s14, 4   ;;  %s684_s13 = smov %s686_s15 }
  0xe9   :  { %12 = sbr.rel (!%p10_p5) target bundleno = 2 (0x2), region = 62 }

// kernel: gmsa_forward.8
= control target key start
LH: loop header
LB: loop body
LE: loop exit
PB: predicated region body
PF: predicated region fallthrough
CT: control target
= control target key end

     0   :  { %9 = vsyncpa [#allocation3], 0  ;;  %s6476_s0 = inlined_call_operand.vmem [shape: bf16[8,144,4], index: 0, kind: input, shape index: {}]   ;;  %s6477_s1 = inlined_call_operand.vmem [shape: bf16[8,4,144], index: 1, kind: input, shape index: {}]   ;;  %s6478_s2 = inlined_call_operand.vmem [shape: bf16[8,4,144], index: 2, kind: output, shape index: {0}]   ;;  %s6479_s3 = inlined_call_operand.hbm [shape: bf16[8,144,144], index: 3, kind: output, shape index: {1}]  }
   0x1   :  { %11 = vsyncpa [#allocation3 + $0x1], 0  ;;  %s4200_s12 = smov 0   ;;  %s4202_s13 = smov 0  }
   0x2   :  { %s4204_s14 = smov 0   ;;  %s4206_s15 = smov 0  }
   0x3 LB: > { %s4221_s16 = sadd.s32 4294967295, %s4173_s15   ;;  %s3314_s17 = sadd.s32 4294967294, %s4173_s15   ;;  %s4173_s15 = sphi %s4206_s15, %s7106_s15   ;;  %s4169_s14 = sphi %s4204_s14, %s7105_s14   ;;  %s4165_s13 = sphi %s4202_s13, %s7104_s13   ;;  %s4161_s12 = sphi %s4200_s12, %s7103_s12  }
   0x4   : > { %s4225_s18 = sadd.s32 1, %s4173_s15   ;;  %s102_s19 = sadd.s32 1, %s4169_s14 }
   0x5   : > { %s99_s20 = ssub.s32 %s4173_s15, %s4225_s18  ;;  %p112_p0 = scmp.ne.s32.totalorder %s4169_s14, %s4165_s13 }
   0x6   : > { %p100_p1 = scmp.eq.s32.totalorder %s99_s20, 0  ;;  %p113_p2 = scmp.eq.s32.totalorder %s4221_s16, 1 }
   0x7   : > { %p118_p3 = scmp.ne.s32.totalorder %s4165_s13, %s4161_s12  ;;  %p119_p4 = scmp.eq.s32.totalorder %s3314_s17, 1 }
   0x8   : > { %s4236_s21 = scalar_select %p100_p1, %s4169_s14, %s102_s19  }
   0x9   : > { %p4238_p5 = por %p113_p2, %p112_p0  ;;  %p4242_p6 = por %p119_p4, %p118_p3 }
   0xa   : > { %p3317_p7 = scmp.ge.s32.totalorder %s4173_s15, 1  ;;  %p157_p8 = scmp.lt.s32.totalorder %s4173_s15, 3 }
   0xc   : > { %p158_p9 = pnand %p3317_p7, %p157_p8 }
   0xe   : > { %161 = sbr.rel (%p158_p9) target bundleno = 1090 (0x442), region = 28 }
  0x13   : > { %s3318_s24 = sshll.u32 %s4221_s16, 2  ;;  %v4175_v0 = vmov 0   ;;  %vm338_vm0 = vcmask 31744   ;;  %vm1074_vm1 = vcmask 130048   ;;  %s191_s6 = sand.u32 1, %s4165_s13   ;;  %vm2731_vm2 = vcmask 1043456  }
  0x14   : > { %366 = vmatprep.subr.bf16.mxu0 %v4175_v0  ;;  %561 = vmatprep.subr.bf16.mxu1 %v4175_v0  ;;  %p195_p10 = scmp.lt.s32.totalorder %s3318_s24, 7  ;;  %s3597_s7 = smul.u32 576, %s191_s6  ;;  %vm2732_vm3 = vcmask 130052   ;;  %vm3182_vm5 = vcmask 1041408   ;;  %vm3183_vm6 = vcmask 125954  }
  0x15   : > { %398 = vmatprep.mubr.bf16.mxu0 %v4175_v0  ;;  %593 = vmatprep.mubr.bf16.mxu1 %v4175_v0  ;;  %vm5750_vm4 = vmor %vm2732_vm3, %vm2731_vm2  ;;  %s3599_s17 = smul.u32 9216, %s4221_s16  ;;  %s6430_s26 = scalar_lea.sflag [#allocation3], %s191_s6 }
  0x16   : > { %s7108_s24 = smov (!%p195_p10, %s3318_s24), 7  ;;  %s5759_s8 = scalar_lea.vmem [#allocation2], %s3597_s7  ;;  %vm6409_vm7 = vmor %vm3183_vm6, %vm3182_vm5 }
  0x17   : > { %s3598_s25 = smul.u32 72, %s7108_s24  ;;  %s3523_s29 = sshll.u32 %s7108_s24, 2 }
  0x18   : > { %s5704_s5 = scalar_lea.vmem %s6477_s1, %s3523_s29  ;;  %s6407_s11 = scalar_lea.vmem %s6478_s2, %s3523_s29 }
  0x19   : > { %s4259_s28 = scalar_lea.vmem %s6476_s0, %s3598_s25  ;;  %s3214_s19 = sshll.u32 %s5759_s8, 4  ;;  %s6426_s19 = int_to_ptr.vmem [resolvable:$true] %s3214_s19 }
  0x1a   : > { %v4262_v1 = vld [vmem:[%s4259_s28 + $0x38] sm:$0xff]   ;;  %v4265_v2 = vld [vmem:[%s4259_s28 + $0x80] sm:$0xff]   ;;  %v4273_v5 = vld [vmem:[%s4259_s28 + $0x30] sm:$0xff]   ;;  %s6424_s25 = scalar_lea.hbm %s6479_s3, %s3599_s17  ;;  %s4113_s27 = scalar_lea.vmem %s6426_s19, 9216 }
  0x1b   : > { %v361_v3 = vsel %vm338_vm0, %v4262_v1, 0  ;;  %v556_v4 = vsel %vm338_vm0, %v4265_v2, 0  ;;  %v4277_v6 = vld [vmem:[%s4259_s28 + $0x78] sm:$0xff]   ;;  %v358_v7 = vsel %vm338_vm0, %v4273_v5, 0  ;;  %v4285_v9 = vld [vmem:[%s4259_s28 + $0x28] sm:$0xff]   ;;  %v4289_v10 = vld [vmem:[%s4259_s28 + $0x70] sm:$0xff]   ;;  %p4114_p11 = scmp.ne.s32.totalorder %s6426_s19, %s4113_s27 }
  0x1c   : > { %367 = vmatpush1.bf16.xpose.msra.mxu0 %v361_v3  ;;  %562 = vmatpush1.bf16.xpose.msra.mxu1 %v556_v4  ;;  %v553_v8 = vsel %vm338_vm0, %v4277_v6, 0  ;;  %v355_v11 = vsel %vm338_vm0, %v4285_v9, 0  ;;  %v550_v12 = vsel %vm338_vm0, %v4289_v10, 0  ;;  %v4297_v13 = vld [vmem:[%s4259_s28 + $0x20] sm:$0xff]   ;;  %v4301_v14 = vld [vmem:[%s4259_s28 + $0x68] sm:$0xff]   ;;  %v4309_v17 = vld [vmem:[%s4259_s28 + $0x18] sm:$0xff]  }
  0x1d   : > { %368 = vmatprep.subr.bf16.mxu0 %v4175_v0  ;;  %563 = vmatprep.subr.bf16.mxu1 %v4175_v0  ;;  %v352_v15 = vsel %vm338_vm0, %v4297_v13, 0  ;;  %v547_v16 = vsel %vm338_vm0, %v4301_v14, 0  ;;  %v4313_v18 = vld [vmem:[%s4259_s28 + $0x60] sm:$0xff]   ;;  %v349_v19 = vsel %vm338_vm0, %v4309_v17, 0  ;;  %v3653_v21 = vld [vmem:[%s4259_s28 + $0x10] sm:$0xff]   ;;  %v3654_v22 = vld [vmem:[%s4259_s28 + $0x58] sm:$0xff]   ;;  %p4115_p12 = pnand %p4114_p11, %p4238_p5 }
  0x1e   : > { %v544_v20 = vsel %vm338_vm0, %v4313_v18, 0  ;;  %v346_v23 = vsel %vm338_vm0, %v3653_v21, 0  ;;  %v541_v24 = vsel %vm338_vm0, %v3654_v22, 0  ;;  %v3655_v25 = vld [vmem:[%s4259_s28 + $0x8] sm:$0xff]   ;;  %v3656_v26 = vld [vmem:[%s4259_s28 + $0x50] sm:$0xff]   ;;  %v3657_v29 = vld [vmem:[%s4259_s28] sm:$0xff]  }
  0x1f   : > { %v343_v27 = vsel %vm338_vm0, %v3655_v25, 0  ;;  %v538_v28 = vsel %vm338_vm0, %v3656_v26, 0  ;;  %v3658_v30 = vld [vmem:[%s4259_s28 + $0x48] sm:$0xff]   ;;  %v340_v31 = vsel %vm338_vm0, %v3657_v29, 0  ;;  %v4339_v33 = vld [vmem:[%s4259_s28 + $0x40] sm:$0xff]   ;;  %v4355_v38 = vld [vmem:[%s4259_s28 + $0x110] sm:$0xff]   ;;  %p4116_p13 = pneg %p4115_p12 }
  0x20   : > { %v535_v32 = vsel %vm338_vm0, %v3658_v30, 0  ;;  %v4343_v34 = vld [vmem:[%s4259_s28 + $0x88] sm:$0xff]   ;;  %v364_v35 = vsel %vm338_vm0, %v4339_v33, 0  ;;  %v946_v40 = vsel %vm338_vm0, %v4355_v38, 0  ;;  %v4365_v41 = vld [vmem:[%s4259_s28 + $0xc0] sm:$0xff]   ;;  %v4381_v45 = vld [vmem:[%s4259_s28 + $0xb8] sm:$0xff]  }
  0x21   : > { %v559_v36 = vsel %vm338_vm0, %v4343_v34, 0  ;;  %v4351_v37 = vld [vmem:[%s4259_s28 + $0xc8] sm:$0xff]   ;;  %v748_v43 = vsel %vm338_vm0, %v4365_v41, 0  ;;  %v4386_v46 = vld [vmem:[%s4259_s28 + $0x100] sm:$0xff]   ;;  %v745_v47 = vsel %vm338_vm0, %v4381_v45, 0  ;;  %v4397_v49 = vld [vmem:[%s4259_s28 + $0xb0] sm:$0xff]  }
  0x22   : > { %v751_v39 = vsel %vm338_vm0, %v4351_v37, 0  ;;  %v4370_v42 = vld [vmem:[%s4259_s28 + $0x108] sm:$0xff]   ;;  %v940_v48 = vsel %vm338_vm0, %v4386_v46, 0  ;;  %v4402_v50 = vld [vmem:[%s4259_s28 + $0xf8] sm:$0xff]   ;;  %v742_v51 = vsel %vm338_vm0, %v4397_v49, 0  ;;  %v4420_v54 = vld [vmem:[%s4259_s28 + $0xf0] sm:$0xff]  }
  0x23   : > { %v943_v44 = vsel %vm338_vm0, %v4370_v42, 0  ;;  %v937_v52 = vsel %vm338_vm0, %v4402_v50, 0  ;;  %v4415_v53 = vld [vmem:[%s4259_s28 + $0xa8] sm:$0xff]   ;;  %v934_v56 = vsel %vm338_vm0, %v4420_v54, 0  ;;  %v3671_v57 = vld [vmem:[%s4259_s28 + $0xa0] sm:$0xff]   ;;  %v3673_v61 = vld [vmem:[%s4259_s28 + $0x98] sm:$0xff]  }
  0x24   : > { %369 = vmatpush1.bf16.xpose.msra.mxu0 %v358_v7  ;;  %564 = vmatpush1.bf16.xpose.msra.mxu1 %v553_v8  ;;  %v739_v55 = vsel %vm338_vm0, %v4415_v53, 0  ;;  %v3672_v58 = vld [vmem:[%s4259_s28 + $0xe8] sm:$0xff]   ;;  %v736_v59 = vsel %vm338_vm0, %v3671_v57, 0  ;;  %v3674_v62 = vld [vmem:[%s4259_s28 + $0xe0] sm:$0xff]   ;;  %v733_v63 = vsel %vm338_vm0, %v3673_v61, 0  ;;  %v3675_v4 = vld [vmem:[%s4259_s28 + $0x90] sm:$0xff]  }
  0x25   : > { %370 = vmatprep.subr.bf16.mxu0 %v4175_v0  ;;  %565 = vmatprep.subr.bf16.mxu1 %v4175_v0  ;;  %v931_v60 = vsel %vm338_vm0, %v3672_v58, 0  ;;  %v928_v3 = vsel %vm338_vm0, %v3674_v62, 0  ;;  %v3676_v7 = vld [vmem:[%s4259_s28 + $0xd8] sm:$0xff]   ;;  %v730_v8 = vsel %vm338_vm0, %v3675_v4, 0  ;;  %s4177_s16 = smov [#allocation2]  }
  0x2c   : > { %371 = vmatpush1.bf16.xpose.msra.mxu0 %v355_v11  ;;  %566 = vmatpush1.bf16.xpose.msra.mxu1 %v550_v12 }
  0x2d   : > { %372 = vmatprep.subr.bf16.mxu0 %v4175_v0  ;;  %567 = vmatprep.subr.bf16.mxu1 %v4175_v0 }
  0x34   : > { %373 = vmatpush1.bf16.xpose.msra.mxu0 %v352_v15  ;;  %568 = vmatpush1.bf16.xpose.msra.mxu1 %v547_v16 }
  0x35   : > { %374 = vmatprep.subr.bf16.mxu0 %v4175_v0  ;;  %569 = vmatprep.subr.bf16.mxu1 %v4175_v0 }
  0x3c   : > { %375 = vmatpush1.bf16.xpose.msra.mxu0 %v349_v19  ;;  %570 = vmatpush1.bf16.xpose.msra.mxu1 %v544_v20 }
  0x3d   : > { %376 = vmatprep.subr.bf16.mxu0 %v4175_v0  ;;  %571 = vmatprep.subr.bf16.mxu1 %v4175_v0 }
  0x44   : > { %377 = vmatpush1.bf16.xpose.msra.mxu0 %v346_v23  ;;  %572 = vmatpush1.bf16.xpose.msra.mxu1 %v541_v24 }
  0x45   : > { %378 = vmatprep.subr.bf16.mxu0 %v4175_v0  ;;  %573 = vmatprep.subr.bf16.mxu1 %v4175_v0 }
  0x4c   : > { %379 = vmatpush1.bf16.xpose.msra.mxu0 %v343_v27  ;;  %574 = vmatpush1.bf16.xpose.msra.mxu1 %v538_v28 }
  0x4d   : > { %380 = vmatprep.subr.bf16.mxu0 %v4175_v0  ;;  %575 = vmatprep.subr.bf16.mxu1 %v4175_v0 }
  0x54   : > { %381 = vmatpush1.bf16.xpose.msra.mxu0 %v340_v31  ;;  %576 = vmatpush1.bf16.xpose.msra.mxu1 %v535_v32 }
  0x55   : > { %396 = vmatprep.subr.bf16.mxu0 %v4175_v0  ;;  %591 = vmatprep.subr.bf16.mxu1 %v4175_v0 }
  0x5c   : > { %397 = vmatpush2.bf16.xpose.msra.mxu0 %v364_v35  ;;  %592 = vmatpush2.bf16.xpose.msra.mxu1 %v559_v36 }
  0x5d   : > { %756 = vmatprep.subr.bf16.mxu0 %v4175_v0  ;;  %951 = vmatprep.subr.bf16.mxu1 %v4175_v0 }
  0x63   : > { %3335 = vmatmul.mubr.msk.bf16.vlgmr.msra.gmra.mxu0 %vm338_vm0, %v3657_v29  ;;  %3353 = vmatmul.mubr.msk.bf16.vlgmr.msra.gmra.mxu1 %vm338_vm0, %v3658_v30 }
  0x64   : > { %757 = vmatpush1.bf16.xpose.msra.mxu0 %v751_v39  ;;  %952 = vmatpush1.bf16.xpose.msra.mxu1 %v946_v40 }
  0x65   : > { %408 = vmatprep.mubr.bf16.mxu0 %v4175_v0  ;;  %603 = vmatprep.mubr.bf16.mxu1 %v4175_v0 }
  0x66   : > { %758 = vmatprep.subr.bf16.mxu0 %v4175_v0  ;;  %953 = vmatprep.subr.bf16.mxu1 %v4175_v0 }
  0x6b   : > { %3336 = vmatmul.mubr.msk.bf16.gmra.mxu0 %vm338_vm0, %v3655_v25  ;;  %3354 = vmatmul.mubr.msk.bf16.gmra.mxu1 %vm338_vm0, %v3656_v26 }
  0x6c   : > { %759 = vmatpush1.bf16.xpose.msra.mxu0 %v748_v43  ;;  %954 = vmatpush1.bf16.xpose.msra.mxu1 %v943_v44 }
  0x6d   : > { %418 = vmatprep.mubr.bf16.mxu0 %v4175_v0  ;;  %613 = vmatprep.mubr.bf16.mxu1 %v4175_v0 }
  0x6e   : > { %760 = vmatprep.subr.bf16.mxu0 %v4175_v0  ;;  %955 = vmatprep.subr.bf16.mxu1 %v4175_v0 }
  0x73   : > { %3337 = vmatmul.mubr.msk.bf16.gmra.mxu0 %vm338_vm0, %v3653_v21  ;;  %3355 = vmatmul.mubr.msk.bf16.gmra.mxu1 %vm338_vm0, %v3654_v22 }
  0x74   : > { %761 = vmatpush1.bf16.xpose.msra.mxu0 %v745_v47  ;;  %956 = vmatpush1.bf16.xpose.msra.mxu1 %v940_v48 }
  0x75   : > { %428 = vmatprep.mubr.bf16.mxu0 %v4175_v0  ;;  %623 = vmatprep.mubr.bf16.mxu1 %v4175_v0 }
  0x76   : > { %762 = vmatprep.subr.bf16.mxu0 %v4175_v0  ;;  %957 = vmatprep.subr.bf16.mxu1 %v4175_v0 }
  0x7b   : > { %3338 = vmatmul.mubr.msk.bf16.gmra.mxu0 %vm338_vm0, %v4309_v17  ;;  %3356 = vmatmul.mubr.msk.bf16.gmra.mxu1 %vm338_vm0, %v4313_v18 }
  0x7c   : > { %763 = vmatpush1.bf16.xpose.msra.mxu0 %v742_v51  ;;  %958 = vmatpush1.bf16.xpose.msra.mxu1 %v937_v52 }
  0x7d   : > { %438 = vmatprep.mubr.bf16.mxu0 %v4175_v0  ;;  %633 = vmatprep.mubr.bf16.mxu1 %v4175_v0 }
  0x7e   : > { %764 = vmatprep.subr.bf16.mxu0 %v4175_v0  ;;  %959 = vmatprep.subr.bf16.mxu1 %v4175_v0 }
  0x83   : > { %3339 = vmatmul.mubr.msk.bf16.gmra.mxu0 %vm338_vm0, %v4297_v13  ;;  %3357 = vmatmul.mubr.msk.bf16.gmra.mxu1 %vm338_vm0, %v4301_v14 }
  0x84   : > { %765 = vmatpush1.bf16.xpose.msra.mxu0 %v739_v55  ;;  %960 = vmatpush1.bf16.xpose.msra.mxu1 %v934_v56 }
  0x85   : > { %448 = vmatprep.mubr.bf16.mxu0 %v4175_v0  ;;  %643 = vmatprep.mubr.bf16.mxu1 %v4175_v0 }
  0x86   : > { %766 = vmatprep.subr.bf16.mxu0 %v4175_v0  ;;  %961 = vmatprep.subr.bf16.mxu1 %v4175_v0 }
  0x8b   : > { %3340 = vmatmul.mubr.msk.bf16.gmra.mxu0 %vm338_vm0, %v4285_v9  ;;  %3358 = vmatmul.mubr.msk.bf16.gmra.mxu1 %vm338_vm0, %v4289_v10  ;;  %v3678_v9 = vld [vmem:[%s4259_s28 + $0x118] sm:$0xff]  }
  0x8c   : > { %767 = vmatpush1.bf16.xpose.msra.mxu0 %v736_v59  ;;  %962 = vmatpush1.bf16.xpose.msra.mxu1 %v931_v60  ;;  %v949_v11 = vsel %vm338_vm0, %v3678_v9, 0 }
  0x8d   : > { %458 = vmatprep.mubr.bf16.mxu0 %v4175_v0  ;;  %653 = vmatprep.mubr.bf16.mxu1 %v4175_v0 }
  0x8e   : > { %768 = vmatprep.subr.bf16.mxu0 %v4175_v0  ;;  %963 = vmatprep.subr.bf16.mxu1 %v4175_v0 }
  0x93   : > { %3341 = vmatmul.mubr.msk.bf16.gmra.mxu0 %vm338_vm0, %v4273_v5  ;;  %3359 = vmatmul.mubr.msk.bf16.gmra.mxu1 %vm338_vm0, %v4277_v6  ;;  %v925_v5 = vsel %vm338_vm0, %v3676_v7, 0  ;;  %v3677_v6 = vld [vmem:[%s4259_s28 + $0xd0] sm:$0xff]   ;;  %s4117_s28 = sshll.u32 %s4177_s16, 4  ;;  %s4118_s28 = int_to_ptr.vmem [resolvable:$false] %s4117_s28 }
  0x94   : > { %769 = vmatpush1.bf16.xpose.msra.mxu0 %v733_v63  ;;  %964 = vmatpush1.bf16.xpose.msra.mxu1 %v928_v3  ;;  %v754_v10 = vsel %vm338_vm0, %v3677_v6, 0  ;;  %s4119_s29 = scalar_lea.vmem %s4118_s28, 18432  ;;  %p4120_p0 = scmp.lt.s32.totalorder %s6426_s19, %s4118_s28 }
  0x95   : > { %468 = vmatprep.mubr.bf16.mxu0 %v4175_v0  ;;  %663 = vmatprep.mubr.bf16.mxu1 %v4175_v0  ;;  %p4121_p1 = scmp.lt.s32.totalorder %s4119_s29, %s4113_s27 }
  0x96   : > { %770 = vmatprep.subr.bf16.mxu0 %v4175_v0  ;;  %965 = vmatprep.subr.bf16.mxu1 %v4175_v0 }
  0x97   : > { %p4122_p2 = por %p4121_p1, %p4120_p0 }
  0x99   : > { %p4123_p3 = pnand %p4122_p2, %p4116_p13 }
  0x9b   : > { %3342 = vmatmul.mubr.msk.bf16.gmra.mxu0 %vm338_vm0, %v4262_v1  ;;  %3360 = vmatmul.mubr.msk.bf16.gmra.mxu1 %vm338_vm0, %v4265_v2 }
  0x9c   : > { %771 = vmatpush1.bf16.xpose.msra.mxu0 %v730_v8  ;;  %966 = vmatpush1.bf16.xpose.msra.mxu1 %v925_v5 }
  0x9d   : > { %478 = vmatprep.mubr.bf16.mxu0 %v4175_v0  ;;  %786 = vmatprep.subr.bf16.mxu0 %v4175_v0 }
  0x9e   : > { %673 = vmatprep.mubr.bf16.mxu1 %v4175_v0  ;;  %981 = vmatprep.subr.bf16.mxu1 %v4175_v0 }
  0xa3   : > { %3343 = vmatmul.mubr.msk.bf16.gmra.mxu0 %vm338_vm0, %v4339_v33  ;;  %3361 = vmatmul.mubr.msk.bf16.gmra.mxu1 %vm338_vm0, %v4343_v34 }
  0xa4   : > { %787 = vmatpush2.bf16.xpose.msra.mxu0 %v754_v10  ;;  %982 = vmatpush2.bf16.xpose.msra.mxu1 %v949_v11 }
  0xa5   : > { %788 = vmatprep.mubr.bf16.mxu0 %v4175_v0  ;;  %983 = vmatprep.mubr.bf16.mxu1 %v4175_v0 }
  0xab   : > { %3371 = vmatmul.mubr.msk.bf16.vlgmr.msra.gmra.mxu0 %vm338_vm0, %v3675_v4  ;;  %3389 = vmatmul.mubr.msk.bf16.vlgmr.msra.gmra.mxu1 %vm338_vm0, %v3676_v7 }
  0xac   : > { %798 = vmatprep.mubr.bf16.mxu0 %v4175_v0  ;;  %993 = vmatprep.mubr.bf16.mxu1 %v4175_v0 }
  0xb3   : > { %3372 = vmatmul.mubr.msk.bf16.gmra.mxu0 %vm338_vm0, %v3673_v61  ;;  %3390 = vmatmul.mubr.msk.bf16.gmra.mxu1 %vm338_vm0, %v3674_v62 }
  0xb4   : > { %808 = vmatprep.mubr.bf16.mxu0 %v4175_v0  ;;  %1003 = vmatprep.mubr.bf16.mxu1 %v4175_v0 }
  0xbb   : > { %3373 = vmatmul.mubr.msk.bf16.gmra.mxu0 %vm338_vm0, %v3671_v57  ;;  %3391 = vmatmul.mubr.msk.bf16.gmra.mxu1 %vm338_vm0, %v3672_v58 }
  0xbc   : > { %818 = vmatprep.mubr.bf16.mxu0 %v4175_v0  ;;  %1013 = vmatprep.mubr.bf16.mxu1 %v4175_v0 }
  0xc3   : > { %3374 = vmatmul.mubr.msk.bf16.gmra.mxu0 %vm338_vm0, %v4415_v53  ;;  %3392 = vmatmul.mubr.msk.bf16.gmra.mxu1 %vm338_vm0, %v4420_v54 }
  0xc4   : > { %828 = vmatprep.mubr.bf16.mxu0 %v4175_v0  ;;  %1023 = vmatprep.mubr.bf16.mxu1 %v4175_v0 }
  0xcb   : > { %3375 = vmatmul.mubr.msk.bf16.gmra.mxu0 %vm338_vm0, %v4397_v49  ;;  %3393 = vmatmul.mubr.msk.bf16.gmra.mxu1 %vm338_vm0, %v4402_v50 }
  0xcc   : > { %838 = vmatprep.mubr.bf16.mxu0 %v4175_v0  ;;  %1033 = vmatprep.mubr.bf16.mxu1 %v4175_v0 }
  0xd3   : > { %3376 = vmatmul.mubr.msk.bf16.gmra.mxu0 %vm338_vm0, %v4381_v45  ;;  %3394 = vmatmul.mubr.msk.bf16.gmra.mxu1 %vm338_vm0, %v4386_v46 }
  0xd4   : > { %848 = vmatprep.mubr.bf16.mxu0 %v4175_v0  ;;  %1043 = vmatprep.mubr.bf16.mxu1 %v4175_v0 }
  0xdb   : > { %3377 = vmatmul.mubr.msk.bf16.gmra.mxu0 %vm338_vm0, %v4365_v41  ;;  %3395 = vmatmul.mubr.msk.bf16.gmra.mxu1 %vm338_vm0, %v4370_v42 }
  0xdc   : > { %858 = vmatprep.mubr.bf16.mxu0 %v4175_v0  ;;  %1053 = vmatprep.mubr.bf16.mxu1 %v4175_v0 }
  0xe3   : > { %3378 = vmatmul.mubr.msk.bf16.gmra.mxu0 %vm338_vm0, %v4351_v37  ;;  %3396 = vmatmul.mubr.msk.bf16.gmra.mxu1 %vm338_vm0, %v4355_v38 }
  0xe4   : > { %868 = vmatprep.mubr.bf16.mxu0 %v4175_v0  ;;  %1063 = vmatprep.mubr.bf16.mxu1 %v4175_v0 }
  0xeb   : > { %3379 = vmatmul.mubr.msk.bf16.gmra.mxu0 %vm338_vm0, %v3677_v6  ;;  %3397 = vmatmul.mubr.msk.bf16.gmra.mxu1 %vm338_vm0, %v3678_v9 }
 0x123   : > { %v4525_v1 = vpop.f32.mrf.mxu0  ;;  %v4527_v2 = vpop.f32.mrf.mxu1 }
 0x124   : > { %6683 = vst [vmem:[#allocation5_spill] sm:$0xff] %v4525_v1  ;;  %6684 = vst [vmem:[#allocation6_spill] sm:$0xff] %v4527_v2 }
 0x125   : > { %v4529_v12 = vpop.f32.mrf.mxu0  ;;  %v4531_v13 = vpop.f32.mrf.mxu1 }
 0x126   : > { %6685 = vst [vmem:[#allocation7_spill] sm:$0xff] %v4529_v12  ;;  %6686 = vst [vmem:[#allocation8_spill] sm:$0xff] %v4531_v13  ;;  %v1075_v14 = vsel %vm1074_vm1, %v4529_v12, -inf }
 0x127   : > { %v4535_v15 = vpop.f32.mrf.mxu0  ;;  %v1076_v0 = vmax.f32 %v4525_v1, %v1075_v14  ;;  %v4538_v16 = vpop.f32.mrf.mxu1 }
 0x128   : > { %6687 = vst [vmem:[#allocation9_spill] sm:$0xff] %v4535_v15  ;;  %6688 = vst [vmem:[#allocation10_spill] sm:$0xff] %v4538_v16 }
 0x129   : > { %1077 = vmax.xlane.f32.xlu0 %v1076_v0  ;;  %v4540_v17 = vpop.f32.mrf.mxu0  ;;  %v4542_v18 = vpop.f32.mrf.mxu1 }
 0x12a   : > { %6689 = vst [vmem:[#allocation11_spill] sm:$0xff] %v4540_v17  ;;  %6690 = vst [vmem:[#allocation12_spill] sm:$0xff] %v4542_v18  ;;  %v1079_v19 = vsel %vm1074_vm1, %v4540_v17, -inf }
 0x12b   : > { %v4546_v20 = vpop.f32.mrf.mxu0  ;;  %v1080_v21 = vmax.f32 %v4535_v15, %v1079_v19  ;;  %v4549_v22 = vpop.f32.mrf.mxu1 }
 0x12c   : > { %6691 = vst [vmem:[#allocation13_spill] sm:$0xff] %v4546_v20  ;;  %6692 = vst [vmem:[#allocation14_spill] sm:$0xff] %v4549_v22 }
 0x12d   : > { %1081 = vmax.xlane.f32.xlu1 %v1080_v21  ;;  %v4551_v23 = vpop.f32.mrf.mxu0  ;;  %v4553_v24 = vpop.f32.mrf.mxu1 }
 0x12e   : > { %6693 = vst [vmem:[#allocation15_spill] sm:$0xff] %v4551_v23  ;;  %6694 = vst [vmem:[#allocation16_spill] sm:$0xff] %v4553_v24  ;;  %v1083_v25 = vsel %vm1074_vm1, %v4551_v23, -inf  ;;  %v1155_v28 = vsel %vm1074_vm1, %v4553_v24, -inf  ;;  %v1147_v23 = vsel %vm1074_vm1, %v4531_v13, -inf }
 0x12f   : > { %v4557_v26 = vpop.f32.mrf.mxu0  ;;  %v1084_v27 = vmax.f32 %v4546_v20, %v1083_v25  ;;  %v4562_v29 = vpop.f32.mrf.mxu1  ;;  %v1156_v34 = vmax.f32 %v4549_v22, %v1155_v28  ;;  %v1148_v13 = vmax.f32 %v4527_v2, %v1147_v23 }
 0x130   : > { %6695 = vst [vmem:[#allocation17_spill] sm:$0xff] %v4557_v26  ;;  %6696 = vst [vmem:[#allocation18_spill] sm:$0xff] %v4562_v29 }
 0x131   : > { %1085 = vmax.xlane.f32.xlu0 %v1084_v27  ;;  %v4564_v30 = vpop.f32.mrf.mxu0  ;;  %v4566_v31 = vpop.f32.mrf.mxu1 }
 0x132   : > { %6697 = vst [vmem:[#allocation19_spill] sm:$0xff] %v4564_v30  ;;  %6698 = vst [vmem:[#allocation20_spill] sm:$0xff] %v4566_v31  ;;  %v1087_v32 = vsel %vm1074_vm1, %v4564_v30, -inf  ;;  %v1159_v36 = vsel %vm1074_vm1, %v4566_v31, -inf }
 0x133   : > { %v4570_v33 = vpop.f32.mrf.mxu0  ;;  %v1088_v35 = vmax.f32 %v4557_v26, %v1087_v32  ;;  %v4576_v37 = vpop.f32.mrf.mxu1  ;;  %v1160_v42 = vmax.f32 %v4562_v29, %v1159_v36 }
 0x134   : > { %6699 = vst [vmem:[#allocation21_spill] sm:$0xff] %v4576_v37 }
 0x135   : > { %1157 = vmax.xlane.f32.xlu0 %v1156_v34  ;;  %1089 = vmax.xlane.f32.xlu1 %v1088_v35  ;;  %v4578_v38 = vpop.f32.mrf.mxu0  ;;  %v4580_v39 = vpop.f32.mrf.mxu1 }
 0x136   : > { %6700 = vst [vmem:[#allocation22_spill] sm:$0xff] %v4580_v39  ;;  %v1091_v40 = vsel %vm1074_vm1, %v4578_v38, -inf  ;;  %v1163_v44 = vsel %vm1074_vm1, %v4580_v39, -inf }
 0x137   : > { %v4584_v41 = vpop.f32.mrf.mxu0  ;;  %v1092_v43 = vmax.f32 %v4570_v33, %v1091_v40  ;;  %v4590_v45 = vpop.f32.mrf.mxu1  ;;  %v1164_v50 = vmax.f32 %v4576_v37, %v1163_v44 }
 0x138   : > { %6701 = vst [vmem:[#allocation23_spill] sm:$0xff] %v4584_v41  ;;  %6702 = vst [vmem:[#allocation24_spill] sm:$0xff] %v4590_v45 }
 0x139   : > { %1161 = vmax.xlane.f32.xlu1 %v1160_v42  ;;  %1093 = vmax.xlane.f32.xlu0 %v1092_v43  ;;  %v4592_v46 = vpop.f32.mrf.mxu0  ;;  %v4594_v47 = vpop.f32.mrf.mxu1 }
 0x13a   : > { %6703 = vst [vmem:[#allocation25_spill] sm:$0xff] %v4592_v46  ;;  %6704 = vst [vmem:[#allocation26_spill] sm:$0xff] %v4594_v47  ;;  %v1095_v48 = vsel %vm1074_vm1, %v4592_v46, -inf  ;;  %v1167_v52 = vsel %vm1074_vm1, %v4594_v47, -inf }
 0x13b   : > { %v4598_v49 = vpop.f32.mrf.mxu0  ;;  %v1096_v51 = vmax.f32 %v4584_v41, %v1095_v48  ;;  %v4604_v53 = vpop.f32.mrf.mxu1  ;;  %v1168_v58 = vmax.f32 %v4590_v45, %v1167_v52  ;;  %v1151_v45 = vsel %vm1074_vm1, %v4542_v18, -inf }
 0x13c   : > { %v1152_v18 = vmax.f32 %v4538_v16, %v1151_v45 }
 0x13d   : > { %1165 = vmax.xlane.f32.xlu0 %v1164_v50  ;;  %1097 = vmax.xlane.f32.xlu1 %v1096_v51  ;;  %v4606_v54 = vpop.f32.mrf.mxu0  ;;  %v4608_v55 = vpop.f32.mrf.mxu1 }
 0x13e   : > { %v1099_v56 = vsel %vm1074_vm1, %v4606_v54, -inf  ;;  %v1171_v60 = vsel %vm1074_vm1, %v4608_v55, -inf }
 0x13f   : > { %v4612_v57 = vpop.f32.mrf.mxu0  ;;  %v1100_v59 = vmax.f32 %v4598_v49, %v1099_v56  ;;  %v4618_v61 = vpop.f32.mrf.mxu1  ;;  %v1172_v7 = vmax.f32 %v4604_v53, %v1171_v60 }
 0x141   : > { %1169 = vmax.xlane.f32.xlu1 %v1168_v58  ;;  %1101 = vmax.xlane.f32.xlu0 %v1100_v59  ;;  %v4620_v62 = vpop.f32.mrf.mxu0  ;;  %v4622_v63 = vpop.f32.mrf.mxu1 }
 0x142   : > { %v1103_v3 = vsel %vm1074_vm1, %v4620_v62, -inf  ;;  %v1175_v5 = vsel %vm1074_vm1, %v4622_v63, -inf }
 0x143   : > { %v4626_v4 = vpop.f32.mrf.mxu0  ;;  %v1104_v8 = vmax.f32 %v4612_v57, %v1103_v3  ;;  %v4632_v6 = vpop.f32.mrf.mxu1  ;;  %v1176_v0 = vmax.f32 %v4618_v61, %v1175_v5 }
 0x145   : > { %1173 = vmax.xlane.f32.xlu0 %v1172_v7  ;;  %1105 = vmax.xlane.f32.xlu1 %v1104_v8  ;;  %v4634_v9 = vpop.f32.mrf.mxu0  ;;  %v4636_v10 = vpop.f32.mrf.mxu1 }
 0x146   : > { %v1107_v11 = vsel %vm1074_vm1, %v4634_v9, -inf  ;;  %v1179_v21 = vsel %vm1074_vm1, %v4636_v10, -inf }
 0x147   : > { %v4640_v14 = vpop.f32.mrf.mxu0  ;;  %v1108_v19 = vmax.f32 %v4626_v4, %v1107_v11  ;;  %v4646_v25 = vpop.f32.mrf.mxu1  ;;  %v1180_v35 = vmax.f32 %v4632_v6, %v1179_v21 }
 0x149   : > { %1177 = vmax.xlane.f32.xlu1 %v1176_v0  ;;  %1109 = vmax.xlane.f32.xlu0 %v1108_v19  ;;  %v4648_v27 = vpop.f32.mrf.mxu0  ;;  %v4650_v28 = vpop.f32.mrf.mxu1 }
 0x14a   : > { %v1111_v32 = vsel %vm1074_vm1, %v4648_v27, -inf  ;;  %v1183_v40 = vsel %vm1074_vm1, %v4650_v28, -inf }
 0x14b   : > { %v4654_v34 = vpop.f32.mrf.mxu0  ;;  %v1112_v36 = vmax.f32 %v4640_v14, %v1111_v32  ;;  %v4660_v42 = vpop.f32.mrf.mxu1  ;;  %v1184_v51 = vmax.f32 %v4646_v25, %v1183_v40 }
 0x14d   : > { %1181 = vmax.xlane.f32.xlu0 %v1180_v35  ;;  %1113 = vmax.xlane.f32.xlu1 %v1112_v36  ;;  %v4662_v43 = vpop.f32.mrf.mxu0  ;;  %v4664_v44 = vpop.f32.mrf.mxu1 }
 0x14e   : > { %v1115_v48 = vsel %vm1074_vm1, %v4662_v43, -inf  ;;  %v1187_v56 = vsel %vm1074_vm1, %v4664_v44, -inf }
 0x14f   : > { %v4668_v50 = vpop.f32.mrf.mxu0  ;;  %v1116_v52 = vmax.f32 %v4654_v34, %v1115_v48  ;;  %v4674_v58 = vpop.f32.mrf.mxu1  ;;  %v1188_v8 = vmax.f32 %v4660_v42, %v1187_v56 }
 0x151   : > { %1185 = vmax.xlane.f32.xlu1 %v1184_v51  ;;  %1117 = vmax.xlane.f32.xlu0 %v1116_v52  ;;  %v4676_v59 = vpop.f32.mrf.mxu0  ;;  %v4678_v60 = vpop.f32.mrf.mxu1 }
 0x152   : > { %v1119_v3 = vsel %vm1074_vm1, %v4676_v59, -inf  ;;  %v1191_v11 = vsel %vm1074_vm1, %v4678_v60, -inf }
 0x153   : > { %v4682_v7 = vpop.f32.mrf.mxu0  ;;  %v1120_v5 = vmax.f32 %v4668_v50, %v1119_v3  ;;  %v4688_v0 = vpop.f32.mrf.mxu1  ;;  %v1192_v36 = vmax.f32 %v4674_v58, %v1191_v11 }
 0x155   : > { %1189 = vmax.xlane.f32.xlu0 %v1188_v8  ;;  %1121 = vmax.xlane.f32.xlu1 %v1120_v5  ;;  %v4690_v19 = vpop.f32.mrf.mxu0  ;;  %v4692_v21 = vpop.f32.mrf.mxu1 }
 0x156   : > { %v1123_v32 = vsel %vm1074_vm1, %v4690_v19, -inf  ;;  %v1195_v48 = vsel %vm1074_vm1, %v4692_v21, -inf }
 0x157   : > { %v4696_v35 = vpop.f32.mrf.mxu0  ;;  %v1124_v40 = vmax.f32 %v4682_v7, %v1123_v32  ;;  %v4702_v51 = vpop.f32.mrf.mxu1  ;;  %v1196_v5 = vmax.f32 %v4688_v0, %v1195_v48 }
 0x159   : > { %1193 = vmax.xlane.f32.xlu1 %v1192_v36  ;;  %1125 = vmax.xlane.f32.xlu0 %v1124_v40  ;;  %v4704_v52 = vpop.f32.mrf.mxu0  ;;  %v4706_v56 = vpop.f32.mrf.mxu1 }
 0x15a   : > { %v1127_v3 = vsel %vm1074_vm1, %v4704_v52, -inf  ;;  %v1199_v32 = vsel %vm1074_vm1, %v4706_v56, -inf }
 0x15b   : > { %v4710_v8 = vpop.f32.mrf.mxu0  ;;  %v1128_v11 = vmax.f32 %v4696_v35, %v1127_v3  ;;  %v4716_v29 = vpop.f32.mrf.mxu1  ;;  %v1200_v48 = vmax.f32 %v4702_v51, %v1199_v32 }
 0x15d   : > { %1197 = vmax.xlane.f32.xlu0 %v1196_v5  ;;  %1129 = vmax.xlane.f32.xlu1 %v1128_v11  ;;  %v4718_v36 = vpop.f32.mrf.mxu0  ;;  %v4720_v40 = vpop.f32.mrf.mxu1 }
 0x15e   : > { %v1131_v31 = vsel %vm1074_vm1, %v4718_v36, -inf  ;;  %v1203_v30 = vsel %vm1074_vm1, %v4720_v40, -inf }
 0x15f   : > { %v4724_v26 = vpop.f32.mrf.mxu0  ;;  %v1132_v3 = vmax.f32 %v4710_v8, %v1131_v31  ;;  %v4730_v24 = vpop.f32.mrf.mxu1  ;;  %v1204_v32 = vmax.f32 %v4716_v29, %v1203_v30 }
 0x161   : > { %1201 = vmax.xlane.f32.xlu1 %v1200_v48  ;;  %1133 = vmax.xlane.f32.xlu0 %v1132_v3  ;;  %v4732_v5 = vpop.f32.mrf.mxu0  ;;  %v4734_v11 = vpop.f32.mrf.mxu1 }
 0x162   : > { %v1135_v22 = vsel %vm1074_vm1, %v4732_v5, -inf  ;;  %v1207_v48 = vsel %vm1074_vm1, %v4734_v11, -inf }
 0x163   : > { %v4738_v20 = vpop.f32.mrf.mxu0  ;;  %v1136_v31 = vmax.f32 %v4724_v26, %v1135_v22  ;;  %v4746_v3 = vpop.f32.mrf.mxu1  ;;  %v1208_v22 = vmax.f32 %v4730_v24, %v1207_v48 }
 0x164   : > { %6705 = vst [vmem:[#allocation27_spill] sm:$0xff] %v4738_v20  ;;  %6706 = vst [vmem:[#allocation28_spill] sm:$0xff] %v4746_v3 }
 0x165   : > { %1205 = vmax.xlane.f32.xlu1 %v1204_v32  ;;  %1137 = vmax.xlane.f32.xlu0 %v1136_v31  ;;  %v4748_v17 = vpop.f32.mrf.mxu0  ;;  %v4752_v12 = vpop.f32.mrf.mxu1 }
 0x166   : > { %6707 = vst [vmem:[#allocation29_spill] sm:$0xff] %v4748_v17  ;;  %v1139_v15 = vsel %vm1074_vm1, %v4748_v17, -inf  ;;  %6708 = vst [vmem:[#allocation30_spill] sm:$0xff] %v4752_v12  ;;  %v1211_v17 = vsel %vm1074_vm1, %v4752_v12, -inf }
 0x167   : > { %v4754_v30 = vpop.f32.mrf.mxu0  ;;  %v4760_v1 = vpop.f32.mrf.mxu1  ;;  %v1140_v31 = vmax.f32 %v4738_v20, %v1139_v15  ;;  %v1212_v15 = vmax.f32 %v4746_v3, %v1211_v17 }
 0x168   : > { %6709 = vst [vmem:[#allocation31_spill] sm:$0xff] %v4754_v30  ;;  %6710 = vst [vmem:[#allocation32_spill] sm:$0xff] %v4760_v1 }
 0x169   : > { %1209 = vmax.xlane.f32.xlu1 %v1208_v22  ;;  %1149 = vmax.xlane.f32.xlu0 %v1148_v13  ;;  %v4762_v32 = vpop.f32.mrf.mxu0  ;;  %v4769_v48 = vpop.f32.mrf.mxu1 }
 0x16a   : > { %6711 = vst [vmem:[#allocation33_spill] sm:$0xff] %v4762_v32  ;;  %v1143_v47 = vsel %vm1074_vm1, %v4762_v32, -inf  ;;  %6712 = vst [vmem:[#allocation34_spill] sm:$0xff] %v4769_v48  ;;  %v1215_v12 = vsel %vm1074_vm1, %v4769_v48, -inf }
 0x16b   : > { %v4771_v23 = vpop.f32.mrf.mxu0  ;;  %v4774_v2 = vpop.f32.mrf.mxu1  ;;  %v1144_v22 = vmax.f32 %v4754_v30, %v1143_v47 }
 0x16c   : > { %6713 = vst [vmem:[#allocation35_spill] sm:$0xff] %v4771_v23  ;;  %6714 = vst [vmem:[#allocation36_spill] sm:$0xff] %v4774_v2 }
 0x16d   : > { %1153 = vmax.xlane.f32.xlu1 %v1152_v18  ;;  %1141 = vmax.xlane.f32.xlu0 %v1140_v31  ;;  %v4776_v13 = vpop.f32.mrf.mxu0  ;;  %v4782_v32 = vpop.f32.mrf.mxu1  ;;  %v1216_v18 = vmax.f32 %v4760_v1, %v1215_v12 }
 0x16e   : > { %6715 = vst [vmem:[#allocation37_spill] sm:$0xff] %v4776_v13  ;;  %6716 = vst [vmem:[#allocation38_spill] sm:$0xff] %v4782_v32 }
 0x16f   : > { %v4784_v20 = vpop.f32.mrf.mxu0  ;;  %v4786_v23 = vpop.f32.mrf.mxu1 }
 0x170   : > { %6717 = vst [vmem:[#allocation39_spill] sm:$0xff] %v4784_v20  ;;  %6718 = vst [vmem:[#allocation40_spill] sm:$0xff] %v4786_v23 }
 0x171   : > { %1213 = vmax.xlane.f32.xlu0 %v1212_v15  ;;  %1145 = vmax.xlane.f32.xlu1 %v1144_v22  ;;  %v4788_v45 = vpop.f32.mrf.mxu0  ;;  %v4791_v31 = vpop.f32.mrf.mxu1 }
 0x172   : > { %6719 = vst [vmem:[#allocation41_spill] sm:$0xff] %v4788_v45  ;;  %6720 = vst [vmem:[#allocation42_spill] sm:$0xff] %v4791_v31 }
 0x173   : > { %v4793_v17 = vpop.f32.mrf.mxu0  ;;  %v4795_v47 = vpop.f32.mrf.mxu1 }
 0x174   : > { %6721 = vst [vmem:[#allocation43_spill] sm:$0xff] %v4793_v17  ;;  %6722 = vst [vmem:[#allocation44_spill] sm:$0xff] %v4795_v47 }
 0x175   : > { %1217 = vmax.xlane.f32.xlu1 %v1216_v18  ;;  %v4797_v30 = vpop.f32.mrf.mxu0  ;;  %v4799_v48 = vpop.f32.mrf.mxu1 }
 0x176   : > { %6723 = vst [vmem:[#allocation45_spill] sm:$0xff] %v4797_v30  ;;  %6724 = vst [vmem:[#allocation46_spill] sm:$0xff] %v4799_v48 }
 0x177   : > { %v4801_v3 = vpop.f32.mrf.mxu0  ;;  %v4803_v16 = vpop.f32.mrf.mxu1 }
 0x178   : > { %6725 = vst [vmem:[#allocation47_spill] sm:$0xff] %v4801_v3  ;;  %6726 = vst [vmem:[#allocation48_spill] sm:$0xff] %v4803_v16 }
 0x179   : > { %v4805_v15 = vpop.f32.mrf.mxu0  ;;  %v4807_v22 = vpop.f32.mrf.mxu1 }
 0x17a   : > { %6727 = vst [vmem:[#allocation49_spill] sm:$0xff] %v4805_v15  ;;  %6728 = vst [vmem:[#allocation50_spill] sm:$0xff] %v4807_v22 }
 0x17b   : > { %v4809_v12 = vpop.f32.mrf.mxu0  ;;  %v4811_v1 = vpop.f32.mrf.mxu1 }
 0x17c   : > { %6729 = vst [vmem:[#allocation51_spill] sm:$0xff] %v4809_v12  ;;  %6730 = vst [vmem:[#allocation52_spill] sm:$0xff] %v4811_v1 }
 0x17d   : > { %v4813_v23 = vpop.f32.mrf.mxu0  ;;  %v4817_v20 = vpop.f32.mrf.mxu1 }
 0x17e   : > { %6731 = vst [vmem:[#allocation53_spill] sm:$0xff] %v4813_v23  ;;  %v1235_v18 = vsel %vm1074_vm1, %v4813_v23, -inf  ;;  %6732 = vst [vmem:[#allocation54_spill] sm:$0xff] %v4817_v20  ;;  %v1307_v2 = vsel %vm1074_vm1, %v4817_v20, -inf }
 0x17f   : > { %v4819_v31 = vpop.f32.mrf.mxu0  ;;  %v1236_v45 = vmax.f32 %v4809_v12, %v1235_v18  ;;  %v4824_v32 = vpop.f32.mrf.mxu1  ;;  %v1308_v16 = vmax.f32 %v4811_v1, %v1307_v2 }
 0x180   : > { %6733 = vst [vmem:[#allocation55_spill] sm:$0xff] %v4819_v31  ;;  %6734 = vst [vmem:[#allocation56_spill] sm:$0xff] %v4824_v32 }
 0x181   : > { %1237 = vmax.xlane.f32.xlu0 %v1236_v45  ;;  %v4826_v13 = vpop.f32.mrf.mxu0  ;;  %v4831_v23 = vpop.f32.mrf.mxu1 }
 0x182   : > { %6735 = vst [vmem:[#allocation57_spill] sm:$0xff] %v4826_v13  ;;  %v1239_v3 = vsel %vm1074_vm1, %v4826_v13, -inf  ;;  %6736 = vst [vmem:[#allocation58_spill] sm:$0xff] %v4831_v23  ;;  %v1311_v22 = vsel %vm1074_vm1, %v4831_v23, -inf }
 0x183   : > { %v4833_v41 = vpop.f32.mrf.mxu0  ;;  %v1240_v20 = vmax.f32 %v4819_v31, %v1239_v3  ;;  %v4838_v18 = vpop.f32.mrf.mxu1  ;;  %v1312_v2 = vmax.f32 %v4824_v32, %v1311_v22 }
 0x184   : > { %6737 = vst [vmem:[#allocation59_spill] sm:$0xff] %v4833_v41  ;;  %6738 = vst [vmem:[#allocation60_spill] sm:$0xff] %v4838_v18 }
 0x185   : > { %1309 = vmax.xlane.f32.xlu0 %v1308_v16  ;;  %1241 = vmax.xlane.f32.xlu1 %v1240_v20  ;;  %v4840_v45 = vpop.f32.mrf.mxu0  ;;  %v4845_v13 = vpop.f32.mrf.mxu1 }
 0x186   : > { %6739 = vst [vmem:[#allocation61_spill] sm:$0xff] %v4840_v45  ;;  %v1243_v1 = vsel %vm1074_vm1, %v4840_v45, -inf  ;;  %6740 = vst [vmem:[#allocation62_spill] sm:$0xff] %v4845_v13  ;;  %v1315_v23 = vsel %vm1074_vm1, %v4845_v13, -inf }
 0x187   : > { %v4847_v12 = vpop.f32.mrf.mxu0  ;;  %v1244_v3 = vmax.f32 %v4833_v41, %v1243_v1  ;;  %v4852_v31 = vpop.f32.mrf.mxu1  ;;  %v1316_v20 = vmax.f32 %v4838_v18, %v1315_v23 }
 0x188   : > { %6741 = vst [vmem:[#allocation63_spill] sm:$0xff] %v4847_v12  ;;  %6742 = vst [vmem:[#allocation64_spill] sm:$0xff] %v4852_v31 }
 0x189   : > { %1313 = vmax.xlane.f32.xlu1 %v1312_v2  ;;  %1245 = vmax.xlane.f32.xlu0 %v1244_v3  ;;  %v4854_v16 = vpop.f32.mrf.mxu0  ;;  %v4859_v32 = vpop.f32.mrf.mxu1 }
 0x18a   : > { %6743 = vst [vmem:[#allocation65_spill] sm:$0xff] %v4854_v16  ;;  %v1247_v22 = vsel %vm1074_vm1, %v4854_v16, -inf  ;;  %6744 = vst [vmem:[#allocation66_spill] sm:$0xff] %v4859_v32  ;;  %v1319_v13 = vsel %vm1074_vm1, %v4859_v32, -inf }
 0x18b   : > { %v4861_v45 = vpop.f32.mrf.mxu0  ;;  %v1248_v1 = vmax.f32 %v4847_v12, %v1247_v22  ;;  %v4866_v41 = vpop.f32.mrf.mxu1  ;;  %v1320_v23 = vmax.f32 %v4852_v31, %v1319_v13 }
 0x18c   : > { %6745 = vst [vmem:[#allocation67_spill] sm:$0xff] %v4861_v45  ;;  %6746 = vst [vmem:[#allocation68_spill] sm:$0xff] %v4866_v41 }
 0x18d   : > { %1317 = vmax.xlane.f32.xlu0 %v1316_v20  ;;  %1249 = vmax.xlane.f32.xlu1 %v1248_v1  ;;  %v4868_v2 = vpop.f32.mrf.mxu0  ;;  %v4873_v18 = vpop.f32.mrf.mxu1 }
 0x18e   : > { %6747 = vst [vmem:[#allocation69_spill] sm:$0xff] %v4868_v2  ;;  %v1251_v3 = vsel %vm1074_vm1, %v4868_v2, -inf  ;;  %6748 = vst [vmem:[#allocation70_spill] sm:$0xff] %v4873_v18  ;;  %v1323_v32 = vsel %vm1074_vm1, %v4873_v18, -inf }
 0x18f   : > { %v4875_v16 = vpop.f32.mrf.mxu0  ;;  %v1252_v22 = vmax.f32 %v4861_v45, %v1251_v3  ;;  %v4880_v12 = vpop.f32.mrf.mxu1  ;;  %v1324_v13 = vmax.f32 %v4866_v41, %v1323_v32 }
 0x190   : > { %6749 = vst [vmem:[#allocation71_spill] sm:$0xff] %v4875_v16  ;;  %6750 = vst [vmem:[#allocation72_spill] sm:$0xff] %v4880_v12 }
 0x191   : > { %1321 = vmax.xlane.f32.xlu1 %v1320_v23  ;;  %1253 = vmax.xlane.f32.xlu0 %v1252_v22  ;;  %v4882_v20 = vpop.f32.mrf.mxu0  ;;  %v4887_v31 = vpop.f32.mrf.mxu1 }
 0x192   : > { %6751 = vst [vmem:[#allocation73_spill] sm:$0xff] %v4882_v20  ;;  %v1255_v1 = vsel %vm1074_vm1, %v4882_v20, -inf  ;;  %6752 = vst [vmem:[#allocation74_spill] sm:$0xff] %v4887_v31  ;;  %v1327_v18 = vsel %vm1074_vm1, %v4887_v31, -inf }
 0x193   : > { %v4889_v2 = vpop.f32.mrf.mxu0  ;;  %v1256_v3 = vmax.f32 %v4875_v16, %v1255_v1  ;;  %v4894_v45 = vpop.f32.mrf.mxu1  ;;  %v1328_v32 = vmax.f32 %v4880_v12, %v1327_v18 }
 0x194   : > { %6753 = vst [vmem:[#allocation75_spill] sm:$0xff] %v4889_v2  ;;  %6754 = vst [vmem:[#allocation76_spill] sm:$0xff] %v4894_v45 }
 0x195   : > { %1325 = vmax.xlane.f32.xlu0 %v1324_v13  ;;  %1257 = vmax.xlane.f32.xlu1 %v1256_v3  ;;  %v4896_v23 = vpop.f32.mrf.mxu0  ;;  %v4901_v41 = vpop.f32.mrf.mxu1 }
 0x196   : > { %6755 = vst [vmem:[#allocation77_spill] sm:$0xff] %v4896_v23  ;;  %v1259_v22 = vsel %vm1074_vm1, %v4896_v23, -inf  ;;  %6756 = vst [vmem:[#allocation78_spill] sm:$0xff] %v4901_v41  ;;  %v1331_v31 = vsel %vm1074_vm1, %v4901_v41, -inf }
 0x197   : > { %v4903_v20 = vpop.f32.mrf.mxu0  ;;  %v1260_v1 = vmax.f32 %v4889_v2, %v1259_v22  ;;  %v4908_v16 = vpop.f32.mrf.mxu1  ;;  %v1332_v18 = vmax.f32 %v4894_v45, %v1331_v31 }
 0x198   : > { %6757 = vst [vmem:[#allocation79_spill] sm:$0xff] %v4903_v20  ;;  %6758 = vst [vmem:[#allocation80_spill] sm:$0xff] %v4908_v16 }
 0x199   : > { %1329 = vmax.xlane.f32.xlu1 %v1328_v32  ;;  %1261 = vmax.xlane.f32.xlu0 %v1260_v1  ;;  %v4910_v13 = vpop.f32.mrf.mxu0  ;;  %v4915_v12 = vpop.f32.mrf.mxu1 }
 0x19a   : > { %6759 = vst [vmem:[#allocation81_spill] sm:$0xff] %v4910_v13  ;;  %v1263_v3 = vsel %vm1074_vm1, %v4910_v13, -inf  ;;  %6760 = vst [vmem:[#allocation82_spill] sm:$0xff] %v4915_v12  ;;  %v1335_v41 = vsel %vm1074_vm1, %v4915_v12, -inf }
 0x19b   : > { %v4917_v23 = vpop.f32.mrf.mxu0  ;;  %v1264_v22 = vmax.f32 %v4903_v20, %v1263_v3  ;;  %v4922_v2 = vpop.f32.mrf.mxu1  ;;  %v1336_v31 = vmax.f32 %v4908_v16, %v1335_v41 }
 0x19c   : > { %6761 = vst [vmem:[#allocation83_spill] sm:$0xff] %v4917_v23  ;;  %6762 = vst [vmem:[#allocation84_spill] sm:$0xff] %v4922_v2 }
 0x19d   : > { %1333 = vmax.xlane.f32.xlu0 %v1332_v18  ;;  %1265 = vmax.xlane.f32.xlu1 %v1264_v22  ;;  %v4924_v32 = vpop.f32.mrf.mxu0  ;;  %v4929_v45 = vpop.f32.mrf.mxu1 }
 0x19e   : > { %6763 = vst [vmem:[#allocation85_spill] sm:$0xff] %v4924_v32  ;;  %v1267_v1 = vsel %vm1074_vm1, %v4924_v32, -inf  ;;  %6764 = vst [vmem:[#allocation86_spill] sm:$0xff] %v4929_v45  ;;  %v1339_v12 = vsel %vm1074_vm1, %v4929_v45, -inf }
 0x19f   : > { %v4931_v13 = vpop.f32.mrf.mxu0  ;;  %v1268_v3 = vmax.f32 %v4917_v23, %v1267_v1  ;;  %v4936_v20 = vpop.f32.mrf.mxu1  ;;  %v1340_v41 = vmax.f32 %v4922_v2, %v1339_v12 }
 0x1a0   : > { %6765 = vst [vmem:[#allocation87_spill] sm:$0xff] %v4931_v13  ;;  %6766 = vst [vmem:[#allocation88_spill] sm:$0xff] %v4936_v20 }
 0x1a1   : > { %1337 = vmax.xlane.f32.xlu1 %v1336_v31  ;;  %1269 = vmax.xlane.f32.xlu0 %v1268_v3  ;;  %v4938_v18 = vpop.f32.mrf.mxu0  ;;  %v4943_v16 = vpop.f32.mrf.mxu1 }
 0x1a2   : > { %6767 = vst [vmem:[#allocation89_spill] sm:$0xff] %v4938_v18  ;;  %v1271_v22 = vsel %vm1074_vm1, %v4938_v18, -inf  ;;  %6768 = vst [vmem:[#allocation90_spill] sm:$0xff] %v4943_v16  ;;  %v1343_v45 = vsel %vm1074_vm1, %v4943_v16, -inf }
 0x1a3   : > { %v4945_v32 = vpop.f32.mrf.mxu0  ;;  %v1272_v1 = vmax.f32 %v4931_v13, %v1271_v22  ;;  %v4950_v23 = vpop.f32.mrf.mxu1  ;;  %v1344_v12 = vmax.f32 %v4936_v20, %v1343_v45 }
 0x1a4   : > { %6769 = vst [vmem:[#allocation91_spill] sm:$0xff] %v4945_v32  ;;  %6770 = vst [vmem:[#allocation92_spill] sm:$0xff] %v4950_v23 }
 0x1a5   : > { %1341 = vmax.xlane.f32.xlu0 %v1340_v41  ;;  %1273 = vmax.xlane.f32.xlu1 %v1272_v1  ;;  %v4952_v31 = vpop.f32.mrf.mxu0  ;;  %v4957_v2 = vpop.f32.mrf.mxu1 }
 0x1a6   : > { %6771 = vst [vmem:[#allocation93_spill] sm:$0xff] %v4952_v31  ;;  %v1275_v3 = vsel %vm1074_vm1, %v4952_v31, -inf  ;;  %6772 = vst [vmem:[#allocation94_spill] sm:$0xff] %v4957_v2  ;;  %v1347_v16 = vsel %vm1074_vm1, %v4957_v2, -inf }
 0x1a7   : > { %v4959_v18 = vpop.f32.mrf.mxu0  ;;  %v1276_v22 = vmax.f32 %v4945_v32, %v1275_v3  ;;  %v4964_v13 = vpop.f32.mrf.mxu1  ;;  %v1348_v45 = vmax.f32 %v4950_v23, %v1347_v16 }
 0x1a8   : > { %6773 = vst [vmem:[#allocation95_spill] sm:$0xff] %v4959_v18  ;;  %6774 = vst [vmem:[#allocation96_spill] sm:$0xff] %v4964_v13 }
 0x1a9   : > { %1345 = vmax.xlane.f32.xlu1 %v1344_v12  ;;  %1277 = vmax.xlane.f32.xlu0 %v1276_v22  ;;  %v4966_v41 = vpop.f32.mrf.mxu0  ;;  %v4971_v20 = vpop.f32.mrf.mxu1 }
 0x1aa   : > { %6775 = vst [vmem:[#allocation97_spill] sm:$0xff] %v4966_v41  ;;  %v1279_v1 = vsel %vm1074_vm1, %v4966_v41, -inf  ;;  %6776 = vst [vmem:[#allocation98_spill] sm:$0xff] %v4971_v20  ;;  %v1351_v31 = vsel %vm1074_vm1, %v4971_v20, -inf }
 0x1ab   : > { %v1280_v2 = vmax.f32 %v4959_v18, %v1279_v1  ;;  %v1352_v3 = vmax.f32 %v4964_v13, %v1351_v31 }
 0x1ad   : > { %1349 = vmax.xlane.f32.xlu0 %v1348_v45  ;;  %1281 = vmax.xlane.f32.xlu1 %v1280_v2 }
 0x1b1   : > { %1353 = vmax.xlane.f32.xlu1 %v1352_v3 }
 0x1b2   : > { %v4977_v12 = vpop.xlane.xlu0 %1077 }
 0x1b3   : > { %6777 = vst [vmem:[#allocation99_spill] sm:$0xff] %v4977_v12 }
 0x1b6   : > { %v4979_v22 = vpop.xlane.xlu1 %1081 }
 0x1b7   : > { %6778 = vst [vmem:[#allocation100_spill] sm:$0xff] %v4979_v22 }
 0x1ba   : > { %v4981_v16 = vpop.xlane.xlu0 %1085 }
 0x1bb   : > { %6779 = vst [vmem:[#allocation101_spill] sm:$0xff] %v4981_v16 }
 0x1be   : > { %v4983_v23 = vpop.xlane.xlu0 %1157  ;;  %v4985_v41 = vpop.xlane.xlu1 %1089 }
 0x1bf   : > { %6780 = vst [vmem:[#allocation102_spill] sm:$0xff] %v4983_v23  ;;  %6781 = vst [vmem:[#allocation103_spill] sm:$0xff] %v4985_v41 }
 0x1c2   : > { %v4987_v32 = vpop.xlane.xlu1 %1161  ;;  %v4989_v20 = vpop.xlane.xlu0 %1093 }
 0x1c3   : > { %6782 = vst [vmem:[#allocation104_spill] sm:$0xff] %v4987_v32 }
 0x1c6   : > { %v4991_v1 = vpop.xlane.xlu0 %1165  ;;  %v4993_v2 = vpop.xlane.xlu1 %1097 }
 0x1c7   : > { %6783 = vst [vmem:[#allocation105_spill] sm:$0xff] %v4991_v1  ;;  %6784 = vst [vmem:[#allocation106_spill] sm:$0xff] %v4993_v2 }
 0x1ca   : > { %v4995_v31 = vpop.xlane.xlu1 %1169  ;;  %v4997_v45 = vpop.xlane.xlu0 %1101 }
 0x1cb   : > { %6785 = vst [vmem:[#allocation107_spill] sm:$0xff] %v4995_v31 }
 0x1ce   : > { %v4999_v3 = vpop.xlane.xlu0 %1173  ;;  %v5001_v13 = vpop.xlane.xlu1 %1105 }
 0x1d2   : > { %v5003_v18 = vpop.xlane.xlu1 %1177  ;;  %v1110_v23 = vpop.xlane.xlu0 %1109 }
 0x1d3   : > { %v1379_v41 = vsub.f32 %v4626_v4, %v1110_v23  ;;  %v1380_v32 = vsub.f32 %v4634_v9, %v1110_v23 }
 0x1d5   : > { %v1539_v16 = vmul.f32 1.442695, %v1379_v41  ;;  %v1541_v22 = vmul.f32 1.442695, %v1380_v32 }
 0x1d6   : > { %v1182_v12 = vpop.xlane.xlu0 %1181  ;;  %v1114_v47 = vpop.xlane.xlu1 %1113 }
 0x1d7   : > { %v1415_v37 = vsub.f32 %v4632_v6, %v1182_v12  ;;  %v1416_v31 = vsub.f32 %v4636_v10, %v1182_v12  ;;  %v1381_v46 = vsub.f32 %v4640_v14, %v1114_v47  ;;  %v1382_v2 = vsub.f32 %v4648_v27, %v1114_v47 }
 0x1d8   : > { %3679 = vpow2.f32 %v1539_v16 }
 0x1d9   : > { %v1611_v15 = vmul.f32 1.442695, %v1415_v37  ;;  %v1613_v17 = vmul.f32 1.442695, %v1416_v31  ;;  %v1543_v39 = vmul.f32 1.442695, %v1381_v46  ;;  %3681 = vpow2.f32 %v1541_v22 }
 0x1da   : > { %v1545_v4 = vmul.f32 1.442695, %v1382_v2  ;;  %v1186_v1 = vpop.xlane.xlu1 %1185  ;;  %v1118_v9 = vpop.xlane.xlu0 %1117 }
 0x1db   : > { %3683 = vpow2.f32 %v1611_v15  ;;  %v1417_v23 = vsub.f32 %v4646_v25, %v1186_v1  ;;  %v1418_v32 = vsub.f32 %v4650_v28, %v1186_v1  ;;  %v1383_v6 = vsub.f32 %v4654_v34, %v1118_v9 }
 0x1dc   : > { %3685 = vpow2.f32 %v1613_v17  ;;  %v1384_v10 = vsub.f32 %v4662_v43, %v1118_v9 }
 0x1dd   : > { %3687 = vpow2.f32 %v1543_v39  ;;  %v1615_v14 = vmul.f32 1.442695, %v1417_v23  ;;  %v1617_v27 = vmul.f32 1.442695, %v1418_v32  ;;  %v1547_v37 = vmul.f32 1.442695, %v1383_v6 }
 0x1de   : > { %3689 = vpow2.f32 %v1545_v4  ;;  %v1549_v46 = vmul.f32 1.442695, %v1384_v10  ;;  %v1190_v47 = vpop.xlane.xlu0 %1189  ;;  %v1122_v41 = vpop.xlane.xlu1 %1121 }
 0x1df   : > { %3691 = vpow2.f32 %v1615_v14  ;;  %v1419_v15 = vsub.f32 %v4660_v42, %v1190_v47  ;;  %v1420_v25 = vsub.f32 %v4664_v44, %v1190_v47  ;;  %v1385_v28 = vsub.f32 %v4668_v50, %v1122_v41 }
 0x1e0   : > { %3693 = vpow2.f32 %v1617_v27  ;;  %v1386_v34 = vsub.f32 %v4676_v59, %v1122_v41 }
 0x1e1   : > { %3695 = vpow2.f32 %v1547_v37  ;;  %v1619_v43 = vmul.f32 1.442695, %v1419_v15  ;;  %v1621_v39 = vmul.f32 1.442695, %v1420_v25  ;;  %v1551_v17 = vmul.f32 1.442695, %v1385_v28 }
 0x1e2   : > { %3697 = vpow2.f32 %v1549_v46  ;;  %v1553_v12 = vmul.f32 1.442695, %v1386_v34  ;;  %v1194_v22 = vpop.xlane.xlu1 %1193  ;;  %v1126_v16 = vpop.xlane.xlu0 %1125 }
 0x1e3   : > { %3699 = vpow2.f32 %v1619_v43  ;;  %v1421_v1 = vsub.f32 %v4674_v58, %v1194_v22  ;;  %v1422_v42 = vsub.f32 %v4678_v60, %v1194_v22  ;;  %v1387_v44 = vsub.f32 %v4682_v7, %v1126_v16 }
 0x1e4   : > { %3701 = vpow2.f32 %v1621_v39  ;;  %v1388_v50 = vsub.f32 %v4690_v19, %v1126_v16 }
 0x1e5   : > { %3703 = vpow2.f32 %v1551_v17  ;;  %v1623_v59 = vmul.f32 1.442695, %v1421_v1  ;;  %v1625_v2 = vmul.f32 1.442695, %v1422_v42  ;;  %v1555_v31 = vmul.f32 1.442695, %v1387_v44  ;;  %v5023_v4 = vpop.eup %3679 }
 0x1e6   : > { %3705 = vpow2.f32 %v1553_v12  ;;  %v1557_v9 = vmul.f32 1.442695, %v1388_v50  ;;  %v1198_v23 = vpop.xlane.xlu0 %1197  ;;  %v1130_v32 = vpop.xlane.xlu1 %1129 }
 0x1e7   : > { %v5025_v6 = vpop.eup %3681  ;;  %3707 = vpow2.f32 %v1623_v59  ;;  %v1423_v58 = vsub.f32 %v4688_v0, %v1198_v23  ;;  %v1424_v60 = vsub.f32 %v4692_v21, %v1198_v23  ;;  %v1389_v7 = vsub.f32 %v4696_v35, %v1130_v32 }
 0x1e8   : > { %v5030_v19 = vpop.eup %3683  ;;  %3709 = vpow2.f32 %v1625_v2  ;;  %v1390_v10 = vsub.f32 %v4704_v52, %v1130_v32  ;;  %v1827_v14 = vsel %vm1074_vm1, %v5025_v6, 0.0 }
 0x1e9   : > { %v5035_v27 = vpop.eup %3685  ;;  %3711 = vpow2.f32 %v1555_v31  ;;  %v1627_v37 = vmul.f32 1.442695, %v1423_v58  ;;  %v1629_v46 = vmul.f32 1.442695, %v1424_v60  ;;  %v1559_v47 = vmul.f32 1.442695, %v1389_v7 }
 0x1ea   : > { %v5037_v41 = vpop.eup %3687  ;;  %3713 = vpow2.f32 %v1557_v9  ;;  %v1561_v0 = vmul.f32 1.442695, %v1390_v10  ;;  %v1828_v21 = vadd.f32 %v5023_v4, %v1827_v14  ;;  %v1202_v35 = vpop.xlane.xlu1 %1201  ;;  %v1899_v52 = vsel %vm1074_vm1, %v5035_v27, 0.0 }
 0x1eb   : > { %v1134_v15 = vpop.xlane.xlu0 %1133  ;;  %v5042_v25 = vpop.eup %3689  ;;  %3715 = vpow2.f32 %v1627_v37  ;;  %v1425_v28 = vsub.f32 %v4702_v51, %v1202_v35  ;;  %v1426_v34 = vsub.f32 %v4706_v56, %v1202_v35  ;;  %v1900_v12 = vadd.f32 %v5030_v19, %v1899_v52 }
 0x1ec   : > { %v1391_v43 = vsub.f32 %v4710_v8, %v1134_v15  ;;  %v5047_v39 = vpop.eup %3691  ;;  %3717 = vpow2.f32 %v1629_v46  ;;  %1829 = vadd.xlane.f32.xlu0 %v1828_v21  ;;  %v1392_v17 = vsub.f32 %v4718_v36, %v1134_v15  ;;  %v1831_v22 = vsel %vm1074_vm1, %v5042_v25, 0.0 }
 0x1ed   : > { %v5053_v16 = vpop.eup %3693  ;;  %3719 = vpow2.f32 %v1559_v47  ;;  %v1631_v1 = vmul.f32 1.442695, %v1425_v28  ;;  %v1633_v51 = vmul.f32 1.442695, %v1426_v34  ;;  %v1832_v44 = vadd.f32 %v5037_v41, %v1831_v22 }
 0x1ee   : > { %v1563_v42 = vmul.f32 1.442695, %v1391_v43  ;;  %v5055_v56 = vpop.eup %3695  ;;  %3721 = vpow2.f32 %v1561_v0  ;;  %v1565_v8 = vmul.f32 1.442695, %v1392_v17  ;;  %v1206_v50 = vpop.xlane.xlu1 %1205  ;;  %v1903_v36 = vsel %vm1074_vm1, %v5053_v16, 0.0 }
 0x1ef   : > { %v1138_v59 = vpop.xlane.xlu0 %1137  ;;  %v5060_v2 = vpop.eup %3697  ;;  %3723 = vpow2.f32 %v1631_v1  ;;  %v1427_v31 = vsub.f32 %v4716_v29, %v1206_v50  ;;  %v1428_v9 = vsub.f32 %v4720_v40, %v1206_v50  ;;  %1833 = vadd.xlane.f32.xlu1 %v1832_v44  ;;  %v1904_v7 = vadd.f32 %v5047_v39, %v1903_v36 }
 0x1f0   : > { %v1393_v23 = vsub.f32 %v4724_v26, %v1138_v59  ;;  %v5065_v32 = vpop.eup %3699  ;;  %3725 = vpow2.f32 %v1633_v51  ;;  %1901 = vadd.xlane.f32.xlu0 %v1900_v12  ;;  %v1394_v58 = vsub.f32 %v4732_v5, %v1138_v59  ;;  %v1835_v60 = vsel %vm1074_vm1, %v5060_v2, 0.0 }
 0x1f1   : > { %v5071_v10 = vpop.eup %3701  ;;  %3727 = vpow2.f32 %v1563_v42  ;;  %v1635_v29 = vmul.f32 1.442695, %v1427_v31  ;;  %v1637_v14 = vmul.f32 1.442695, %v1428_v9  ;;  %v1836_v46 = vadd.f32 %v5055_v56, %v1835_v60 }
 0x1f2   : > { %v1567_v40 = vmul.f32 1.442695, %v1393_v23  ;;  %v5073_v37 = vpop.eup %3703  ;;  %3729 = vpow2.f32 %v1565_v8  ;;  %v1569_v26 = vmul.f32 1.442695, %v1394_v58  ;;  %v1210_v47 = vpop.xlane.xlu1 %1209  ;;  %v1907_v5 = vsel %vm1074_vm1, %v5071_v10, 0.0 }
 0x1f3   : > { %v5078_v0 = vpop.eup %3705  ;;  %3731 = vpow2.f32 %v1635_v29  ;;  %v1429_v21 = vsub.f32 %v4730_v24, %v1210_v47  ;;  %v1430_v35 = vsub.f32 %v4734_v11, %v1210_v47  ;;  %1905 = vadd.xlane.f32.xlu1 %v1904_v7  ;;  %v1908_v52 = vadd.f32 %v5065_v32, %v1907_v5  ;;  %v5111_v36 = vpop.xlane.xlu0 %1149 }
 0x1f4   : > { %v5082_v15 = vpop.eup %3707  ;;  %3733 = vpow2.f32 %v1637_v14  ;;  %1837 = vadd.xlane.f32.xlu0 %v1836_v46  ;;  %v1839_v28 = vsel %vm1074_vm1, %v5078_v0, 0.0  ;;  %v1376_v1 = vsub.f32 %v4606_v54, %v4997_v45  ;;  %v1375_v50 = vsub.f32 %v4598_v49, %v4997_v45 }
 0x1f5   : > { %6786 = vst [vmem:[#allocation108_spill] sm:$0xff] %v5082_v15  ;;  %v5087_v34 = vpop.eup %3709  ;;  %3735 = vpow2.f32 %v1567_v40  ;;  %v1639_v43 = vmul.f32 1.442695, %v1429_v21  ;;  %v1641_v17 = vmul.f32 1.442695, %v1430_v35  ;;  %v1840_v24 = vadd.f32 %v5073_v37, %v1839_v28 }
 0x1f6   : > { %6787 = vst [vmem:[#allocation109_spill] sm:$0xff] %v5087_v34  ;;  %v5089_v12 = vpop.eup %3711  ;;  %3737 = vpow2.f32 %v1569_v26  ;;  %v1911_v11 = vsel %vm1074_vm1, %v5087_v34, 0.0  ;;  %v1412_v54 = vsub.f32 %v4608_v55, %v4999_v3  ;;  %v1533_v58 = vmul.f32 1.442695, %v1376_v1  ;;  %v5133_v46 = vpop.xlane.xlu1 %1153 }
 0x1f7   : > { %6788 = vst [vmem:[#allocation110_spill] sm:$0xff] %v5089_v12  ;;  %v5094_v22 = vpop.eup %3713  ;;  %3739 = vpow2.f32 %v1639_v43  ;;  %1841 = vadd.xlane.f32.xlu1 %v1840_v24  ;;  %v1912_v8 = vadd.f32 %v5082_v15, %v1911_v11  ;;  %v1378_v60 = vsub.f32 %v4620_v62, %v5001_v13  ;;  %v1531_v29 = vmul.f32 1.442695, %v1375_v50  ;;  %v6879_v15 = vld [vmem:[#allocation33_spill] sm:$0xff] }
 0x1f8   : > { %6789 = vst [vmem:[#allocation111_spill] sm:$0xff] %v5094_v22  ;;  %v5098_v51 = vpop.eup %3715  ;;  %3741 = vpow2.f32 %v1641_v17  ;;  %1909 = vadd.xlane.f32.xlu0 %v1908_v52  ;;  %v1843_v42 = vsel %vm1074_vm1, %v5094_v22, 0.0  ;;  %v1411_v14 = vsub.f32 %v4604_v53, %v4999_v3  ;;  %v1605_v26 = vmul.f32 1.442695, %v1412_v54  ;;  %v5144_v52 = vpop.xlane.xlu0 %1141 }
 0x1f9   : > { %6790 = vst [vmem:[#allocation112_spill] sm:$0xff] %v5098_v51  ;;  %v5103_v44 = vpop.eup %3717  ;;  %v1844_v31 = vadd.f32 %v5089_v12, %v1843_v42  ;;  %v1377_v62 = vsub.f32 %v4612_v57, %v5001_v13  ;;  %3743 = vpow2.f32 %v1533_v58  ;;  %v1537_v35 = vmul.f32 1.442695, %v1378_v60 }
 0x1fa   : > { %6791 = vst [vmem:[#allocation113_spill] sm:$0xff] %v5103_v44  ;;  %v5107_v59 = vpop.eup %3719  ;;  %v1915_v9 = vsel %vm1074_vm1, %v5103_v44, 0.0  ;;  %v1414_v53 = vsub.f32 %v4622_v63, %v5003_v18  ;;  %3745 = vpow2.f32 %v1531_v29  ;;  %v1603_v43 = vmul.f32 1.442695, %v1411_v14  ;;  %v5162_v54 = vpop.xlane.xlu1 %1145  ;;  %v6840_v44 = vld [vmem:[#allocation35_spill] sm:$0xff] }
 0x1fb   : > { %6792 = vst [vmem:[#allocation114_spill] sm:$0xff] %v5107_v59  ;;  %v5116_v23 = vpop.eup %3721  ;;  %1913 = vadd.xlane.f32.xlu1 %v1912_v8  ;;  %v1916_v49 = vadd.f32 %v5098_v51, %v1915_v9  ;;  %3747 = vpow2.f32 %v1605_v26  ;;  %v1535_v63 = vmul.f32 1.442695, %v1377_v62  ;;  %v1413_v11 = vsub.f32 %v4618_v61, %v5003_v18 }
 0x1fc   : > { %6793 = vst [vmem:[#allocation115_spill] sm:$0xff] %v5116_v23  ;;  %v5120_v7 = vpop.eup %3723  ;;  %1845 = vadd.xlane.f32.xlu0 %v1844_v31  ;;  %v1847_v55 = vsel %vm1074_vm1, %v5116_v23, 0.0  ;;  %3749 = vpow2.f32 %v1537_v35  ;;  %v1609_v8 = vmul.f32 1.442695, %v1414_v53  ;;  %v5170_v60 = vpop.xlane.xlu0 %1213  ;;  %v1372_v29 = vsub.f32 %v4578_v38, %v4989_v20 }
 0x1fd   : > { %6794 = vst [vmem:[#allocation116_spill] sm:$0xff] %v5120_v7  ;;  %v5125_v45 = vpop.eup %3725  ;;  %v1848_v47 = vadd.f32 %v5107_v59, %v1847_v55  ;;  %3751 = vpow2.f32 %v1603_v43  ;;  %v1607_v18 = vmul.f32 1.442695, %v1413_v11  ;;  %v1227_v55 = vsel %vm1074_vm1, %v4797_v30, -inf  ;;  %v6807_v43 = vld [vmem:[#allocation49_spill] sm:$0xff]  ;;  %v6808_v11 = vld [vmem:[#allocation106_spill] sm:$0xff] }
 0x1fe   : > { %6795 = vst [vmem:[#allocation117_spill] sm:$0xff] %v5125_v45  ;;  %v5129_v40 = vpop.eup %3727  ;;  %v1919_v5 = vsel %vm1074_vm1, %v5125_v45, 0.0  ;;  %3753 = vpow2.f32 %v1535_v63  ;;  %v1371_v26 = vsub.f32 %v4570_v33, %v4989_v20  ;;  %v1299_v62 = vsel %vm1074_vm1, %v4799_v48, -inf  ;;  %v5185_v53 = vpop.xlane.xlu1 %1217 }
 0x1ff   : > { %6796 = vst [vmem:[#allocation118_spill] sm:$0xff] %v5129_v40  ;;  %v5138_v21 = vpop.eup %3729  ;;  %1849 = vadd.xlane.f32.xlu1 %v1848_v47  ;;  %v1920_v13 = vadd.f32 %v5120_v7, %v1919_v5  ;;  %3755 = vpow2.f32 %v1609_v8  ;;  %v6804_v47 = vld [vmem:[#allocation105_spill] sm:$0xff]  ;;  %v6805_v5 = vld [vmem:[#allocation22_spill] sm:$0xff]  ;;  %v1525_v63 = vmul.f32 1.442695, %v1372_v29  ;;  %v6815_v29 = vld [vmem:[#allocation23_spill] sm:$0xff]  ;;  %v5285_v48 = vpop.f32.mrf.mxu1  ;;  %v1398_v34 = vsub.f32 %v6879_v15, %v5162_v54 }
 0x200   : > { %6797 = vst [vmem:[#allocation119_spill] sm:$0xff] %v5138_v21  ;;  %v5142_v3 = vpop.eup %3731  ;;  %1917 = vadd.xlane.f32.xlu0 %v1916_v49  ;;  %v1851_v57 = vsel %vm1074_vm1, %v5138_v21, 0.0  ;;  %v1408_v35 = vsub.f32 %v6805_v5, %v6804_v47  ;;  %3757 = vpow2.f32 %v1607_v18  ;;  %v1523_v8 = vmul.f32 1.442695, %v1371_v26  ;;  %v6823_v7 = vld [vmem:[#allocation48_spill] sm:$0xff] }
 0x201   : > { %6798 = vst [vmem:[#allocation120_spill] sm:$0xff] %v5142_v3  ;;  %v5149_v28 = vpop.eup %3733  ;;  %v1852_v17 = vadd.f32 %v5129_v40, %v1851_v57  ;;  %v6806_v57 = vld [vmem:[#allocation43_spill] sm:$0xff]  ;;  %3759 = vpow2.f32 %v1525_v63 }
 0x202   : > { %6799 = vst [vmem:[#allocation121_spill] sm:$0xff] %v5149_v28  ;;  %v5152_v24 = vpop.eup %3735  ;;  %v1923_v1 = vsel %vm1074_vm1, %v5149_v28, 0.0  ;;  %3761 = vpow2.f32 %v1523_v8 }
 0x203   : > { %6800 = vst [vmem:[#allocation122_spill] sm:$0xff] %v5152_v24  ;;  %v5158_v42 = vpop.eup %3737  ;;  %1921 = vadd.xlane.f32.xlu1 %v1920_v13  ;;  %v1924_v31 = vadd.f32 %v5142_v3, %v1923_v1  ;;  %v1228_v13 = vmax.f32 %v6806_v57, %v1227_v55  ;;  %v6809_v1 = vld [vmem:[#allocation25_spill] sm:$0xff]  ;;  %v6814_v55 = vld [vmem:[#allocation50_spill] sm:$0xff] }
 0x204   : > { %6801 = vst [vmem:[#allocation123_spill] sm:$0xff] %v5158_v42  ;;  %v5160_v50 = vpop.eup %3739  ;;  %1853 = vadd.xlane.f32.xlu0 %v1852_v17  ;;  %v1855_v9 = vsel %vm1074_vm1, %v5158_v42, 0.0  ;;  %v1231_v17 = vsel %vm1074_vm1, %v6807_v43, -inf  ;;  %v1374_v33 = vsub.f32 %v6809_v1, %v6808_v11  ;;  %v1303_v5 = vsel %vm1074_vm1, %v6814_v55, -inf  ;;  %v6816_v1 = vld [vmem:[#allocation47_spill] sm:$0xff] }
 0x205   : > { %6802 = vst [vmem:[#allocation124_spill] sm:$0xff] %v5160_v50  ;;  %v5167_v58 = vpop.eup %3741  ;;  %v1856_v61 = vadd.f32 %v5152_v24, %v1855_v9  ;;  %v1232_v3 = vmax.f32 %v6816_v1, %v1231_v17  ;;  %v6822_v17 = vld [vmem:[#allocation5_spill] sm:$0xff]  ;;  %v1304_v55 = vmax.f32 %v6823_v7, %v1303_v5  ;;  %v6828_v5 = vld [vmem:[#allocation7_spill] sm:$0xff] }
 0x206   : > { %6803 = vst [vmem:[#allocation125_spill] sm:$0xff] %v5167_v58  ;;  %v1927_v49 = vsel %vm1074_vm1, %v5167_v58, 0.0  ;;  %v5194_v20 = vpop.eup %3743  ;;  %v1373_v58 = vsub.f32 %v6815_v29, %v6808_v11  ;;  %v6821_v11 = vld [vmem:[#allocation99_spill] sm:$0xff] }
 0x207   : > { %1857 = vadd.xlane.f32.xlu1 %v1856_v61  ;;  %v1928_v14 = vadd.f32 %v5160_v50, %v1927_v49  ;;  %6810 = vst [vmem:[#allocation105_spill] sm:$0xff] %v5194_v20  ;;  %v6812_v61 = vld [vmem:[#allocation44_spill] sm:$0xff]  ;;  %v5199_v49 = vpop.eup %3745  ;;  %v1597_v50 = vmul.f32 1.442695, %v1408_v35  ;;  %v1819_v42 = vsel %vm1074_vm1, %v5194_v20, 0.0  ;;  %v1363_v29 = vsub.f32 %v6822_v17, %v6821_v11 }
 0x208   : > { %1925 = vadd.xlane.f32.xlu0 %v1924_v31  ;;  %v6811_v31 = vld [vmem:[#allocation21_spill] sm:$0xff]  ;;  %v1300_v18 = vmax.f32 %v6812_v61, %v1299_v62  ;;  %6813 = vst [vmem:[#allocation22_spill] sm:$0xff] %v5199_v49  ;;  %v5210_v26 = vpop.eup %3747  ;;  %v6818_v62 = vld [vmem:[#allocation107_spill] sm:$0xff]  ;;  %v1527_v63 = vmul.f32 1.442695, %v1373_v58  ;;  %v1820_v20 = vadd.f32 %v5199_v49, %v1819_v42 }
 0x209   : > { %v1407_v9 = vsub.f32 %v6811_v31, %v6804_v47  ;;  %6817 = vst [vmem:[#allocation106_spill] sm:$0xff] %v5210_v26  ;;  %v1529_v47 = vmul.f32 1.442695, %v1374_v33  ;;  %v5216_v35 = vpop.eup %3749  ;;  %3763 = vpow2.f32 %v1597_v50  ;;  %v6825_v33 = vld [vmem:[#allocation24_spill] sm:$0xff]  ;;  %v6829_v42 = vld [vmem:[#allocation37_spill] sm:$0xff] }
 0x20a   : > { %v5188_v38 = vpop.xlane.xlu0 %1237  ;;  %6820 = vst [vmem:[#allocation25_spill] sm:$0xff] %v5216_v35  ;;  %v5221_v45 = vpop.eup %3751  ;;  %v1823_v50 = vsel %vm1074_vm1, %v5216_v35, 0.0  ;;  %v1219_v17 = vsel %vm1074_vm1, %v6829_v42, -inf  ;;  %v6831_v49 = vld [vmem:[#allocation9_spill] sm:$0xff]  ;;  %v6835_v42 = vld [vmem:[#allocation15_spill] sm:$0xff] }
 0x20b   : > { %1929 = vadd.xlane.f32.xlu1 %v1928_v14  ;;  %v1595_v28 = vmul.f32 1.442695, %v1407_v9  ;;  %6824 = vst [vmem:[#allocation21_spill] sm:$0xff] %v5221_v45  ;;  %3765 = vpow2.f32 %v1529_v47  ;;  %v1891_v9 = vsel %vm1074_vm1, %v5210_v26, 0.0  ;;  %v1220_v43 = vmax.f32 %v6840_v44, %v1219_v17 }
 0x20c   : > { %1229 = vmax.xlane.f32.xlu0 %v1228_v13  ;;  %v6819_v13 = vld [vmem:[#allocation26_spill] sm:$0xff]  ;;  %v1892_v35 = vadd.f32 %v5221_v45, %v1891_v9 }
 0x20d   : > { %v1410_v31 = vsub.f32 %v6819_v13, %v6818_v62  ;;  %v1409_v13 = vsub.f32 %v6825_v33, %v6818_v62  ;;  %v1364_v62 = vsub.f32 %v6828_v5, %v6821_v11  ;;  %v6830_v33 = vld [vmem:[#allocation100_spill] sm:$0xff]  ;;  %3767 = vpow2.f32 %v1595_v28  ;;  %v6834_v5 = vld [vmem:[#allocation101_spill] sm:$0xff]  ;;  %v6838_v45 = vld [vmem:[#allocation102_spill] sm:$0xff] }
 0x20e   : > { %v5206_v24 = vpop.xlane.xlu0 %1309  ;;  %v5208_v14 = vpop.xlane.xlu1 %1241  ;;  %v1365_v47 = vsub.f32 %v6831_v49, %v6830_v33  ;;  %3769 = vpow2.f32 %v1527_v63  ;;  %v1507_v11 = vmul.f32 1.442695, %v1363_v29  ;;  %v1368_v49 = vsub.f32 %v6835_v42, %v6834_v5 }
 0x20f   : > { %1233 = vmax.xlane.f32.xlu1 %v1232_v3  ;;  %v5230_v3 = vpop.eup %3753  ;;  %v1601_v8 = vmul.f32 1.442695, %v1410_v31  ;;  %v6832_v31 = vld [vmem:[#allocation11_spill] sm:$0xff]  ;;  %v1599_v26 = vmul.f32 1.442695, %v1409_v13  ;;  %v6836_v13 = vld [vmem:[#allocation13_spill] sm:$0xff] }
 0x210   : > { %1301 = vmax.xlane.f32.xlu0 %v1300_v18  ;;  %6826 = vst [vmem:[#allocation23_spill] sm:$0xff] %v5230_v3  ;;  %v5236_v58 = vpop.eup %3755  ;;  %v1366_v7 = vsub.f32 %v6832_v31, %v6830_v33  ;;  %v1824_v21 = vadd.f32 %v5230_v3, %v1823_v50  ;;  %v1509_v63 = vmul.f32 1.442695, %v1364_v62  ;;  %v1367_v9 = vsub.f32 %v6836_v13, %v6834_v5  ;;  %v6837_v50 = vld [vmem:[#allocation38_spill] sm:$0xff]  ;;  %v6843_v13 = vld [vmem:[#allocation103_spill] sm:$0xff] }
 0x211   : > { %6827 = vst [vmem:[#allocation107_spill] sm:$0xff] %v5236_v58  ;;  %3771 = vpow2.f32 %v1601_v8  ;;  %v1895_v28 = vsel %vm1074_vm1, %v5236_v58, 0.0  ;;  %v1291_v33 = vsel %vm1074_vm1, %v6837_v50, -inf  ;;  %v1511_v31 = vmul.f32 1.442695, %v1365_v47  ;;  %v6839_v3 = vld [vmem:[#allocation14_spill] sm:$0xff] }
 0x212   : > { %v5226_v40 = vpop.xlane.xlu1 %1313  ;;  %v5228_v18 = vpop.xlane.xlu0 %1245  ;;  %v1403_v29 = vsub.f32 %v6839_v3, %v6838_v45  ;;  %v1513_v42 = vmul.f32 1.442695, %v1366_v7  ;;  %v6841_v8 = vld [vmem:[#allocation16_spill] sm:$0xff]  ;;  %3773 = vpow2.f32 %v1599_v26  ;;  %v1517_v47 = vmul.f32 1.442695, %v1368_v49  ;;  %v6844_v3 = vld [vmem:[#allocation19_spill] sm:$0xff] }
 0x213   : > { %1305 = vmax.xlane.f32.xlu1 %v1304_v55  ;;  %v5252_v55 = vpop.eup %3757  ;;  %v1404_v1 = vsub.f32 %v6841_v8, %v6838_v45  ;;  %3775 = vpow2.f32 %v1507_v11  ;;  %v1370_v50 = vsub.f32 %v6844_v3, %v6843_v13  ;;  %v1515_v7 = vmul.f32 1.442695, %v1367_v9  ;;  %v6846_v45 = vld [vmem:[#allocation17_spill] sm:$0xff]  ;;  %v6850_v49 = vld [vmem:[#allocation36_spill] sm:$0xff] }
 0x214   : > { %1821 = vadd.xlane.f32.xlu0 %v1820_v20  ;;  %6833 = vst [vmem:[#allocation26_spill] sm:$0xff] %v5252_v55  ;;  %v1896_v62 = vadd.f32 %v5252_v55, %v1895_v28  ;;  %v5276_v17 = vpop.eup %3759  ;;  %3777 = vpow2.f32 %v1509_v63  ;;  %v1369_v26 = vsub.f32 %v6846_v45, %v6843_v13  ;;  %v5280_v28 = vpop.f32.mrf.mxu0  ;;  %v1587_v8 = vmul.f32 1.442695, %v1403_v29  ;;  %v6848_v55 = vld [vmem:[#allocation104_spill] sm:$0xff]  ;;  %v6852_v63 = vld [vmem:[#allocation42_spill] sm:$0xff] }
 0x215   : > { %6845 = vst [vmem:[#allocation99_spill] sm:$0xff] %v5276_v17  ;;  %6847 = vst [vmem:[#allocation5_spill] sm:$0xff] %v5280_v28  ;;  %3779 = vpow2.f32 %v1511_v31  ;;  %v1292_v44 = vmax.f32 %v6850_v49, %v1291_v33  ;;  %v5287_v3 = vpop.eup %3761  ;;  %v1295_v9 = vsel %vm1074_vm1, %v6852_v63, -inf  ;;  %v1589_v13 = vmul.f32 1.442695, %v1404_v1  ;;  %v6855_v33 = vld [vmem:[#allocation8_spill] sm:$0xff] }
 0x216   : > { %v5248_v51 = vpop.xlane.xlu0 %1317  ;;  %v5250_v20 = vpop.xlane.xlu1 %1249  ;;  %6851 = vst [vmem:[#allocation24_spill] sm:$0xff] %v5287_v3  ;;  %3781 = vpow2.f32 %v1513_v42  ;;  %v1400_v49 = vsub.f32 %v6855_v33, %v5111_v36  ;;  %v1811_v61 = vsel %vm1074_vm1, %v5276_v17, 0.0  ;;  %v1519_v1 = vmul.f32 1.442695, %v1369_v26  ;;  %v6857_v42 = vld [vmem:[#allocation18_spill] sm:$0xff]  ;;  %v6862_v26 = vld [vmem:[#allocation40_spill] sm:$0xff] }
 0x217   : > { %1825 = vadd.xlane.f32.xlu1 %v1824_v21  ;;  %v6842_v21 = vld [vmem:[#allocation41_spill] sm:$0xff]  ;;  %v5296_v29 = vpop.eup %3763  ;;  %3783 = vpow2.f32 %v1517_v47  ;;  %v5306_v63 = vpop.f32.mrf.mxu0  ;;  %v6861_v33 = vld [vmem:[#allocation6_spill] sm:$0xff]  ;;  %v1296_v23 = vmax.f32 %v6862_v26, %v1295_v9 }
 0x218   : > { %1893 = vadd.xlane.f32.xlu0 %v1892_v35  ;;  %v1223_v5 = vsel %vm1074_vm1, %v6842_v21, -inf  ;;  %v6849_v21 = vld [vmem:[#allocation20_spill] sm:$0xff]  ;;  %6854 = vst [vmem:[#allocation7_spill] sm:$0xff] %v5296_v29  ;;  %v5302_v59 = vpop.eup %3765  ;;  %3785 = vpow2.f32 %v1515_v7  ;;  %6858 = vst [vmem:[#allocation9_spill] sm:$0xff] %v5306_v63  ;;  %v1399_v17 = vsub.f32 %v6861_v33, %v5111_v36  ;;  %v1812_v7 = vadd.f32 %v5287_v3, %v1811_v61 }
 0x219   : > { %v1406_v11 = vsub.f32 %v6849_v21, %v6848_v55  ;;  %v1521_v21 = vmul.f32 1.442695, %v1370_v50  ;;  %6856 = vst [vmem:[#allocation100_spill] sm:$0xff] %v5302_v59  ;;  %3787 = vpow2.f32 %v1587_v8  ;;  %v5308_v50 = vpop.f32.mrf.mxu1  ;;  %v1581_v8 = vmul.f32 1.442695, %v1400_v49  ;;  %v6865_v61 = vld [vmem:[#allocation12_spill] sm:$0xff] }
 0x21a   : > { %v5268_v58 = vpop.xlane.xlu1 %1321  ;;  %v5270_v35 = vpop.xlane.xlu0 %1253  ;;  %6859 = vst [vmem:[#allocation11_spill] sm:$0xff] %v5308_v50  ;;  %3789 = vpow2.f32 %v1589_v13  ;;  %v1815_v13 = vsel %vm1074_vm1, %v5302_v59, 0.0  ;;  %v1402_v9 = vsub.f32 %v6865_v61, %v5133_v46  ;;  %v1283_v49 = vsel %vm1074_vm1, %v5306_v63, -inf  ;;  %v6867_v59 = vld [vmem:[#allocation29_spill] sm:$0xff] }
 0x21b   : > { %1897 = vadd.xlane.f32.xlu1 %v1896_v62  ;;  %v1593_v47 = vmul.f32 1.442695, %v1406_v11  ;;  %3791 = vpow2.f32 %v1521_v21  ;;  %v1883_v11 = vsel %vm1074_vm1, %v5296_v29, 0.0  ;;  %v5334_v21 = vpop.f32.mrf.mxu1  ;;  %v1579_v33 = vmul.f32 1.442695, %v1399_v17 }
 0x21c   : > { %1221 = vmax.xlane.f32.xlu0 %v1220_v43  ;;  %v6853_v43 = vld [vmem:[#allocation39_spill] sm:$0xff]  ;;  %3793 = vpow2.f32 %v1519_v1  ;;  %6866 = vst [vmem:[#allocation102_spill] sm:$0xff] %v5334_v21  ;;  %v1396_v29 = vsub.f32 %v6867_v59, %v5144_v52  ;;  %v1585_v59 = vmul.f32 1.442695, %v1402_v9 }
 0x21d   : > { %v1224_v62 = vmax.f32 %v6853_v43, %v1223_v5  ;;  %v1405_v5 = vsub.f32 %v6857_v42, %v6848_v55  ;;  %v5310_v43 = vpop.eup %3767  ;;  %v5330_v42 = vpop.f32.mrf.mxu0  ;;  %3795 = vpow2.f32 %v1593_v47 }
 0x21e   : > { %v5292_v45 = vpop.xlane.xlu0 %1325  ;;  %v5294_v31 = vpop.xlane.xlu1 %1257  ;;  %6860 = vst [vmem:[#allocation101_spill] sm:$0xff] %v5310_v43  ;;  %v1884_v1 = vadd.f32 %v5310_v43, %v1883_v11  ;;  %3797 = vpow2.f32 %v1581_v8  ;;  %v6871_v11 = vld [vmem:[#allocation27_spill] sm:$0xff]  ;;  %v6874_v8 = vld [vmem:[#allocation28_spill] sm:$0xff] }
 0x21f   : > { %1225 = vmax.xlane.f32.xlu1 %v1224_v62  ;;  %v5320_v55 = vpop.eup %3769  ;;  %v1591_v36 = vmul.f32 1.442695, %v1405_v5  ;;  %v5354_v43 = vpop.f32.mrf.mxu0  ;;  %v1431_v26 = vsub.f32 %v6874_v8, %v5170_v60 }
 0x220   : > { %1293 = vmax.xlane.f32.xlu0 %v1292_v44  ;;  %6863 = vst [vmem:[#allocation15_spill] sm:$0xff] %v5320_v55  ;;  %v5326_v62 = vpop.eup %3771  ;;  %v1816_v5 = vadd.f32 %v5320_v55, %v1815_v13  ;;  %v1395_v13 = vsub.f32 %v6871_v11, %v5144_v52  ;;  %6872 = vst [vmem:[#allocation103_spill] sm:$0xff] %v5354_v43  ;;  %v1573_v52 = vmul.f32 1.442695, %v1396_v29  ;;  %v6877_v11 = vld [vmem:[#allocation30_spill] sm:$0xff] }
 0x221   : > { %6864 = vst [vmem:[#allocation13_spill] sm:$0xff] %v5326_v62  ;;  %v1887_v17 = vsel %vm1074_vm1, %v5326_v62, 0.0  ;;  %3799 = vpow2.f32 %v1591_v36  ;;  %v1284_v36 = vmax.f32 %v5280_v28, %v1283_v49  ;;  %v1287_v49 = vsel %vm1074_vm1, %v5354_v43, -inf }
 0x222   : > { %v5316_v30 = vpop.xlane.xlu1 %1329  ;;  %v5318_v44 = vpop.xlane.xlu0 %1261  ;;  %3801 = vpow2.f32 %v1579_v33  ;;  %v1571_v29 = vmul.f32 1.442695, %v1395_v13  ;;  %v6885_v13 = vld [vmem:[#allocation32_spill] sm:$0xff] }
 0x223   : > { %1297 = vmax.xlane.f32.xlu1 %v1296_v23  ;;  %v6869_v23 = vld [vmem:[#allocation10_spill] sm:$0xff]  ;;  %3803 = vpow2.f32 %v1585_v59 }
 0x224   : > { %1813 = vadd.xlane.f32.xlu0 %v1812_v7  ;;  %v5344_v7 = vpop.eup %3773  ;;  %v1401_v47 = vsub.f32 %v6869_v23, %v5133_v46  ;;  %v1355_v46 = vsel %vm1074_vm1, %v5308_v50, -inf  ;;  %v5362_v23 = vpop.f32.mrf.mxu1  ;;  %3805 = vpow2.f32 %v1573_v52 }
 0x225   : > { %6868 = vst [vmem:[#allocation14_spill] sm:$0xff] %v5344_v7  ;;  %v5350_v63 = vpop.eup %3775  ;;  %6875 = vst [vmem:[#allocation17_spill] sm:$0xff] %v5362_v23  ;;  %v1359_v15 = vsel %vm1074_vm1, %v5362_v23, -inf  ;;  %v1356_v43 = vmax.f32 %v5285_v48, %v1355_v46 }
 0x226   : > { %v5340_v3 = vpop.xlane.xlu0 %1333  ;;  %v5342_v61 = vpop.xlane.xlu1 %1265  ;;  %6870 = vst [vmem:[#allocation16_spill] sm:$0xff] %v5350_v63  ;;  %v1583_v50 = vmul.f32 1.442695, %v1401_v47  ;;  %v6883_v47 = vld [vmem:[#allocation31_spill] sm:$0xff]  ;;  %v1360_v23 = vmax.f32 %v5334_v21, %v1359_v15 }
 0x227   : > { %1817 = vadd.xlane.f32.xlu1 %v1816_v5  ;;  %v5356_v55 = vpop.eup %3777  ;;  %v1888_v5 = vadd.f32 %v5344_v7, %v1887_v17  ;;  %v1643_v7 = vmul.f32 1.442695, %v1431_v26  ;;  %v1397_v28 = vsub.f32 %v6883_v47, %v5162_v54  ;;  %v1577_v54 = vmul.f32 1.442695, %v1398_v34 }
 0x228   : > { %1885 = vadd.xlane.f32.xlu0 %v1884_v1  ;;  %6873 = vst [vmem:[#allocation19_spill] sm:$0xff] %v5356_v55  ;;  %v5365_v9 = vpop.eup %3779  ;;  %v1432_v1 = vsub.f32 %v6877_v11, %v5170_v60  ;;  %v6881_v60 = vld [vmem:[#allocation34_spill] sm:$0xff]  ;;  %3807 = vpow2.f32 %v1583_v50  ;;  %v1795_v34 = vsel %vm1074_vm1, %v5356_v55, 0.0 }
 0x229   : > { %6876 = vst [vmem:[#allocation104_spill] sm:$0xff] %v5365_v9  ;;  %v5374_v8 = vpop.eup %3781  ;;  %v1434_v17 = vsub.f32 %v6881_v60, %v5185_v53  ;;  %v1433_v60 = vsub.f32 %v6885_v13, %v5185_v53  ;;  %3809 = vpow2.f32 %v1571_v29  ;;  %v1575_v13 = vmul.f32 1.442695, %v1397_v28 }
 0x22a   : > { %v5370_v62 = vpop.xlane.xlu1 %1337  ;;  %v5372_v57 = vpop.xlane.xlu0 %1269  ;;  %6878 = vst [vmem:[#allocation20_spill] sm:$0xff] %v5374_v8  ;;  %v1645_v59 = vmul.f32 1.442695, %v1432_v1  ;;  %v6888_v1 = vld [vmem:[#allocation85_spill] sm:$0xff]  ;;  %3811 = vpow2.f32 %v1643_v7  ;;  %v6891_v7 = vld [vmem:[#allocation91_spill] sm:$0xff] }
 0x22b   : > { %v5380_v33 = vpop.eup %3783  ;;  %1889 = vadd.xlane.f32.xlu1 %v1888_v5  ;;  %v1649_v52 = vmul.f32 1.442695, %v1434_v17  ;;  %v1460_v53 = vsub.f32 %v6888_v1, %v5372_v57 }
 0x22c   : > { %6880 = vst [vmem:[#allocation8_spill] sm:$0xff] %v5380_v33  ;;  %1285 = vmax.xlane.f32.xlu0 %v1284_v36  ;;  %v5384_v11 = vpop.eup %3785  ;;  %v1288_v36 = vmax.f32 %v5330_v42, %v1287_v49  ;;  %v1803_v46 = vsel %vm1074_vm1, %v5380_v33, 0.0  ;;  %3813 = vpow2.f32 %v1645_v59  ;;  %v1647_v33 = vmul.f32 1.442695, %v1433_v60  ;;  %v6893_v60 = vld [vmem:[#allocation93_spill] sm:$0xff] }
 0x22d   : > { %6882 = vst [vmem:[#allocation18_spill] sm:$0xff] %v5384_v11  ;;  %v5391_v12 = vpop.eup %3787  ;;  %v1804_v29 = vadd.f32 %v5384_v11, %v1803_v46  ;;  %3815 = vpow2.f32 %v1577_v54  ;;  %v1701_v59 = vmul.f32 1.442695, %v1460_v53  ;;  %v1796_v11 = vadd.f32 %v5350_v63, %v1795_v34  ;;  %v6894_v34 = vld [vmem:[#allocation92_spill] sm:$0xff]  ;;  %v6895_v63 = vld [vmem:[#allocation94_spill] sm:$0xff] }
 0x22e   : > { %6884 = vst [vmem:[#allocation6_spill] sm:$0xff] %v5391_v12  ;;  %v5396_v5 = vpop.xlane.xlu0 %1341  ;;  %v5398_v26 = vpop.xlane.xlu1 %1273  ;;  %3817 = vpow2.f32 %v1649_v52 }
 0x22f   : > { %v5400_v22 = vpop.eup %3789  ;;  %1289 = vmax.xlane.f32.xlu1 %v1288_v36  ;;  %3819 = vpow2.f32 %v1575_v13 }
 0x230   : > { %6886 = vst [vmem:[#allocation12_spill] sm:$0xff] %v5400_v22  ;;  %v5404_v47 = vpop.eup %3791  ;;  %1357 = vmax.xlane.f32.xlu0 %v1356_v43  ;;  %v1799_v43 = vsel %vm1074_vm1, %v5374_v8, 0.0  ;;  %v1875_v15 = vsel %vm1074_vm1, %v5400_v22, 0.0  ;;  %3821 = vpow2.f32 %v1647_v33  ;;  %v6897_v33 = vld [vmem:[#allocation83_spill] sm:$0xff] }
 0x231   : > { %6887 = vst [vmem:[#allocation29_spill] sm:$0xff] %v5404_v47  ;;  %v5408_v49 = vpop.eup %3793  ;;  %v1807_v36 = vsel %vm1074_vm1, %v5404_v47, 0.0  ;;  %v1800_v22 = vadd.f32 %v5365_v9, %v1799_v43  ;;  %v1876_v52 = vadd.f32 %v5391_v12, %v1875_v15  ;;  %v1459_v43 = vsub.f32 %v6897_v33, %v5372_v57  ;;  %v6898_v15 = vld [vmem:[#allocation97_spill] sm:$0xff] }
 0x232   : > { %6889 = vst [vmem:[#allocation10_spill] sm:$0xff] %v5408_v49  ;;  %v5413_v50 = vpop.eup %3795  ;;  %v5416_v17 = vpop.xlane.xlu1 %1345  ;;  %v1808_v53 = vadd.f32 %v5408_v49, %v1807_v36  ;;  %3823 = vpow2.f32 %v1701_v59 }
 0x233   : > { %6890 = vst [vmem:[#allocation27_spill] sm:$0xff] %v5413_v50  ;;  %v1278_v1 = vpop.xlane.xlu0 %1277  ;;  %v5425_v55 = vpop.eup %3797  ;;  %1361 = vmax.xlane.f32.xlu1 %v1360_v23 }
 0x234   : > { %v1463_v28 = vsub.f32 %v6891_v7, %v1278_v1  ;;  %6892 = vst [vmem:[#allocation28_spill] sm:$0xff] %v5425_v55  ;;  %1805 = vadd.xlane.f32.xlu0 %v1804_v29  ;;  %v1464_v46 = vsub.f32 %v6893_v60, %v1278_v1  ;;  %v5429_v8 = vpop.eup %3799  ;;  %v1879_v7 = vsel %vm1074_vm1, %v5413_v50, 0.0  ;;  %v1867_v50 = vsel %vm1074_vm1, %v5425_v55, 0.0 }
 0x235   : > { %v5436_v1 = vpop.eup %3801 }
 0x236   : > { %v1707_v54 = vmul.f32 1.442695, %v1463_v28  ;;  %v1709_v47 = vmul.f32 1.442695, %v1464_v46  ;;  %v1282_v29 = vpop.xlane.xlu1 %1281  ;;  %v6896_v28 = vld [vmem:[#allocation95_spill] sm:$0xff]  ;;  %v1880_v46 = vadd.f32 %v5429_v8, %v1879_v7  ;;  %v5447_v9 = vpop.eup %3803  ;;  %v1868_v57 = vadd.f32 %v5436_v1, %v1867_v50  ;;  %v6902_v7 = vld [vmem:[#allocation96_spill] sm:$0xff] }
 0x237   : > { %v1350_v23 = vpop.xlane.xlu0 %1349  ;;  %v1465_v21 = vsub.f32 %v6896_v28, %v1282_v29  ;;  %1809 = vadd.xlane.f32.xlu1 %v1808_v53  ;;  %v1466_v36 = vsub.f32 %v6898_v15, %v1282_v29  ;;  %6899 = vst [vmem:[#allocation30_spill] sm:$0xff] %v5447_v9  ;;  %v6900_v28 = vld [vmem:[#allocation86_spill] sm:$0xff]  ;;  %v5452_v59 = vpop.eup %3805  ;;  %v1871_v50 = vsel %vm1074_vm1, %v5447_v9, 0.0 }
 0x238   : > { %v1499_v60 = vsub.f32 %v6894_v34, %v1350_v23  ;;  %v1500_v13 = vsub.f32 %v6895_v63, %v1350_v23  ;;  %1877 = vadd.xlane.f32.xlu0 %v1876_v52  ;;  %3825 = vpow2.f32 %v1707_v54  ;;  %v1496_v49 = vsub.f32 %v6900_v28, %v5396_v5  ;;  %v6901_v52 = vld [vmem:[#allocation89_spill] sm:$0xff]  ;;  %v6903_v54 = vld [vmem:[#allocation98_spill] sm:$0xff] }
 0x239   : > { %v1711_v23 = vmul.f32 1.442695, %v1465_v21  ;;  %3827 = vpow2.f32 %v1709_v47  ;;  %v1713_v55 = vmul.f32 1.442695, %v1466_v36  ;;  %v1462_v53 = vsub.f32 %v6901_v52, %v5398_v26  ;;  %v6904_v21 = vld [vmem:[#allocation77_spill] sm:$0xff]  ;;  %v6905_v36 = vld [vmem:[#allocation84_spill] sm:$0xff] }
 0x23a   : > { %v1779_v34 = vmul.f32 1.442695, %v1499_v60  ;;  %v1781_v63 = vmul.f32 1.442695, %v1500_v13  ;;  %v1354_v12 = vpop.xlane.xlu1 %1353  ;;  %v5458_v13 = vpop.eup %3807  ;;  %v1456_v33 = vsub.f32 %v6904_v21, %v5318_v44  ;;  %v1699_v47 = vmul.f32 1.442695, %v1459_v43 }
 0x23b   : > { %v1501_v29 = vsub.f32 %v6902_v7, %v1354_v12  ;;  %v1502_v60 = vsub.f32 %v6903_v54, %v1354_v12  ;;  %1881 = vadd.xlane.f32.xlu1 %v1880_v46  ;;  %v5464_v15 = vpop.eup %3809  ;;  %v1773_v7 = vmul.f32 1.442695, %v1496_v49  ;;  %v6906_v54 = vld [vmem:[#allocation87_spill] sm:$0xff]  ;;  %v6908_v21 = vld [vmem:[#allocation90_spill] sm:$0xff] }
 0x23c   : > { %3829 = vpow2.f32 %v1779_v34  ;;  %1797 = vadd.xlane.f32.xlu0 %v1796_v11  ;;  %v1495_v34 = vsub.f32 %v6905_v36, %v5396_v5  ;;  %v5468_v52 = vpop.eup %3811  ;;  %v1461_v43 = vsub.f32 %v6906_v54, %v5398_v26  ;;  %v1859_v11 = vsel %vm1074_vm1, %v5452_v59, 0.0 }
 0x23d   : > { %3831 = vpow2.f32 %v1781_v63  ;;  %v1783_v28 = vmul.f32 1.442695, %v1501_v29  ;;  %v1785_v12 = vmul.f32 1.442695, %v1502_v60  ;;  %v5474_v46 = vpop.eup %3813  ;;  %v1705_v63 = vmul.f32 1.442695, %v1462_v53 }
 0x23e   : > { %3833 = vpow2.f32 %v1711_v23  ;;  %6907 = vst [vmem:[#allocation33_spill] sm:$0xff] %v5474_v46  ;;  %v1498_v9 = vsub.f32 %v6908_v21, %v5416_v17  ;;  %v5478_v5 = vpop.eup %3815  ;;  %v6910_v23 = vld [vmem:[#allocation75_spill] sm:$0xff]  ;;  %v1693_v49 = vmul.f32 1.442695, %v1456_v33  ;;  %v6912_v60 = vld [vmem:[#allocation78_spill] sm:$0xff] }
 0x23f   : > { %3835 = vpow2.f32 %v1713_v55  ;;  %6909 = vst [vmem:[#allocation34_spill] sm:$0xff] %v5478_v5  ;;  %v1455_v29 = vsub.f32 %v6910_v23, %v5318_v44  ;;  %1801 = vadd.xlane.f32.xlu1 %v1800_v22  ;;  %v1872_v55 = vadd.f32 %v5458_v13, %v1871_v50  ;;  %v5483_v26 = vpop.eup %3817  ;;  %v1492_v53 = vsub.f32 %v6912_v60, %v5340_v3  ;;  %v6913_v44 = vld [vmem:[#allocation88_spill] sm:$0xff]  ;;  %v6914_v50 = vld [vmem:[#allocation81_spill] sm:$0xff] }
 0x240   : > { %3837 = vpow2.f32 %v1783_v28  ;;  %1869 = vadd.xlane.f32.xlu0 %v1868_v57  ;;  %6911 = vst [vmem:[#allocation31_spill] sm:$0xff] %v5483_v26  ;;  %v1771_v36 = vmul.f32 1.442695, %v1495_v34  ;;  %v1860_v28 = vadd.f32 %v5464_v15, %v1859_v11  ;;  %v5488_v54 = vpop.eup %3819  ;;  %v1703_v21 = vmul.f32 1.442695, %v1461_v43  ;;  %v6915_v11 = vld [vmem:[#allocation69_spill] sm:$0xff] }
 0x241   : > { %3839 = vpow2.f32 %v1785_v12  ;;  %v1497_v33 = vsub.f32 %v6913_v44, %v5416_v17  ;;  %v1931_v22 = vsel %vm1074_vm1, %v5474_v46, 0.0  ;;  %v5494_v57 = vpop.eup %3821  ;;  %v1458_v12 = vsub.f32 %v6914_v50, %v5342_v61  ;;  %v6917_v60 = vld [vmem:[#allocation76_spill] sm:$0xff] }
 0x242   : > { %3841 = vpow2.f32 %v1699_v47  ;;  %v1777_v47 = vmul.f32 1.442695, %v1498_v9  ;;  %v1863_v34 = vsel %vm1074_vm1, %v5478_v5, 0.0  ;;  %v1691_v43 = vmul.f32 1.442695, %v1455_v29  ;;  %v5504_v23 = vpop.eup %3823  ;;  %v6919_v5 = vld [vmem:[#allocation82_spill] sm:$0xff] }
 0x243   : > { %3843 = vpow2.f32 %v1773_v7  ;;  %v1452_v7 = vsub.f32 %v6915_v11, %v5270_v35  ;;  %1873 = vadd.xlane.f32.xlu1 %v1872_v55  ;;  %v1935_v17 = vsel %vm1074_vm1, %v5483_v26, 0.0  ;;  %6916 = vst [vmem:[#allocation32_spill] sm:$0xff] %v5504_v23  ;;  %v1491_v44 = vsub.f32 %v6917_v60, %v5340_v3  ;;  %v6918_v11 = vld [vmem:[#allocation79_spill] sm:$0xff] }
 0x244   : > { %3845 = vpow2.f32 %v1705_v63  ;;  %1861 = vadd.xlane.f32.xlu0 %v1860_v28  ;;  %v1765_v63 = vmul.f32 1.442695, %v1492_v53  ;;  %v1932_v9 = vadd.f32 %v5468_v52, %v1931_v22  ;;  %v1457_v29 = vsub.f32 %v6918_v11, %v5342_v61  ;;  %v6926_v11 = vld [vmem:[#allocation61_spill] sm:$0xff] }
 0x245   : > { %3847 = vpow2.f32 %v1693_v49  ;;  %v5509_v50 = vpop.eup %3825  ;;  %v1775_v49 = vmul.f32 1.442695, %v1497_v33  ;;  %v1864_v55 = vadd.f32 %v5488_v54, %v1863_v34  ;;  %v1697_v26 = vmul.f32 1.442695, %v1458_v12  ;;  %v6922_v33 = vld [vmem:[#allocation70_spill] sm:$0xff] }
 0x246   : > { %3849 = vpow2.f32 %v1771_v36  ;;  %v5514_v28 = vpop.eup %3827  ;;  %v1494_v46 = vsub.f32 %v6919_v5, %v5370_v62  ;;  %v1936_v3 = vadd.f32 %v5494_v57, %v1935_v17  ;;  %v6920_v36 = vld [vmem:[#allocation67_spill] sm:$0xff]  ;;  %v1685_v60 = vmul.f32 1.442695, %v1452_v7 }
 0x247   : > { %3851 = vpow2.f32 %v1703_v21  ;;  %v1451_v22 = vsub.f32 %v6920_v36, %v5270_v35  ;;  %1865 = vadd.xlane.f32.xlu1 %v1864_v55  ;;  %v1995_v61 = vsel %vm1074_vm1, %v5514_v28, 0.0  ;;  %v1488_v5 = vsub.f32 %v6922_v33, %v5292_v45  ;;  %v6924_v35 = vld [vmem:[#allocation80_spill] sm:$0xff] }
 0x248   : > { %3853 = vpow2.f32 %v1777_v47  ;;  %1933 = vadd.xlane.f32.xlu0 %v1932_v9  ;;  %v1763_v12 = vmul.f32 1.442695, %v1491_v44  ;;  %v1996_v47 = vadd.f32 %v5509_v50, %v1995_v61  ;;  %v1695_v17 = vmul.f32 1.442695, %v1457_v29  ;;  %v6927_v44 = vld [vmem:[#allocation73_spill] sm:$0xff] }
 0x249   : > { %v5519_v53 = vpop.eup %3829  ;;  %3855 = vpow2.f32 %v1691_v43  ;;  %v1493_v7 = vsub.f32 %v6924_v35, %v5370_v62  ;;  %v1448_v55 = vsub.f32 %v6926_v11, %v5228_v18  ;;  %v1769_v36 = vmul.f32 1.442695, %v1494_v46  ;;  %v6929_v35 = vld [vmem:[#allocation68_spill] sm:$0xff] }
 0x24a   : > { %v5525_v21 = vpop.eup %3831  ;;  %3857 = vpow2.f32 %v1765_v63  ;;  %v1454_v63 = vsub.f32 %v6927_v44, %v5294_v31  ;;  %v1683_v29 = vmul.f32 1.442695, %v1451_v22  ;;  %v1487_v11 = vsub.f32 %v6929_v35, %v5292_v45  ;;  %v6930_v22 = vld [vmem:[#allocation71_spill] sm:$0xff] }
 0x24b   : > { %6921 = vst [vmem:[#allocation85_spill] sm:$0xff] %v5525_v21  ;;  %v5530_v34 = vpop.eup %3833  ;;  %3859 = vpow2.f32 %v1775_v49  ;;  %v2067_v43 = vsel %vm1074_vm1, %v5525_v21, 0.0  ;;  %1937 = vadd.xlane.f32.xlu1 %v1936_v3  ;;  %v1757_v21 = vmul.f32 1.442695, %v1488_v5  ;;  %v1767_v3 = vmul.f32 1.442695, %v1493_v7 }
 0x24c   : > { %6923 = vst [vmem:[#allocation91_spill] sm:$0xff] %v5530_v34  ;;  %v5536_v9 = vpop.eup %3835  ;;  %3861 = vpow2.f32 %v1697_v26  ;;  %1997 = vadd.xlane.f32.xlu0 %v1996_v47  ;;  %v2068_v62 = vadd.f32 %v5519_v53, %v2067_v43  ;;  %v1689_v44 = vmul.f32 1.442695, %v1454_v63  ;;  %v1987_v5 = vsel %vm1074_vm1, %v5504_v23, 0.0  ;;  %v6936_v63 = vld [vmem:[#allocation62_spill] sm:$0xff] }
 0x24d   : > { %6925 = vst [vmem:[#allocation93_spill] sm:$0xff] %v5536_v9  ;;  %v5542_v61 = vpop.eup %3837  ;;  %3863 = vpow2.f32 %v1685_v60  ;;  %v1999_v49 = vsel %vm1074_vm1, %v5536_v9, 0.0  ;;  %v1453_v60 = vsub.f32 %v6930_v22, %v5294_v31  ;;  %v6932_v9 = vld [vmem:[#allocation74_spill] sm:$0xff] }
 0x24e   : > { %v5547_v33 = vpop.eup %3839  ;;  %3865 = vpow2.f32 %v1763_v12  ;;  %v2000_v46 = vadd.f32 %v5530_v34, %v1999_v49  ;;  %v1490_v45 = vsub.f32 %v6932_v9, %v5316_v30  ;;  %v6934_v49 = vld [vmem:[#allocation59_spill] sm:$0xff]  ;;  %v1484_v9 = vsub.f32 %v6936_v63, %v5248_v51 }
 0x24f   : > { %6928 = vst [vmem:[#allocation92_spill] sm:$0xff] %v5547_v33  ;;  %v5552_v26 = vpop.eup %3841  ;;  %3867 = vpow2.f32 %v1695_v17  ;;  %v2071_v47 = vsel %vm1074_vm1, %v5547_v33, 0.0  ;;  %v1447_v31 = vsub.f32 %v6934_v49, %v5228_v18  ;;  %v1677_v17 = vmul.f32 1.442695, %v1448_v55  ;;  %v6938_v18 = vld [vmem:[#allocation72_spill] sm:$0xff] }
 0x250   : > { %v5558_v43 = vpop.eup %3843  ;;  %3869 = vpow2.f32 %v1769_v36  ;;  %2069 = vadd.xlane.f32.xlu0 %v2068_v62  ;;  %2001 = vadd.xlane.f32.xlu1 %v2000_v46  ;;  %v2072_v7 = vadd.f32 %v5542_v61, %v2071_v47  ;;  %v6937_v36 = vld [vmem:[#allocation65_spill] sm:$0xff]  ;;  %v1755_v33 = vmul.f32 1.442695, %v1487_v11  ;;  %v1687_v34 = vmul.f32 1.442695, %v1453_v60 }
 0x251   : > { %6931 = vst [vmem:[#allocation94_spill] sm:$0xff] %v5558_v43  ;;  %v5564_v12 = vpop.eup %3845  ;;  %3871 = vpow2.f32 %v1683_v29  ;;  %v1450_v22 = vsub.f32 %v6937_v36, %v5250_v20  ;;  %v1489_v55 = vsub.f32 %v6938_v18, %v5316_v30  ;;  %v1988_v29 = vadd.f32 %v5552_v26, %v1987_v5  ;;  %v6941_v60 = vld [vmem:[#allocation53_spill] sm:$0xff]  ;;  %v6942_v30 = vld [vmem:[#allocation60_spill] sm:$0xff]  ;;  %v6944_v5 = vld [vmem:[#allocation63_spill] sm:$0xff] }
 0x252   : > { %6933 = vst [vmem:[#allocation95_spill] sm:$0xff] %v5564_v12  ;;  %v5569_v35 = vpop.eup %3847  ;;  %3873 = vpow2.f32 %v1757_v21  ;;  %v1761_v46 = vmul.f32 1.442695, %v1490_v45  ;;  %v2059_v47 = vsel %vm1074_vm1, %v5558_v43, 0.0  ;;  %v1991_v11 = vsel %vm1074_vm1, %v5564_v12, 0.0 }
 0x253   : > { %6935 = vst [vmem:[#allocation83_spill] sm:$0xff] %v5569_v35  ;;  %v5575_v23 = vpop.eup %3849  ;;  %3875 = vpow2.f32 %v1767_v3  ;;  %v1444_v49 = vsub.f32 %v6941_v60, %v5188_v38  ;;  %v1675_v63 = vmul.f32 1.442695, %v1447_v31  ;;  %v1483_v3 = vsub.f32 %v6942_v30, %v5248_v51  ;;  %v6947_v51 = vld [vmem:[#allocation66_spill] sm:$0xff] }
 0x254   : > { %v5580_v62 = vpop.eup %3851  ;;  %3877 = vpow2.f32 %v1689_v44  ;;  %1989 = vadd.xlane.f32.xlu0 %v1988_v29  ;;  %2073 = vadd.xlane.f32.xlu1 %v2072_v7  ;;  %v1749_v45 = vmul.f32 1.442695, %v1484_v9  ;;  %v1449_v36 = vsub.f32 %v6944_v5, %v5250_v20  ;;  %v1681_v18 = vmul.f32 1.442695, %v1450_v22  ;;  %v6950_v29 = vld [vmem:[#allocation54_spill] sm:$0xff] }
 0x255   : > { %6939 = vst [vmem:[#allocation97_spill] sm:$0xff] %v5580_v62  ;;  %v5586_v21 = vpop.eup %3853  ;;  %3879 = vpow2.f32 %v1677_v17  ;;  %v1759_v43 = vmul.f32 1.442695, %v1489_v55  ;;  %v2060_v31 = vadd.f32 %v5575_v23, %v2059_v47  ;;  %v1992_v17 = vadd.f32 %v5580_v62, %v1991_v11 }
 0x256   : > { %6940 = vst [vmem:[#allocation86_spill] sm:$0xff] %v5586_v21  ;;  %v5592_v44 = vpop.eup %3855  ;;  %3881 = vpow2.f32 %v1755_v33  ;;  %v1486_v7 = vsub.f32 %v6947_v51, %v5268_v58  ;;  %v1979_v9 = vsel %vm1074_vm1, %v5569_v35, 0.0  ;;  %v2063_v20 = vsel %vm1074_vm1, %v5586_v21, 0.0  ;;  %v6954_v35 = vld [vmem:[#allocation64_spill] sm:$0xff] }
 0x257   : > { %6943 = vst [vmem:[#allocation89_spill] sm:$0xff] %v5592_v44  ;;  %v5596_v12 = vpop.eup %3857  ;;  %3883 = vpow2.f32 %v1687_v34  ;;  %v6949_v34 = vld [vmem:[#allocation51_spill] sm:$0xff]  ;;  %v1669_v55 = vmul.f32 1.442695, %v1444_v49  ;;  %v1480_v47 = vsub.f32 %v6950_v29, %v5206_v24  ;;  %v1747_v5 = vmul.f32 1.442695, %v1483_v3 }
 0x258   : > { %6945 = vst [vmem:[#allocation96_spill] sm:$0xff] %v5596_v12  ;;  %v5600_v60 = vpop.eup %3859  ;;  %3885 = vpow2.f32 %v1761_v46  ;;  %v1443_v22 = vsub.f32 %v6949_v34, %v5188_v38  ;;  %2061 = vadd.xlane.f32.xlu0 %v2060_v31  ;;  %1993 = vadd.xlane.f32.xlu1 %v1992_v17  ;;  %v6952_v46 = vld [vmem:[#allocation57_spill] sm:$0xff]  ;;  %v1679_v51 = vmul.f32 1.442695, %v1449_v36  ;;  %v1485_v38 = vsub.f32 %v6954_v35, %v5268_v58  ;;  %v6957_v58 = vld [vmem:[#allocation52_spill] sm:$0xff] }
 0x259   : > { %6946 = vst [vmem:[#allocation98_spill] sm:$0xff] %v5600_v60  ;;  %v5608_v33 = vpop.eup %3861  ;;  %3887 = vpow2.f32 %v1675_v63  ;;  %v1446_v30 = vsub.f32 %v6952_v46, %v5208_v14  ;;  %v1980_v49 = vadd.f32 %v5592_v44, %v1979_v9  ;;  %v2064_v63 = vadd.f32 %v5600_v60, %v2063_v20 }
 0x25a   : > { %6948 = vst [vmem:[#allocation77_spill] sm:$0xff] %v5608_v33  ;;  %v5614_v11 = vpop.eup %3863  ;;  %3889 = vpow2.f32 %v1749_v45  ;;  %v1753_v17 = vmul.f32 1.442695, %v1486_v7  ;;  %v2051_v34 = vsel %vm1074_vm1, %v5596_v12, 0.0  ;;  %v1983_v3 = vsel %vm1074_vm1, %v5608_v33, 0.0  ;;  %v7003_v12 = vld [vmem:[#allocation117_spill] sm:$0xff] }
 0x25b   : > { %6951 = vst [vmem:[#allocation84_spill] sm:$0xff] %v5614_v11  ;;  %v5618_v21 = vpop.eup %3865  ;;  %3891 = vpow2.f32 %v1759_v43  ;;  %v1667_v36 = vmul.f32 1.442695, %v1443_v22  ;;  %v1479_v43 = vsub.f32 %v6957_v58, %v5206_v24  ;;  %v1741_v9 = vmul.f32 1.442695, %v1480_v47  ;;  %v6962_v24 = vld [vmem:[#allocation58_spill] sm:$0xff] }
 0x25c   : > { %6953 = vst [vmem:[#allocation87_spill] sm:$0xff] %v5618_v21  ;;  %v5624_v31 = vpop.eup %3867  ;;  %3893 = vpow2.f32 %v1681_v18  ;;  %1981 = vadd.xlane.f32.xlu0 %v1980_v49  ;;  %2065 = vadd.xlane.f32.xlu1 %v2064_v63  ;;  %v6959_v18 = vld [vmem:[#allocation55_spill] sm:$0xff]  ;;  %v1673_v20 = vmul.f32 1.442695, %v1446_v30  ;;  %v1751_v46 = vmul.f32 1.442695, %v1485_v38  ;;  %v2052_v22 = vadd.f32 %v5618_v21, %v2051_v34 }
 0x25d   : > { %6955 = vst [vmem:[#allocation90_spill] sm:$0xff] %v5624_v31  ;;  %v5630_v45 = vpop.eup %3869  ;;  %3895 = vpow2.f32 %v1669_v55  ;;  %v1445_v7 = vsub.f32 %v6959_v18, %v5208_v14  ;;  %v1984_v55 = vadd.f32 %v5624_v31, %v1983_v3  ;;  %v1482_v49 = vsub.f32 %v6962_v24, %v5226_v40  ;;  %v7002_v21 = vld [vmem:[#allocation118_spill] sm:$0xff] }
 0x25e   : > { %6956 = vst [vmem:[#allocation75_spill] sm:$0xff] %v5630_v45  ;;  %v5634_v35 = vpop.eup %3871  ;;  %3897 = vpow2.f32 %v1747_v5  ;;  %v1971_v47 = vsel %vm1074_vm1, %v5614_v11, 0.0  ;;  %v2055_v14 = vsel %vm1074_vm1, %v5630_v45, 0.0  ;;  %v6999_v45 = vld [vmem:[#allocation113_spill] sm:$0xff] }
 0x25f   : > { %6958 = vst [vmem:[#allocation78_spill] sm:$0xff] %v5634_v35  ;;  %v5638_v29 = vpop.eup %3873  ;;  %3899 = vpow2.f32 %v1679_v51  ;;  %v1739_v51 = vmul.f32 1.442695, %v1479_v43  ;;  %v1671_v38 = vmul.f32 1.442695, %v1445_v7  ;;  %v1972_v3 = vadd.f32 %v5634_v35, %v1971_v47  ;;  %v7000_v35 = vld [vmem:[#allocation112_spill] sm:$0xff] }
 0x260   : > { %6960 = vst [vmem:[#allocation88_spill] sm:$0xff] %v5638_v29  ;;  %v5642_v33 = vpop.eup %3875  ;;  %3901 = vpow2.f32 %v1753_v17  ;;  %2053 = vadd.xlane.f32.xlu0 %v2052_v22  ;;  %1985 = vadd.xlane.f32.xlu1 %v1984_v55  ;;  %v6966_v17 = vld [vmem:[#allocation56_spill] sm:$0xff]  ;;  %v2043_v22 = vsel %vm1074_vm1, %v5638_v29, 0.0 }
 0x261   : > { %6961 = vst [vmem:[#allocation81_spill] sm:$0xff] %v5642_v33  ;;  %v5650_v30 = vpop.eup %3877  ;;  %3903 = vpow2.f32 %v1667_v36  ;;  %v1481_v34 = vsub.f32 %v6966_v17, %v5226_v40  ;;  %v2056_v58 = vadd.f32 %v5642_v33, %v2055_v14  ;;  %v1745_v36 = vmul.f32 1.442695, %v1482_v49 }
 0x262   : > { %6963 = vst [vmem:[#allocation69_spill] sm:$0xff] %v5650_v30  ;;  %v5652_v5 = vpop.eup %3879  ;;  %3905 = vpow2.f32 %v1741_v9  ;;  %v1975_v43 = vsel %vm1074_vm1, %v5650_v30, 0.0  ;;  %v6996_v30 = vld [vmem:[#allocation46_spill] sm:$0xff] }
 0x263   : > { %6964 = vst [vmem:[#allocation76_spill] sm:$0xff] %v5652_v5  ;;  %v5654_v63 = vpop.eup %3881  ;;  %3907 = vpow2.f32 %v1751_v46  ;;  %v1743_v46 = vmul.f32 1.442695, %v1481_v34  ;;  %v1963_v49 = vsel %vm1074_vm1, %v5652_v5, 0.0 }
 0x264   : > { %6965 = vst [vmem:[#allocation79_spill] sm:$0xff] %v5654_v63  ;;  %v5660_v18 = vpop.eup %3883  ;;  %3909 = vpow2.f32 %v1673_v20  ;;  %1973 = vadd.xlane.f32.xlu0 %v1972_v3  ;;  %2057 = vadd.xlane.f32.xlu1 %v2056_v58  ;;  %v2044_v20 = vadd.f32 %v5654_v63, %v2043_v22 }
 0x265   : > { %6967 = vst [vmem:[#allocation82_spill] sm:$0xff] %v5660_v18  ;;  %v5666_v9 = vpop.eup %3885  ;;  %3911 = vpow2.f32 %v1739_v51  ;;  %v1976_v55 = vadd.f32 %v5660_v18, %v1975_v43 }
 0x266   : > { %6968 = vst [vmem:[#allocation67_spill] sm:$0xff] %v5666_v9  ;;  %v5668_v40 = vpop.eup %3887  ;;  %3913 = vpow2.f32 %v1671_v38  ;;  %v2047_v47 = vsel %vm1074_vm1, %v5666_v9, 0.0 }
 0x267   : > { %6969 = vst [vmem:[#allocation70_spill] sm:$0xff] %v5668_v40  ;;  %v5670_v7 = vpop.eup %3889  ;;  %3915 = vpow2.f32 %v1745_v36  ;;  %v1964_v17 = vadd.f32 %v5668_v40, %v1963_v49  ;;  %v3470_v49 = vld.sshfl [vmem:[%s5704_s5] sm:$0x33 pattern:$0x76325410] }
 0x268   : > { %6970 = vst [vmem:[#allocation80_spill] sm:$0xff] %v5670_v7  ;;  %v5674_v24 = vpop.eup %3891  ;;  %2045 = vadd.xlane.f32.xlu0 %v2044_v20  ;;  %1977 = vadd.xlane.f32.xlu1 %v1976_v55  ;;  %3917 = vpow2.f32 %v1743_v46  ;;  %v2035_v58 = vsel %vm1074_vm1, %v5670_v7, 0.0 }
 0x269   : > { %6971 = vst [vmem:[#allocation61_spill] sm:$0xff] %v5674_v24  ;;  %v5680_v14 = vpop.eup %3893  ;;  %v2048_v34 = vadd.f32 %v5674_v24, %v2047_v47  ;;  %v3481_v24 = vld.sshfl [vmem:[%s5704_s5 + $0x4] sm:$0x33 pattern:$0x76325410] }
 0x26a   : > { %6972 = vst [vmem:[#allocation73_spill] sm:$0xff] %v5680_v14  ;;  %v5682_v51 = vpop.eup %3895  ;;  %v1967_v36 = vsel %vm1074_vm1, %v5680_v14, 0.0  ;;  %v2814_v14 = vcombine.high %v3470_v49, %v3470_v49 }
 0x26b   : > { %6973 = vst [vmem:[#allocation68_spill] sm:$0xff] %v5682_v51  ;;  %v5684_v38 = vpop.eup %3897 }
 0x26c   : > { %6974 = vst [vmem:[#allocation71_spill] sm:$0xff] %v5684_v38  ;;  %v5688_v3 = vpop.eup %3899  ;;  %1965 = vadd.xlane.f32.xlu0 %v1964_v17  ;;  %2049 = vadd.xlane.f32.xlu1 %v2048_v34  ;;  %v2036_v20 = vadd.f32 %v5684_v38, %v2035_v58  ;;  %v1955_v17 = vsel %vm1074_vm1, %v5682_v51, 0.0  ;;  %v2895_v38 = vcombine.high %v3481_v24, %v3481_v24 }
 0x26d   : > { %6975 = vst [vmem:[#allocation74_spill] sm:$0xff] %v5688_v3  ;;  %v5694_v22 = vpop.eup %3901  ;;  %v1968_v55 = vadd.f32 %v5688_v3, %v1967_v36  ;;  %3480 = vmatprep.mubr.msk.bf16.mxu0 %vm1074_vm1, %v2814_v14 }
 0x26e   : > { %6976 = vst [vmem:[#allocation59_spill] sm:$0xff] %v5694_v22  ;;  %v5697_v43 = vpop.eup %3903  ;;  %v2039_v34 = vsel %vm1074_vm1, %v5694_v22, 0.0  ;;  %3491 = vmatprep.mubr.msk.bf16.mxu1 %vm1074_vm1, %v2895_v38 }
 0x26f   : > { %6977 = vst [vmem:[#allocation62_spill] sm:$0xff] %v5697_v43  ;;  %v5706_v46 = vpop.eup %3905  ;;  %v1956_v36 = vadd.f32 %v5697_v43, %v1955_v17 }
 0x270   : > { %6978 = vst [vmem:[#allocation65_spill] sm:$0xff] %v5706_v46  ;;  %v5711_v47 = vpop.eup %3907  ;;  %2037 = vadd.xlane.f32.xlu0 %v2036_v20  ;;  %1969 = vadd.xlane.f32.xlu1 %v1968_v55  ;;  %v2027_v22 = vsel %vm1074_vm1, %v5706_v46, 0.0 }
 0x271   : > { %6979 = vst [vmem:[#allocation72_spill] sm:$0xff] %v5711_v47  ;;  %v5717_v7 = vpop.eup %3909  ;;  %v2040_v3 = vadd.f32 %v5711_v47, %v2039_v34 }
 0x272   : > { %6980 = vst [vmem:[#allocation53_spill] sm:$0xff] %v5717_v7  ;;  %v5721_v58 = vpop.eup %3911  ;;  %v1959_v49 = vsel %vm1074_vm1, %v5717_v7, 0.0 }
 0x273   : > { %6981 = vst [vmem:[#allocation60_spill] sm:$0xff] %v5721_v58  ;;  %v5725_v9 = vpop.eup %3913  ;;  %v2028_v55 = vadd.f32 %v5721_v58, %v2027_v22 }
 0x274   : > { %6982 = vst [vmem:[#allocation63_spill] sm:$0xff] %v5725_v9  ;;  %v5731_v20 = vpop.eup %3915  ;;  %1957 = vadd.xlane.f32.xlu0 %v1956_v36  ;;  %2041 = vadd.xlane.f32.xlu1 %v2040_v3  ;;  %v1960_v24 = vadd.f32 %v5725_v9, %v1959_v49 }
 0x275   : > { %6983 = vst [vmem:[#allocation66_spill] sm:$0xff] %v5731_v20  ;;  %v1830_v14 = vpop.xlane.xlu0 %1829  ;;  %v5736_v17 = vpop.eup %3917  ;;  %v2031_v34 = vsel %vm1074_vm1, %v5731_v20, 0.0  ;;  %v6987_v20 = vld [vmem:[#allocation111_spill] sm:$0xff] }
 0x276   : > { %3919 = vrcp.f32 %v1830_v14  ;;  %6984 = vst [vmem:[#allocation51_spill] sm:$0xff] %v5736_v17  ;;  %v2032_v3 = vadd.f32 %v5736_v17, %v2031_v34 }
 0x278   : > { %2029 = vadd.xlane.f32.xlu0 %v2028_v55  ;;  %1961 = vadd.xlane.f32.xlu1 %v1960_v24  ;;  %v1834_v36 = vpop.xlane.xlu1 %1833 }
 0x279   : > { %v1902_v7 = vpop.xlane.xlu0 %1901 }
 0x27a   : > { %3921 = vrcp.f32 %v1902_v7 }
 0x27b   : > { %3923 = vrcp.f32 %v1834_v36 }
 0x27c   : > { %2033 = vadd.xlane.f32.xlu1 %v2032_v3  ;;  %v1906_v14 = vpop.xlane.xlu1 %1905 }
 0x27d   : > { %v1838_v38 = vpop.xlane.xlu0 %1837 }
 0x27e   : > { %3925 = vrcp.f32 %v1838_v38 }
 0x27f   : > { %3927 = vrcp.f32 %v1906_v14 }
 0x280   : > { %v1842_v49 = vpop.xlane.xlu1 %1841 }
 0x281   : > { %v1910_v22 = vpop.xlane.xlu0 %1909 }
 0x282   : > { %3929 = vrcp.f32 %v1910_v22 }
 0x283   : > { %v3920_v55 = vpop.eup %3919  ;;  %3931 = vrcp.f32 %v1842_v49 }
 0x284   : > { %v5745_v7 = vmul.f32 %v3920_v55, %v5025_v6  ;;  %v5748_v24 = vmul.f32 %v3920_v55, %v5023_v4  ;;  %v1914_v36 = vpop.xlane.xlu1 %1913 }
 0x285   : > { %v1846_v34 = vpop.xlane.xlu0 %1845 }
 0x286   : > { %3933 = vrcp.f32 %v1846_v34  ;;  %v3533_v38 = vpack.c.bf16 %v5745_v7, %v5748_v24 }
 0x287   : > { %v3922_v14 = vpop.eup %3921  ;;  %3935 = vrcp.f32 %v1914_v36 }
 0x288   : > { %v3924_v22 = vpop.eup %3923  ;;  %v5757_v49 = vmul.f32 %v3922_v14, %v5035_v27  ;;  %2742 = vst.msk [vmem:[%s5759_s8 + $0x40] sm:$0xff] %vm5750_vm4, %v3533_v38  ;;  %v5765_v4 = vmul.f32 %v3922_v14, %v5030_v19  ;;  %v1850_v55 = vpop.xlane.xlu1 %1849 }
 0x289   : > { %v1918_v6 = vpop.xlane.xlu0 %1917  ;;  %v5768_v34 = vmul.f32 %v3924_v22, %v5042_v25  ;;  %v5771_v36 = vmul.f32 %v3924_v22, %v5037_v41 }
 0x28a   : > { %3937 = vrcp.f32 %v1918_v6  ;;  %v3551_v27 = vpack.c.bf16 %v5757_v49, %v5765_v4 }
 0x28b   : > { %v3926_v17 = vpop.eup %3925  ;;  %3939 = vrcp.f32 %v1850_v55  ;;  %v3534_v38 = vpack.c.bf16 %v5768_v34, %v5771_v36 }
 0x28c   : > { %v3928_v19 = vpop.eup %3927  ;;  %v5778_v14 = vmul.f32 %v3926_v17, %v5060_v2  ;;  %v5781_v25 = vmul.f32 %v3926_v17, %v5055_v56  ;;  %2760 = vst.msk [vmem:[%s5759_s8 + $0xd0] sm:$0xff] %vm5750_vm4, %v3551_v27  ;;  %v1922_v22 = vpop.xlane.xlu1 %1921 }
 0x28d   : > { %v1854_v41 = vpop.xlane.xlu0 %1853  ;;  %v5787_v6 = vmul.f32 %v3928_v19, %v5053_v16  ;;  %2743 = vst.msk [vmem:[%s5759_s8 + $0x48] sm:$0xff] %vm5750_vm4, %v3534_v38  ;;  %v5793_v55 = vmul.f32 %v3928_v19, %v5047_v39 }
 0x28e   : > { %3941 = vrcp.f32 %v1854_v41  ;;  %v3535_v56 = vpack.c.bf16 %v5778_v14, %v5781_v25 }
 0x28f   : > { %v3930_v2 = vpop.eup %3929  ;;  %3943 = vrcp.f32 %v1922_v22  ;;  %v3552_v17 = vpack.c.bf16 %v5787_v6, %v5793_v55 }
 0x290   : > { %v3932_v27 = vpop.eup %3931  ;;  %v5800_v16 = vmul.f32 %v3930_v2, %v5071_v10  ;;  %2744 = vst.msk [vmem:[%s5759_s8 + $0x50] sm:$0xff] %vm5750_vm4, %v3535_v56  ;;  %v5806_v39 = vmul.f32 %v3930_v2, %v5065_v32  ;;  %v1858_v19 = vpop.xlane.xlu1 %1857 }
 0x291   : > { %v1926_v38 = vpop.xlane.xlu0 %1925  ;;  %v5809_v41 = vmul.f32 %v3932_v27, %v5078_v0  ;;  %v5812_v22 = vmul.f32 %v3932_v27, %v5073_v37  ;;  %2761 = vst.msk [vmem:[%s5759_s8 + $0xd8] sm:$0xff] %vm5750_vm4, %v3552_v17  ;;  %v6988_v0 = vld [vmem:[#allocation110_spill] sm:$0xff]  ;;  %v6989_v27 = vld [vmem:[#allocation109_spill] sm:$0xff] }
 0x292   : > { %3945 = vrcp.f32 %v1926_v38  ;;  %v3553_v10 = vpack.c.bf16 %v5800_v16, %v5806_v39 }
 0x293   : > { %v3934_v56 = vpop.eup %3933  ;;  %3947 = vrcp.f32 %v1858_v19  ;;  %v3536_v32 = vpack.c.bf16 %v5809_v41, %v5812_v22  ;;  %v6990_v19 = vld [vmem:[#allocation108_spill] sm:$0xff] }
 0x294   : > { %v3936_v2 = vpop.eup %3935  ;;  %v5822_v9 = vmul.f32 %v3934_v56, %v6987_v20  ;;  %v5825_v58 = vmul.f32 %v3934_v56, %v6988_v0  ;;  %2762 = vst.msk [vmem:[%s5759_s8 + $0xe0] sm:$0xff] %vm5750_vm4, %v3553_v10  ;;  %v1930_v17 = vpop.xlane.xlu1 %1929  ;;  %v6991_v20 = vld [vmem:[#allocation43_spill] sm:$0xff]  ;;  %v6992_v56 = vld [vmem:[#allocation45_spill] sm:$0xff] }
 0x295   : > { %v1230_v37 = vpop.xlane.xlu0 %1229  ;;  %v5831_v38 = vmul.f32 %v3936_v2, %v6989_v27  ;;  %2745 = vst.msk [vmem:[%s5759_s8 + $0x58] sm:$0xff] %vm5750_vm4, %v3536_v32  ;;  %v5837_v46 = vmul.f32 %v3936_v2, %v6990_v19  ;;  %3949 = vrcp.f32 %v1930_v17  ;;  %v6993_v19 = vld [vmem:[#allocation115_spill] sm:$0xff] }
 0x296   : > { %v1439_v47 = vsub.f32 %v6991_v20, %v1230_v37  ;;  %v1440_v0 = vsub.f32 %v6992_v56, %v1230_v37  ;;  %v3537_v10 = vpack.c.bf16 %v5822_v9, %v5825_v58  ;;  %v6994_v37 = vld [vmem:[#allocation114_spill] sm:$0xff]  ;;  %v6995_v56 = vld [vmem:[#allocation44_spill] sm:$0xff] }
 0x297   : > { %v3938_v43 = vpop.eup %3937  ;;  %v3554_v27 = vpack.c.bf16 %v5831_v38, %v5837_v46 }
 0x298   : > { %v3940_v51 = vpop.eup %3939  ;;  %v1659_v40 = vmul.f32 1.442695, %v1439_v47  ;;  %v1661_v5 = vmul.f32 1.442695, %v1440_v0  ;;  %2746 = vst.msk [vmem:[%s5759_s8 + $0x60] sm:$0xff] %vm5750_vm4, %v3537_v10  ;;  %v1234_v2 = vpop.xlane.xlu1 %1233  ;;  %v6997_v0 = vld [vmem:[#allocation47_spill] sm:$0xff] }
 0x299   : > { %v1302_v32 = vpop.xlane.xlu0 %1301  ;;  %v5849_v20 = vmul.f32 %v3940_v51, %v6993_v19  ;;  %v5852_v17 = vmul.f32 %v3940_v51, %v6994_v37  ;;  %2763 = vst.msk [vmem:[%s5759_s8 + $0xe8] sm:$0xff] %vm5750_vm4, %v3554_v27  ;;  %v1441_v63 = vsub.f32 %v6997_v0, %v1234_v2  ;;  %v6998_v10 = vld [vmem:[#allocation49_spill] sm:$0xff]  ;;  %v5862_v19 = vmul.f32 %v3938_v43, %v6999_v45 }
 0x29a   : > { %3951 = vpow2.f32 %v1659_v40  ;;  %v1475_v18 = vsub.f32 %v6995_v56, %v1302_v32  ;;  %v1476_v47 = vsub.f32 %v6996_v30, %v1302_v32  ;;  %v1442_v33 = vsub.f32 %v6998_v10, %v1234_v2  ;;  %v7001_v56 = vld [vmem:[#allocation119_spill] sm:$0xff]  ;;  %v7006_v10 = vld [vmem:[#allocation116_spill] sm:$0xff] }
 0x29b   : > { %v3942_v29 = vpop.eup %3941  ;;  %3953 = vpow2.f32 %v1661_v5  ;;  %v5865_v51 = vmul.f32 %v3938_v43, %v7000_v35  ;;  %v1663_v40 = vmul.f32 1.442695, %v1441_v63  ;;  %v3538_v45 = vpack.c.bf16 %v5849_v20, %v5852_v17  ;;  %v7004_v35 = vld [vmem:[#allocation48_spill] sm:$0xff] }
 0x29c   : > { %v3944_v37 = vpop.eup %3943  ;;  %v1731_v11 = vmul.f32 1.442695, %v1475_v18  ;;  %v1733_v27 = vmul.f32 1.442695, %v1476_v47  ;;  %v2184_v31 = vmul.f32 %v3942_v29, %v7001_v56  ;;  %v1665_v30 = vmul.f32 1.442695, %v1442_v33  ;;  %v1306_v0 = vpop.xlane.xlu1 %1305 }
 0x29d   : > { %v1822_v32 = vpop.xlane.xlu0 %1821  ;;  %v2183_v5 = vmul.f32 %v3942_v29, %v7002_v21  ;;  %v5870_v2 = vmul.f32 %v3944_v37, %v7003_v12  ;;  %v1477_v43 = vsub.f32 %v7004_v35, %v1306_v0  ;;  %v7005_v18 = vld [vmem:[#allocation50_spill] sm:$0xff]  ;;  %v5877_v63 = vmul.f32 %v3944_v37, %v7006_v10  ;;  %2747 = vst.msk [vmem:[%s5759_s8 + $0x68] sm:$0xff] %vm5750_vm4, %v3538_v45  ;;  %v7007_v35 = vld [vmem:[#allocation121_spill] sm:$0xff]  ;;  %v7008_v10 = vld [vmem:[#allocation123_spill] sm:$0xff] }
 0x29e   : > { %3955 = vpow2.f32 %v1731_v11  ;;  %v1478_v47 = vsub.f32 %v7005_v18, %v1306_v0  ;;  %v3555_v12 = vpack.c.bf16 %v5862_v19, %v5865_v51  ;;  %v7010_v45 = vld [vmem:[#allocation120_spill] sm:$0xff] }
 0x29f   : > { %v3946_v33 = vpop.eup %3945  ;;  %3957 = vpow2.f32 %v1733_v27  ;;  %v3539_v56 = vpack.c.bf16 %v2184_v31, %v2183_v5  ;;  %v1735_v11 = vmul.f32 1.442695, %v1477_v43  ;;  %v7009_v27 = vld [vmem:[#allocation122_spill] sm:$0xff] }
 0x2a0   : > { %v3948_v21 = vpop.eup %3947  ;;  %3959 = vpow2.f32 %v1663_v40  ;;  %v1737_v29 = vmul.f32 1.442695, %v1478_v47  ;;  %v2220_v0 = vmul.f32 %v3946_v33, %v7007_v35  ;;  %v1826_v18 = vpop.xlane.xlu1 %1825  ;;  %v2219_v62 = vmul.f32 %v3946_v33, %v7010_v45  ;;  %2764 = vst.msk [vmem:[%s5759_s8 + $0xf0] sm:$0xff] %vm5750_vm4, %v3555_v12  ;;  %v7014_v12 = vld [vmem:[#allocation37_spill] sm:$0xff] }
 0x2a1   : > { %3961 = vpow2.f32 %v1665_v30  ;;  %v1894_v37 = vpop.xlane.xlu0 %1893  ;;  %v2186_v60 = vmul.f32 %v3948_v21, %v7008_v10  ;;  %v2185_v44 = vmul.f32 %v3948_v21, %v7009_v27  ;;  %2748 = vst.msk [vmem:[%s5759_s8 + $0x70] sm:$0xff] %vm5750_vm4, %v3539_v56  ;;  %v3556_v40 = vpack.c.bf16 %v5870_v2, %v5877_v63  ;;  %v7011_v21 = vld [vmem:[#allocation125_spill] sm:$0xff]  ;;  %v7012_v56 = vld [vmem:[#allocation124_spill] sm:$0xff] }
 0x2a2   : > { %3963 = vrcp.f32 %v1822_v32  ;;  %v3950_v30 = vpop.eup %3949  ;;  %v3557_v33 = vpack.c.bf16 %v2220_v0, %v2219_v62 }
 0x2a3   : > { %3965 = vpow2.f32 %v1735_v11  ;;  %v2314_v43 = vpack.c.bf16 %v2186_v60, %v2184_v31  ;;  %v2313_v47 = vpack.c.bf16 %v2185_v44, %v2183_v5  ;;  %v3540_v35 = vpack.c.bf16 %v2186_v60, %v2185_v44  ;;  %2765 = vst.msk [vmem:[%s5759_s8 + $0xf8] sm:$0xff] %vm5750_vm4, %v3556_v40  ;;  %v7013_v60 = vld [vmem:[#allocation35_spill] sm:$0xff] }
 0x2a4   : > { %3967 = vpow2.f32 %v1737_v29  ;;  %v2222_v10 = vmul.f32 %v3950_v30, %v7011_v21  ;;  %v2221_v27 = vmul.f32 %v3950_v30, %v7012_v56  ;;  %v1898_v31 = vpop.xlane.xlu1 %1897  ;;  %v2312_v44 = vpack.c.bf16 %v5849_v20, %v5822_v9  ;;  %2766 = vst.msk [vmem:[%s5759_s8 + $0x100] sm:$0xff] %vm5750_vm4, %v3557_v33  ;;  %v7016_v21 = vld [vmem:[#allocation38_spill] sm:$0xff]  ;;  %v7017_v56 = vld [vmem:[#allocation39_spill] sm:$0xff] }
 0x2a5   : > { %3969 = vrcp.f32 %v1894_v37  ;;  %3471 = vmatprep.subr.msk.bf16.mxu0 %vm1074_vm1, %v2314_v43  ;;  %v1222_v32 = vpop.xlane.xlu0 %1221  ;;  %2749 = vst.msk [vmem:[%s5759_s8 + $0x78] sm:$0xff] %vm5750_vm4, %v3540_v35 }
 0x2a6   : > { %3971 = vrcp.f32 %v1826_v18  ;;  %v1435_v5 = vsub.f32 %v7013_v60, %v1222_v32  ;;  %v1436_v11 = vsub.f32 %v7014_v12, %v1222_v32  ;;  %2847 = vmatpush1.bf16.xpose.msra.mxu0 %v2313_v47  ;;  %v2332_v29 = vpack.c.bf16 %v2222_v10, %v2220_v0 }
 0x2a7   : > { %v5912_v37 = vpop.eup %3951  ;;  %3973 = vrcp.f32 %v1898_v31  ;;  %3472 = vmatprep.subr.msk.bf16.mxu0 %vm1074_vm1, %v2312_v44  ;;  %v2331_v45 = vpack.c.bf16 %v2221_v27, %v2219_v62  ;;  %v3558_v40 = vpack.c.bf16 %v2222_v10, %v2221_v27  ;;  %v2330_v18 = vpack.c.bf16 %v5870_v2, %v5862_v19  ;;  %v7015_v62 = vld [vmem:[#allocation36_spill] sm:$0xff]  ;;  %v7018_v19 = vld [vmem:[#allocation41_spill] sm:$0xff] }
 0x2a8   : > { %v5915_v30 = vpop.eup %3953  ;;  %v1651_v9 = vmul.f32 1.442695, %v1435_v5  ;;  %v1653_v20 = vmul.f32 1.442695, %v1436_v11  ;;  %3482 = vmatprep.subr.msk.bf16.mxu1 %vm1074_vm1, %v2332_v29  ;;  %v1226_v43 = vpop.xlane.xlu1 %1225  ;;  %v2311_v12 = vpack.c.bf16 %v5852_v17, %v5825_v58 }
 0x2a9   : > { %v1294_v0 = vpop.xlane.xlu0 %1293  ;;  %2767 = vst.msk [vmem:[%s5759_s8 + $0x108] sm:$0xff] %vm5750_vm4, %v3558_v40  ;;  %2928 = vmatpush1.bf16.xpose.msra.mxu1 %v2331_v45  ;;  %v1947_v47 = vsel %vm1074_vm1, %v5915_v30, 0.0  ;;  %v1437_v27 = vsub.f32 %v7017_v56, %v1226_v43  ;;  %v1438_v2 = vsub.f32 %v7018_v19, %v1226_v43 }
 0x2aa   : > { %3975 = vpow2.f32 %v1651_v9  ;;  %v1471_v35 = vsub.f32 %v7015_v62, %v1294_v0  ;;  %v1472_v10 = vsub.f32 %v7016_v21, %v1294_v0  ;;  %3483 = vmatprep.subr.msk.bf16.mxu1 %vm1074_vm1, %v2330_v18  ;;  %v1948_v32 = vadd.f32 %v5912_v37, %v1947_v47  ;;  %v7019_v0 = vld [vmem:[#allocation40_spill] sm:$0xff]  ;;  %v7020_v47 = vld [vmem:[#allocation42_spill] sm:$0xff] }
 0x2ab   : > { %v5929_v33 = vpop.eup %3955  ;;  %3977 = vpow2.f32 %v1653_v20  ;;  %v1655_v5 = vmul.f32 1.442695, %v1437_v27  ;;  %v1657_v29 = vmul.f32 1.442695, %v1438_v2  ;;  %v2310_v9 = vpack.c.bf16 %v5809_v41, %v5778_v14 }
 0x2ac   : > { %v5933_v31 = vpop.eup %3957  ;;  %v1723_v44 = vmul.f32 1.442695, %v1471_v35  ;;  %v1725_v60 = vmul.f32 1.442695, %v1472_v10  ;;  %1949 = vadd.xlane.f32.xlu0 %v1948_v32  ;;  %v1298_v40 = vpop.xlane.xlu1 %1297  ;;  %v2329_v41 = vpack.c.bf16 %v5877_v63, %v5865_v51  ;;  %v2328_v35 = vpack.c.bf16 %v5831_v38, %v5800_v16  ;;  %v7022_v51 = vld [vmem:[#allocation22_spill] sm:$0xff] }
 0x2ad   : > { %v5937_v11 = vpop.eup %3959  ;;  %v1814_v45 = vpop.xlane.xlu0 %1813  ;;  %v2019_v20 = vsel %vm1074_vm1, %v5933_v31, 0.0  ;;  %v1473_v43 = vsub.f32 %v7019_v0, %v1298_v40  ;;  %v1474_v58 = vsub.f32 %v7020_v47, %v1298_v40  ;;  %v7023_v40 = vld [vmem:[#allocation106_spill] sm:$0xff]  ;;  %v7024_v0 = vld [vmem:[#allocation25_spill] sm:$0xff]  ;;  %v7025_v47 = vld [vmem:[#allocation23_spill] sm:$0xff] }
 0x2ae   : > { %v5943_v18 = vpop.eup %3961  ;;  %3979 = vpow2.f32 %v1723_v44  ;;  %2849 = vmatpush1.bf16.xpose.msra.mxu0 %v2311_v12  ;;  %v2020_v17 = vadd.f32 %v5929_v33, %v2019_v20  ;;  %v7021_v44 = vld [vmem:[#allocation105_spill] sm:$0xff] }
 0x2af   : > { %v3964_v62 = vpop.eup %3963  ;;  %3981 = vpow2.f32 %v1725_v60  ;;  %3473 = vmatprep.subr.msk.bf16.mxu0 %vm1074_vm1, %v2310_v9  ;;  %v1951_v14 = vsel %vm1074_vm1, %v5943_v18, 0.0  ;;  %v1727_v10 = vmul.f32 1.442695, %v1473_v43  ;;  %v1729_v56 = vmul.f32 1.442695, %v1474_v58 }
 0x2b0   : > { %v5955_v21 = vpop.eup %3965  ;;  %3983 = vpow2.f32 %v1655_v5  ;;  %v1952_v27 = vadd.f32 %v5937_v11, %v1951_v14  ;;  %2021 = vadd.xlane.f32.xlu0 %v2020_v17  ;;  %v1818_v32 = vpop.xlane.xlu1 %1817  ;;  %v5961_v60 = vmul.f32 %v3964_v62, %v7021_v44  ;;  %v5964_v63 = vmul.f32 %v3964_v62, %v7022_v51 }
 0x2b1   : > { %v5958_v19 = vpop.eup %3967  ;;  %3985 = vpow2.f32 %v1657_v29  ;;  %v1886_v2 = vpop.xlane.xlu0 %1885  ;;  %2930 = vmatpush1.bf16.xpose.msra.mxu1 %v2329_v41  ;;  %v2309_v5 = vpack.c.bf16 %v5812_v22, %v5781_v25  ;;  %v7026_v25 = vld [vmem:[#allocation21_spill] sm:$0xff]  ;;  %v2308_v14 = vpack.c.bf16 %v5768_v34, %v5745_v7  ;;  %v7027_v41 = vld [vmem:[#allocation107_spill] sm:$0xff]  ;;  %v2327_v7 = vpack.c.bf16 %v5837_v46, %v5806_v39 }
 0x2b2   : > { %v3970_v16 = vpop.eup %3969  ;;  %3987 = vrcp.f32 %v1814_v45  ;;  %1953 = vadd.xlane.f32.xlu1 %v1952_v27  ;;  %3484 = vmatprep.subr.msk.bf16.mxu1 %vm1074_vm1, %v2328_v35  ;;  %v2023_v38 = vsel %vm1074_vm1, %v5958_v19, 0.0  ;;  %v3531_v45 = vpack.c.bf16 %v5961_v60, %v5964_v63  ;;  %v7029_v27 = vld [vmem:[#allocation5_spill] sm:$0xff] }
 0x2b3   : > { %v3972_v12 = vpop.eup %3971  ;;  %3989 = vpow2.f32 %v1727_v10  ;;  %v2024_v29 = vadd.f32 %v5955_v21, %v2023_v38  ;;  %v5973_v9 = vmul.f32 %v3970_v16, %v7023_v40  ;;  %v5984_v22 = vmul.f32 %v3970_v16, %v7026_v25  ;;  %v7028_v10 = vld [vmem:[#allocation26_spill] sm:$0xff]  ;;  %v7032_v25 = vld [vmem:[#allocation103_spill] sm:$0xff] }
 0x2b4   : > { %v3974_v20 = vpop.eup %3973  ;;  %3991 = vpow2.f32 %v1729_v56  ;;  %v5978_v43 = vmul.f32 %v3972_v12, %v7024_v0  ;;  %v5981_v58 = vmul.f32 %v3972_v12, %v7025_v47  ;;  %v1890_v17 = vpop.xlane.xlu1 %1889  ;;  %2740 = vst.msk [vmem:[%s5759_s8 + $0x30] sm:$0xff] %vm5750_vm4, %v3531_v45  ;;  %v2326_v12 = vpack.c.bf16 %v5787_v6, %v5757_v49  ;;  %v7031_v49 = vld [vmem:[#allocation11_spill] sm:$0xff] }
 0x2b5   : > { %3993 = vrcp.f32 %v1886_v2  ;;  %v1286_v62 = vpop.xlane.xlu0 %1285  ;;  %v5989_v35 = vmul.f32 %v3974_v20, %v7027_v41  ;;  %v5995_v56 = vmul.f32 %v3974_v20, %v7028_v10  ;;  %v7030_v2 = vld [vmem:[#allocation9_spill] sm:$0xff]  ;;  %v2307_v10 = vpack.c.bf16 %v5771_v36, %v5748_v24 }
 0x2b6   : > { %3995 = vrcp.f32 %v1818_v32  ;;  %2025 = vadd.xlane.f32.xlu1 %v2024_v29  ;;  %2851 = vmatpush1.bf16.xpose.msra.mxu0 %v2309_v5  ;;  %v1467_v44 = vsub.f32 %v7029_v27, %v1286_v62  ;;  %v1468_v51 = vsub.f32 %v7030_v2, %v1286_v62  ;;  %v3532_v34 = vpack.c.bf16 %v5978_v43, %v5981_v58 }
 0x2b7   : > { %v5999_v16 = vpop.eup %3975  ;;  %3997 = vrcp.f32 %v1890_v17  ;;  %3474 = vmatprep.subr.msk.bf16.mxu0 %vm1074_vm1, %v2308_v14  ;;  %v3549_v29 = vpack.c.bf16 %v5973_v9, %v5984_v22  ;;  %v3550_v39 = vpack.c.bf16 %v5989_v35, %v5995_v56 }
 0x2b8   : > { %v6006_v38 = vpop.eup %3977  ;;  %v1715_v32 = vmul.f32 1.442695, %v1467_v44  ;;  %v1717_v5 = vmul.f32 1.442695, %v1468_v51  ;;  %v1290_v45 = vpop.xlane.xlu1 %1289  ;;  %2741 = vst.msk [vmem:[%s5759_s8 + $0x38] sm:$0xff] %vm5750_vm4, %v3532_v34 }
 0x2b9   : > { %2932 = vmatpush1.bf16.xpose.msra.mxu1 %v2327_v7  ;;  %v1358_v40 = vpop.xlane.xlu0 %1357  ;;  %v1939_v46 = vsel %vm1074_vm1, %v6006_v38, 0.0  ;;  %v1469_v0 = vsub.f32 %v5330_v42, %v1290_v45  ;;  %2758 = vst.msk [vmem:[%s5759_s8 + $0xc0] sm:$0xff] %vm5750_vm4, %v3549_v29  ;;  %v1470_v17 = vsub.f32 %v7032_v25, %v1290_v45  ;;  %2759 = vst.msk [vmem:[%s5759_s8 + $0xc8] sm:$0xff] %vm5750_vm4, %v3550_v39  ;;  %v7034_v29 = vld [vmem:[#allocation17_spill] sm:$0xff] }
 0x2ba   : > { %3999 = vpow2.f32 %v1715_v32  ;;  %v1503_v20 = vsub.f32 %v5285_v48, %v1358_v40  ;;  %v1504_v6 = vsub.f32 %v7031_v49, %v1358_v40  ;;  %3485 = vmatprep.subr.msk.bf16.mxu1 %vm1074_vm1, %v2326_v12  ;;  %v1940_v62 = vadd.f32 %v5999_v16, %v1939_v46 }
 0x2bb   : > { %v6026_v47 = vpop.eup %3979  ;;  %4001 = vpow2.f32 %v1717_v5  ;;  %v1719_v42 = vmul.f32 1.442695, %v1469_v0  ;;  %v1721_v44 = vmul.f32 1.442695, %v1470_v17  ;;  %v2306_v7 = vpack.c.bf16 %v5978_v43, %v5961_v60  ;;  %v7033_v5 = vld [vmem:[#allocation102_spill] sm:$0xff]  ;;  %v7035_v17 = vld [vmem:[#allocation99_spill] sm:$0xff] }
 0x2bc   : > { %v6033_v48 = vpop.eup %3981  ;;  %v1787_v14 = vmul.f32 1.442695, %v1503_v20  ;;  %v1789_v41 = vmul.f32 1.442695, %v1504_v6  ;;  %1941 = vadd.xlane.f32.xlu0 %v1940_v62  ;;  %v1362_v51 = vpop.xlane.xlu1 %1361  ;;  %v2325_v43 = vpack.c.bf16 %v5793_v55, %v5765_v4  ;;  %v2324_v45 = vpack.c.bf16 %v5989_v35, %v5973_v9  ;;  %v7036_v4 = vld [vmem:[#allocation24_spill] sm:$0xff] }
 0x2bd   : > { %v6037_v27 = vpop.eup %3983  ;;  %v1806_v2 = vpop.xlane.xlu0 %1805  ;;  %v2011_v34 = vsel %vm1074_vm1, %v6033_v48, 0.0  ;;  %v1505_v12 = vsub.f32 %v7033_v5, %v1362_v51  ;;  %v1506_v24 = vsub.f32 %v7034_v29, %v1362_v51  ;;  %v2305_v35 = vpack.c.bf16 %v5981_v58, %v5964_v63  ;;  %v7039_v5 = vld [vmem:[#allocation15_spill] sm:$0xff]  ;;  %v7040_v29 = vld [vmem:[#allocation101_spill] sm:$0xff]  ;;  %v7042_v58 = vld [vmem:[#allocation14_spill] sm:$0xff] }
 0x2be   : > { %v6043_v32 = vpop.eup %3985  ;;  %4003 = vpow2.f32 %v1787_v14  ;;  %2853 = vmatpush1.bf16.xpose.msra.mxu0 %v2307_v10  ;;  %v2012_v36 = vadd.f32 %v6026_v47, %v2011_v34  ;;  %v7037_v10 = vld [vmem:[#allocation7_spill] sm:$0xff] }
 0x2bf   : > { %v3988_v40 = vpop.eup %3987  ;;  %4005 = vpow2.f32 %v1789_v41  ;;  %3475 = vmatprep.subr.msk.bf16.mxu0 %vm1074_vm1, %v2306_v7  ;;  %v1943_v60 = vsel %vm1074_vm1, %v6043_v32, 0.0  ;;  %v1791_v39 = vmul.f32 1.442695, %v1505_v12  ;;  %v1793_v20 = vmul.f32 1.442695, %v1506_v24 }
 0x2c0   : > { %v6055_v46 = vpop.eup %3989  ;;  %4007 = vpow2.f32 %v1719_v42  ;;  %v1944_v49 = vadd.f32 %v6037_v27, %v1943_v60  ;;  %2013 = vadd.xlane.f32.xlu0 %v2012_v36  ;;  %v1810_v25 = vpop.xlane.xlu1 %1809  ;;  %v2164_v62 = vmul.f32 %v3988_v40, %v7035_v17  ;;  %v2163_v55 = vmul.f32 %v3988_v40, %v7036_v4  ;;  %v7041_v60 = vld [vmem:[#allocation13_spill] sm:$0xff] }
 0x2c1   : > { %v6058_v6 = vpop.eup %3991  ;;  %4009 = vpow2.f32 %v1721_v44  ;;  %2934 = vmatpush1.bf16.xpose.msra.mxu1 %v2325_v43  ;;  %v1878_v0 = vpop.xlane.xlu0 %1877 }
 0x2c2   : > { %v3994_v14 = vpop.eup %3993  ;;  %4011 = vrcp.f32 %v1806_v2  ;;  %1945 = vadd.xlane.f32.xlu1 %v1944_v49  ;;  %3486 = vmatprep.subr.msk.bf16.mxu1 %vm1074_vm1, %v2324_v45  ;;  %v2015_v9 = vsel %vm1074_vm1, %v6058_v6, 0.0  ;;  %v3529_v51 = vpack.c.bf16 %v2164_v62, %v2163_v55  ;;  %v7038_v2 = vld [vmem:[#allocation100_spill] sm:$0xff]  ;;  %v2323_v49 = vpack.c.bf16 %v5995_v56, %v5984_v22 }
 0x2c3   : > { %v3996_v41 = vpop.eup %3995  ;;  %4013 = vpow2.f32 %v1791_v39  ;;  %v2016_v42 = vadd.f32 %v6055_v46, %v2015_v9  ;;  %v2200_v44 = vmul.f32 %v3994_v14, %v7037_v10  ;;  %v2199_v24 = vmul.f32 %v3994_v14, %v7040_v29 }
 0x2c4   : > { %v3998_v7 = vpop.eup %3997  ;;  %4015 = vpow2.f32 %v1793_v20  ;;  %v2166_v34 = vmul.f32 %v3996_v41, %v7038_v2  ;;  %v2165_v12 = vmul.f32 %v3996_v41, %v7039_v5  ;;  %v1882_v40 = vpop.xlane.xlu1 %1881  ;;  %2738 = vst.msk [vmem:[%s5759_s8 + $0x20] sm:$0xff] %vm5750_vm4, %v3529_v51 }
 0x2c5   : > { %4017 = vrcp.f32 %v1878_v0  ;;  %v1798_v36 = vpop.xlane.xlu0 %1797  ;;  %v2202_v63 = vmul.f32 %v3998_v7, %v7041_v60  ;;  %v2201_v43 = vmul.f32 %v3998_v7, %v7042_v58  ;;  %v3547_v0 = vpack.c.bf16 %v2200_v44, %v2199_v24  ;;  %v7044_v60 = vld [vmem:[#allocation18_spill] sm:$0xff] }
 0x2c6   : > { %4019 = vrcp.f32 %v1810_v25  ;;  %2017 = vadd.xlane.f32.xlu1 %v2016_v42  ;;  %2855 = vmatpush1.bf16.xpose.msra.mxu0 %v2305_v35  ;;  %v2304_v45 = vpack.c.bf16 %v2166_v34, %v2164_v62  ;;  %v3530_v39 = vpack.c.bf16 %v2166_v34, %v2165_v12  ;;  %v2303_v41 = vpack.c.bf16 %v2165_v12, %v2163_v55 }
 0x2c7   : > { %v6077_v20 = vpop.eup %3999  ;;  %4021 = vrcp.f32 %v1798_v36  ;;  %v2322_v4 = vpack.c.bf16 %v2202_v63, %v2200_v44  ;;  %v3548_v25 = vpack.c.bf16 %v2202_v63, %v2201_v43  ;;  %2756 = vst.msk [vmem:[%s5759_s8 + $0xb0] sm:$0xff] %vm5750_vm4, %v3547_v0  ;;  %v2321_v29 = vpack.c.bf16 %v2201_v43, %v2199_v24  ;;  %v7043_v36 = vld [vmem:[#allocation8_spill] sm:$0xff] }
 0x2c8   : > { %v6081_v17 = vpop.eup %4001  ;;  %4023 = vrcp.f32 %v1882_v40  ;;  %3476 = vmatprep.subr.msk.bf16.mxu0 %vm1074_vm1, %v2304_v45  ;;  %2739 = vst.msk [vmem:[%s5759_s8 + $0x28] sm:$0xff] %vm5750_vm4, %v3530_v39  ;;  %v1802_v14 = vpop.xlane.xlu1 %1801 }
 0x2c9   : > { %2936 = vmatpush1.bf16.xpose.msra.mxu1 %v2323_v49  ;;  %v1870_v62 = vpop.xlane.xlu0 %1869  ;;  %v2003_v9 = vsel %vm1074_vm1, %v6081_v17, 0.0  ;;  %2757 = vst.msk [vmem:[%s5759_s8 + $0xb8] sm:$0xff] %vm5750_vm4, %v3548_v25  ;;  %v7045_v25 = vld [vmem:[#allocation12_spill] sm:$0xff] }
 0x2ca   : > { %4025 = vrcp.f32 %v1870_v62  ;;  %3487 = vmatprep.subr.msk.bf16.mxu1 %vm1074_vm1, %v2322_v4  ;;  %v2004_v22 = vadd.f32 %v6077_v20, %v2003_v9 }
 0x2cb   : > { %v6097_v56 = vpop.eup %4003  ;;  %4027 = vrcp.f32 %v1802_v14  ;;  %v7046_v14 = vld [vmem:[#allocation6_spill] sm:$0xff] }
 0x2cc   : > { %v6099_v35 = vpop.eup %4005  ;;  %2005 = vadd.xlane.f32.xlu0 %v2004_v22  ;;  %v1874_v44 = vpop.xlane.xlu1 %1873 }
 0x2cd   : > { %v6101_v42 = vpop.eup %4007  ;;  %v1862_v10 = vpop.xlane.xlu0 %1861  ;;  %v2075_v51 = vsel %vm1074_vm1, %v6099_v35, 0.0 }
 0x2ce   : > { %v6105_v7 = vpop.eup %4009  ;;  %2857 = vmatpush1.bf16.xpose.msra.mxu0 %v2303_v41  ;;  %4029 = vrcp.f32 %v1862_v10  ;;  %v2076_v2 = vadd.f32 %v6097_v56, %v2075_v51  ;;  %v7047_v41 = vld [vmem:[#allocation29_spill] sm:$0xff] }
 0x2cf   : > { %v4012_v34 = vpop.eup %4011  ;;  %4031 = vrcp.f32 %v1874_v44  ;;  %v2007_v5 = vsel %vm1074_vm1, %v6105_v7, 0.0  ;;  %v7048_v44 = vld [vmem:[#allocation10_spill] sm:$0xff] }
 0x2d0   : > { %v6110_v55 = vpop.eup %4013  ;;  %2077 = vadd.xlane.f32.xlu0 %v2076_v2  ;;  %v2008_v12 = vadd.f32 %v6101_v42, %v2007_v5  ;;  %v2160_v40 = vmul.f32 %v4012_v34, %v7043_v36  ;;  %v2159_v63 = vmul.f32 %v4012_v34, %v7044_v60  ;;  %v1866_v39 = vpop.xlane.xlu1 %1865  ;;  %v7050_v60 = vld [vmem:[#allocation16_spill] sm:$0xff] }
 0x2d1   : > { %v6115_v58 = vpop.eup %4015  ;;  %2938 = vmatpush1.bf16.xpose.msra.mxu1 %v2321_v29  ;;  %v1934_v45 = vpop.xlane.xlu0 %1933 }
 0x2d2   : > { %v4018_v49 = vpop.eup %4017  ;;  %2009 = vadd.xlane.f32.xlu1 %v2008_v12  ;;  %4033 = vrcp.f32 %v1934_v45  ;;  %v2079_v24 = vsel %vm1074_vm1, %v6115_v58, 0.0  ;;  %v3527_v43 = vpack.c.bf16 %v2160_v40, %v2159_v63  ;;  %v7049_v12 = vld [vmem:[#allocation19_spill] sm:$0xff] }
 0x2d3   : > { %v4020_v0 = vpop.eup %4019  ;;  %4035 = vrcp.f32 %v1866_v39  ;;  %v2080_v4 = vadd.f32 %v6110_v55, %v2079_v24  ;;  %v2196_v62 = vmul.f32 %v4018_v49, %v7045_v25  ;;  %v2195_v9 = vmul.f32 %v4018_v49, %v7046_v14 }
 0x2d4   : > { %v4022_v22 = vpop.eup %4021  ;;  %v2162_v10 = vmul.f32 %v4020_v0, %v7047_v41  ;;  %v2161_v51 = vmul.f32 %v4020_v0, %v7048_v44  ;;  %2736 = vst.msk [vmem:[%s5759_s8 + $0x10] sm:$0xff] %vm5750_vm4, %v3527_v43  ;;  %v1938_v5 = vpop.xlane.xlu1 %1937  ;;  %v7051_v0 = vld [vmem:[#allocation27_spill] sm:$0xff] }
 0x2d5   : > { %v4024_v2 = vpop.eup %4023  ;;  %v1998_v34 = vpop.xlane.xlu0 %1997  ;;  %v3545_v29 = vpack.c.bf16 %v2196_v62, %v2195_v9  ;;  %v2156_v36 = vmul.f32 %v4022_v22, %v7049_v12  ;;  %v2155_v45 = vmul.f32 %v4022_v22, %v7050_v60 }
 0x2d6   : > { %2081 = vadd.xlane.f32.xlu1 %v2080_v4  ;;  %v2302_v39 = vpack.c.bf16 %v2162_v10, %v2160_v40  ;;  %4037 = vrcp.f32 %v1998_v34  ;;  %v2301_v49 = vpack.c.bf16 %v2161_v51, %v2159_v63  ;;  %v3528_v24 = vpack.c.bf16 %v2162_v10, %v2161_v51  ;;  %v7052_v40 = vld [vmem:[#allocation28_spill] sm:$0xff] }
 0x2d7   : > { %v4026_v25 = vpop.eup %4025  ;;  %4039 = vrcp.f32 %v1938_v5  ;;  %v2198_v14 = vmul.f32 %v4024_v2, %v7051_v0  ;;  %v2197_v43 = vmul.f32 %v4024_v2, %v5429_v8  ;;  %2754 = vst.msk [vmem:[%s5759_s8 + $0xa0] sm:$0xff] %vm5750_vm4, %v3545_v29  ;;  %v3525_v41 = vpack.c.bf16 %v2156_v36, %v2155_v45  ;;  %v7053_v34 = vld [vmem:[#allocation20_spill] sm:$0xff] }
 0x2d8   : > { %v4028_v44 = vpop.eup %4027  ;;  %3477 = vmatprep.subr.msk.bf16.mxu0 %vm1074_vm1, %v2302_v39  ;;  %2737 = vst.msk [vmem:[%s5759_s8 + $0x18] sm:$0xff] %vm5750_vm4, %v3528_v24  ;;  %v2192_v63 = vmul.f32 %v4026_v25, %v7052_v40  ;;  %v2191_v4 = vmul.f32 %v4026_v25, %v5436_v1  ;;  %v7054_v29 = vld [vmem:[#allocation104_spill] sm:$0xff] }
 0x2d9   : > { %2859 = vmatpush1.bf16.xpose.msra.mxu0 %v2301_v49  ;;  %v2320_v22 = vpack.c.bf16 %v2198_v14, %v2196_v62  ;;  %v2070_v10 = vpop.xlane.xlu0 %2069  ;;  %v2319_v51 = vpack.c.bf16 %v2197_v43, %v2195_v9  ;;  %v3546_v8 = vpack.c.bf16 %v2198_v14, %v2197_v43  ;;  %v2002_v2 = vpop.xlane.xlu1 %2001  ;;  %v2158_v5 = vmul.f32 %v4028_v44, %v7053_v34  ;;  %v7055_v43 = vld [vmem:[#allocation30_spill] sm:$0xff] }
 0x2da   : > { %2734 = vst.msk [vmem:[%s5759_s8] sm:$0xff] %vm5750_vm4, %v3525_v41  ;;  %4041 = vrcp.f32 %v2070_v10  ;;  %v2157_v12 = vmul.f32 %v4028_v44, %v7054_v29  ;;  %v3543_v60 = vpack.c.bf16 %v2192_v63, %v2191_v4 }
 0x2db   : > { %v4030_v39 = vpop.eup %4029  ;;  %3488 = vmatprep.subr.msk.bf16.mxu1 %vm1074_vm1, %v2320_v22  ;;  %2755 = vst.msk [vmem:[%s5759_s8 + $0xa8] sm:$0xff] %vm5750_vm4, %v3546_v8  ;;  %4043 = vrcp.f32 %v2002_v2  ;;  %v2300_v1 = vpack.c.bf16 %v2158_v5, %v2156_v36 }
 0x2dc   : > { %v4032_v62 = vpop.eup %4031  ;;  %2940 = vmatpush1.bf16.xpose.msra.mxu1 %v2319_v51  ;;  %v3526_v9 = vpack.c.bf16 %v2158_v5, %v2157_v12  ;;  %2752 = vst.msk [vmem:[%s5759_s8 + $0x90] sm:$0xff] %vm5750_vm4, %v3543_v60  ;;  %v2188_v49 = vmul.f32 %v4030_v39, %v5452_v59  ;;  %v2187_v24 = vmul.f32 %v4030_v39, %v5464_v15 }
 0x2dd   : > { %3478 = vmatprep.subr.msk.bf16.mxu0 %vm1074_vm1, %v2300_v1  ;;  %v1990_v25 = vpop.xlane.xlu0 %1989  ;;  %v2299_v0 = vpack.c.bf16 %v2157_v12, %v2155_v45  ;;  %v2074_v14 = vpop.xlane.xlu1 %2073  ;;  %v2194_v41 = vmul.f32 %v4032_v62, %v7055_v43  ;;  %v2193_v36 = vmul.f32 %v4032_v62, %v5458_v13  ;;  %v7056_v45 = vld [vmem:[#allocation33_spill] sm:$0xff] }
 0x2de   : > { %4045 = vrcp.f32 %v1990_v25  ;;  %2735 = vst.msk [vmem:[%s5759_s8 + $0x8] sm:$0xff] %vm5750_vm4, %v3526_v9  ;;  %v3541_v44 = vpack.c.bf16 %v2188_v49, %v2187_v24 }
 0x2df   : > { %v4034_v40 = vpop.eup %4033  ;;  %4047 = vrcp.f32 %v2074_v14  ;;  %v2318_v59 = vpack.c.bf16 %v2194_v41, %v2192_v63  ;;  %v3544_v15 = vpack.c.bf16 %v2194_v41, %v2193_v36  ;;  %v2317_v10 = vpack.c.bf16 %v2193_v36, %v2191_v4  ;;  %v7057_v63 = vld [vmem:[#allocation34_spill] sm:$0xff] }
 0x2e0   : > { %v4036_v22 = vpop.eup %4035  ;;  %2750 = vst.msk [vmem:[%s5759_s8 + $0x80] sm:$0xff] %vm5750_vm4, %v3541_v44  ;;  %v2224_v51 = vmul.f32 %v4034_v40, %v7056_v45  ;;  %v2223_v8 = vmul.f32 %v4034_v40, %v5468_v52 }
 0x2e1   : > { %2861 = vmatpush1.bf16.xpose.msra.mxu0 %v2299_v0  ;;  %3489 = vmatprep.subr.msk.bf16.mxu1 %vm1074_vm1, %v2318_v59  ;;  %v2062_v13 = vpop.xlane.xlu0 %2061  ;;  %2753 = vst.msk [vmem:[%s5759_s8 + $0x98] sm:$0xff] %vm5750_vm4, %v3544_v15  ;;  %v1994_v2 = vpop.xlane.xlu1 %1993  ;;  %v2190_v34 = vmul.f32 %v4036_v22, %v7057_v63  ;;  %v2189_v4 = vmul.f32 %v4036_v22, %v5488_v54  ;;  %v7060_v15 = vld [vmem:[#allocation93_spill] sm:$0xff]  ;;  %v7062_v63 = vld [vmem:[#allocation32_spill] sm:$0xff] }
 0x2e2   : > { %4049 = vrcp.f32 %v2062_v13  ;;  %v3559_v5 = vpack.c.bf16 %v2224_v51, %v2223_v8 }
 0x2e3   : > { %v4038_v29 = vpop.eup %4037  ;;  %4051 = vrcp.f32 %v1994_v2  ;;  %v2316_v12 = vpack.c.bf16 %v2190_v34, %v2188_v49  ;;  %v3542_v52 = vpack.c.bf16 %v2190_v34, %v2189_v4  ;;  %v2315_v54 = vpack.c.bf16 %v2189_v4, %v2187_v24  ;;  %v7058_v49 = vld [vmem:[#allocation31_spill] sm:$0xff]  ;;  %v7059_v24 = vld [vmem:[#allocation85_spill] sm:$0xff] }
 0x2e4   : > { %v4040_v60 = vpop.eup %4039  ;;  %2942 = vmatpush1.bf16.xpose.msra.mxu1 %v2317_v10  ;;  %2768 = vst.msk [vmem:[%s5759_s8 + $0x110] sm:$0xff] %vm5750_vm4, %v3559_v5  ;;  %v2256_v39 = vmul.f32 %v4038_v29, %v5514_v28  ;;  %v2255_v1 = vmul.f32 %v4038_v29, %v5509_v50  ;;  %v7061_v10 = vld [vmem:[#allocation91_spill] sm:$0xff] }
 0x2e5   : > { %3479 = vmatprep.subr.msk.bf16.mxu0 %vm1074_vm1, %v2316_v12  ;;  %v1982_v62 = vpop.xlane.xlu0 %1981  ;;  %2751 = vst.msk [vmem:[%s5759_s8 + $0x88] sm:$0xff] %vm5750_vm4, %v3542_v52  ;;  %v2066_v9 = vpop.xlane.xlu1 %2065  ;;  %v2226_v25 = vmul.f32 %v4040_v60, %v7058_v49  ;;  %v2225_v0 = vmul.f32 %v4040_v60, %v5494_v57  ;;  %v7063_v52 = vld [vmem:[#allocation92_spill] sm:$0xff] }
 0x2e6   : > { %4053 = vrcp.f32 %v1982_v62  ;;  %v3575_v14 = vpack.c.bf16 %v2256_v39, %v2255_v1 }
 0x2e7   : > { %v4042_v43 = vpop.eup %4041  ;;  %4055 = vrcp.f32 %v2066_v9  ;;  %v2334_v28 = vpack.c.bf16 %v2226_v25, %v2224_v51  ;;  %v3560_v50 = vpack.c.bf16 %v2226_v25, %v2225_v0  ;;  %v2333_v36 = vpack.c.bf16 %v2225_v0, %v2223_v8  ;;  %v4111_v25 = vld.sshfl [vmem:[%s5704_s5] sm:$0x33 pattern:$0x76325410]  ;;  %v7064_v0 = vld [vmem:[#allocation94_spill] sm:$0xff] }
 0x2e8   : > { %v4044_v41 = vpop.eup %4043  ;;  %2784 = vst.msk [vmem:[%s5759_s8 + $0x190] sm:$0xff] %vm5750_vm4, %v3575_v14  ;;  %v2292_v44 = vmul.f32 %v4042_v43, %v7059_v24  ;;  %v2291_v40 = vmul.f32 %v4042_v43, %v5519_v53 }
 0x2e9   : > { %2877 = vmatpush2.bf16.xpose.msra.mxu0 %v2315_v54  ;;  %3490 = vmatprep.subr.msk.bf16.mxu1 %vm1074_vm1, %v2334_v28  ;;  %v2054_v57 = vpop.xlane.xlu0 %2053  ;;  %2769 = vst.msk [vmem:[%s5759_s8 + $0x118] sm:$0xff] %vm5750_vm4, %v3560_v50  ;;  %v1986_v59 = vpop.xlane.xlu1 %1985  ;;  %v2258_v22 = vmul.f32 %v4044_v41, %v7060_v15  ;;  %v2257_v45 = vmul.f32 %v4044_v41, %v7061_v10  ;;  %v7065_v50 = vld [vmem:[#allocation95_spill] sm:$0xff]  ;;  %v6221_v15 = vld.sshfl [vmem:[%s5704_s5 + $0x8] sm:$0x33 pattern:$0x76325410] }
 0x2ea   : > { %4057 = vrcp.f32 %v2054_v57  ;;  %v3593_v51 = vpack.c.bf16 %v2292_v44, %v2291_v40  ;;  %v4112_v57 = vld.sshfl [vmem:[%s5704_s5 + $0x4] sm:$0x33 pattern:$0x76325410]  ;;  %v7067_v10 = vld [vmem:[#allocation83_spill] sm:$0xff] }
 0x2eb   : > { %v4046_v8 = vpop.eup %4045  ;;  %4059 = vrcp.f32 %v1986_v59  ;;  %v2350_v13 = vpack.c.bf16 %v2258_v22, %v2256_v39  ;;  %v3576_v53 = vpack.c.bf16 %v2258_v22, %v2257_v45  ;;  %v2349_v29 = vpack.c.bf16 %v2257_v45, %v2255_v1 }
 0x2ec   : > { %v4048_v2 = vpop.eup %4047  ;;  %2958 = vmatpush2.bf16.xpose.msra.mxu1 %v2333_v36  ;;  %2802 = vst.msk [vmem:[%s5759_s8 + $0x220] sm:$0xff] %vm5750_vm4, %v3593_v51  ;;  %v2252_v34 = vmul.f32 %v4046_v8, %v7062_v63  ;;  %v6198_v4 = vmul.f32 %v4046_v8, %v5552_v26  ;;  %v7066_v36 = vld [vmem:[#allocation97_spill] sm:$0xff] }
 0x2ed   : > { %3493 = vmatprep.subr.msk.bf16.mxu0 %vm1074_vm1, %v2350_v13  ;;  %v1974_v5 = vpop.xlane.xlu0 %1973  ;;  %2785 = vst.msk [vmem:[%s5759_s8 + $0x198] sm:$0xff] %vm5750_vm4, %v3576_v53  ;;  %v2058_v12 = vpop.xlane.xlu1 %2057  ;;  %v2294_v60 = vmul.f32 %v4048_v2, %v7063_v52  ;;  %v2293_v39 = vmul.f32 %v4048_v2, %v5542_v61  ;;  %v7068_v51 = vld [vmem:[#allocation89_spill] sm:$0xff]  ;;  %v2976_v13 = vcombine.high %v6221_v15, %v6221_v15 }
 0x2ee   : > { %4061 = vrcp.f32 %v1974_v5  ;;  %v3573_v62 = vpack.c.bf16 %v2252_v34, %v6198_v4 }
 0x2ef   : > { %v4050_v54 = vpop.eup %4049  ;;  %4063 = vrcp.f32 %v2058_v12  ;;  %v2368_v26 = vpack.c.bf16 %v2294_v60, %v2292_v44  ;;  %v3594_v9 = vpack.c.bf16 %v2294_v60, %v2293_v39  ;;  %v2367_v1 = vpack.c.bf16 %v2293_v39, %v2291_v40  ;;  %v6239_v60 = vld.sshfl [vmem:[%s5704_s5 + $0xc] sm:$0x33 pattern:$0x76325410] }
 0x2f0   : > { %v4052_v49 = vpop.eup %4051  ;;  %2879 = vmatmul.mubr.bf16.vlgmr.msra.gmra.mxu0 %v4111_v25  ;;  %2782 = vst.msk [vmem:[%s5759_s8 + $0x180] sm:$0xff] %vm5750_vm4, %v3573_v62  ;;  %v2288_v14 = vmul.f32 %v4050_v54, %v7064_v0  ;;  %v2287_v61 = vmul.f32 %v4050_v54, %v5575_v23  ;;  %v7072_v25 = vld [vmem:[#allocation87_spill] sm:$0xff]  ;;  %v3057_v0 = vcombine.high %v6239_v60, %v6239_v60 }
 0x2f1   : > { %3009 = vmatpush1.bf16.xpose.msra.mxu0 %v2349_v29  ;;  %3504 = vmatprep.subr.msk.bf16.mxu1 %vm1074_vm1, %v2368_v26  ;;  %v2046_v43 = vpop.xlane.xlu0 %2045  ;;  %2803 = vst.msk [vmem:[%s5759_s8 + $0x228] sm:$0xff] %vm5750_vm4, %v3594_v9  ;;  %v1978_v28 = vpop.xlane.xlu1 %1977  ;;  %v2254_v41 = vmul.f32 %v4052_v49, %v7065_v50  ;;  %v2253_v24 = vmul.f32 %v4052_v49, %v7066_v36  ;;  %v7070_v29 = vld [vmem:[#allocation98_spill] sm:$0xff]  ;;  %v7071_v9 = vld [vmem:[#allocation96_spill] sm:$0xff] }
 0x2f2   : > { %4065 = vrcp.f32 %v2046_v43  ;;  %v3591_v44 = vpack.c.bf16 %v2288_v14, %v2287_v61  ;;  %3502 = vmatprep.mubr.msk.bf16.mxu0 %vm1074_vm1, %v2976_v13  ;;  %v7074_v50 = vld [vmem:[#allocation90_spill] sm:$0xff] }
 0x2f3   : > { %v4054_v40 = vpop.eup %4053  ;;  %2960 = vmatmul.mubr.bf16.vlgmr.msra.gmra.mxu1 %v4112_v57  ;;  %4067 = vrcp.f32 %v1978_v28  ;;  %v2348_v23 = vpack.c.bf16 %v2254_v41, %v2252_v34  ;;  %v3574_v59 = vpack.c.bf16 %v2254_v41, %v2253_v24  ;;  %v2347_v2 = vpack.c.bf16 %v2253_v24, %v6198_v4  ;;  %v7069_v34 = vld [vmem:[#allocation86_spill] sm:$0xff] }
 0x2f4   : > { %v4056_v22 = vpop.eup %4055  ;;  %3090 = vmatpush1.bf16.xpose.msra.mxu1 %v2367_v1  ;;  %2800 = vst.msk [vmem:[%s5759_s8 + $0x210] sm:$0xff] %vm5750_vm4, %v3591_v44  ;;  %v2248_v45 = vmul.f32 %v4054_v40, %v7067_v10  ;;  %v2247_v8 = vmul.f32 %v4054_v40, %v7068_v51  ;;  %3513 = vmatprep.mubr.msk.bf16.mxu1 %vm1074_vm1, %v3057_v0 }
 0x2f5   : > { %3494 = vmatprep.subr.msk.bf16.mxu0 %vm1074_vm1, %v2348_v23  ;;  %v1966_v53 = vpop.xlane.xlu0 %1965  ;;  %2783 = vst.msk [vmem:[%s5759_s8 + $0x188] sm:$0xff] %vm5750_vm4, %v3574_v59  ;;  %v2050_v63 = vpop.xlane.xlu1 %2049  ;;  %v2290_v5 = vmul.f32 %v4056_v22, %v7069_v34  ;;  %v2289_v12 = vmul.f32 %v4056_v22, %v7070_v29  ;;  %v7075_v23 = vld [vmem:[#allocation84_spill] sm:$0xff]  ;;  %v7076_v22 = vld [vmem:[#allocation78_spill] sm:$0xff] }
 0x2f6   : > { %4069 = vrcp.f32 %v1966_v53  ;;  %v3571_v52 = vpack.c.bf16 %v2248_v45, %v2247_v8 }
 0x2f7   : > { %v4058_v39 = vpop.eup %4057  ;;  %4071 = vrcp.f32 %v2050_v63  ;;  %v2366_v62 = vpack.c.bf16 %v2290_v5, %v2288_v14  ;;  %v3592_v54 = vpack.c.bf16 %v2290_v5, %v2289_v12  ;;  %v2365_v26 = vpack.c.bf16 %v2289_v12, %v2287_v61  ;;  %v7073_v61 = vld [vmem:[#allocation77_spill] sm:$0xff] }
 0x2f8   : > { %v4060_v4 = vpop.eup %4059  ;;  %2780 = vst.msk [vmem:[%s5759_s8 + $0x170] sm:$0xff] %vm5750_vm4, %v3571_v52  ;;  %v2284_v49 = vmul.f32 %v4058_v39, %v7071_v9  ;;  %v2283_v1 = vmul.f32 %v4058_v39, %v7072_v25  ;;  %v7078_v63 = vld [vmem:[#allocation81_spill] sm:$0xff] }
 0x2f9   : > { %3011 = vmatpush1.bf16.xpose.msra.mxu0 %v2347_v2  ;;  %3505 = vmatprep.subr.msk.bf16.mxu1 %vm1074_vm1, %v2366_v62  ;;  %v2038_v43 = vpop.xlane.xlu0 %2037  ;;  %2801 = vst.msk [vmem:[%s5759_s8 + $0x218] sm:$0xff] %vm5750_vm4, %v3592_v54  ;;  %v1970_v14 = vpop.xlane.xlu1 %1969  ;;  %v2250_v28 = vmul.f32 %v4060_v4, %v7073_v61  ;;  %v2249_v41 = vmul.f32 %v4060_v4, %v7074_v50  ;;  %v7080_v4 = vld [vmem:[#allocation79_spill] sm:$0xff] }
 0x2fa   : > { %4073 = vrcp.f32 %v2038_v43  ;;  %v3589_v36 = vpack.c.bf16 %v2284_v49, %v2283_v1 }
 0x2fb   : > { %v4062_v24 = vpop.eup %4061  ;;  %4075 = vrcp.f32 %v1970_v14  ;;  %v2346_v44 = vpack.c.bf16 %v2250_v28, %v2248_v45  ;;  %v3572_v40 = vpack.c.bf16 %v2250_v28, %v2249_v41  ;;  %v2345_v13 = vpack.c.bf16 %v2249_v41, %v2247_v8  ;;  %v7077_v45 = vld [vmem:[#allocation75_spill] sm:$0xff]  ;;  %v7079_v8 = vld [vmem:[#allocation88_spill] sm:$0xff] }
 0x2fc   : > { %v4064_v57 = vpop.eup %4063  ;;  %3092 = vmatpush1.bf16.xpose.msra.mxu1 %v2365_v26  ;;  %2798 = vst.msk [vmem:[%s5759_s8 + $0x200] sm:$0xff] %vm5750_vm4, %v3589_v36  ;;  %v2244_v59 = vmul.f32 %v4062_v24, %v7075_v23  ;;  %v2243_v10 = vmul.f32 %v4062_v24, %v7076_v22  ;;  %v7083_v36 = vld [vmem:[#allocation76_spill] sm:$0xff] }
 0x2fd   : > { %3495 = vmatprep.subr.msk.bf16.mxu0 %vm1074_vm1, %v2346_v44  ;;  %v1958_v51 = vpop.xlane.xlu0 %1957  ;;  %2781 = vst.msk [vmem:[%s5759_s8 + $0x178] sm:$0xff] %vm5750_vm4, %v3572_v40  ;;  %v2042_v53 = vpop.xlane.xlu1 %2041  ;;  %v2286_v2 = vmul.f32 %v4064_v57, %v7077_v45  ;;  %v2285_v34 = vmul.f32 %v4064_v57, %v7078_v63  ;;  %v7084_v44 = vld [vmem:[#allocation70_spill] sm:$0xff] }
 0x2fe   : > { %4077 = vrcp.f32 %v1958_v51  ;;  %v3569_v5 = vpack.c.bf16 %v2244_v59, %v2243_v10  ;;  %v7086_v51 = vld [vmem:[#allocation61_spill] sm:$0xff] }
 0x2ff   : > { %v4066_v29 = vpop.eup %4065  ;;  %4079 = vrcp.f32 %v2042_v53  ;;  %v2364_v12 = vpack.c.bf16 %v2286_v2, %v2284_v49  ;;  %v3590_v52 = vpack.c.bf16 %v2286_v2, %v2285_v34  ;;  %v2363_v62 = vpack.c.bf16 %v2285_v34, %v2283_v1  ;;  %v7081_v49 = vld [vmem:[#allocation69_spill] sm:$0xff]  ;;  %v7082_v1 = vld [vmem:[#allocation82_spill] sm:$0xff] }
 0x300   : > { %v4068_v39 = vpop.eup %4067  ;;  %2778 = vst.msk [vmem:[%s5759_s8 + $0x160] sm:$0xff] %vm5750_vm4, %v3569_v5  ;;  %v2280_v54 = vmul.f32 %v4066_v29, %v7079_v8  ;;  %v2279_v26 = vmul.f32 %v4066_v29, %v7080_v4  ;;  %v7090_v8 = vld [vmem:[#allocation74_spill] sm:$0xff] }
 0x301   : > { %3013 = vmatpush1.bf16.xpose.msra.mxu0 %v2345_v13  ;;  %3506 = vmatprep.subr.msk.bf16.mxu1 %vm1074_vm1, %v2364_v12  ;;  %v2030_v9 = vpop.xlane.xlu0 %2029  ;;  %2799 = vst.msk [vmem:[%s5759_s8 + $0x208] sm:$0xff] %vm5750_vm4, %v3590_v52  ;;  %v1962_v25 = vpop.xlane.xlu1 %1961  ;;  %v2246_v0 = vmul.f32 %v4068_v39, %v7081_v49  ;;  %v2245_v43 = vmul.f32 %v4068_v39, %v7082_v1  ;;  %v7088_v12 = vld [vmem:[#allocation71_spill] sm:$0xff]  ;;  %v7089_v39 = vld [vmem:[#allocation73_spill] sm:$0xff] }
 0x302   : > { %4081 = vrcp.f32 %v2030_v9  ;;  %v3587_v14 = vpack.c.bf16 %v2280_v54, %v2279_v26 }
 0x303   : > { %v4070_v61 = vpop.eup %4069  ;;  %4083 = vrcp.f32 %v1962_v25  ;;  %v2344_v28 = vpack.c.bf16 %v2246_v0, %v2244_v59  ;;  %v3570_v50 = vpack.c.bf16 %v2246_v0, %v2245_v43  ;;  %v2343_v57 = vpack.c.bf16 %v2245_v43, %v2243_v10  ;;  %v7085_v59 = vld [vmem:[#allocation67_spill] sm:$0xff]  ;;  %v7087_v10 = vld [vmem:[#allocation80_spill] sm:$0xff]  ;;  %v7092_v43 = vld [vmem:[#allocation62_spill] sm:$0xff] }
 0x304   : > { %v4072_v41 = vpop.eup %4071  ;;  %3094 = vmatpush1.bf16.xpose.msra.mxu1 %v2363_v62  ;;  %2796 = vst.msk [vmem:[%s5759_s8 + $0x1f0] sm:$0xff] %vm5750_vm4, %v3587_v14  ;;  %v2240_v24 = vmul.f32 %v4070_v61, %v7083_v36  ;;  %v2239_v40 = vmul.f32 %v4070_v61, %v7084_v44  ;;  %v7091_v0 = vld [vmem:[#allocation68_spill] sm:$0xff] }
 0x305   : > { %3496 = vmatprep.subr.msk.bf16.mxu0 %vm1074_vm1, %v2344_v28  ;;  %2779 = vst.msk [vmem:[%s5759_s8 + $0x168] sm:$0xff] %vm5750_vm4, %v3570_v50  ;;  %v2034_v23 = vpop.xlane.xlu1 %2033  ;;  %v2282_v22 = vmul.f32 %v4072_v41, %v7085_v59  ;;  %v2281_v13 = vmul.f32 %v4072_v41, %v7086_v51  ;;  %v7093_v28 = vld [vmem:[#allocation59_spill] sm:$0xff]  ;;  %v7094_v41 = vld [vmem:[#allocation72_spill] sm:$0xff]  ;;  %v7095_v51 = vld [vmem:[#allocation65_spill] sm:$0xff] }
 0x306   : > { %4085 = vrcp.f32 %v2034_v23  ;;  %v3567_v53 = vpack.c.bf16 %v2240_v24, %v2239_v40 }
 0x307   : > { %v4074_v45 = vpop.eup %4073  ;;  %v2362_v2 = vpack.c.bf16 %v2282_v22, %v2280_v54  ;;  %v3588_v63 = vpack.c.bf16 %v2282_v22, %v2281_v13  ;;  %v2361_v5 = vpack.c.bf16 %v2281_v13, %v2279_v26 }
 0x308   : > { %v4076_v34 = vpop.eup %4075  ;;  %2776 = vst.msk [vmem:[%s5759_s8 + $0x150] sm:$0xff] %vm5750_vm4, %v3567_v53  ;;  %v2276_v29 = vmul.f32 %v4074_v45, %v7087_v10  ;;  %v2275_v52 = vmul.f32 %v4074_v45, %v7088_v12  ;;  %v7097_v45 = vld [vmem:[#allocation53_spill] sm:$0xff] }
 0x309   : > { %3015 = vmatpush1.bf16.xpose.msra.mxu0 %v2343_v57  ;;  %3507 = vmatprep.subr.msk.bf16.mxu1 %vm1074_vm1, %v2362_v2  ;;  %2797 = vst.msk [vmem:[%s5759_s8 + $0x1f8] sm:$0xff] %vm5750_vm4, %v3588_v63  ;;  %v2242_v62 = vmul.f32 %v4076_v34, %v7089_v39  ;;  %v2241_v54 = vmul.f32 %v4076_v34, %v7090_v8  ;;  %v7098_v63 = vld [vmem:[#allocation63_spill] sm:$0xff] }
 0x30a   : > { %v3585_v4 = vpack.c.bf16 %v2276_v29, %v2275_v52 }
 0x30b   : > { %v4078_v26 = vpop.eup %4077  ;;  %v2342_v9 = vpack.c.bf16 %v2242_v62, %v2240_v24  ;;  %v3568_v25 = vpack.c.bf16 %v2242_v62, %v2241_v54  ;;  %v2341_v61 = vpack.c.bf16 %v2241_v54, %v2239_v40  ;;  %v7096_v40 = vld [vmem:[#allocation60_spill] sm:$0xff]  ;;  %v7100_v62 = vld [vmem:[#allocation51_spill] sm:$0xff] }
 0x30c   : > { %v4080_v49 = vpop.eup %4079  ;;  %3096 = vmatpush1.bf16.xpose.msra.mxu1 %v2361_v5  ;;  %2794 = vst.msk [vmem:[%s5759_s8 + $0x1e0] sm:$0xff] %vm5750_vm4, %v3585_v4  ;;  %v2236_v1 = vmul.f32 %v4078_v26, %v7091_v0  ;;  %v2235_v14 = vmul.f32 %v4078_v26, %v7092_v43 }
 0x30d   : > { %3497 = vmatprep.subr.msk.bf16.mxu0 %vm1074_vm1, %v2342_v9  ;;  %2777 = vst.msk [vmem:[%s5759_s8 + $0x158] sm:$0xff] %vm5750_vm4, %v3568_v25  ;;  %v2278_v50 = vmul.f32 %v4080_v49, %v7093_v28  ;;  %v2277_v36 = vmul.f32 %v4080_v49, %v7094_v41 }
 0x30e   : > { %v3565_v24 = vpack.c.bf16 %v2236_v1, %v2235_v14 }
 0x30f   : > { %v4082_v44 = vpop.eup %4081  ;;  %v2360_v57 = vpack.c.bf16 %v2278_v50, %v2276_v29  ;;  %v3586_v23 = vpack.c.bf16 %v2278_v50, %v2277_v36  ;;  %v2359_v22 = vpack.c.bf16 %v2277_v36, %v2275_v52  ;;  %v7099_v52 = vld [vmem:[#allocation66_spill] sm:$0xff] }
 0x310   : > { %v4084_v59 = vpop.eup %4083  ;;  %2774 = vst.msk [vmem:[%s5759_s8 + $0x140] sm:$0xff] %vm5750_vm4, %v3565_v24  ;;  %v2272_v13 = vmul.f32 %v4082_v44, %v7095_v51  ;;  %v2271_v53 = vmul.f32 %v4082_v44, %v7096_v40 }
 0x311   : > { %3017 = vmatpush1.bf16.xpose.msra.mxu0 %v2341_v61  ;;  %3508 = vmatprep.subr.msk.bf16.mxu1 %vm1074_vm1, %v2360_v57  ;;  %2795 = vst.msk [vmem:[%s5759_s8 + $0x1e8] sm:$0xff] %vm5750_vm4, %v3586_v23  ;;  %v2238_v2 = vmul.f32 %v4084_v59, %v7097_v45  ;;  %v2237_v34 = vmul.f32 %v4084_v59, %v7098_v63 }
 0x312   : > { %v3583_v5 = vpack.c.bf16 %v2272_v13, %v2271_v53 }
 0x313   : > { %v4086_v10 = vpop.eup %4085  ;;  %v2340_v29 = vpack.c.bf16 %v2238_v2, %v2236_v1  ;;  %v3566_v12 = vpack.c.bf16 %v2238_v2, %v2237_v34  ;;  %v2339_v54 = vpack.c.bf16 %v2237_v34, %v2235_v14 }
 0x314   : > { %3098 = vmatpush1.bf16.xpose.msra.mxu1 %v2359_v22  ;;  %v2274_v39 = vmul.f32 %v4086_v10, %v7099_v52  ;;  %v2273_v8 = vmul.f32 %v4086_v10, %v7100_v62  ;;  %2792 = vst.msk [vmem:[%s5759_s8 + $0x1d0] sm:$0xff] %vm5750_vm4, %v3583_v5 }
 0x315   : > { %3498 = vmatprep.subr.msk.bf16.mxu0 %vm1074_vm1, %v2340_v29  ;;  %2775 = vst.msk [vmem:[%s5759_s8 + $0x148] sm:$0xff] %vm5750_vm4, %v3566_v12 }
 0x316   : > { %v2358_v4 = vpack.c.bf16 %v2274_v39, %v2272_v13  ;;  %v3584_v26 = vpack.c.bf16 %v2274_v39, %v2273_v8  ;;  %v2357_v9 = vpack.c.bf16 %v2273_v8, %v2271_v53 }
 0x318   : > { %3509 = vmatprep.subr.msk.bf16.mxu1 %vm1074_vm1, %v2358_v4  ;;  %2793 = vst.msk [vmem:[%s5759_s8 + $0x1d8] sm:$0xff] %vm5750_vm4, %v3584_v26 }
 0x319   : > { %3019 = vmatpush1.bf16.xpose.msra.mxu0 %v2339_v54 }
 0x31c   : > { %3100 = vmatpush1.bf16.xpose.msra.mxu1 %v2357_v9 }
 0x335   : > { %v1950_v25 = vpop.xlane.xlu0 %1949 }
 0x336   : > { %4087 = vrcp.f32 %v1950_v25 }
 0x339   : > { %v2022_v49 = vpop.xlane.xlu0 %2021 }
 0x33a   : > { %4089 = vrcp.f32 %v2022_v49 }
 0x33b   : > { %v1954_v0 = vpop.xlane.xlu1 %1953 }
 0x33c   : > { %4091 = vrcp.f32 %v1954_v0 }
 0x33f   : > { %v2026_v1 = vpop.xlane.xlu1 %2025 }
 0x340   : > { %4093 = vrcp.f32 %v2026_v1 }
 0x343   : > { %v4088_v43 = vpop.eup %4087 }
 0x344   : > { %v2232_v14 = vmul.f32 %v4088_v43, %v5915_v30  ;;  %v2231_v61 = vmul.f32 %v4088_v43, %v5912_v37 }
 0x345   : > { %v1942_v28 = vpop.xlane.xlu0 %1941 }
 0x346   : > { %4095 = vrcp.f32 %v1942_v28  ;;  %v3563_v50 = vpack.c.bf16 %v2232_v14, %v2231_v61 }
 0x347   : > { %v4090_v41 = vpop.eup %4089 }
 0x348   : > { %2772 = vst.msk [vmem:[%s5759_s8 + $0x130] sm:$0xff] %vm5750_vm4, %v3563_v50  ;;  %v2268_v24 = vmul.f32 %v4090_v41, %v5933_v31  ;;  %v2267_v44 = vmul.f32 %v4090_v41, %v5929_v33 }
 0x349   : > { %v4092_v36 = vpop.eup %4091  ;;  %v2014_v57 = vpop.xlane.xlu0 %2013 }
 0x34a   : > { %v2234_v23 = vmul.f32 %v4092_v36, %v5943_v18  ;;  %v2233_v30 = vmul.f32 %v4092_v36, %v5937_v11  ;;  %4097 = vrcp.f32 %v2014_v57  ;;  %v3581_v59 = vpack.c.bf16 %v2268_v24, %v2267_v44 }
 0x34b   : > { %v1946_v37 = vpop.xlane.xlu1 %1945  ;;  %v4176_v57 = vmov 1983009808  }
 0x34c   : > { %4099 = vrcp.f32 %v1946_v37  ;;  %v2338_v22 = vpack.c.bf16 %v2234_v23, %v2232_v14  ;;  %v2337_v51 = vpack.c.bf16 %v2233_v30, %v2231_v61  ;;  %v3564_v13 = vpack.c.bf16 %v2234_v23, %v2233_v30  ;;  %2790 = vst.msk [vmem:[%s5759_s8 + $0x1c0] sm:$0xff] %vm5750_vm4, %v3581_v59 }
 0x34d   : > { %v4094_v40 = vpop.eup %4093  ;;  %v3148_v23 = vunpack.c.l.s4 %v4176_v57 }
 0x34e   : > { %3499 = vmatprep.subr.msk.bf16.mxu0 %vm1074_vm1, %v2338_v22  ;;  %2773 = vst.msk [vmem:[%s5759_s8 + $0x138] sm:$0xff] %vm5750_vm4, %v3564_v13  ;;  %v2270_v33 = vmul.f32 %v4094_v40, %v5958_v19  ;;  %v2269_v31 = vmul.f32 %v4094_v40, %v5955_v21 }
 0x34f   : > { %3021 = vmatpush1.bf16.xpose.msra.mxu0 %v2337_v51  ;;  %v2018_v11 = vpop.xlane.xlu1 %2017  ;;  %v3149_v30 = vunpack.c.0.s8 %v3148_v23 }
 0x350   : > { %4101 = vrcp.f32 %v2018_v11  ;;  %v2356_v18 = vpack.c.bf16 %v2270_v33, %v2268_v24  ;;  %v2355_v53 = vpack.c.bf16 %v2269_v31, %v2267_v44  ;;  %v3582_v45 = vpack.c.bf16 %v2270_v33, %v2269_v31 }
 0x352   : > { %3510 = vmatprep.subr.msk.bf16.mxu1 %vm1074_vm1, %v2356_v18  ;;  %2791 = vst.msk [vmem:[%s5759_s8 + $0x1c8] sm:$0xff] %vm5750_vm4, %v3582_v45 }
 0x353   : > { %3102 = vmatpush1.bf16.xpose.msra.mxu1 %v2355_v53  ;;  %v4096_v2 = vpop.eup %4095 }
 0x354   : > { %v2228_v34 = vmul.f32 %v4096_v2, %v6006_v38  ;;  %v2227_v19 = vmul.f32 %v4096_v2, %v5999_v16 }
 0x355   : > { %v2006_v63 = vpop.xlane.xlu0 %2005 }
 0x356   : > { %4103 = vrcp.f32 %v2006_v63  ;;  %v3561_v21 = vpack.c.bf16 %v2228_v34, %v2227_v19 }
 0x357   : > { %v4098_v5 = vpop.eup %4097 }
 0x358   : > { %2770 = vst.msk [vmem:[%s5759_s8 + $0x120] sm:$0xff] %vm5750_vm4, %v3561_v21  ;;  %v2264_v12 = vmul.f32 %v4098_v5, %v6033_v48  ;;  %v2263_v52 = vmul.f32 %v4098_v5, %v6026_v47 }
 0x359   : > { %v4100_v10 = vpop.eup %4099  ;;  %v2078_v29 = vpop.xlane.xlu0 %2077 }
 0x35a   : > { %4105 = vrcp.f32 %v2078_v29  ;;  %v2230_v39 = vmul.f32 %v4100_v10, %v6043_v32  ;;  %v2229_v38 = vmul.f32 %v4100_v10, %v6037_v27  ;;  %v3579_v62 = vpack.c.bf16 %v2264_v12, %v2263_v52 }
 0x35b   : > { %v2010_v16 = vpop.xlane.xlu1 %2009 }
 0x35c   : > { %4107 = vrcp.f32 %v2010_v16  ;;  %v2336_v8 = vpack.c.bf16 %v2230_v39, %v2228_v34  ;;  %v2335_v54 = vpack.c.bf16 %v2229_v38, %v2227_v19  ;;  %v3562_v4 = vpack.c.bf16 %v2230_v39, %v2229_v38  ;;  %2788 = vst.msk [vmem:[%s5759_s8 + $0x1b0] sm:$0xff] %vm5750_vm4, %v3579_v62 }
 0x35d   : > { %v4102_v26 = vpop.eup %4101 }
 0x35e   : > { %3500 = vmatprep.subr.msk.bf16.mxu0 %vm1074_vm1, %v2336_v8  ;;  %2771 = vst.msk [vmem:[%s5759_s8 + $0x128] sm:$0xff] %vm5750_vm4, %v3562_v4  ;;  %v2266_v47 = vmul.f32 %v4102_v26, %v6058_v6  ;;  %v2265_v48 = vmul.f32 %v4102_v26, %v6055_v46 }
 0x35f   : > { %3023 = vmatpush1.bf16.xpose.msra.mxu0 %v2335_v54  ;;  %v2082_v27 = vpop.xlane.xlu1 %2081 }
 0x360   : > { %4109 = vrcp.f32 %v2082_v27  ;;  %v2354_v32 = vpack.c.bf16 %v2266_v47, %v2264_v12  ;;  %v2353_v9 = vpack.c.bf16 %v2265_v48, %v2263_v52  ;;  %v3580_v25 = vpack.c.bf16 %v2266_v47, %v2265_v48 }
 0x362   : > { %3511 = vmatprep.subr.msk.bf16.mxu1 %vm1074_vm1, %v2354_v32  ;;  %2789 = vst.msk [vmem:[%s5759_s8 + $0x1b8] sm:$0xff] %vm5750_vm4, %v3580_v25 }
 0x363   : > { %v4104_v49 = vpop.eup %4103  ;;  %3104 = vmatpush1.bf16.xpose.msra.mxu1 %v2353_v9 }
 0x364   : > { %v2260_v0 = vmul.f32 %v4104_v49, %v6081_v17  ;;  %v2259_v6 = vmul.f32 %v4104_v49, %v6077_v20 }
 0x366   : > { %v3577_v46 = vpack.c.bf16 %v2260_v0, %v2259_v6 }
 0x367   : > { %v4106_v1 = vpop.eup %4105 }
 0x368   : > { %2786 = vst.msk [vmem:[%s5759_s8 + $0x1a0] sm:$0xff] %vm5750_vm4, %v3577_v46  ;;  %v2296_v43 = vmul.f32 %v4106_v1, %v6099_v35  ;;  %v2295_v14 = vmul.f32 %v4106_v1, %v6097_v56 }
 0x369   : > { %v4108_v61 = vpop.eup %4107 }
 0x36a   : > { %v2262_v28 = vmul.f32 %v4108_v61, %v6105_v7  ;;  %v2261_v50 = vmul.f32 %v4108_v61, %v6101_v42  ;;  %v3595_v41 = vpack.c.bf16 %v2296_v43, %v2295_v14 }
 0x36c   : > { %v2352_v17 = vpack.c.bf16 %v2262_v28, %v2260_v0  ;;  %v2351_v36 = vpack.c.bf16 %v2261_v50, %v2259_v6  ;;  %v3578_v20 = vpack.c.bf16 %v2262_v28, %v2261_v50  ;;  %2804 = vst.msk [vmem:[%s5759_s8 + $0x230] sm:$0xff] %vm5750_vm4, %v3595_v41 }
 0x36d   : > { %v4110_v24 = vpop.eup %4109 }
 0x36e   : > { %3501 = vmatprep.subr.msk.bf16.mxu0 %vm1074_vm1, %v2352_v17  ;;  %2787 = vst.msk [vmem:[%s5759_s8 + $0x1a8] sm:$0xff] %vm5750_vm4, %v3578_v20  ;;  %v2298_v56 = vmul.f32 %v4110_v24, %v6115_v58  ;;  %v2297_v35 = vmul.f32 %v4110_v24, %v6110_v55  ;;  %v3150_v58 = vlaneseq }
 0x36f   : > { %3039 = vmatpush2.bf16.xpose.msra.mxu0 %v2351_v36 }
 0x370   : > { %v2370_v42 = vpack.c.bf16 %v2298_v56, %v2296_v43  ;;  %v2369_v7 = vpack.c.bf16 %v2297_v35, %v2295_v14  ;;  %v3596_v44 = vpack.c.bf16 %v2298_v56, %v2297_v35  ;;  %v3151_v55 = vshrl.u32 %v3150_v58, 7 }
 0x372   : > { %3512 = vmatprep.subr.msk.bf16.mxu1 %vm1074_vm1, %v2370_v42  ;;  %2805 = vst.msk [vmem:[%s5759_s8 + $0x238] sm:$0xff] %vm5750_vm4, %v3596_v44  ;;  %v3152_v59 = vsub.s32 %v3149_v30, %v3151_v55 }
 0x373   : > { %3120 = vmatpush2.bf16.xpose.msra.mxu1 %v2369_v7 }
 0x376   : > { %3041 = vmatmul.mubr.bf16.vlgmr.msra.gmra.mxu0 %v6221_v15 }
 0x37a   : > { %3122 = vmatmul.mubr.bf16.vlgmr.msra.gmra.mxu1 %v6239_v60 }
 0x3b0   : > { %v2880_v37 = vpop.f32.mrf.mxu0 }
 0x3b2   : > { %v2882_v22 = vpop.f32.mrf.mxu0 }
 0x3b3   : > { %v2961_v3 = vpop.f32.mrf.mxu1  ;;  %v3514_v51 = vpack.c.bf16 %v2882_v22, %v2880_v37 }
 0x3b4   : > { %v2884_v60 = vpop.f32.mrf.mxu0 }
 0x3b5   : > { %v3153_v13 = vrot.slane %v3514_v51, %v3152_v59  ;;  %v2963_v40 = vpop.f32.mrf.mxu1 }
 0x3b6   : > { %v3515_v33 = vpack.c.bf16 %v2963_v40, %v2961_v3  ;;  %v2885_v31 = vpop.f32.mrf.mxu0 }
 0x3b7   : > { %3185 = vst.msk [vmem:[%s6407_s11] sm:$0xf] %vm6409_vm7, %v3153_v13  ;;  %v2965_v11 = vpop.f32.mrf.mxu1 }
 0x3b8   : > { %v3161_v18 = vrot.slane %v3515_v33, %v3152_v59 }
 0x3b9   : > { %v2966_v53 = vpop.f32.mrf.mxu1 }
 0x3ba   : > { %3186 = vst.msk [vmem:[%s6407_s11 + $0x4] sm:$0xf] %vm6409_vm7, %v3161_v18 }
 0x3bb   : > { %4126 = shalt.err (!%p4123_p3)
}
 0x3bc   : > { %s4127_s30 = scalar_lea.hbm %s6424_s25, 9216  ;;  %s4131_s6 = scalar_lea.hbm %s6479_s3, 18432 }
 0x3bd   : > { %p4128_p4 = scmp.ne.s32.totalorder %s6424_s25, %s4127_s30  ;;  %p4132_p9 = scmp.lt.s32.totalorder %s6424_s25, %s6479_s3 }
 0x3be   : > { %p4133_p10 = scmp.lt.s32.totalorder %s4131_s6, %s4127_s30 }
 0x3bf   : > { %p4129_p7 = pnand %p4128_p4, %p4238_p5 }
 0x3c0   : > { %p4134_p11 = por %p4133_p10, %p4132_p9 }
 0x3c1   : > { %p4130_p8 = pneg %p4129_p7 }
 0x3c3   : > { %p4135_p12 = pnand %p4134_p11, %p4130_p8 }
 0x3c5   : > { %4138 = shalt.err (!%p4135_p12)
}
 0x3c6   : > { %s4178_s9 = smov 128   ;;  %s4179_s10 = smov 8  }
 0x3c7   : > { %3600 = dma.vmem_to_hbm [thread:$0]  (%p4238_p5), %s6426_s19, 9216, %s6424_s25, %s6430_s26, %s4178_s9, %s4178_s9, %s4179_s10  }
 0x436   : > { %v3042_v45 = vpop.f32.mrf.mxu0 }
 0x438   : > { %v3044_v2 = vpop.f32.mrf.mxu0 }
 0x439   : > { %v3516_v63 = vpack.c.bf16 %v3044_v2, %v3042_v45 }
 0x43a   : > { %v3046_v34 = vpop.f32.mrf.mxu0  ;;  %v3123_v19 = vpop.f32.mrf.mxu1 }
 0x43b   : > { %v3169_v21 = vrot.slane %v3516_v63, %v3152_v59 }
 0x43c   : > { %v3047_v5 = vpop.f32.mrf.mxu0  ;;  %v3125_v10 = vpop.f32.mrf.mxu1 }
 0x43d   : > { %3187 = vst.msk [vmem:[%s6407_s11 + $0x8] sm:$0xf] %vm6409_vm7, %v3169_v21  ;;  %v3517_v29 = vpack.c.bf16 %v3125_v10, %v3123_v19 }
 0x43e   : > { %v3127_v12 = vpop.f32.mrf.mxu1 }
 0x43f   : > { %v3177_v52 = vrot.slane %v3517_v29, %v3152_v59 }
 0x440   : > { %v3128_v39 = vpop.f32.mrf.mxu1 }
 0x441   : > { %3188 = vst.msk [vmem:[%s6407_s11 + $0xc] sm:$0xf] %vm6409_vm7, %v3177_v52 }
 0x442 PF: > { %p3606_p5 = scmp.ge.s32.totalorder %s4173_s15, 2  ;;  %s3238_s22 = sand.u32 1, %s4161_s12  }
 0x443   : > { %s3239_s17 = scalar_lea.sflag [#allocation3], %s3238_s22 }
 0x444   : > { %p3603_p13 = pnand %p3606_p5, %p4242_p6 }
 0x446   : > { %p3604_p0 = pneg %p3603_p13 }
 0x448   : > { %4156 = dma.done.wait (%p3604_p0), %s3239_s17, 9216  }
 0x449   : > { %4158 = vsyncadd (%p3604_p0), %s3239_s17, 4294958080  ;;  %p14_p1 = scmp.ge.s32.totalorder %s4225_s18, 4   ;;  %s7103_s12 = smov %s4165_s13 }
 0x44a   : > { %s7104_s13 = smov %s4169_s14  ;;  %s7105_s14 = smov %s4236_s21 }
 0x44b   : > { %s7106_s15 = smov %s4225_s18  ;;  %16 = sbr.rel (!%p14_p1) target bundleno = 3 (0x3), region = 78 }
 0x450   :  { %3244 = vsyncpa [#allocation3], 1 }
 0x451   :  { %3246 = vsyncpa [#allocation3 + $0x1], 1 }

</bundles_post_ra>
